<compile_context>
chip_gen: v7x
topology: tpu7x:2x2x1
jax: 0.10.0
libtpu: 0.0.40
codegen_flags: <defaults>
</compile_context>

<pallas_src>
import math
from functools import partial

import jax
import jax.numpy as jnp
from jax.experimental import pallas as pl
from jax.experimental.pallas import tpu as pltpu

LANE = 128                       # TPU lane width; channels are padded to a multiple of this
_EPS = 1e-5
# Safe on every generation (v5e/v6e have 128 MiB physical VMEM, v7x has 64 MiB per TC) and well
# above the 16/32 MiB scoped defaults.
_VMEM_LIMIT = 48 * 1024 * 1024
_VMEM_BUDGET = 24 * 1024 * 1024  # what one grid step's estimated live set may grow to


def _round_up(x, m):
    return ((x + m - 1) // m) * m


def _pick_images_per_step(n, per_image_bytes, rows_per_image,
                          budget_bytes=_VMEM_BUDGET, max_rows=8192):
    """Largest divisor of n whose per-step VMEM estimate fits the budget (and whose matmul M
    stays reasonable) — fills the MXU M dimension without blowing v7x's 64 MiB VMEM."""
    best = 1
    for nb in range(1, n + 1):
        if n % nb:
            continue
        if nb * per_image_bytes > budget_bytes or nb * rows_per_image > max_rows:
            break
        best = nb
    return best


# ----------------------------- Pallas kernels -------------------------------

def _input_stats_kernel(x_ref, pstats_ref):
    """Per-step partial (sum, sum-of-squares) of the raw NetworkBlock input (feeds bn1 of the
    first BasicBlock).  Rows 0/1 of the 8-row stat block hold sum / sumsq, the rest stay 0."""
    x = x_ref[...].astype(jnp.float32)                       # (nb, H, W, C)
    xf = x.reshape(-1, x.shape[-1])
    ps = jnp.sum(xf, axis=0, keepdims=True)
    pss = jnp.sum(xf * xf, axis=0, keepdims=True)
    pstats_ref[...] = jnp.zeros_like(pstats_ref)
    pstats_ref[0:1, 0:1, :] = ps.reshape(1, 1, -1)
    pstats_ref[0:1, 1:2, :] = pss.reshape(1, 1, -1)


def _fused_conv_kernel(*refs, mode, s, Hs, H, W, Ho, Wo, nb, count_in, eps,
                       has_sc, has_res):
    """Fused:  finalize input BN stats (fold gamma/beta)  ->  BN + ReLU
            -> 3x3 conv (stride s) as 9 accumulating bf16 MXU dots
            [+ 1x1 shortcut conv on the same activation] [+ residual add]
            -> partial batch stats of the output (for the next BN).

    mode == "pad":    x_ref is the raw (nb, H, W, Cin) activation; the 1-pixel halo is built in a
                      zero-filled VMEM scratch (sublane-aligned interior store), stride 1.
    mode == "planes": x_ref is the zero-padded, stride-parity-rearranged (nb, s*s*Hs, Ws, Cin)
                      input (+ validity mask) so every strided tap is a contiguous window.
    """
    it = iter(refs)
    x_ref = next(it)
    mask_ref = next(it) if mode == "planes" else None
    pst_ref = next(it)                   # (steps_in, 8, Cin) partial stats of this conv's input
    g_ref = next(it)                     # (1, Cin)  bn gamma
    b_ref = next(it)                     # (1, Cin)  bn beta
    w_ref = next(it)                     # (9, Cin, Cout) bf16, tap-major
    wsc_ref = next(it) if has_sc else None       # (Cin, Cout) bf16
    res_ref = next(it) if has_res else None      # (nb, Ho*Wo, Cout)
    out_ref = next(it)                   # (nb, Ho*Wo, Cout)
    sc_ref = next(it) if has_sc else None
    pstats_ref = next(it)                # (1, 8, Cout) partial stats of the main output
    pad_ref = next(it) if mode == "pad" else None    # VMEM (nb, H+2, W+9, Cin) f32

    cin = x_ref.shape[-1]
    cout = out_ref.shape[-1]
    rows = nb * Ho * Wo

    # -- finalize this conv's input BN (training-mode batch stats) and fold into an affine --
    # NOTE: E[x^2]-E[x]^2 in f32; kept identical to the previous (verified) numerics.
    pst = pst_ref[...].astype(jnp.float32)
    psum = jnp.sum(pst[:, 0, :], axis=0, keepdims=True)           # (1, Cin)
    psumsq = jnp.sum(pst[:, 1, :], axis=0, keepdims=True)
    mean = psum / count_in
    var = jnp.maximum(psumsq / count_in - mean * mean, 0.0)       # biased, like torch training BN
    scale = g_ref[...].astype(jnp.float32) * jax.lax.rsqrt(var + eps)
    bias = b_ref[...].astype(jnp.float32) - mean * scale
    scale4 = scale.reshape(1, 1, 1, cin)
    bias4 = bias.reshape(1, 1, 1, cin)

    x = x_ref[...].astype(jnp.float32)
    a = jnp.maximum(x * scale4 + bias4, 0.0)                      # BN + ReLU, f32

    if mode == "pad":
        # Build the 1-pixel halo in VMEM: zero post-activation padding, no mask multiply and no
        # XLA-side pad round trip.  The interior lands at sublane offset 8 (aligned store).
        pad_ref[...] = jnp.zeros_like(pad_ref)
        pad_ref[:, 1:H + 1, 8:8 + W, :] = a
        ap = pad_ref[...]
    else:
        # Parity planes were zero-padded before rearrangement; re-zero the ring post-ReLU.
        a = a * mask_ref[...]

    acc = jnp.zeros((rows, cout), jnp.float32)
    centre = None
    for dy in range(3):
        for dx in range(3):
            if mode == "pad":
                t = ap[:, dy:dy + H, 7 + dx:7 + dx + W, :]        # (nb, H, W, Cin)
            else:
                p = (dy % s) * s + (dx % s)
                r0, c0 = dy // s, dx // s
                t = a[:, p * Hs + r0: p * Hs + r0 + Ho, c0: c0 + Wo, :]
            tap = t.reshape(rows, cin).astype(jnp.bfloat16)       # cast right before the MXU
            if dy == 1 and dx == 1:
                centre = tap
            acc = acc + jnp.dot(tap, w_ref[3 * dy + dx],
                                preferred_element_type=jnp.float32)

    if has_res:
        acc = acc + res_ref[...].astype(jnp.float32).reshape(rows, cout)  # fused residual add
    out_ref[...] = acc.reshape(nb, Ho * Wo, cout).astype(out_ref.dtype)

    if has_sc:
        # 1x1 stride-s shortcut conv == centre tap of the same normalized activation.
        sc = jnp.dot(centre, wsc_ref[...], preferred_element_type=jnp.float32)
        sc_ref[...] = sc.reshape(nb, Ho * Wo, cout).astype(sc_ref.dtype)

    # Partial batch statistics of the main output (finalized in the consumer's prologue).
    ps = jnp.sum(acc, axis=0, keepdims=True)
    pss = jnp.sum(acc * acc, axis=0, keepdims=True)
    pstats_ref[...] = jnp.zeros_like(pstats_ref)
    pstats_ref[0:1, 0:1, :] = ps.reshape(1, 1, cout)
    pstats_ref[0:1, 1:2, :] = pss.reshape(1, 1, cout)


# ------------------------------ wrappers -------------------------------------

def _compiler_params():
    return pltpu.CompilerParams(dimension_semantics=("parallel",),
                                vmem_limit_bytes=_VMEM_LIMIT)


def _conv_input_planes(x_nhwc, stride):
    """Zero-pad (pad=1) and rearrange into stride-parity planes so every 3x3 tap of a stride-`s`
    conv is a contiguous (Ho, Wo) window.  Pure layout plumbing (plain JAX), only used for the
    single strided layer of the NetworkBlock."""
    N, H, W, C = x_nhwc.shape
    s = stride
    Ho = (H - 1) // s + 1
    Wo = (W - 1) // s + 1
    Hp2 = ((H + 2 + s - 1) // s) * s
    Wp2 = ((W + 2 + s - 1) // s) * s
    xp = jnp.pad(x_nhwc, ((0, 0), (1, Hp2 - H - 1), (1, Wp2 - W - 1), (0, 0)))
    mp = jnp.pad(jnp.ones((1, H, W, 1), jnp.float32),
                 ((0, 0), (1, Hp2 - H - 1), (1, Wp2 - W - 1), (0, 0)))
    Hs, Ws = Hp2 // s, Wp2 // s

    def to_planes(t):
        nb_, cb = t.shape[0], t.shape[-1]
        t = t.reshape(nb_, Hs, s, Ws, s, cb)
        t = jnp.transpose(t, (0, 2, 4, 1, 3, 5))                 # (N, s, s, Hs, Ws, C)
        return t.reshape(nb_, s * s * Hs, Ws, cb)

    planes = to_planes(xp)                                       # (N, s*s*Hs, Ws, C)
    mask = to_planes(mp)[0]                                      # (s*s*Hs, Ws, 1)
    return planes, mask, Hs, Ws, Ho, Wo


def input_batch_stats(x_nhwc):
    """Per-step partial BN statistics of the very first block input (grid parallel over images)."""
    N, H, W, C = x_nhwc.shape
    per_img = 4 * H * W * C * 3
    nb = _pick_images_per_step(N, per_img, H * W)
    steps = N // nb
    pstats = pl.pallas_call(
        _input_stats_kernel,
        grid=(steps,),
        in_specs=[pl.BlockSpec((nb, H, W, C), lambda n: (n, 0, 0, 0))],
        out_specs=pl.BlockSpec((1, 8, C), lambda n: (n, 0, 0)),
        out_shape=jax.ShapeDtypeStruct((steps, 8, C), jnp.float32),
        compiler_params=_compiler_params(),
    )(x_nhwc)
    return pstats, N * H * W


def fused_bn_relu_conv3x3(x_nhwc, pstats_in, count_in, gamma, beta, w9, *, stride,
                          w_sc=None, residual=None, eps=_EPS):
    """relu(bn(x)) -> 3x3 conv (stride) [+ 1x1 shortcut conv] [+ residual add].
    Returns (out, shortcut_or_None, per-step partial stats of out, element count of out)."""
    N, H, W, Cin = x_nhwc.shape
    Cout = w9.shape[-1]
    has_sc = w_sc is not None
    has_res = residual is not None

    if stride == 1:
        mode, Ho, Wo, Hs = "pad", H, W, 0
        x_in, mask = x_nhwc, None
        in_rows, in_cols = H, W
    else:
        mode = "planes"
        x_in, mask, Hs, Ws, Ho, Wo = _conv_input_planes(x_nhwc, stride)
        in_rows, in_cols = x_in.shape[1], x_in.shape[2]
    HW = Ho * Wo

    # Rough per-image VMEM estimate: input (double-buffered) + f32 activation + halo scratch
    # + tap copy + f32 accumulator + out/sc/res blocks (double-buffered).
    per_img = (4 * in_rows * in_cols * Cin * 4
               + 4 * (H + 2) * (W + 9) * Cin
               + 4 * HW * Cout * (2 + 2 * (1 + int(has_sc) + int(has_res))))
    nb = _pick_images_per_step(N, per_img, HW)
    steps = N // nb

    in_arrays = [x_in]
    in_specs = [pl.BlockSpec((nb,) + tuple(x_in.shape[1:]), lambda n: (n, 0, 0, 0))]
    if mode == "planes":
        in_arrays.append(mask)
        in_specs.append(pl.BlockSpec(mask.shape, lambda n: (0, 0, 0)))
    in_arrays += [pstats_in, gamma, beta, w9]
    in_specs += [pl.BlockSpec(pstats_in.shape, lambda n: (0, 0, 0)),
                 pl.BlockSpec((1, Cin), lambda n: (0, 0)),
                 pl.BlockSpec((1, Cin), lambda n: (0, 0)),
                 pl.BlockSpec(w9.shape, lambda n: (0, 0, 0))]
    if has_sc:
        in_arrays.append(w_sc)
        in_specs.append(pl.BlockSpec(w_sc.shape, lambda n: (0, 0)))
    if has_res:
        in_arrays.append(residual)
        in_specs.append(pl.BlockSpec((nb, HW, Cout), lambda n: (n, 0, 0)))

    out_shape = [jax.ShapeDtypeStruct((N, HW, Cout), x_nhwc.dtype)]
    out_specs = [pl.BlockSpec((nb, HW, Cout), lambda n: (n, 0, 0))]
    if has_sc:
        out_shape.append(jax.ShapeDtypeStruct((N, HW, Cout), x_nhwc.dtype))
        out_specs.append(pl.BlockSpec((nb, HW, Cout), lambda n: (n, 0, 0)))
    out_shape.append(jax.ShapeDtypeStruct((steps, 8, Cout), jnp.float32))
    out_specs.append(pl.BlockSpec((1, 8, Cout), lambda n: (n, 0, 0)))

    scratch = []
    if mode == "pad":
        scratch.append(pltpu.VMEM((nb, H + 2, W + 9, Cin), jnp.float32))

    kernel = partial(_fused_conv_kernel, mode=mode, s=stride, Hs=Hs, H=H, W=W,
                     Ho=Ho, Wo=Wo, nb=nb, count_in=float(count_in), eps=eps,
                     has_sc=has_sc, has_res=has_res)
    results = pl.pallas_call(
        kernel,
        grid=(steps,),
        in_specs=in_specs,
        out_specs=tuple(out_specs),
        out_shape=tuple(out_shape),
        scratch_shapes=tuple(scratch),
        compiler_params=_compiler_params(),
    )(*in_arrays)

    if has_sc:
        h, sc, pstats_out = results
        sc = sc.reshape(N, Ho, Wo, Cout)
    else:
        h, pstats_out = results
        sc = None
    return h.reshape(N, Ho, Wo, Cout), sc, pstats_out, N * HW


# --------------------------- module forward ----------------------------------

def basic_block_forward(x_nhwc, pstats_in, count_in, p, stride, equal_in_out, eps=_EPS):
    # WRN (pre-activation) BasicBlock forward, dropRate == 0.0
    # TODO(synk): dropout branch (dropRate > 0) not implemented; default dropRate=0.0 is a no-op.
    assert not (equal_in_out and stride != 1), \
        "identity shortcut with stride>1 is not a valid WRN config"
    N = x_nhwc.shape[0]

    # kernel A: bn1+relu1 folded into conv1 (strided) [+ 1x1 shortcut conv]; emits bn2 stats
    h, sc, pst_h, cnt_h = fused_bn_relu_conv3x3(
        x_nhwc, pstats_in, count_in, p["bn1_g"], p["bn1_b"], p["w1"],
        stride=stride, w_sc=None if equal_in_out else p["w_sc"], eps=eps)
    _, Ho, Wo, Cout = h.shape
    res = x_nhwc if equal_in_out else sc                        # (N, Ho, Wo, Cout)

    # kernel B: bn2+relu2 folded into conv2 (stride 1) + residual add; emits next bn1 stats
    out, _, pst_o, cnt_o = fused_bn_relu_conv3x3(
        h, pst_h, cnt_h, p["bn2_g"], p["bn2_b"], p["w2"],
        stride=1, residual=res.reshape(N, Ho * Wo, Cout), eps=eps)
    return out, pst_o, cnt_o


def network_block_forward(x_nchw, layer_params, in_planes, out_planes, stride, eps=_EPS):
    cin_pad = _round_up(in_planes, LANE)
    x = jnp.transpose(x_nchw, (0, 2, 3, 1))       # NCHW -> NHWC (channels on the lane axis)
    x = jnp.pad(x, ((0, 0), (0, 0), (0, 0), (0, cin_pad - in_planes)))   # lane-dense channels
    pstats, count = input_batch_stats(x)          # bn1 partial stats for the first block
    for i, p in enumerate(layer_params):
        cin = in_planes if i == 0 else out_planes
        x, pstats, count = basic_block_forward(
            x, pstats, count, p, stride if i == 0 else 1, cin == out_planes, eps=eps)
    x = x[..., :out_planes]                       # drop the lane padding
    return jnp.transpose(x, (0, 3, 1, 2))         # NHWC -> NCHW


# --------------------------- parameter init ----------------------------------

def init_basic_block(key, cin, cout):
    cinp, coutp = _round_up(cin, LANE), _round_up(cout, LANE)
    k1, k2, k3 = jax.random.split(key, 3)
    std3 = math.sqrt(2.0 / (3 * 3 * cout))        # WRN-style init, deterministic via PRNGKey

    def pad_w9(w, cip, cop):
        # (3,3,ci,co) -> (9, cip, cop) bf16: row index 3*dy+dx; zero padding on both channel
        # axes keeps the lane-padded channels exactly zero through the whole block.
        ci, co = w.shape[2], w.shape[3]
        w = w.reshape(9, ci, co)
        return jnp.pad(w, ((0, 0), (0, cip - ci), (0, cop - co))).astype(jnp.bfloat16)

    def pad_vec(v, cp):
        return jnp.pad(v, ((0, 0), (0, cp - v.shape[-1])))

    p = {
        "bn1_g": pad_vec(jnp.ones((1, cin), jnp.float32), cinp),
        "bn1_b": jnp.zeros((1, cinp), jnp.float32),
        "w1": pad_w9(jax.random.normal(k1, (3, 3, cin, cout), jnp.float32) * std3, cinp, coutp),
        "bn2_g": pad_vec(jnp.ones((1, cout), jnp.float32), coutp),
        "bn2_b": jnp.zeros((1, coutp), jnp.float32),
        "w2": pad_w9(jax.random.normal(k2, (3, 3, cout, cout), jnp.float32) * std3, coutp, coutp),
    }
    if cin != cout:
        wsc = jax.random.normal(k3, (cin, cout), jnp.float32) * math.sqrt(2.0 / cout)
        p["w_sc"] = jnp.pad(wsc, ((0, cinp - cin), (0, coutp - cout))).astype(jnp.bfloat16)
    return p


if __name__ == "__main__":
    # NetworkBlock(nb_layers=2, in_planes=4, out_planes=8, block=BasicBlock, stride=2)
    nb_layers, in_planes, out_planes, stride = 2, 4, 8, 2

    key = jax.random.PRNGKey(0)
    kx, *kls = jax.random.split(key, 1 + nb_layers)
    layer_params = []
    for i, kl in enumerate(kls):
        cin = in_planes if i == 0 else out_planes
        layer_params.append(init_basic_block(kl, cin, out_planes))

    x = jax.random.normal(kx, (2, in_planes, 16, 16), jnp.float32)   # NCHW, like PyTorch

    fwd = jax.jit(partial(network_block_forward, in_planes=in_planes,
                          out_planes=out_planes, stride=stride))
    y = jax.block_until_ready(fwd(x, layer_params))
    assert y.shape == (2, out_planes, 16 // stride, 16 // stride), y.shape
    assert bool(jnp.all(jnp.isfinite(y)))
    print("KERNEL_OK")
</pallas_src>

<mosaic_0001>
module attributes {stable_mosaic.version = 11 : i64} {
  func.func @_input_stats_kernel(%arg0: i32, %arg1: memref<2x16x16x128xf32, #tpu.memory_space<vmem>>, %arg2: memref<1x8x128xf32, #tpu.memory_space<vmem>>) attributes {dimension_semantics = [#tpu.dimension_semantics<parallel>], iteration_bounds = array<i64: 1>, scalar_prefetch = 0 : i64, scratch_operands = 0 : i64, tpu.core_type = #tpu.core_type<tc>, window_params = [{transform_indices = @transform_0, window_bounds = array<i64: 2, 16, 16, 128>}, {transform_indices = @transform_1, window_bounds = array<i64: 1, 8, 128>}]} {
    %c0 = arith.constant 0 : index
    %c0_0 = arith.constant 0 : index
    %c0_1 = arith.constant 0 : index
    %c0_2 = arith.constant 0 : index
    %0 = vector.load %arg1[%c0, %c0_0, %c0_1, %c0_2] : memref<2x16x16x128xf32, #tpu.memory_space<vmem>>, vector<2x16x16x128xf32>
    %1 = vector.shape_cast %0 : vector<2x16x16x128xf32> to vector<512x128xf32>
    %cst = arith.constant dense<0.000000e+00> : vector<128xf32>
    %2 = vector.multi_reduction <add>, %1, %cst [0] : vector<512x128xf32> to vector<128xf32>
    %3 = vector.shape_cast %2 : vector<128xf32> to vector<1x128xf32>
    %4 = arith.mulf %1, %1 : vector<512x128xf32>
    %cst_3 = arith.constant dense<0.000000e+00> : vector<128xf32>
    %5 = vector.multi_reduction <add>, %4, %cst_3 [0] : vector<512x128xf32> to vector<128xf32>
    %6 = vector.shape_cast %5 : vector<128xf32> to vector<1x128xf32>
    %cst_4 = arith.constant 0.000000e+00 : f32
    %7 = vector.broadcast %cst_4 : f32 to vector<1x8x128xf32>
    %c0_5 = arith.constant 0 : index
    %c0_6 = arith.constant 0 : index
    %c0_7 = arith.constant 0 : index
    %8 = vector.load %arg2[%c0_5, %c0_6, %c0_7] : memref<1x8x128xf32, #tpu.memory_space<vmem>>, vector<1x8x128xf32>
    tpu.vector_store %arg2[%c0_5, %c0_6, %c0_7], %7 {strides = array<i32>} : memref<1x8x128xf32, #tpu.memory_space<vmem>>, vector<1x8x128xf32>,
    %9 = vector.shape_cast %3 : vector<1x128xf32> to vector<1x1x128xf32>
    %c0_8 = arith.constant 0 : index
    %c0_9 = arith.constant 0 : index
    %c0_10 = arith.constant 0 : index
    %10 = vector.load %arg2[%c0_8, %c0_9, %c0_10] : memref<1x8x128xf32, #tpu.memory_space<vmem>>, vector<1x1x128xf32>
    tpu.vector_store %arg2[%c0_8, %c0_9, %c0_10], %9 {strides = array<i32>} : memref<1x8x128xf32, #tpu.memory_space<vmem>>, vector<1x1x128xf32>,
    %11 = vector.shape_cast %6 : vector<1x128xf32> to vector<1x1x128xf32>
    %c0_11 = arith.constant 0 : index
    %c1 = arith.constant 1 : index
    %c0_12 = arith.constant 0 : index
    %12 = vector.load %arg2[%c0_11, %c1, %c0_12] : memref<1x8x128xf32, #tpu.memory_space<vmem>>, vector<1x1x128xf32>
    tpu.vector_store %arg2[%c0_11, %c1, %c0_12], %11 {strides = array<i32>} : memref<1x8x128xf32, #tpu.memory_space<vmem>>, vector<1x1x128xf32>,
    return
  }
  func.func @transform_0(%arg0: i32) -> (i32, i32, i32, i32) {
    %c0_i32 = arith.constant 0 : i32
    %c0_i32_0 = arith.constant 0 : i32
    %c0_i32_1 = arith.constant 0 : i32
    %c0_i32_2 = arith.constant 0 : i32
    return %arg0, %c0_i32, %c0_i32_0, %c0_i32_1 : i32, i32, i32, i32
  }
  func.func @transform_1(%arg0: i32) -> (i32, i32, i32) {
    %c0_i32 = arith.constant 0 : i32
    %c0_i32_0 = arith.constant 0 : i32
    %c0_i32_1 = arith.constant 0 : i32
    return %arg0, %c0_i32, %c0_i32_0 : i32, i32, i32
  }
}

module attributes {stable_mosaic.version = 11 : i64} {
  func.func @_fused_conv_kernel(%arg0: i32, %arg1: memref<2x8x8x128xf32, #tpu.memory_space<vmem>>, %arg2: memref<1x8x128xf32, #tpu.memory_space<vmem>>, %arg3: memref<1x128xf32, #tpu.memory_space<vmem>>, %arg4: memref<1x128xf32, #tpu.memory_space<vmem>>, %arg5: memref<9x128x128xbf16, #tpu.memory_space<vmem>>, %arg6: memref<2x64x128xf32, #tpu.memory_space<vmem>>, %arg7: memref<1x8x128xf32, #tpu.memory_space<vmem>>, %arg8: memref<2x10x17x128xf32, #tpu.memory_space<vmem>>) attributes {dimension_semantics = [#tpu.dimension_semantics<parallel>], iteration_bounds = array<i64: 1>, scalar_prefetch = 0 : i64, scratch_operands = 1 : i64, tpu.core_type = #tpu.core_type<tc>, window_params = [{transform_indices = @transform_0, window_bounds = array<i64: 2, 8, 8, 128>}, {pipeline_mode = #tpu.pipeline_mode<synchronous>, transform_indices = @transform_1, window_bounds = array<i64: 1, 8, 128>}, {pipeline_mode = #tpu.pipeline_mode<synchronous>, transform_indices = @transform_2, window_bounds = array<i64: 1, 128>}, {pipeline_mode = #tpu.pipeline_mode<synchronous>, transform_indices = @transform_3, window_bounds = array<i64: 1, 128>}, {pipeline_mode = #tpu.pipeline_mode<synchronous>, transform_indices = @transform_4, window_bounds = array<i64: 9, 128, 128>}, {transform_indices = @transform_5, window_bounds = array<i64: 2, 64, 128>}, {transform_indices = @transform_6, window_bounds = array<i64: 1, 8, 128>}]} {
    %c0 = arith.constant 0 : index
    %c0_0 = arith.constant 0 : index
    %c0_1 = arith.constant 0 : index
    %0 = vector.load %arg2[%c0, %c0_0, %c0_1] : memref<1x8x128xf32, #tpu.memory_space<vmem>>, vector<1x8x128xf32>
    %1 = vector.extract_strided_slice %0 {offsets = [0, 0, 0], sizes = [1, 1, 128], strides = [1, 1, 1]} : vector<1x8x128xf32> to vector<1x1x128xf32>
    %2 = vector.shape_cast %1 : vector<1x1x128xf32> to vector<1x128xf32>
    %cst = arith.constant dense<0.000000e+00> : vector<128xf32>
    %3 = vector.multi_reduction <add>, %2, %cst [0] : vector<1x128xf32> to vector<128xf32>
    %4 = vector.shape_cast %3 : vector<128xf32> to vector<1x128xf32>
    %5 = vector.extract_strided_slice %0 {offsets = [0, 1, 0], sizes = [1, 1, 128], strides = [1, 1, 1]} : vector<1x8x128xf32> to vector<1x1x128xf32>
    %6 = vector.shape_cast %5 : vector<1x1x128xf32> to vector<1x128xf32>
    %cst_2 = arith.constant dense<0.000000e+00> : vector<128xf32>
    %7 = vector.multi_reduction <add>, %6, %cst_2 [0] : vector<1x128xf32> to vector<128xf32>
    %8 = vector.shape_cast %7 : vector<128xf32> to vector<1x128xf32>
    %cst_3 = arith.constant 1.280000e+02 : f32
    %9 = vector.broadcast %cst_3 : f32 to vector<1x128xf32>
    %10 = arith.divf %4, %9 : vector<1x128xf32>
    %cst_4 = arith.constant 1.280000e+02 : f32
    %11 = vector.broadcast %cst_4 : f32 to vector<1x128xf32>
    %12 = arith.divf %8, %11 : vector<1x128xf32>
    %13 = arith.mulf %10, %10 : vector<1x128xf32>
    %14 = arith.subf %12, %13 : vector<1x128xf32>
    %cst_5 = arith.constant 0.000000e+00 : f32
    %15 = vector.broadcast %cst_5 : f32 to vector<1x128xf32>
    %16 = arith.maximumf %14, %15 : vector<1x128xf32>
    %c0_6 = arith.constant 0 : index
    %c0_7 = arith.constant 0 : index
    %17 = vector.load %arg3[%c0_6, %c0_7] : memref<1x128xf32, #tpu.memory_space<vmem>>, vector<1x128xf32>
    %cst_8 = arith.constant 9.99999974E-6 : f32
    %18 = vector.broadcast %cst_8 : f32 to vector<1x128xf32>
    %19 = arith.addf %16, %18 : vector<1x128xf32>
    %20 = math.rsqrt %19 : vector<1x128xf32>
    %21 = arith.mulf %17, %20 : vector<1x128xf32>
    %c0_9 = arith.constant 0 : index
    %c0_10 = arith.constant 0 : index
    %22 = vector.load %arg4[%c0_9, %c0_10] : memref<1x128xf32, #tpu.memory_space<vmem>>, vector<1x128xf32>
    %23 = arith.mulf %10, %21 : vector<1x128xf32>
    %24 = arith.subf %22, %23 : vector<1x128xf32>
    %25 = vector.shape_cast %21 : vector<1x128xf32> to vector<1x1x1x128xf32>
    %26 = vector.shape_cast %24 : vector<1x128xf32> to vector<1x1x1x128xf32>
    %c0_11 = arith.constant 0 : index
    %c0_12 = arith.constant 0 : index
    %c0_13 = arith.constant 0 : index
    %c0_14 = arith.constant 0 : index
    %27 = vector.load %arg1[%c0_11, %c0_12, %c0_13, %c0_14] : memref<2x8x8x128xf32, #tpu.memory_space<vmem>>, vector<2x8x8x128xf32>
    %28 = vector.broadcast %25 : vector<1x1x1x128xf32> to vector<2x8x8x128xf32>
    %29 = arith.mulf %27, %28 : vector<2x8x8x128xf32>
    %30 = vector.broadcast %26 : vector<1x1x1x128xf32> to vector<2x8x8x128xf32>
    %31 = arith.addf %29, %30 : vector<2x8x8x128xf32>
    %cst_15 = arith.constant 0.000000e+00 : f32
    %32 = vector.broadcast %cst_15 : f32 to vector<2x8x8x128xf32>
    %33 = arith.maximumf %31, %32 : vector<2x8x8x128xf32>
    %cst_16 = arith.constant 0.000000e+00 : f32
    %34 = vector.broadcast %cst_16 : f32 to vector<2x10x17x128xf32>
    %c0_17 = arith.constant 0 : index
    %c0_18 = arith.constant 0 : index
    %c0_19 = arith.constant 0 : index
    %c0_20 = arith.constant 0 : index
    %35 = vector.load %arg8[%c0_17, %c0_18, %c0_19, %c0_20] : memref<2x10x17x128xf32, #tpu.memory_space<vmem>>, vector<2x10x17x128xf32>
    tpu.vector_store %arg8[%c0_17, %c0_18, %c0_19, %c0_20], %34 {strides = array<i32>} : memref<2x10x17x128xf32, #tpu.memory_space<vmem>>, vector<2x10x17x128xf32>,
    %c0_21 = arith.constant 0 : index
    %c1 = arith.constant 1 : index
    %c8 = arith.constant 8 : index
    %c0_22 = arith.constant 0 : index
    %36 = vector.load %arg8[%c0_21, %c1, %c8, %c0_22] : memref<2x10x17x128xf32, #tpu.memory_space<vmem>>, vector<2x8x8x128xf32>
    tpu.vector_store %arg8[%c0_21, %c1, %c8, %c0_22], %33 {strides = array<i32>} : memref<2x10x17x128xf32, #tpu.memory_space<vmem>>, vector<2x8x8x128xf32>,
    %c0_23 = arith.constant 0 : index
    %c0_24 = arith.constant 0 : index
    %c0_25 = arith.constant 0 : index
    %c0_26 = arith.constant 0 : index
    %37 = vector.load %arg8[%c0_23, %c0_24, %c0_25, %c0_26] : memref<2x10x17x128xf32, #tpu.memory_space<vmem>>, vector<2x10x17x128xf32>
    %cst_27 = arith.constant 0.000000e+00 : f32
    %38 = vector.broadcast %cst_27 : f32 to vector<128x128xf32>
    %39 = vector.extract_strided_slice %37 {offsets = [0, 0, 7, 0], sizes = [2, 8, 8, 128], strides = [1, 1, 1, 1]} : vector<2x10x17x128xf32> to vector<2x8x8x128xf32>
    %40 = vector.shape_cast %39 : vector<2x8x8x128xf32> to vector<128x128xf32>
    %41 = arith.truncf %40 : vector<128x128xf32> to vector<128x128xbf16>
    %c0_28 = arith.constant 0 : index
    %c0_29 = arith.constant 0 : index
    %c0_30 = arith.constant 0 : index
    %42 = vector.load %arg5[%c0_28, %c0_29, %c0_30] : memref<9x128x128xbf16, #tpu.memory_space<vmem>>, vector<1x128x128xbf16>
    %43 = vector.shape_cast %42 : vector<1x128x128xbf16> to vector<128x128xbf16>
    %cst_31 = arith.constant dense<0.000000e+00> : vector<128x128xf32>
    %44 = tpu.matmul %41, %43, %cst_31 {dimension_numbers = #tpu.dot_dimension_numbers<[1], [0], [0], [1], [0, 0, 1, 1], [], []>} : vector<128x128xbf16>, vector<128x128xbf16>, vector<128x128xf32> -> vector<128x128xf32>
    %45 = arith.addf %38, %44 : vector<128x128xf32>
    %46 = vector.extract_strided_slice %37 {offsets = [0, 0, 8, 0], sizes = [2, 8, 8, 128], strides = [1, 1, 1, 1]} : vector<2x10x17x128xf32> to vector<2x8x8x128xf32>
    %47 = vector.shape_cast %46 : vector<2x8x8x128xf32> to vector<128x128xf32>
    %48 = arith.truncf %47 : vector<128x128xf32> to vector<128x128xbf16>
    %c1_32 = arith.constant 1 : index
    %c0_33 = arith.constant 0 : index
    %c0_34 = arith.constant 0 : index
    %49 = vector.load %arg5[%c1_32, %c0_33, %c0_34] : memref<9x128x128xbf16, #tpu.memory_space<vmem>>, vector<1x128x128xbf16>
    %50 = vector.shape_cast %49 : vector<1x128x128xbf16> to vector<128x128xbf16>
    %cst_35 = arith.constant dense<0.000000e+00> : vector<128x128xf32>
    %51 = tpu.matmul %48, %50, %cst_35 {dimension_numbers = #tpu.dot_dimension_numbers<[1], [0], [0], [1], [0, 0, 1, 1], [], []>} : vector<128x128xbf16>, vector<128x128xbf16>, vector<128x128xf32> -> vector<128x128xf32>
    %52 = arith.addf %45, %51 : vector<128x128xf32>
    %53 = vector.extract_strided_slice %37 {offsets = [0, 0, 9, 0], sizes = [2, 8, 8, 128], strides = [1, 1, 1, 1]} : vector<2x10x17x128xf32> to vector<2x8x8x128xf32>
    %54 = vector.shape_cast %53 : vector<2x8x8x128xf32> to vector<128x128xf32>
    %55 = arith.truncf %54 : vector<128x128xf32> to vector<128x128xbf16>
    %c2 = arith.constant 2 : index
    %c0_36 = arith.constant 0 : index
    %c0_37 = arith.constant 0 : index
    %56 = vector.load %arg5[%c2, %c0_36, %c0_37] : memref<9x128x128xbf16, #tpu.memory_space<vmem>>, vector<1x128x128xbf16>
    %57 = vector.shape_cast %56 : vector<1x128x128xbf16> to vector<128x128xbf16>
    %cst_38 = arith.constant dense<0.000000e+00> : vector<128x128xf32>
    %58 = tpu.matmul %55, %57, %cst_38 {dimension_numbers = #tpu.dot_dimension_numbers<[1], [0], [0], [1], [0, 0, 1, 1], [], []>} : vector<128x128xbf16>, vector<128x128xbf16>, vector<128x128xf32> -> vector<128x128xf32>
    %59 = arith.addf %52, %58 : vector<128x128xf32>
    %60 = vector.extract_strided_slice %37 {offsets = [0, 1, 7, 0], sizes = [2, 8, 8, 128], strides = [1, 1, 1, 1]} : vector<2x10x17x128xf32> to vector<2x8x8x128xf32>
    %61 = vector.shape_cast %60 : vector<2x8x8x128xf32> to vector<128x128xf32>
    %62 = arith.truncf %61 : vector<128x128xf32> to vector<128x128xbf16>
    %c3 = arith.constant 3 : index
    %c0_39 = arith.constant 0 : index
    %c0_40 = arith.constant 0 : index
    %63 = vector.load %arg5[%c3, %c0_39, %c0_40] : memref<9x128x128xbf16, #tpu.memory_space<vmem>>, vector<1x128x128xbf16>
    %64 = vector.shape_cast %63 : vector<1x128x128xbf16> to vector<128x128xbf16>
    %cst_41 = arith.constant dense<0.000000e+00> : vector<128x128xf32>
    %65 = tpu.matmul %62, %64, %cst_41 {dimension_numbers = #tpu.dot_dimension_numbers<[1], [0], [0], [1], [0, 0, 1, 1], [], []>} : vector<128x128xbf16>, vector<128x128xbf16>, vector<128x128xf32> -> vector<128x128xf32>
    %66 = arith.addf %59, %65 : vector<128x128xf32>
    %67 = vector.extract_strided_slice %37 {offsets = [0, 1, 8, 0], sizes = [2, 8, 8, 128], strides = [1, 1, 1, 1]} : vector<2x10x17x128xf32> to vector<2x8x8x128xf32>
    %68 = vector.shape_cast %67 : vector<2x8x8x128xf32> to vector<128x128xf32>
    %69 = arith.truncf %68 : vector<128x128xf32> to vector<128x128xbf16>
    %c4 = arith.constant 4 : index
    %c0_42 = arith.constant 0 : index
    %c0_43 = arith.constant 0 : index
    %70 = vector.load %arg5[%c4, %c0_42, %c0_43] : memref<9x128x128xbf16, #tpu.memory_space<vmem>>, vector<1x128x128xbf16>
    %71 = vector.shape_cast %70 : vector<1x128x128xbf16> to vector<128x128xbf16>
    %cst_44 = arith.constant dense<0.000000e+00> : vector<128x128xf32>
    %72 = tpu.matmul %69, %71, %cst_44 {dimension_numbers = #tpu.dot_dimension_numbers<[1], [0], [0], [1], [0, 0, 1, 1], [], []>} : vector<128x128xbf16>, vector<128x128xbf16>, vector<128x128xf32> -> vector<128x128xf32>
    %73 = arith.addf %66, %72 : vector<128x128xf32>
    %74 = vector.extract_strided_slice %37 {offsets = [0, 1, 9, 0], sizes = [2, 8, 8, 128], strides = [1, 1, 1, 1]} : vector<2x10x17x128xf32> to vector<2x8x8x128xf32>
    %75 = vector.shape_cast %74 : vector<2x8x8x128xf32> to vector<128x128xf32>
    %76 = arith.truncf %75 : vector<128x128xf32> to vector<128x128xbf16>
    %c5 = arith.constant 5 : index
    %c0_45 = arith.constant 0 : index
    %c0_46 = arith.constant 0 : index
    %77 = vector.load %arg5[%c5, %c0_45, %c0_46] : memref<9x128x128xbf16, #tpu.memory_space<vmem>>, vector<1x128x128xbf16>
    %78 = vector.shape_cast %77 : vector<1x128x128xbf16> to vector<128x128xbf16>
    %cst_47 = arith.constant dense<0.000000e+00> : vector<128x128xf32>
    %79 = tpu.matmul %76, %78, %cst_47 {dimension_numbers = #tpu.dot_dimension_numbers<[1], [0], [0], [1], [0, 0, 1, 1], [], []>} : vector<128x128xbf16>, vector<128x128xbf16>, vector<128x128xf32> -> vector<128x128xf32>
    %80 = arith.addf %73, %79 : vector<128x128xf32>
    %81 = vector.extract_strided_slice %37 {offsets = [0, 2, 7, 0], sizes = [2, 8, 8, 128], strides = [1, 1, 1, 1]} : vector<2x10x17x128xf32> to vector<2x8x8x128xf32>
    %82 = vector.shape_cast %81 : vector<2x8x8x128xf32> to vector<128x128xf32>
    %83 = arith.truncf %82 : vector<128x128xf32> to vector<128x128xbf16>
    %c6 = arith.constant 6 : index
    %c0_48 = arith.constant 0 : index
    %c0_49 = arith.constant 0 : index
    %84 = vector.load %arg5[%c6, %c0_48, %c0_49] : memref<9x128x128xbf16, #tpu.memory_space<vmem>>, vector<1x128x128xbf16>
    %85 = vector.shape_cast %84 : vector<1x128x128xbf16> to vector<128x128xbf16>
    %cst_50 = arith.constant dense<0.000000e+00> : vector<128x128xf32>
    %86 = tpu.matmul %83, %85, %cst_50 {dimension_numbers = #tpu.dot_dimension_numbers<[1], [0], [0], [1], [0, 0, 1, 1], [], []>} : vector<128x128xbf16>, vector<128x128xbf16>, vector<128x128xf32> -> vector<128x128xf32>
    %87 = arith.addf %80, %86 : vector<128x128xf32>
    %88 = vector.extract_strided_slice %37 {offsets = [0, 2, 8, 0], sizes = [2, 8, 8, 128], strides = [1, 1, 1, 1]} : vector<2x10x17x128xf32> to vector<2x8x8x128xf32>
    %89 = vector.shape_cast %88 : vector<2x8x8x128xf32> to vector<128x128xf32>
    %90 = arith.truncf %89 : vector<128x128xf32> to vector<128x128xbf16>
    %c7 = arith.constant 7 : index
    %c0_51 = arith.constant 0 : index
    %c0_52 = arith.constant 0 : index
    %91 = vector.load %arg5[%c7, %c0_51, %c0_52] : memref<9x128x128xbf16, #tpu.memory_space<vmem>>, vector<1x128x128xbf16>
    %92 = vector.shape_cast %91 : vector<1x128x128xbf16> to vector<128x128xbf16>
    %cst_53 = arith.constant dense<0.000000e+00> : vector<128x128xf32>
    %93 = tpu.matmul %90, %92, %cst_53 {dimension_numbers = #tpu.dot_dimension_numbers<[1], [0], [0], [1], [0, 0, 1, 1], [], []>} : vector<128x128xbf16>, vector<128x128xbf16>, vector<128x128xf32> -> vector<128x128xf32>
    %94 = arith.addf %87, %93 : vector<128x128xf32>
    %95 = vector.extract_strided_slice %37 {offsets = [0, 2, 9, 0], sizes = [2, 8, 8, 128], strides = [1, 1, 1, 1]} : vector<2x10x17x128xf32> to vector<2x8x8x128xf32>
    %96 = vector.shape_cast %95 : vector<2x8x8x128xf32> to vector<128x128xf32>
    %97 = arith.truncf %96 : vector<128x128xf32> to vector<128x128xbf16>
    %c8_54 = arith.constant 8 : index
    %c0_55 = arith.constant 0 : index
    %c0_56 = arith.constant 0 : index
    %98 = vector.load %arg5[%c8_54, %c0_55, %c0_56] : memref<9x128x128xbf16, #tpu.memory_space<vmem>>, vector<1x128x128xbf16>
    %99 = vector.shape_cast %98 : vector<1x128x128xbf16> to vector<128x128xbf16>
    %cst_57 = arith.constant dense<0.000000e+00> : vector<128x128xf32>
    %100 = tpu.matmul %97, %99, %cst_57 {dimension_numbers = #tpu.dot_dimension_numbers<[1], [0], [0], [1], [0, 0, 1, 1], [], []>} : vector<128x128xbf16>, vector<128x128xbf16>, vector<128x128xf32> -> vector<128x128xf32>
    %101 = arith.addf %94, %100 : vector<128x128xf32>
    %102 = vector.shape_cast %101 : vector<128x128xf32> to vector<2x64x128xf32>
    %c0_58 = arith.constant 0 : index
    %c0_59 = arith.constant 0 : index
    %c0_60 = arith.constant 0 : index
    %103 = vector.load %arg6[%c0_58, %c0_59, %c0_60] : memref<2x64x128xf32, #tpu.memory_space<vmem>>, vector<2x64x128xf32>
    tpu.vector_store %arg6[%c0_58, %c0_59, %c0_60], %102 {strides = array<i32>} : memref<2x64x128xf32, #tpu.memory_space<vmem>>, vector<2x64x128xf32>,
    %cst_61 = arith.constant dense<0.000000e+00> : vector<128xf32>
    %104 = vector.multi_reduction <add>, %101, %cst_61 [0] : vector<128x128xf32> to vector<128xf32>
    %105 = vector.shape_cast %104 : vector<128xf32> to vector<1x128xf32>
    %106 = arith.mulf %101, %101 : vector<128x128xf32>
    %cst_62 = arith.constant dense<0.000000e+00> : vector<128xf32>
    %107 = vector.multi_reduction <add>, %106, %cst_62 [0] : vector<128x128xf32> to vector<128xf32>
    %108 = vector.shape_cast %107 : vector<128xf32> to vector<1x128xf32>
    %cst_63 = arith.constant 0.000000e+00 : f32
    %109 = vector.broadcast %cst_63 : f32 to vector<1x8x128xf32>
    %c0_64 = arith.constant 0 : index
    %c0_65 = arith.constant 0 : index
    %c0_66 = arith.constant 0 : index
    %110 = vector.load %arg7[%c0_64, %c0_65, %c0_66] : memref<1x8x128xf32, #tpu.memory_space<vmem>>, vector<1x8x128xf32>
    tpu.vector_store %arg7[%c0_64, %c0_65, %c0_66], %109 {strides = array<i32>} : memref<1x8x128xf32, #tpu.memory_space<vmem>>, vector<1x8x128xf32>,
    %111 = vector.shape_cast %105 : vector<1x128xf32> to vector<1x1x128xf32>
    %c0_67 = arith.constant 0 : index
    %c0_68 = arith.constant 0 : index
    %c0_69 = arith.constant 0 : index
    %112 = vector.load %arg7[%c0_67, %c0_68, %c0_69] : memref<1x8x128xf32, #tpu.memory_space<vmem>>, vector<1x1x128xf32>
    tpu.vector_store %arg7[%c0_67, %c0_68, %c0_69], %111 {strides = array<i32>} : memref<1x8x128xf32, #tpu.memory_space<vmem>>, vector<1x1x128xf32>,
    %113 = vector.shape_cast %108 : vector<1x128xf32> to vector<1x1x128xf32>
    %c0_70 = arith.constant 0 : index
    %c1_71 = arith.constant 1 : index
    %c0_72 = arith.constant 0 : index
    %114 = vector.load %arg7[%c0_70, %c1_71, %c0_72] : memref<1x8x128xf32, #tpu.memory_space<vmem>>, vector<1x1x128xf32>
    tpu.vector_store %arg7[%c0_70, %c1_71, %c0_72], %113 {strides = array<i32>} : memref<1x8x128xf32, #tpu.memory_space<vmem>>, vector<1x1x128xf32>,
    return
  }
  func.func @transform_0(%arg0: i32) -> (i32, i32, i32, i32) {
    %c0_i32 = arith.constant 0 : i32
    %c0_i32_0 = arith.constant 0 : i32
    %c0_i32_1 = arith.constant 0 : i32
    %c0_i32_2 = arith.constant 0 : i32
    return %arg0, %c0_i32, %c0_i32_0, %c0_i32_1 : i32, i32, i32, i32
  }
  func.func @transform_1(%arg0: i32) -> (i32, i32, i32) {
    %c0_i32 = arith.constant 0 : i32
    %c0_i32_0 = arith.constant 0 : i32
    %c0_i32_1 = arith.constant 0 : i32
    %c0_i32_2 = arith.constant 0 : i32
    return %c0_i32, %c0_i32_0, %c0_i32_1 : i32, i32, i32
  }
  func.func @transform_2(%arg0: i32) -> (i32, i32) {
    %c0_i32 = arith.constant 0 : i32
    %c0_i32_0 = arith.constant 0 : i32
    %c0_i32_1 = arith.constant 0 : i32
    return %c0_i32, %c0_i32_0 : i32, i32
  }
  func.func @transform_3(%arg0: i32) -> (i32, i32) {
    %c0_i32 = arith.constant 0 : i32
    %c0_i32_0 = arith.constant 0 : i32
    %c0_i32_1 = arith.constant 0 : i32
    return %c0_i32, %c0_i32_0 : i32, i32
  }
  func.func @transform_4(%arg0: i32) -> (i32, i32, i32) {
    %c0_i32 = arith.constant 0 : i32
    %c0_i32_0 = arith.constant 0 : i32
    %c0_i32_1 = arith.constant 0 : i32
    %c0_i32_2 = arith.constant 0 : i32
    return %c0_i32, %c0_i32_0, %c0_i32_1 : i32, i32, i32
  }
  func.func @transform_5(%arg0: i32) -> (i32, i32, i32) {
    %c0_i32 = arith.constant 0 : i32
    %c0_i32_0 = arith.constant 0 : i32
    %c0_i32_1 = arith.constant 0 : i32
    return %arg0, %c0_i32, %c0_i32_0 : i32, i32, i32
  }
  func.func @transform_6(%arg0: i32) -> (i32, i32, i32) {
    %c0_i32 = arith.constant 0 : i32
    %c0_i32_0 = arith.constant 0 : i32
    %c0_i32_1 = arith.constant 0 : i32
    return %arg0, %c0_i32, %c0_i32_0 : i32, i32, i32
  }
}

module attributes {stable_mosaic.version = 11 : i64} {
  func.func @_fused_conv_kernel(%arg0: i32, %arg1: memref<2x36x9x128xf32, #tpu.memory_space<vmem>>, %arg2: memref<36x9x1xf32, #tpu.memory_space<vmem>>, %arg3: memref<1x8x128xf32, #tpu.memory_space<vmem>>, %arg4: memref<1x128xf32, #tpu.memory_space<vmem>>, %arg5: memref<1x128xf32, #tpu.memory_space<vmem>>, %arg6: memref<9x128x128xbf16, #tpu.memory_space<vmem>>, %arg7: memref<128x128xbf16, #tpu.memory_space<vmem>>, %arg8: memref<2x64x128xf32, #tpu.memory_space<vmem>>, %arg9: memref<2x64x128xf32, #tpu.memory_space<vmem>>, %arg10: memref<1x8x128xf32, #tpu.memory_space<vmem>>) attributes {dimension_semantics = [#tpu.dimension_semantics<parallel>], iteration_bounds = array<i64: 1>, scalar_prefetch = 0 : i64, scratch_operands = 0 : i64, tpu.core_type = #tpu.core_type<tc>, window_params = [{transform_indices = @transform_0, window_bounds = array<i64: 2, 36, 9, 128>}, {pipeline_mode = #tpu.pipeline_mode<synchronous>, transform_indices = @transform_1, window_bounds = array<i64: 36, 9, 1>}, {pipeline_mode = #tpu.pipeline_mode<synchronous>, transform_indices = @transform_2, window_bounds = array<i64: 1, 8, 128>}, {pipeline_mode = #tpu.pipeline_mode<synchronous>, transform_indices = @transform_3, window_bounds = array<i64: 1, 128>}, {pipeline_mode = #tpu.pipeline_mode<synchronous>, transform_indices = @transform_4, window_bounds = array<i64: 1, 128>}, {pipeline_mode = #tpu.pipeline_mode<synchronous>, transform_indices = @transform_5, window_bounds = array<i64: 9, 128, 128>}, {pipeline_mode = #tpu.pipeline_mode<synchronous>, transform_indices = @transform_6, window_bounds = array<i64: 128, 128>}, {transform_indices = @transform_7, window_bounds = array<i64: 2, 64, 128>}, {transform_indices = @transform_8, window_bounds = array<i64: 2, 64, 128>}, {transform_indices = @transform_9, window_bounds = array<i64: 1, 8, 128>}]} {
    %c0 = arith.constant 0 : index
    %c0_0 = arith.constant 0 : index
    %c0_1 = arith.constant 0 : index
    %0 = vector.load %arg3[%c0, %c0_0, %c0_1] : memref<1x8x128xf32, #tpu.memory_space<vmem>>, vector<1x8x128xf32>
    %1 = vector.extract_strided_slice %0 {offsets = [0, 0, 0], sizes = [1, 1, 128], strides = [1, 1, 1]} : vector<1x8x128xf32> to vector<1x1x128xf32>
    %2 = vector.shape_cast %1 : vector<1x1x128xf32> to vector<1x128xf32>
    %cst = arith.constant dense<0.000000e+00> : vector<128xf32>
    %3 = vector.multi_reduction <add>, %2, %cst [0] : vector<1x128xf32> to vector<128xf32>
    %4 = vector.shape_cast %3 : vector<128xf32> to vector<1x128xf32>
    %5 = vector.extract_strided_slice %0 {offsets = [0, 1, 0], sizes = [1, 1, 128], strides = [1, 1, 1]} : vector<1x8x128xf32> to vector<1x1x128xf32>
    %6 = vector.shape_cast %5 : vector<1x1x128xf32> to vector<1x128xf32>
    %cst_2 = arith.constant dense<0.000000e+00> : vector<128xf32>
    %7 = vector.multi_reduction <add>, %6, %cst_2 [0] : vector<1x128xf32> to vector<128xf32>
    %8 = vector.shape_cast %7 : vector<128xf32> to vector<1x128xf32>
    %cst_3 = arith.constant 5.120000e+02 : f32
    %9 = vector.broadcast %cst_3 : f32 to vector<1x128xf32>
    %10 = arith.divf %4, %9 : vector<1x128xf32>
    %cst_4 = arith.constant 5.120000e+02 : f32
    %11 = vector.broadcast %cst_4 : f32 to vector<1x128xf32>
    %12 = arith.divf %8, %11 : vector<1x128xf32>
    %13 = arith.mulf %10, %10 : vector<1x128xf32>
    %14 = arith.subf %12, %13 : vector<1x128xf32>
    %cst_5 = arith.constant 0.000000e+00 : f32
    %15 = vector.broadcast %cst_5 : f32 to vector<1x128xf32>
    %16 = arith.maximumf %14, %15 : vector<1x128xf32>
    %c0_6 = arith.constant 0 : index
    %c0_7 = arith.constant 0 : index
    %17 = vector.load %arg4[%c0_6, %c0_7] : memref<1x128xf32, #tpu.memory_space<vmem>>, vector<1x128xf32>
    %cst_8 = arith.constant 9.99999974E-6 : f32
    %18 = vector.broadcast %cst_8 : f32 to vector<1x128xf32>
    %19 = arith.addf %16, %18 : vector<1x128xf32>
    %20 = math.rsqrt %19 : vector<1x128xf32>
    %21 = arith.mulf %17, %20 : vector<1x128xf32>
    %c0_9 = arith.constant 0 : index
    %c0_10 = arith.constant 0 : index
    %22 = vector.load %arg5[%c0_9, %c0_10] : memref<1x128xf32, #tpu.memory_space<vmem>>, vector<1x128xf32>
    %23 = arith.mulf %10, %21 : vector<1x128xf32>
    %24 = arith.subf %22, %23 : vector<1x128xf32>
    %25 = vector.shape_cast %21 : vector<1x128xf32> to vector<1x1x1x128xf32>
    %26 = vector.shape_cast %24 : vector<1x128xf32> to vector<1x1x1x128xf32>
    %c0_11 = arith.constant 0 : index
    %c0_12 = arith.constant 0 : index
    %c0_13 = arith.constant 0 : index
    %c0_14 = arith.constant 0 : index
    %27 = vector.load %arg1[%c0_11, %c0_12, %c0_13, %c0_14] : memref<2x36x9x128xf32, #tpu.memory_space<vmem>>, vector<2x36x9x128xf32>
    %28 = vector.broadcast %25 : vector<1x1x1x128xf32> to vector<2x36x9x128xf32>
    %29 = arith.mulf %27, %28 : vector<2x36x9x128xf32>
    %30 = vector.broadcast %26 : vector<1x1x1x128xf32> to vector<2x36x9x128xf32>
    %31 = arith.addf %29, %30 : vector<2x36x9x128xf32>
    %cst_15 = arith.constant 0.000000e+00 : f32
    %32 = vector.broadcast %cst_15 : f32 to vector<2x36x9x128xf32>
    %33 = arith.maximumf %31, %32 : vector<2x36x9x128xf32>
    %c0_16 = arith.constant 0 : index
    %c0_17 = arith.constant 0 : index
    %c0_18 = arith.constant 0 : index
    %34 = vector.load %arg2[%c0_16, %c0_17, %c0_18] : memref<36x9x1xf32, #tpu.memory_space<vmem>>, vector<36x9x1xf32>
    %35 = vector.shape_cast %34 : vector<36x9x1xf32> to vector<1x36x9x1xf32>
    %36 = vector.broadcast %35 : vector<1x36x9x1xf32> to vector<2x36x9x128xf32>
    %37 = arith.mulf %33, %36 : vector<2x36x9x128xf32>
    %cst_19 = arith.constant 0.000000e+00 : f32
    %38 = vector.broadcast %cst_19 : f32 to vector<128x128xf32>
    %39 = vector.extract_strided_slice %37 {offsets = [0, 0, 0, 0], sizes = [2, 8, 8, 128], strides = [1, 1, 1, 1]} : vector<2x36x9x128xf32> to vector<2x8x8x128xf32>
    %40 = vector.shape_cast %39 : vector<2x8x8x128xf32> to vector<128x128xf32>
    %41 = arith.truncf %40 : vector<128x128xf32> to vector<128x128xbf16>
    %c0_20 = arith.constant 0 : index
    %c0_21 = arith.constant 0 : index
    %c0_22 = arith.constant 0 : index
    %42 = vector.load %arg6[%c0_20, %c0_21, %c0_22] : memref<9x128x128xbf16, #tpu.memory_space<vmem>>, vector<1x128x128xbf16>
    %43 = vector.shape_cast %42 : vector<1x128x128xbf16> to vector<128x128xbf16>
    %cst_23 = arith.constant dense<0.000000e+00> : vector<128x128xf32>
    %44 = tpu.matmul %41, %43, %cst_23 {dimension_numbers = #tpu.dot_dimension_numbers<[1], [0], [0], [1], [0, 0, 1, 1], [], []>} : vector<128x128xbf16>, vector<128x128xbf16>, vector<128x128xf32> -> vector<128x128xf32>
    %45 = arith.addf %38, %44 : vector<128x128xf32>
    %46 = vector.extract_strided_slice %37 {offsets = [0, 9, 0, 0], sizes = [2, 8, 8, 128], strides = [1, 1, 1, 1]} : vector<2x36x9x128xf32> to vector<2x8x8x128xf32>
    %47 = vector.shape_cast %46 : vector<2x8x8x128xf32> to vector<128x128xf32>
    %48 = arith.truncf %47 : vector<128x128xf32> to vector<128x128xbf16>
    %c1 = arith.constant 1 : index
    %c0_24 = arith.constant 0 : index
    %c0_25 = arith.constant 0 : index
    %49 = vector.load %arg6[%c1, %c0_24, %c0_25] : memref<9x128x128xbf16, #tpu.memory_space<vmem>>, vector<1x128x128xbf16>
    %50 = vector.shape_cast %49 : vector<1x128x128xbf16> to vector<128x128xbf16>
    %cst_26 = arith.constant dense<0.000000e+00> : vector<128x128xf32>
    %51 = tpu.matmul %48, %50, %cst_26 {dimension_numbers = #tpu.dot_dimension_numbers<[1], [0], [0], [1], [0, 0, 1, 1], [], []>} : vector<128x128xbf16>, vector<128x128xbf16>, vector<128x128xf32> -> vector<128x128xf32>
    %52 = arith.addf %45, %51 : vector<128x128xf32>
    %53 = vector.extract_strided_slice %37 {offsets = [0, 0, 1, 0], sizes = [2, 8, 8, 128], strides = [1, 1, 1, 1]} : vector<2x36x9x128xf32> to vector<2x8x8x128xf32>
    %54 = vector.shape_cast %53 : vector<2x8x8x128xf32> to vector<128x128xf32>
    %55 = arith.truncf %54 : vector<128x128xf32> to vector<128x128xbf16>
    %c2 = arith.constant 2 : index
    %c0_27 = arith.constant 0 : index
    %c0_28 = arith.constant 0 : index
    %56 = vector.load %arg6[%c2, %c0_27, %c0_28] : memref<9x128x128xbf16, #tpu.memory_space<vmem>>, vector<1x128x128xbf16>
    %57 = vector.shape_cast %56 : vector<1x128x128xbf16> to vector<128x128xbf16>
    %cst_29 = arith.constant dense<0.000000e+00> : vector<128x128xf32>
    %58 = tpu.matmul %55, %57, %cst_29 {dimension_numbers = #tpu.dot_dimension_numbers<[1], [0], [0], [1], [0, 0, 1, 1], [], []>} : vector<128x128xbf16>, vector<128x128xbf16>, vector<128x128xf32> -> vector<128x128xf32>
    %59 = arith.addf %52, %58 : vector<128x128xf32>
    %60 = vector.extract_strided_slice %37 {offsets = [0, 18, 0, 0], sizes = [2, 8, 8, 128], strides = [1, 1, 1, 1]} : vector<2x36x9x128xf32> to vector<2x8x8x128xf32>
    %61 = vector.shape_cast %60 : vector<2x8x8x128xf32> to vector<128x128xf32>
    %62 = arith.truncf %61 : vector<128x128xf32> to vector<128x128xbf16>
    %c3 = arith.constant 3 : index
    %c0_30 = arith.constant 0 : index
    %c0_31 = arith.constant 0 : index
    %63 = vector.load %arg6[%c3, %c0_30, %c0_31] : memref<9x128x128xbf16, #tpu.memory_space<vmem>>, vector<1x128x128xbf16>
    %64 = vector.shape_cast %63 : vector<1x128x128xbf16> to vector<128x128xbf16>
    %cst_32 = arith.constant dense<0.000000e+00> : vector<128x128xf32>
    %65 = tpu.matmul %62, %64, %cst_32 {dimension_numbers = #tpu.dot_dimension_numbers<[1], [0], [0], [1], [0, 0, 1, 1], [], []>} : vector<128x128xbf16>, vector<128x128xbf16>, vector<128x128xf32> -> vector<128x128xf32>
    %66 = arith.addf %59, %65 : vector<128x128xf32>
    %67 = vector.extract_strided_slice %37 {offsets = [0, 27, 0, 0], sizes = [2, 8, 8, 128], strides = [1, 1, 1, 1]} : vector<2x36x9x128xf32> to vector<2x8x8x128xf32>
    %68 = vector.shape_cast %67 : vector<2x8x8x128xf32> to vector<128x128xf32>
    %69 = arith.truncf %68 : vector<128x128xf32> to vector<128x128xbf16>
    %c4 = arith.constant 4 : index
    %c0_33 = arith.constant 0 : index
    %c0_34 = arith.constant 0 : index
    %70 = vector.load %arg6[%c4, %c0_33, %c0_34] : memref<9x128x128xbf16, #tpu.memory_space<vmem>>, vector<1x128x128xbf16>
    %71 = vector.shape_cast %70 : vector<1x128x128xbf16> to vector<128x128xbf16>
    %cst_35 = arith.constant dense<0.000000e+00> : vector<128x128xf32>
    %72 = tpu.matmul %69, %71, %cst_35 {dimension_numbers = #tpu.dot_dimension_numbers<[1], [0], [0], [1], [0, 0, 1, 1], [], []>} : vector<128x128xbf16>, vector<128x128xbf16>, vector<128x128xf32> -> vector<128x128xf32>
    %73 = arith.addf %66, %72 : vector<128x128xf32>
    %74 = vector.extract_strided_slice %37 {offsets = [0, 18, 1, 0], sizes = [2, 8, 8, 128], strides = [1, 1, 1, 1]} : vector<2x36x9x128xf32> to vector<2x8x8x128xf32>
    %75 = vector.shape_cast %74 : vector<2x8x8x128xf32> to vector<128x128xf32>
    %76 = arith.truncf %75 : vector<128x128xf32> to vector<128x128xbf16>
    %c5 = arith.constant 5 : index
    %c0_36 = arith.constant 0 : index
    %c0_37 = arith.constant 0 : index
    %77 = vector.load %arg6[%c5, %c0_36, %c0_37] : memref<9x128x128xbf16, #tpu.memory_space<vmem>>, vector<1x128x128xbf16>
    %78 = vector.shape_cast %77 : vector<1x128x128xbf16> to vector<128x128xbf16>
    %cst_38 = arith.constant dense<0.000000e+00> : vector<128x128xf32>
    %79 = tpu.matmul %76, %78, %cst_38 {dimension_numbers = #tpu.dot_dimension_numbers<[1], [0], [0], [1], [0, 0, 1, 1], [], []>} : vector<128x128xbf16>, vector<128x128xbf16>, vector<128x128xf32> -> vector<128x128xf32>
    %80 = arith.addf %73, %79 : vector<128x128xf32>
    %81 = vector.extract_strided_slice %37 {offsets = [0, 1, 0, 0], sizes = [2, 8, 8, 128], strides = [1, 1, 1, 1]} : vector<2x36x9x128xf32> to vector<2x8x8x128xf32>
    %82 = vector.shape_cast %81 : vector<2x8x8x128xf32> to vector<128x128xf32>
    %83 = arith.truncf %82 : vector<128x128xf32> to vector<128x128xbf16>
    %c6 = arith.constant 6 : index
    %c0_39 = arith.constant 0 : index
    %c0_40 = arith.constant 0 : index
    %84 = vector.load %arg6[%c6, %c0_39, %c0_40] : memref<9x128x128xbf16, #tpu.memory_space<vmem>>, vector<1x128x128xbf16>
    %85 = vector.shape_cast %84 : vector<1x128x128xbf16> to vector<128x128xbf16>
    %cst_41 = arith.constant dense<0.000000e+00> : vector<128x128xf32>
    %86 = tpu.matmul %83, %85, %cst_41 {dimension_numbers = #tpu.dot_dimension_numbers<[1], [0], [0], [1], [0, 0, 1, 1], [], []>} : vector<128x128xbf16>, vector<128x128xbf16>, vector<128x128xf32> -> vector<128x128xf32>
    %87 = arith.addf %80, %86 : vector<128x128xf32>
    %88 = vector.extract_strided_slice %37 {offsets = [0, 10, 0, 0], sizes = [2, 8, 8, 128], strides = [1, 1, 1, 1]} : vector<2x36x9x128xf32> to vector<2x8x8x128xf32>
    %89 = vector.shape_cast %88 : vector<2x8x8x128xf32> to vector<128x128xf32>
    %90 = arith.truncf %89 : vector<128x128xf32> to vector<128x128xbf16>
    %c7 = arith.constant 7 : index
    %c0_42 = arith.constant 0 : index
    %c0_43 = arith.constant 0 : index
    %91 = vector.load %arg6[%c7, %c0_42, %c0_43] : memref<9x128x128xbf16, #tpu.memory_space<vmem>>, vector<1x128x128xbf16>
    %92 = vector.shape_cast %91 : vector<1x128x128xbf16> to vector<128x128xbf16>
    %cst_44 = arith.constant dense<0.000000e+00> : vector<128x128xf32>
    %93 = tpu.matmul %90, %92, %cst_44 {dimension_numbers = #tpu.dot_dimension_numbers<[1], [0], [0], [1], [0, 0, 1, 1], [], []>} : vector<128x128xbf16>, vector<128x128xbf16>, vector<128x128xf32> -> vector<128x128xf32>
    %94 = arith.addf %87, %93 : vector<128x128xf32>
    %95 = vector.extract_strided_slice %37 {offsets = [0, 1, 1, 0], sizes = [2, 8, 8, 128], strides = [1, 1, 1, 1]} : vector<2x36x9x128xf32> to vector<2x8x8x128xf32>
    %96 = vector.shape_cast %95 : vector<2x8x8x128xf32> to vector<128x128xf32>
    %97 = arith.truncf %96 : vector<128x128xf32> to vector<128x128xbf16>
    %c8 = arith.constant 8 : index
    %c0_45 = arith.constant 0 : index
    %c0_46 = arith.constant 0 : index
    %98 = vector.load %arg6[%c8, %c0_45, %c0_46] : memref<9x128x128xbf16, #tpu.memory_space<vmem>>, vector<1x128x128xbf16>
    %99 = vector.shape_cast %98 : vector<1x128x128xbf16> to vector<128x128xbf16>
    %cst_47 = arith.constant dense<0.000000e+00> : vector<128x128xf32>
    %100 = tpu.matmul %97, %99, %cst_47 {dimension_numbers = #tpu.dot_dimension_numbers<[1], [0], [0], [1], [0, 0, 1, 1], [], []>} : vector<128x128xbf16>, vector<128x128xbf16>, vector<128x128xf32> -> vector<128x128xf32>
    %101 = arith.addf %94, %100 : vector<128x128xf32>
    %102 = vector.shape_cast %101 : vector<128x128xf32> to vector<2x64x128xf32>
    %c0_48 = arith.constant 0 : index
    %c0_49 = arith.constant 0 : index
    %c0_50 = arith.constant 0 : index
    %103 = vector.load %arg8[%c0_48, %c0_49, %c0_50] : memref<2x64x128xf32, #tpu.memory_space<vmem>>, vector<2x64x128xf32>
    tpu.vector_store %arg8[%c0_48, %c0_49, %c0_50], %102 {strides = array<i32>} : memref<2x64x128xf32, #tpu.memory_space<vmem>>, vector<2x64x128xf32>,
    %c0_51 = arith.constant 0 : index
    %c0_52 = arith.constant 0 : index
    %104 = vector.load %arg7[%c0_51, %c0_52] : memref<128x128xbf16, #tpu.memory_space<vmem>>, vector<128x128xbf16>
    %cst_53 = arith.constant dense<0.000000e+00> : vector<128x128xf32>
    %105 = tpu.matmul %69, %104, %cst_53 {dimension_numbers = #tpu.dot_dimension_numbers<[1], [0], [0], [1], [0, 0, 1, 1], [], []>} : vector<128x128xbf16>, vector<128x128xbf16>, vector<128x128xf32> -> vector<128x128xf32>
    %106 = vector.shape_cast %105 : vector<128x128xf32> to vector<2x64x128xf32>
    %c0_54 = arith.constant 0 : index
    %c0_55 = arith.constant 0 : index
    %c0_56 = arith.constant 0 : index
    %107 = vector.load %arg9[%c0_54, %c0_55, %c0_56] : memref<2x64x128xf32, #tpu.memory_space<vmem>>, vector<2x64x128xf32>
    tpu.vector_store %arg9[%c0_54, %c0_55, %c0_56], %106 {strides = array<i32>} : memref<2x64x128xf32, #tpu.memory_space<vmem>>, vector<2x64x128xf32>,
    %cst_57 = arith.constant dense<0.000000e+00> : vector<128xf32>
    %108 = vector.multi_reduction <add>, %101, %cst_57 [0] : vector<128x128xf32> to vector<128xf32>
    %109 = vector.shape_cast %108 : vector<128xf32> to vector<1x128xf32>
    %110 = arith.mulf %101, %101 : vector<128x128xf32>
    %cst_58 = arith.constant dense<0.000000e+00> : vector<128xf32>
    %111 = vector.multi_reduction <add>, %110, %cst_58 [0] : vector<128x128xf32> to vector<128xf32>
    %112 = vector.shape_cast %111 : vector<128xf32> to vector<1x128xf32>
    %cst_59 = arith.constant 0.000000e+00 : f32
    %113 = vector.broadcast %cst_59 : f32 to vector<1x8x128xf32>
    %c0_60 = arith.constant 0 : index
    %c0_61 = arith.constant 0 : index
    %c0_62 = arith.constant 0 : index
    %114 = vector.load %arg10[%c0_60, %c0_61, %c0_62] : memref<1x8x128xf32, #tpu.memory_space<vmem>>, vector<1x8x128xf32>
    tpu.vector_store %arg10[%c0_60, %c0_61, %c0_62], %113 {strides = array<i32>} : memref<1x8x128xf32, #tpu.memory_space<vmem>>, vector<1x8x128xf32>,
    %115 = vector.shape_cast %109 : vector<1x128xf32> to vector<1x1x128xf32>
    %c0_63 = arith.constant 0 : index
    %c0_64 = arith.constant 0 : index
    %c0_65 = arith.constant 0 : index
    %116 = vector.load %arg10[%c0_63, %c0_64, %c0_65] : memref<1x8x128xf32, #tpu.memory_space<vmem>>, vector<1x1x128xf32>
    tpu.vector_store %arg10[%c0_63, %c0_64, %c0_65], %115 {strides = array<i32>} : memref<1x8x128xf32, #tpu.memory_space<vmem>>, vector<1x1x128xf32>,
    %117 = vector.shape_cast %112 : vector<1x128xf32> to vector<1x1x128xf32>
    %c0_66 = arith.constant 0 : index
    %c1_67 = arith.constant 1 : index
    %c0_68 = arith.constant 0 : index
    %118 = vector.load %arg10[%c0_66, %c1_67, %c0_68] : memref<1x8x128xf32, #tpu.memory_space<vmem>>, vector<1x1x128xf32>
    tpu.vector_store %arg10[%c0_66, %c1_67, %c0_68], %117 {strides = array<i32>} : memref<1x8x128xf32, #tpu.memory_space<vmem>>, vector<1x1x128xf32>,
    return
  }
  func.func @transform_0(%arg0: i32) -> (i32, i32, i32, i32) {
    %c0_i32 = arith.constant 0 : i32
    %c0_i32_0 = arith.constant 0 : i32
    %c0_i32_1 = arith.constant 0 : i32
    %c0_i32_2 = arith.constant 0 : i32
    return %arg0, %c0_i32, %c0_i32_0, %c0_i32_1 : i32, i32, i32, i32
  }
  func.func @transform_1(%arg0: i32) -> (i32, i32, i32) {
    %c0_i32 = arith.constant 0 : i32
    %c0_i32_0 = arith.constant 0 : i32
    %c0_i32_1 = arith.constant 0 : i32
    %c0_i32_2 = arith.constant 0 : i32
    return %c0_i32, %c0_i32_0, %c0_i32_1 : i32, i32, i32
  }
  func.func @transform_2(%arg0: i32) -> (i32, i32, i32) {
    %c0_i32 = arith.constant 0 : i32
    %c0_i32_0 = arith.constant 0 : i32
    %c0_i32_1 = arith.constant 0 : i32
    %c0_i32_2 = arith.constant 0 : i32
    return %c0_i32, %c0_i32_0, %c0_i32_1 : i32, i32, i32
  }
  func.func @transform_3(%arg0: i32) -> (i32, i32) {
    %c0_i32 = arith.constant 0 : i32
    %c0_i32_0 = arith.constant 0 : i32
    %c0_i32_1 = arith.constant 0 : i32
    return %c0_i32, %c0_i32_0 : i32, i32
  }
  func.func @transform_4(%arg0: i32) -> (i32, i32) {
    %c0_i32 = arith.constant 0 : i32
    %c0_i32_0 = arith.constant 0 : i32
    %c0_i32_1 = arith.constant 0 : i32
    return %c0_i32, %c0_i32_0 : i32, i32
  }
  func.func @transform_5(%arg0: i32) -> (i32, i32, i32) {
    %c0_i32 = arith.constant 0 : i32
    %c0_i32_0 = arith.constant 0 : i32
    %c0_i32_1 = arith.constant 0 : i32
    %c0_i32_2 = arith.constant 0 : i32
    return %c0_i32, %c0_i32_0, %c0_i32_1 : i32, i32, i32
  }
  func.func @transform_6(%arg0: i32) -> (i32, i32) {
    %c0_i32 = arith.constant 0 : i32
    %c0_i32_0 = arith.constant 0 : i32
    %c0_i32_1 = arith.constant 0 : i32
    return %c0_i32, %c0_i32_0 : i32, i32
  }
  func.func @transform_7(%arg0: i32) -> (i32, i32, i32) {
    %c0_i32 = arith.constant 0 : i32
    %c0_i32_0 = arith.constant 0 : i32
    %c0_i32_1 = arith.constant 0 : i32
    return %arg0, %c0_i32, %c0_i32_0 : i32, i32, i32
  }
  func.func @transform_8(%arg0: i32) -> (i32, i32, i32) {
    %c0_i32 = arith.constant 0 : i32
    %c0_i32_0 = arith.constant 0 : i32
    %c0_i32_1 = arith.constant 0 : i32
    return %arg0, %c0_i32, %c0_i32_0 : i32, i32, i32
  }
  func.func @transform_9(%arg0: i32) -> (i32, i32, i32) {
    %c0_i32 = arith.constant 0 : i32
    %c0_i32_0 = arith.constant 0 : i32
    %c0_i32_1 = arith.constant 0 : i32
    return %arg0, %c0_i32, %c0_i32_0 : i32, i32, i32
  }
}

module attributes {stable_mosaic.version = 11 : i64} {
  func.func @_fused_conv_kernel(%arg0: i32, %arg1: memref<2x8x8x128xf32, #tpu.memory_space<vmem>>, %arg2: memref<1x8x128xf32, #tpu.memory_space<vmem>>, %arg3: memref<1x128xf32, #tpu.memory_space<vmem>>, %arg4: memref<1x128xf32, #tpu.memory_space<vmem>>, %arg5: memref<9x128x128xbf16, #tpu.memory_space<vmem>>, %arg6: memref<2x64x128xf32, #tpu.memory_space<vmem>>, %arg7: memref<2x64x128xf32, #tpu.memory_space<vmem>>, %arg8: memref<1x8x128xf32, #tpu.memory_space<vmem>>, %arg9: memref<2x10x17x128xf32, #tpu.memory_space<vmem>>) attributes {dimension_semantics = [#tpu.dimension_semantics<parallel>], iteration_bounds = array<i64: 1>, scalar_prefetch = 0 : i64, scratch_operands = 1 : i64, tpu.core_type = #tpu.core_type<tc>, window_params = [{transform_indices = @transform_0, window_bounds = array<i64: 2, 8, 8, 128>}, {pipeline_mode = #tpu.pipeline_mode<synchronous>, transform_indices = @transform_1, window_bounds = array<i64: 1, 8, 128>}, {pipeline_mode = #tpu.pipeline_mode<synchronous>, transform_indices = @transform_2, window_bounds = array<i64: 1, 128>}, {pipeline_mode = #tpu.pipeline_mode<synchronous>, transform_indices = @transform_3, window_bounds = array<i64: 1, 128>}, {pipeline_mode = #tpu.pipeline_mode<synchronous>, transform_indices = @transform_4, window_bounds = array<i64: 9, 128, 128>}, {transform_indices = @transform_5, window_bounds = array<i64: 2, 64, 128>}, {transform_indices = @transform_6, window_bounds = array<i64: 2, 64, 128>}, {transform_indices = @transform_7, window_bounds = array<i64: 1, 8, 128>}]} {
    %c0 = arith.constant 0 : index
    %c0_0 = arith.constant 0 : index
    %c0_1 = arith.constant 0 : index
    %0 = vector.load %arg2[%c0, %c0_0, %c0_1] : memref<1x8x128xf32, #tpu.memory_space<vmem>>, vector<1x8x128xf32>
    %1 = vector.extract_strided_slice %0 {offsets = [0, 0, 0], sizes = [1, 1, 128], strides = [1, 1, 1]} : vector<1x8x128xf32> to vector<1x1x128xf32>
    %2 = vector.shape_cast %1 : vector<1x1x128xf32> to vector<1x128xf32>
    %cst = arith.constant dense<0.000000e+00> : vector<128xf32>
    %3 = vector.multi_reduction <add>, %2, %cst [0] : vector<1x128xf32> to vector<128xf32>
    %4 = vector.shape_cast %3 : vector<128xf32> to vector<1x128xf32>
    %5 = vector.extract_strided_slice %0 {offsets = [0, 1, 0], sizes = [1, 1, 128], strides = [1, 1, 1]} : vector<1x8x128xf32> to vector<1x1x128xf32>
    %6 = vector.shape_cast %5 : vector<1x1x128xf32> to vector<1x128xf32>
    %cst_2 = arith.constant dense<0.000000e+00> : vector<128xf32>
    %7 = vector.multi_reduction <add>, %6, %cst_2 [0] : vector<1x128xf32> to vector<128xf32>
    %8 = vector.shape_cast %7 : vector<128xf32> to vector<1x128xf32>
    %cst_3 = arith.constant 1.280000e+02 : f32
    %9 = vector.broadcast %cst_3 : f32 to vector<1x128xf32>
    %10 = arith.divf %4, %9 : vector<1x128xf32>
    %cst_4 = arith.constant 1.280000e+02 : f32
    %11 = vector.broadcast %cst_4 : f32 to vector<1x128xf32>
    %12 = arith.divf %8, %11 : vector<1x128xf32>
    %13 = arith.mulf %10, %10 : vector<1x128xf32>
    %14 = arith.subf %12, %13 : vector<1x128xf32>
    %cst_5 = arith.constant 0.000000e+00 : f32
    %15 = vector.broadcast %cst_5 : f32 to vector<1x128xf32>
    %16 = arith.maximumf %14, %15 : vector<1x128xf32>
    %c0_6 = arith.constant 0 : index
    %c0_7 = arith.constant 0 : index
    %17 = vector.load %arg3[%c0_6, %c0_7] : memref<1x128xf32, #tpu.memory_space<vmem>>, vector<1x128xf32>
    %cst_8 = arith.constant 9.99999974E-6 : f32
    %18 = vector.broadcast %cst_8 : f32 to vector<1x128xf32>
    %19 = arith.addf %16, %18 : vector<1x128xf32>
    %20 = math.rsqrt %19 : vector<1x128xf32>
    %21 = arith.mulf %17, %20 : vector<1x128xf32>
    %c0_9 = arith.constant 0 : index
    %c0_10 = arith.constant 0 : index
    %22 = vector.load %arg4[%c0_9, %c0_10] : memref<1x128xf32, #tpu.memory_space<vmem>>, vector<1x128xf32>
    %23 = arith.mulf %10, %21 : vector<1x128xf32>
    %24 = arith.subf %22, %23 : vector<1x128xf32>
    %25 = vector.shape_cast %21 : vector<1x128xf32> to vector<1x1x1x128xf32>
    %26 = vector.shape_cast %24 : vector<1x128xf32> to vector<1x1x1x128xf32>
    %c0_11 = arith.constant 0 : index
    %c0_12 = arith.constant 0 : index
    %c0_13 = arith.constant 0 : index
    %c0_14 = arith.constant 0 : index
    %27 = vector.load %arg1[%c0_11, %c0_12, %c0_13, %c0_14] : memref<2x8x8x128xf32, #tpu.memory_space<vmem>>, vector<2x8x8x128xf32>
    %28 = vector.broadcast %25 : vector<1x1x1x128xf32> to vector<2x8x8x128xf32>
    %29 = arith.mulf %27, %28 : vector<2x8x8x128xf32>
    %30 = vector.broadcast %26 : vector<1x1x1x128xf32> to vector<2x8x8x128xf32>
    %31 = arith.addf %29, %30 : vector<2x8x8x128xf32>
    %cst_15 = arith.constant 0.000000e+00 : f32
    %32 = vector.broadcast %cst_15 : f32 to vector<2x8x8x128xf32>
    %33 = arith.maximumf %31, %32 : vector<2x8x8x128xf32>
    %cst_16 = arith.constant 0.000000e+00 : f32
    %34 = vector.broadcast %cst_16 : f32 to vector<2x10x17x128xf32>
    %c0_17 = arith.constant 0 : index
    %c0_18 = arith.constant 0 : index
    %c0_19 = arith.constant 0 : index
    %c0_20 = arith.constant 0 : index
    %35 = vector.load %arg9[%c0_17, %c0_18, %c0_19, %c0_20] : memref<2x10x17x128xf32, #tpu.memory_space<vmem>>, vector<2x10x17x128xf32>
    tpu.vector_store %arg9[%c0_17, %c0_18, %c0_19, %c0_20], %34 {strides = array<i32>} : memref<2x10x17x128xf32, #tpu.memory_space<vmem>>, vector<2x10x17x128xf32>,
    %c0_21 = arith.constant 0 : index
    %c1 = arith.constant 1 : index
    %c8 = arith.constant 8 : index
    %c0_22 = arith.constant 0 : index
    %36 = vector.load %arg9[%c0_21, %c1, %c8, %c0_22] : memref<2x10x17x128xf32, #tpu.memory_space<vmem>>, vector<2x8x8x128xf32>
    tpu.vector_store %arg9[%c0_21, %c1, %c8, %c0_22], %33 {strides = array<i32>} : memref<2x10x17x128xf32, #tpu.memory_space<vmem>>, vector<2x8x8x128xf32>,
    %c0_23 = arith.constant 0 : index
    %c0_24 = arith.constant 0 : index
    %c0_25 = arith.constant 0 : index
    %c0_26 = arith.constant 0 : index
    %37 = vector.load %arg9[%c0_23, %c0_24, %c0_25, %c0_26] : memref<2x10x17x128xf32, #tpu.memory_space<vmem>>, vector<2x10x17x128xf32>
    %cst_27 = arith.constant 0.000000e+00 : f32
    %38 = vector.broadcast %cst_27 : f32 to vector<128x128xf32>
    %39 = vector.extract_strided_slice %37 {offsets = [0, 0, 7, 0], sizes = [2, 8, 8, 128], strides = [1, 1, 1, 1]} : vector<2x10x17x128xf32> to vector<2x8x8x128xf32>
    %40 = vector.shape_cast %39 : vector<2x8x8x128xf32> to vector<128x128xf32>
    %41 = arith.truncf %40 : vector<128x128xf32> to vector<128x128xbf16>
    %c0_28 = arith.constant 0 : index
    %c0_29 = arith.constant 0 : index
    %c0_30 = arith.constant 0 : index
    %42 = vector.load %arg5[%c0_28, %c0_29, %c0_30] : memref<9x128x128xbf16, #tpu.memory_space<vmem>>, vector<1x128x128xbf16>
    %43 = vector.shape_cast %42 : vector<1x128x128xbf16> to vector<128x128xbf16>
    %cst_31 = arith.constant dense<0.000000e+00> : vector<128x128xf32>
    %44 = tpu.matmul %41, %43, %cst_31 {dimension_numbers = #tpu.dot_dimension_numbers<[1], [0], [0], [1], [0, 0, 1, 1], [], []>} : vector<128x128xbf16>, vector<128x128xbf16>, vector<128x128xf32> -> vector<128x128xf32>
    %45 = arith.addf %38, %44 : vector<128x128xf32>
    %46 = vector.extract_strided_slice %37 {offsets = [0, 0, 8, 0], sizes = [2, 8, 8, 128], strides = [1, 1, 1, 1]} : vector<2x10x17x128xf32> to vector<2x8x8x128xf32>
    %47 = vector.shape_cast %46 : vector<2x8x8x128xf32> to vector<128x128xf32>
    %48 = arith.truncf %47 : vector<128x128xf32> to vector<128x128xbf16>
    %c1_32 = arith.constant 1 : index
    %c0_33 = arith.constant 0 : index
    %c0_34 = arith.constant 0 : index
    %49 = vector.load %arg5[%c1_32, %c0_33, %c0_34] : memref<9x128x128xbf16, #tpu.memory_space<vmem>>, vector<1x128x128xbf16>
    %50 = vector.shape_cast %49 : vector<1x128x128xbf16> to vector<128x128xbf16>
    %cst_35 = arith.constant dense<0.000000e+00> : vector<128x128xf32>
    %51 = tpu.matmul %48, %50, %cst_35 {dimension_numbers = #tpu.dot_dimension_numbers<[1], [0], [0], [1], [0, 0, 1, 1], [], []>} : vector<128x128xbf16>, vector<128x128xbf16>, vector<128x128xf32> -> vector<128x128xf32>
    %52 = arith.addf %45, %51 : vector<128x128xf32>
    %53 = vector.extract_strided_slice %37 {offsets = [0, 0, 9, 0], sizes = [2, 8, 8, 128], strides = [1, 1, 1, 1]} : vector<2x10x17x128xf32> to vector<2x8x8x128xf32>
    %54 = vector.shape_cast %53 : vector<2x8x8x128xf32> to vector<128x128xf32>
    %55 = arith.truncf %54 : vector<128x128xf32> to vector<128x128xbf16>
    %c2 = arith.constant 2 : index
    %c0_36 = arith.constant 0 : index
    %c0_37 = arith.constant 0 : index
    %56 = vector.load %arg5[%c2, %c0_36, %c0_37] : memref<9x128x128xbf16, #tpu.memory_space<vmem>>, vector<1x128x128xbf16>
    %57 = vector.shape_cast %56 : vector<1x128x128xbf16> to vector<128x128xbf16>
    %cst_38 = arith.constant dense<0.000000e+00> : vector<128x128xf32>
    %58 = tpu.matmul %55, %57, %cst_38 {dimension_numbers = #tpu.dot_dimension_numbers<[1], [0], [0], [1], [0, 0, 1, 1], [], []>} : vector<128x128xbf16>, vector<128x128xbf16>, vector<128x128xf32> -> vector<128x128xf32>
    %59 = arith.addf %52, %58 : vector<128x128xf32>
    %60 = vector.extract_strided_slice %37 {offsets = [0, 1, 7, 0], sizes = [2, 8, 8, 128], strides = [1, 1, 1, 1]} : vector<2x10x17x128xf32> to vector<2x8x8x128xf32>
    %61 = vector.shape_cast %60 : vector<2x8x8x128xf32> to vector<128x128xf32>
    %62 = arith.truncf %61 : vector<128x128xf32> to vector<128x128xbf16>
    %c3 = arith.constant 3 : index
    %c0_39 = arith.constant 0 : index
    %c0_40 = arith.constant 0 : index
    %63 = vector.load %arg5[%c3, %c0_39, %c0_40] : memref<9x128x128xbf16, #tpu.memory_space<vmem>>, vector<1x128x128xbf16>
    %64 = vector.shape_cast %63 : vector<1x128x128xbf16> to vector<128x128xbf16>
    %cst_41 = arith.constant dense<0.000000e+00> : vector<128x128xf32>
    %65 = tpu.matmul %62, %64, %cst_41 {dimension_numbers = #tpu.dot_dimension_numbers<[1], [0], [0], [1], [0, 0, 1, 1], [], []>} : vector<128x128xbf16>, vector<128x128xbf16>, vector<128x128xf32> -> vector<128x128xf32>
    %66 = arith.addf %59, %65 : vector<128x128xf32>
    %67 = vector.extract_strided_slice %37 {offsets = [0, 1, 8, 0], sizes = [2, 8, 8, 128], strides = [1, 1, 1, 1]} : vector<2x10x17x128xf32> to vector<2x8x8x128xf32>
    %68 = vector.shape_cast %67 : vector<2x8x8x128xf32> to vector<128x128xf32>
    %69 = arith.truncf %68 : vector<128x128xf32> to vector<128x128xbf16>
    %c4 = arith.constant 4 : index
    %c0_42 = arith.constant 0 : index
    %c0_43 = arith.constant 0 : index
    %70 = vector.load %arg5[%c4, %c0_42, %c0_43] : memref<9x128x128xbf16, #tpu.memory_space<vmem>>, vector<1x128x128xbf16>
    %71 = vector.shape_cast %70 : vector<1x128x128xbf16> to vector<128x128xbf16>
    %cst_44 = arith.constant dense<0.000000e+00> : vector<128x128xf32>
    %72 = tpu.matmul %69, %71, %cst_44 {dimension_numbers = #tpu.dot_dimension_numbers<[1], [0], [0], [1], [0, 0, 1, 1], [], []>} : vector<128x128xbf16>, vector<128x128xbf16>, vector<128x128xf32> -> vector<128x128xf32>
    %73 = arith.addf %66, %72 : vector<128x128xf32>
    %74 = vector.extract_strided_slice %37 {offsets = [0, 1, 9, 0], sizes = [2, 8, 8, 128], strides = [1, 1, 1, 1]} : vector<2x10x17x128xf32> to vector<2x8x8x128xf32>
    %75 = vector.shape_cast %74 : vector<2x8x8x128xf32> to vector<128x128xf32>
    %76 = arith.truncf %75 : vector<128x128xf32> to vector<128x128xbf16>
    %c5 = arith.constant 5 : index
    %c0_45 = arith.constant 0 : index
    %c0_46 = arith.constant 0 : index
    %77 = vector.load %arg5[%c5, %c0_45, %c0_46] : memref<9x128x128xbf16, #tpu.memory_space<vmem>>, vector<1x128x128xbf16>
    %78 = vector.shape_cast %77 : vector<1x128x128xbf16> to vector<128x128xbf16>
    %cst_47 = arith.constant dense<0.000000e+00> : vector<128x128xf32>
    %79 = tpu.matmul %76, %78, %cst_47 {dimension_numbers = #tpu.dot_dimension_numbers<[1], [0], [0], [1], [0, 0, 1, 1], [], []>} : vector<128x128xbf16>, vector<128x128xbf16>, vector<128x128xf32> -> vector<128x128xf32>
    %80 = arith.addf %73, %79 : vector<128x128xf32>
    %81 = vector.extract_strided_slice %37 {offsets = [0, 2, 7, 0], sizes = [2, 8, 8, 128], strides = [1, 1, 1, 1]} : vector<2x10x17x128xf32> to vector<2x8x8x128xf32>
    %82 = vector.shape_cast %81 : vector<2x8x8x128xf32> to vector<128x128xf32>
    %83 = arith.truncf %82 : vector<128x128xf32> to vector<128x128xbf16>
    %c6 = arith.constant 6 : index
    %c0_48 = arith.constant 0 : index
    %c0_49 = arith.constant 0 : index
    %84 = vector.load %arg5[%c6, %c0_48, %c0_49] : memref<9x128x128xbf16, #tpu.memory_space<vmem>>, vector<1x128x128xbf16>
    %85 = vector.shape_cast %84 : vector<1x128x128xbf16> to vector<128x128xbf16>
    %cst_50 = arith.constant dense<0.000000e+00> : vector<128x128xf32>
    %86 = tpu.matmul %83, %85, %cst_50 {dimension_numbers = #tpu.dot_dimension_numbers<[1], [0], [0], [1], [0, 0, 1, 1], [], []>} : vector<128x128xbf16>, vector<128x128xbf16>, vector<128x128xf32> -> vector<128x128xf32>
    %87 = arith.addf %80, %86 : vector<128x128xf32>
    %88 = vector.extract_strided_slice %37 {offsets = [0, 2, 8, 0], sizes = [2, 8, 8, 128], strides = [1, 1, 1, 1]} : vector<2x10x17x128xf32> to vector<2x8x8x128xf32>
    %89 = vector.shape_cast %88 : vector<2x8x8x128xf32> to vector<128x128xf32>
    %90 = arith.truncf %89 : vector<128x128xf32> to vector<128x128xbf16>
    %c7 = arith.constant 7 : index
    %c0_51 = arith.constant 0 : index
    %c0_52 = arith.constant 0 : index
    %91 = vector.load %arg5[%c7, %c0_51, %c0_52] : memref<9x128x128xbf16, #tpu.memory_space<vmem>>, vector<1x128x128xbf16>
    %92 = vector.shape_cast %91 : vector<1x128x128xbf16> to vector<128x128xbf16>
    %cst_53 = arith.constant dense<0.000000e+00> : vector<128x128xf32>
    %93 = tpu.matmul %90, %92, %cst_53 {dimension_numbers = #tpu.dot_dimension_numbers<[1], [0], [0], [1], [0, 0, 1, 1], [], []>} : vector<128x128xbf16>, vector<128x128xbf16>, vector<128x128xf32> -> vector<128x128xf32>
    %94 = arith.addf %87, %93 : vector<128x128xf32>
    %95 = vector.extract_strided_slice %37 {offsets = [0, 2, 9, 0], sizes = [2, 8, 8, 128], strides = [1, 1, 1, 1]} : vector<2x10x17x128xf32> to vector<2x8x8x128xf32>
    %96 = vector.shape_cast %95 : vector<2x8x8x128xf32> to vector<128x128xf32>
    %97 = arith.truncf %96 : vector<128x128xf32> to vector<128x128xbf16>
    %c8_54 = arith.constant 8 : index
    %c0_55 = arith.constant 0 : index
    %c0_56 = arith.constant 0 : index
    %98 = vector.load %arg5[%c8_54, %c0_55, %c0_56] : memref<9x128x128xbf16, #tpu.memory_space<vmem>>, vector<1x128x128xbf16>
    %99 = vector.shape_cast %98 : vector<1x128x128xbf16> to vector<128x128xbf16>
    %cst_57 = arith.constant dense<0.000000e+00> : vector<128x128xf32>
    %100 = tpu.matmul %97, %99, %cst_57 {dimension_numbers = #tpu.dot_dimension_numbers<[1], [0], [0], [1], [0, 0, 1, 1], [], []>} : vector<128x128xbf16>, vector<128x128xbf16>, vector<128x128xf32> -> vector<128x128xf32>
    %101 = arith.addf %94, %100 : vector<128x128xf32>
    %c0_58 = arith.constant 0 : index
    %c0_59 = arith.constant 0 : index
    %c0_60 = arith.constant 0 : index
    %102 = vector.load %arg6[%c0_58, %c0_59, %c0_60] : memref<2x64x128xf32, #tpu.memory_space<vmem>>, vector<2x64x128xf32>
    %103 = vector.shape_cast %102 : vector<2x64x128xf32> to vector<128x128xf32>
    %104 = arith.addf %101, %103 : vector<128x128xf32>
    %105 = vector.shape_cast %104 : vector<128x128xf32> to vector<2x64x128xf32>
    %c0_61 = arith.constant 0 : index
    %c0_62 = arith.constant 0 : index
    %c0_63 = arith.constant 0 : index
    %106 = vector.load %arg7[%c0_61, %c0_62, %c0_63] : memref<2x64x128xf32, #tpu.memory_space<vmem>>, vector<2x64x128xf32>
    tpu.vector_store %arg7[%c0_61, %c0_62, %c0_63], %105 {strides = array<i32>} : memref<2x64x128xf32, #tpu.memory_space<vmem>>, vector<2x64x128xf32>,
    %cst_64 = arith.constant dense<0.000000e+00> : vector<128xf32>
    %107 = vector.multi_reduction <add>, %104, %cst_64 [0] : vector<128x128xf32> to vector<128xf32>
    %108 = vector.shape_cast %107 : vector<128xf32> to vector<1x128xf32>
    %109 = arith.mulf %104, %104 : vector<128x128xf32>
    %cst_65 = arith.constant dense<0.000000e+00> : vector<128xf32>
    %110 = vector.multi_reduction <add>, %109, %cst_65 [0] : vector<128x128xf32> to vector<128xf32>
    %111 = vector.shape_cast %110 : vector<128xf32> to vector<1x128xf32>
    %cst_66 = arith.constant 0.000000e+00 : f32
    %112 = vector.broadcast %cst_66 : f32 to vector<1x8x128xf32>
    %c0_67 = arith.constant 0 : index
    %c0_68 = arith.constant 0 : index
    %c0_69 = arith.constant 0 : index
    %113 = vector.load %arg8[%c0_67, %c0_68, %c0_69] : memref<1x8x128xf32, #tpu.memory_space<vmem>>, vector<1x8x128xf32>
    tpu.vector_store %arg8[%c0_67, %c0_68, %c0_69], %112 {strides = array<i32>} : memref<1x8x128xf32, #tpu.memory_space<vmem>>, vector<1x8x128xf32>,
    %114 = vector.shape_cast %108 : vector<1x128xf32> to vector<1x1x128xf32>
    %c0_70 = arith.constant 0 : index
    %c0_71 = arith.constant 0 : index
    %c0_72 = arith.constant 0 : index
    %115 = vector.load %arg8[%c0_70, %c0_71, %c0_72] : memref<1x8x128xf32, #tpu.memory_space<vmem>>, vector<1x1x128xf32>
    tpu.vector_store %arg8[%c0_70, %c0_71, %c0_72], %114 {strides = array<i32>} : memref<1x8x128xf32, #tpu.memory_space<vmem>>, vector<1x1x128xf32>,
    %116 = vector.shape_cast %111 : vector<1x128xf32> to vector<1x1x128xf32>
    %c0_73 = arith.constant 0 : index
    %c1_74 = arith.constant 1 : index
    %c0_75 = arith.constant 0 : index
    %117 = vector.load %arg8[%c0_73, %c1_74, %c0_75] : memref<1x8x128xf32, #tpu.memory_space<vmem>>, vector<1x1x128xf32>
    tpu.vector_store %arg8[%c0_73, %c1_74, %c0_75], %116 {strides = array<i32>} : memref<1x8x128xf32, #tpu.memory_space<vmem>>, vector<1x1x128xf32>,
    return
  }
  func.func @transform_0(%arg0: i32) -> (i32, i32, i32, i32) {
    %c0_i32 = arith.constant 0 : i32
    %c0_i32_0 = arith.constant 0 : i32
    %c0_i32_1 = arith.constant 0 : i32
    %c0_i32_2 = arith.constant 0 : i32
    return %arg0, %c0_i32, %c0_i32_0, %c0_i32_1 : i32, i32, i32, i32
  }
  func.func @transform_1(%arg0: i32) -> (i32, i32, i32) {
    %c0_i32 = arith.constant 0 : i32
    %c0_i32_0 = arith.constant 0 : i32
    %c0_i32_1 = arith.constant 0 : i32
    %c0_i32_2 = arith.constant 0 : i32
    return %c0_i32, %c0_i32_0, %c0_i32_1 : i32, i32, i32
  }
  func.func @transform_2(%arg0: i32) -> (i32, i32) {
    %c0_i32 = arith.constant 0 : i32
    %c0_i32_0 = arith.constant 0 : i32
    %c0_i32_1 = arith.constant 0 : i32
    return %c0_i32, %c0_i32_0 : i32, i32
  }
  func.func @transform_3(%arg0: i32) -> (i32, i32) {
    %c0_i32 = arith.constant 0 : i32
    %c0_i32_0 = arith.constant 0 : i32
    %c0_i32_1 = arith.constant 0 : i32
    return %c0_i32, %c0_i32_0 : i32, i32
  }
  func.func @transform_4(%arg0: i32) -> (i32, i32, i32) {
    %c0_i32 = arith.constant 0 : i32
    %c0_i32_0 = arith.constant 0 : i32
    %c0_i32_1 = arith.constant 0 : i32
    %c0_i32_2 = arith.constant 0 : i32
    return %c0_i32, %c0_i32_0, %c0_i32_1 : i32, i32, i32
  }
  func.func @transform_5(%arg0: i32) -> (i32, i32, i32) {
    %c0_i32 = arith.constant 0 : i32
    %c0_i32_0 = arith.constant 0 : i32
    %c0_i32_1 = arith.constant 0 : i32
    return %arg0, %c0_i32, %c0_i32_0 : i32, i32, i32
  }
  func.func @transform_6(%arg0: i32) -> (i32, i32, i32) {
    %c0_i32 = arith.constant 0 : i32
    %c0_i32_0 = arith.constant 0 : i32
    %c0_i32_1 = arith.constant 0 : i32
    return %arg0, %c0_i32, %c0_i32_0 : i32, i32, i32
  }
  func.func @transform_7(%arg0: i32) -> (i32, i32, i32) {
    %c0_i32 = arith.constant 0 : i32
    %c0_i32_0 = arith.constant 0 : i32
    %c0_i32_1 = arith.constant 0 : i32
    return %arg0, %c0_i32, %c0_i32_0 : i32, i32, i32
  }
}

module attributes {stable_mosaic.version = 11 : i64} {
  func.func @_fused_conv_kernel(%arg0: i32, %arg1: memref<2x8x8x128xf32, #tpu.memory_space<vmem>>, %arg2: memref<1x8x128xf32, #tpu.memory_space<vmem>>, %arg3: memref<1x128xf32, #tpu.memory_space<vmem>>, %arg4: memref<1x128xf32, #tpu.memory_space<vmem>>, %arg5: memref<9x128x128xbf16, #tpu.memory_space<vmem>>, %arg6: memref<2x64x128xf32, #tpu.memory_space<vmem>>, %arg7: memref<2x64x128xf32, #tpu.memory_space<vmem>>, %arg8: memref<1x8x128xf32, #tpu.memory_space<vmem>>, %arg9: memref<2x10x17x128xf32, #tpu.memory_space<vmem>>) attributes {dimension_semantics = [#tpu.dimension_semantics<parallel>], iteration_bounds = array<i64: 1>, scalar_prefetch = 0 : i64, scratch_operands = 1 : i64, tpu.core_type = #tpu.core_type<tc>, window_params = [{transform_indices = @transform_0, window_bounds = array<i64: 2, 8, 8, 128>}, {pipeline_mode = #tpu.pipeline_mode<synchronous>, transform_indices = @transform_1, window_bounds = array<i64: 1, 8, 128>}, {pipeline_mode = #tpu.pipeline_mode<synchronous>, transform_indices = @transform_2, window_bounds = array<i64: 1, 128>}, {pipeline_mode = #tpu.pipeline_mode<synchronous>, transform_indices = @transform_3, window_bounds = array<i64: 1, 128>}, {pipeline_mode = #tpu.pipeline_mode<synchronous>, transform_indices = @transform_4, window_bounds = array<i64: 9, 128, 128>}, {transform_indices = @transform_5, window_bounds = array<i64: 2, 64, 128>}, {transform_indices = @transform_6, window_bounds = array<i64: 2, 64, 128>}, {transform_indices = @transform_7, window_bounds = array<i64: 1, 8, 128>}]} {
    %c0 = arith.constant 0 : index
    %c0_0 = arith.constant 0 : index
    %c0_1 = arith.constant 0 : index
    %0 = vector.load %arg2[%c0, %c0_0, %c0_1] : memref<1x8x128xf32, #tpu.memory_space<vmem>>, vector<1x8x128xf32>
    %1 = vector.extract_strided_slice %0 {offsets = [0, 0, 0], sizes = [1, 1, 128], strides = [1, 1, 1]} : vector<1x8x128xf32> to vector<1x1x128xf32>
    %2 = vector.shape_cast %1 : vector<1x1x128xf32> to vector<1x128xf32>
    %cst = arith.constant dense<0.000000e+00> : vector<128xf32>
    %3 = vector.multi_reduction <add>, %2, %cst [0] : vector<1x128xf32> to vector<128xf32>
    %4 = vector.shape_cast %3 : vector<128xf32> to vector<1x128xf32>
    %5 = vector.extract_strided_slice %0 {offsets = [0, 1, 0], sizes = [1, 1, 128], strides = [1, 1, 1]} : vector<1x8x128xf32> to vector<1x1x128xf32>
    %6 = vector.shape_cast %5 : vector<1x1x128xf32> to vector<1x128xf32>
    %cst_2 = arith.constant dense<0.000000e+00> : vector<128xf32>
    %7 = vector.multi_reduction <add>, %6, %cst_2 [0] : vector<1x128xf32> to vector<128xf32>
    %8 = vector.shape_cast %7 : vector<128xf32> to vector<1x128xf32>
    %cst_3 = arith.constant 1.280000e+02 : f32
    %9 = vector.broadcast %cst_3 : f32 to vector<1x128xf32>
    %10 = arith.divf %4, %9 : vector<1x128xf32>
    %cst_4 = arith.constant 1.280000e+02 : f32
    %11 = vector.broadcast %cst_4 : f32 to vector<1x128xf32>
    %12 = arith.divf %8, %11 : vector<1x128xf32>
    %13 = arith.mulf %10, %10 : vector<1x128xf32>
    %14 = arith.subf %12, %13 : vector<1x128xf32>
    %cst_5 = arith.constant 0.000000e+00 : f32
    %15 = vector.broadcast %cst_5 : f32 to vector<1x128xf32>
    %16 = arith.maximumf %14, %15 : vector<1x128xf32>
    %c0_6 = arith.constant 0 : index
    %c0_7 = arith.constant 0 : index
    %17 = vector.load %arg3[%c0_6, %c0_7] : memref<1x128xf32, #tpu.memory_space<vmem>>, vector<1x128xf32>
    %cst_8 = arith.constant 9.99999974E-6 : f32
    %18 = vector.broadcast %cst_8 : f32 to vector<1x128xf32>
    %19 = arith.addf %16, %18 : vector<1x128xf32>
    %20 = math.rsqrt %19 : vector<1x128xf32>
    %21 = arith.mulf %17, %20 : vector<1x128xf32>
    %c0_9 = arith.constant 0 : index
    %c0_10 = arith.constant 0 : index
    %22 = vector.load %arg4[%c0_9, %c0_10] : memref<1x128xf32, #tpu.memory_space<vmem>>, vector<1x128xf32>
    %23 = arith.mulf %10, %21 : vector<1x128xf32>
    %24 = arith.subf %22, %23 : vector<1x128xf32>
    %25 = vector.shape_cast %21 : vector<1x128xf32> to vector<1x1x1x128xf32>
    %26 = vector.shape_cast %24 : vector<1x128xf32> to vector<1x1x1x128xf32>
    %c0_11 = arith.constant 0 : index
    %c0_12 = arith.constant 0 : index
    %c0_13 = arith.constant 0 : index
    %c0_14 = arith.constant 0 : index
    %27 = vector.load %arg1[%c0_11, %c0_12, %c0_13, %c0_14] : memref<2x8x8x128xf32, #tpu.memory_space<vmem>>, vector<2x8x8x128xf32>
    %28 = vector.broadcast %25 : vector<1x1x1x128xf32> to vector<2x8x8x128xf32>
    %29 = arith.mulf %27, %28 : vector<2x8x8x128xf32>
    %30 = vector.broadcast %26 : vector<1x1x1x128xf32> to vector<2x8x8x128xf32>
    %31 = arith.addf %29, %30 : vector<2x8x8x128xf32>
    %cst_15 = arith.constant 0.000000e+00 : f32
    %32 = vector.broadcast %cst_15 : f32 to vector<2x8x8x128xf32>
    %33 = arith.maximumf %31, %32 : vector<2x8x8x128xf32>
    %cst_16 = arith.constant 0.000000e+00 : f32
    %34 = vector.broadcast %cst_16 : f32 to vector<2x10x17x128xf32>
    %c0_17 = arith.constant 0 : index
    %c0_18 = arith.constant 0 : index
    %c0_19 = arith.constant 0 : index
    %c0_20 = arith.constant 0 : index
    %35 = vector.load %arg9[%c0_17, %c0_18, %c0_19, %c0_20] : memref<2x10x17x128xf32, #tpu.memory_space<vmem>>, vector<2x10x17x128xf32>
    tpu.vector_store %arg9[%c0_17, %c0_18, %c0_19, %c0_20], %34 {strides = array<i32>} : memref<2x10x17x128xf32, #tpu.memory_space<vmem>>, vector<2x10x17x128xf32>,
    %c0_21 = arith.constant 0 : index
    %c1 = arith.constant 1 : index
    %c8 = arith.constant 8 : index
    %c0_22 = arith.constant 0 : index
    %36 = vector.load %arg9[%c0_21, %c1, %c8, %c0_22] : memref<2x10x17x128xf32, #tpu.memory_space<vmem>>, vector<2x8x8x128xf32>
    tpu.vector_store %arg9[%c0_21, %c1, %c8, %c0_22], %33 {strides = array<i32>} : memref<2x10x17x128xf32, #tpu.memory_space<vmem>>, vector<2x8x8x128xf32>,
    %c0_23 = arith.constant 0 : index
    %c0_24 = arith.constant 0 : index
    %c0_25 = arith.constant 0 : index
    %c0_26 = arith.constant 0 : index
    %37 = vector.load %arg9[%c0_23, %c0_24, %c0_25, %c0_26] : memref<2x10x17x128xf32, #tpu.memory_space<vmem>>, vector<2x10x17x128xf32>
    %cst_27 = arith.constant 0.000000e+00 : f32
    %38 = vector.broadcast %cst_27 : f32 to vector<128x128xf32>
    %39 = vector.extract_strided_slice %37 {offsets = [0, 0, 7, 0], sizes = [2, 8, 8, 128], strides = [1, 1, 1, 1]} : vector<2x10x17x128xf32> to vector<2x8x8x128xf32>
    %40 = vector.shape_cast %39 : vector<2x8x8x128xf32> to vector<128x128xf32>
    %41 = arith.truncf %40 : vector<128x128xf32> to vector<128x128xbf16>
    %c0_28 = arith.constant 0 : index
    %c0_29 = arith.constant 0 : index
    %c0_30 = arith.constant 0 : index
    %42 = vector.load %arg5[%c0_28, %c0_29, %c0_30] : memref<9x128x128xbf16, #tpu.memory_space<vmem>>, vector<1x128x128xbf16>
    %43 = vector.shape_cast %42 : vector<1x128x128xbf16> to vector<128x128xbf16>
    %cst_31 = arith.constant dense<0.000000e+00> : vector<128x128xf32>
    %44 = tpu.matmul %41, %43, %cst_31 {dimension_numbers = #tpu.dot_dimension_numbers<[1], [0], [0], [1], [0, 0, 1, 1], [], []>} : vector<128x128xbf16>, vector<128x128xbf16>, vector<128x128xf32> -> vector<128x128xf32>
    %45 = arith.addf %38, %44 : vector<128x128xf32>
    %46 = vector.extract_strided_slice %37 {offsets = [0, 0, 8, 0], sizes = [2, 8, 8, 128], strides = [1, 1, 1, 1]} : vector<2x10x17x128xf32> to vector<2x8x8x128xf32>
    %47 = vector.shape_cast %46 : vector<2x8x8x128xf32> to vector<128x128xf32>
    %48 = arith.truncf %47 : vector<128x128xf32> to vector<128x128xbf16>
    %c1_32 = arith.constant 1 : index
    %c0_33 = arith.constant 0 : index
    %c0_34 = arith.constant 0 : index
    %49 = vector.load %arg5[%c1_32, %c0_33, %c0_34] : memref<9x128x128xbf16, #tpu.memory_space<vmem>>, vector<1x128x128xbf16>
    %50 = vector.shape_cast %49 : vector<1x128x128xbf16> to vector<128x128xbf16>
    %cst_35 = arith.constant dense<0.000000e+00> : vector<128x128xf32>
    %51 = tpu.matmul %48, %50, %cst_35 {dimension_numbers = #tpu.dot_dimension_numbers<[1], [0], [0], [1], [0, 0, 1, 1], [], []>} : vector<128x128xbf16>, vector<128x128xbf16>, vector<128x128xf32> -> vector<128x128xf32>
    %52 = arith.addf %45, %51 : vector<128x128xf32>
    %53 = vector.extract_strided_slice %37 {offsets = [0, 0, 9, 0], sizes = [2, 8, 8, 128], strides = [1, 1, 1, 1]} : vector<2x10x17x128xf32> to vector<2x8x8x128xf32>
    %54 = vector.shape_cast %53 : vector<2x8x8x128xf32> to vector<128x128xf32>
    %55 = arith.truncf %54 : vector<128x128xf32> to vector<128x128xbf16>
    %c2 = arith.constant 2 : index
    %c0_36 = arith.constant 0 : index
    %c0_37 = arith.constant 0 : index
    %56 = vector.load %arg5[%c2, %c0_36, %c0_37] : memref<9x128x128xbf16, #tpu.memory_space<vmem>>, vector<1x128x128xbf16>
    %57 = vector.shape_cast %56 : vector<1x128x128xbf16> to vector<128x128xbf16>
    %cst_38 = arith.constant dense<0.000000e+00> : vector<128x128xf32>
    %58 = tpu.matmul %55, %57, %cst_38 {dimension_numbers = #tpu.dot_dimension_numbers<[1], [0], [0], [1], [0, 0, 1, 1], [], []>} : vector<128x128xbf16>, vector<128x128xbf16>, vector<128x128xf32> -> vector<128x128xf32>
    %59 = arith.addf %52, %58 : vector<128x128xf32>
    %60 = vector.extract_strided_slice %37 {offsets = [0, 1, 7, 0], sizes = [2, 8, 8, 128], strides = [1, 1, 1, 1]} : vector<2x10x17x128xf32> to vector<2x8x8x128xf32>
    %61 = vector.shape_cast %60 : vector<2x8x8x128xf32> to vector<128x128xf32>
    %62 = arith.truncf %61 : vector<128x128xf32> to vector<128x128xbf16>
    %c3 = arith.constant 3 : index
    %c0_39 = arith.constant 0 : index
    %c0_40 = arith.constant 0 : index
    %63 = vector.load %arg5[%c3, %c0_39, %c0_40] : memref<9x128x128xbf16, #tpu.memory_space<vmem>>, vector<1x128x128xbf16>
    %64 = vector.shape_cast %63 : vector<1x128x128xbf16> to vector<128x128xbf16>
    %cst_41 = arith.constant dense<0.000000e+00> : vector<128x128xf32>
    %65 = tpu.matmul %62, %64, %cst_41 {dimension_numbers = #tpu.dot_dimension_numbers<[1], [0], [0], [1], [0, 0, 1, 1], [], []>} : vector<128x128xbf16>, vector<128x128xbf16>, vector<128x128xf32> -> vector<128x128xf32>
    %66 = arith.addf %59, %65 : vector<128x128xf32>
    %67 = vector.extract_strided_slice %37 {offsets = [0, 1, 8, 0], sizes = [2, 8, 8, 128], strides = [1, 1, 1, 1]} : vector<2x10x17x128xf32> to vector<2x8x8x128xf32>
    %68 = vector.shape_cast %67 : vector<2x8x8x128xf32> to vector<128x128xf32>
    %69 = arith.truncf %68 : vector<128x128xf32> to vector<128x128xbf16>
    %c4 = arith.constant 4 : index
    %c0_42 = arith.constant 0 : index
    %c0_43 = arith.constant 0 : index
    %70 = vector.load %arg5[%c4, %c0_42, %c0_43] : memref<9x128x128xbf16, #tpu.memory_space<vmem>>, vector<1x128x128xbf16>
    %71 = vector.shape_cast %70 : vector<1x128x128xbf16> to vector<128x128xbf16>
    %cst_44 = arith.constant dense<0.000000e+00> : vector<128x128xf32>
    %72 = tpu.matmul %69, %71, %cst_44 {dimension_numbers = #tpu.dot_dimension_numbers<[1], [0], [0], [1], [0, 0, 1, 1], [], []>} : vector<128x128xbf16>, vector<128x128xbf16>, vector<128x128xf32> -> vector<128x128xf32>
    %73 = arith.addf %66, %72 : vector<128x128xf32>
    %74 = vector.extract_strided_slice %37 {offsets = [0, 1, 9, 0], sizes = [2, 8, 8, 128], strides = [1, 1, 1, 1]} : vector<2x10x17x128xf32> to vector<2x8x8x128xf32>
    %75 = vector.shape_cast %74 : vector<2x8x8x128xf32> to vector<128x128xf32>
    %76 = arith.truncf %75 : vector<128x128xf32> to vector<128x128xbf16>
    %c5 = arith.constant 5 : index
    %c0_45 = arith.constant 0 : index
    %c0_46 = arith.constant 0 : index
    %77 = vector.load %arg5[%c5, %c0_45, %c0_46] : memref<9x128x128xbf16, #tpu.memory_space<vmem>>, vector<1x128x128xbf16>
    %78 = vector.shape_cast %77 : vector<1x128x128xbf16> to vector<128x128xbf16>
    %cst_47 = arith.constant dense<0.000000e+00> : vector<128x128xf32>
    %79 = tpu.matmul %76, %78, %cst_47 {dimension_numbers = #tpu.dot_dimension_numbers<[1], [0], [0], [1], [0, 0, 1, 1], [], []>} : vector<128x128xbf16>, vector<128x128xbf16>, vector<128x128xf32> -> vector<128x128xf32>
    %80 = arith.addf %73, %79 : vector<128x128xf32>
    %81 = vector.extract_strided_slice %37 {offsets = [0, 2, 7, 0], sizes = [2, 8, 8, 128], strides = [1, 1, 1, 1]} : vector<2x10x17x128xf32> to vector<2x8x8x128xf32>
    %82 = vector.shape_cast %81 : vector<2x8x8x128xf32> to vector<128x128xf32>
    %83 = arith.truncf %82 : vector<128x128xf32> to vector<128x128xbf16>
    %c6 = arith.constant 6 : index
    %c0_48 = arith.constant 0 : index
    %c0_49 = arith.constant 0 : index
    %84 = vector.load %arg5[%c6, %c0_48, %c0_49] : memref<9x128x128xbf16, #tpu.memory_space<vmem>>, vector<1x128x128xbf16>
    %85 = vector.shape_cast %84 : vector<1x128x128xbf16> to vector<128x128xbf16>
    %cst_50 = arith.constant dense<0.000000e+00> : vector<128x128xf32>
    %86 = tpu.matmul %83, %85, %cst_50 {dimension_numbers = #tpu.dot_dimension_numbers<[1], [0], [0], [1], [0, 0, 1, 1], [], []>} : vector<128x128xbf16>, vector<128x128xbf16>, vector<128x128xf32> -> vector<128x128xf32>
    %87 = arith.addf %80, %86 : vector<128x128xf32>
    %88 = vector.extract_strided_slice %37 {offsets = [0, 2, 8, 0], sizes = [2, 8, 8, 128], strides = [1, 1, 1, 1]} : vector<2x10x17x128xf32> to vector<2x8x8x128xf32>
    %89 = vector.shape_cast %88 : vector<2x8x8x128xf32> to vector<128x128xf32>
    %90 = arith.truncf %89 : vector<128x128xf32> to vector<128x128xbf16>
    %c7 = arith.constant 7 : index
    %c0_51 = arith.constant 0 : index
    %c0_52 = arith.constant 0 : index
    %91 = vector.load %arg5[%c7, %c0_51, %c0_52] : memref<9x128x128xbf16, #tpu.memory_space<vmem>>, vector<1x128x128xbf16>
    %92 = vector.shape_cast %91 : vector<1x128x128xbf16> to vector<128x128xbf16>
    %cst_53 = arith.constant dense<0.000000e+00> : vector<128x128xf32>
    %93 = tpu.matmul %90, %92, %cst_53 {dimension_numbers = #tpu.dot_dimension_numbers<[1], [0], [0], [1], [0, 0, 1, 1], [], []>} : vector<128x128xbf16>, vector<128x128xbf16>, vector<128x128xf32> -> vector<128x128xf32>
    %94 = arith.addf %87, %93 : vector<128x128xf32>
    %95 = vector.extract_strided_slice %37 {offsets = [0, 2, 9, 0], sizes = [2, 8, 8, 128], strides = [1, 1, 1, 1]} : vector<2x10x17x128xf32> to vector<2x8x8x128xf32>
    %96 = vector.shape_cast %95 : vector<2x8x8x128xf32> to vector<128x128xf32>
    %97 = arith.truncf %96 : vector<128x128xf32> to vector<128x128xbf16>
    %c8_54 = arith.constant 8 : index
    %c0_55 = arith.constant 0 : index
    %c0_56 = arith.constant 0 : index
    %98 = vector.load %arg5[%c8_54, %c0_55, %c0_56] : memref<9x128x128xbf16, #tpu.memory_space<vmem>>, vector<1x128x128xbf16>
    %99 = vector.shape_cast %98 : vector<1x128x128xbf16> to vector<128x128xbf16>
    %cst_57 = arith.constant dense<0.000000e+00> : vector<128x128xf32>
    %100 = tpu.matmul %97, %99, %cst_57 {dimension_numbers = #tpu.dot_dimension_numbers<[1], [0], [0], [1], [0, 0, 1, 1], [], []>} : vector<128x128xbf16>, vector<128x128xbf16>, vector<128x128xf32> -> vector<128x128xf32>
    %101 = arith.addf %94, %100 : vector<128x128xf32>
    %c0_58 = arith.constant 0 : index
    %c0_59 = arith.constant 0 : index
    %c0_60 = arith.constant 0 : index
    %102 = vector.load %arg6[%c0_58, %c0_59, %c0_60] : memref<2x64x128xf32, #tpu.memory_space<vmem>>, vector<2x64x128xf32>
    %103 = vector.shape_cast %102 : vector<2x64x128xf32> to vector<128x128xf32>
    %104 = arith.addf %101, %103 : vector<128x128xf32>
    %105 = vector.shape_cast %104 : vector<128x128xf32> to vector<2x64x128xf32>
    %c0_61 = arith.constant 0 : index
    %c0_62 = arith.constant 0 : index
    %c0_63 = arith.constant 0 : index
    %106 = vector.load %arg7[%c0_61, %c0_62, %c0_63] : memref<2x64x128xf32, #tpu.memory_space<vmem>>, vector<2x64x128xf32>
    tpu.vector_store %arg7[%c0_61, %c0_62, %c0_63], %105 {strides = array<i32>} : memref<2x64x128xf32, #tpu.memory_space<vmem>>, vector<2x64x128xf32>,
    %cst_64 = arith.constant dense<0.000000e+00> : vector<128xf32>
    %107 = vector.multi_reduction <add>, %104, %cst_64 [0] : vector<128x128xf32> to vector<128xf32>
    %108 = vector.shape_cast %107 : vector<128xf32> to vector<1x128xf32>
    %109 = arith.mulf %104, %104 : vector<128x128xf32>
    %cst_65 = arith.constant dense<0.000000e+00> : vector<128xf32>
    %110 = vector.multi_reduction <add>, %109, %cst_65 [0] : vector<128x128xf32> to vector<128xf32>
    %111 = vector.shape_cast %110 : vector<128xf32> to vector<1x128xf32>
    %cst_66 = arith.constant 0.000000e+00 : f32
    %112 = vector.broadcast %cst_66 : f32 to vector<1x8x128xf32>
    %c0_67 = arith.constant 0 : index
    %c0_68 = arith.constant 0 : index
    %c0_69 = arith.constant 0 : index
    %113 = vector.load %arg8[%c0_67, %c0_68, %c0_69] : memref<1x8x128xf32, #tpu.memory_space<vmem>>, vector<1x8x128xf32>
    tpu.vector_store %arg8[%c0_67, %c0_68, %c0_69], %112 {strides = array<i32>} : memref<1x8x128xf32, #tpu.memory_space<vmem>>, vector<1x8x128xf32>,
    %114 = vector.shape_cast %108 : vector<1x128xf32> to vector<1x1x128xf32>
    %c0_70 = arith.constant 0 : index
    %c0_71 = arith.constant 0 : index
    %c0_72 = arith.constant 0 : index
    %115 = vector.load %arg8[%c0_70, %c0_71, %c0_72] : memref<1x8x128xf32, #tpu.memory_space<vmem>>, vector<1x1x128xf32>
    tpu.vector_store %arg8[%c0_70, %c0_71, %c0_72], %114 {strides = array<i32>} : memref<1x8x128xf32, #tpu.memory_space<vmem>>, vector<1x1x128xf32>,
    %116 = vector.shape_cast %111 : vector<1x128xf32> to vector<1x1x128xf32>
    %c0_73 = arith.constant 0 : index
    %c1_74 = arith.constant 1 : index
    %c0_75 = arith.constant 0 : index
    %117 = vector.load %arg8[%c0_73, %c1_74, %c0_75] : memref<1x8x128xf32, #tpu.memory_space<vmem>>, vector<1x1x128xf32>
    tpu.vector_store %arg8[%c0_73, %c1_74, %c0_75], %116 {strides = array<i32>} : memref<1x8x128xf32, #tpu.memory_space<vmem>>, vector<1x1x128xf32>,
    return
  }
  func.func @transform_0(%arg0: i32) -> (i32, i32, i32, i32) {
    %c0_i32 = arith.constant 0 : i32
    %c0_i32_0 = arith.constant 0 : i32
    %c0_i32_1 = arith.constant 0 : i32
    %c0_i32_2 = arith.constant 0 : i32
    return %arg0, %c0_i32, %c0_i32_0, %c0_i32_1 : i32, i32, i32, i32
  }
  func.func @transform_1(%arg0: i32) -> (i32, i32, i32) {
    %c0_i32 = arith.constant 0 : i32
    %c0_i32_0 = arith.constant 0 : i32
    %c0_i32_1 = arith.constant 0 : i32
    %c0_i32_2 = arith.constant 0 : i32
    return %c0_i32, %c0_i32_0, %c0_i32_1 : i32, i32, i32
  }
  func.func @transform_2(%arg0: i32) -> (i32, i32) {
    %c0_i32 = arith.constant 0 : i32
    %c0_i32_0 = arith.constant 0 : i32
    %c0_i32_1 = arith.constant 0 : i32
    return %c0_i32, %c0_i32_0 : i32, i32
  }
  func.func @transform_3(%arg0: i32) -> (i32, i32) {
    %c0_i32 = arith.constant 0 : i32
    %c0_i32_0 = arith.constant 0 : i32
    %c0_i32_1 = arith.constant 0 : i32
    return %c0_i32, %c0_i32_0 : i32, i32
  }
  func.func @transform_4(%arg0: i32) -> (i32, i32, i32) {
    %c0_i32 = arith.constant 0 : i32
    %c0_i32_0 = arith.constant 0 : i32
    %c0_i32_1 = arith.constant 0 : i32
    %c0_i32_2 = arith.constant 0 : i32
    return %c0_i32, %c0_i32_0, %c0_i32_1 : i32, i32, i32
  }
  func.func @transform_5(%arg0: i32) -> (i32, i32, i32) {
    %c0_i32 = arith.constant 0 : i32
    %c0_i32_0 = arith.constant 0 : i32
    %c0_i32_1 = arith.constant 0 : i32
    return %arg0, %c0_i32, %c0_i32_0 : i32, i32, i32
  }
  func.func @transform_6(%arg0: i32) -> (i32, i32, i32) {
    %c0_i32 = arith.constant 0 : i32
    %c0_i32_0 = arith.constant 0 : i32
    %c0_i32_1 = arith.constant 0 : i32
    return %arg0, %c0_i32, %c0_i32_0 : i32, i32, i32
  }
  func.func @transform_7(%arg0: i32) -> (i32, i32, i32) {
    %c0_i32 = arith.constant 0 : i32
    %c0_i32_0 = arith.constant 0 : i32
    %c0_i32_1 = arith.constant 0 : i32
    return %arg0, %c0_i32, %c0_i32_0 : i32, i32, i32
  }
}

</mosaic_0001>

<bundles_post_ra>
// kernel: network_block_forward.5
= control target key start
LH: loop header
LB: loop body
LE: loop exit
PB: predicated region body
PF: predicated region fallthrough
CT: control target
= control target key end

     0   :  { %v282_v50 = vmov 0.0   ;;  %s494_s0 = inlined_call_operand.vmem [shape: f32[2,16,16,128], index: 0, kind: input, shape index: {}]   ;;  %s495_s1 = inlined_call_operand.vmem [shape: f32[1,8,128], index: 1, kind: output, shape index: {}]  }
   0x1   :  { %v8_v0 = vld [vmem:[%s494_s0] sm:$0xff]  ;;  %v9_v1 = vld [vmem:[%s494_s0 + $0x8] sm:$0xff]  ;;  %v10_v2 = vld [vmem:[%s494_s0 + $0x10] sm:$0xff]  ;;  %274 = vst [vmem:[%s495_s1] sm:$0xff] %v282_v50 }
   0x2   :  { %v11_v3 = vld [vmem:[%s494_s0 + $0x18] sm:$0xff]  ;;  %v72_v4 = vadd.f32 %v9_v1, %v8_v0  ;;  %v141_v5 = vmul.f32 %v8_v0, %v8_v0  ;;  %v142_v6 = vmul.f32 %v9_v1, %v9_v1  ;;  %v143_v7 = vmul.f32 %v10_v2, %v10_v2  ;;  %v12_v8 = vld [vmem:[%s494_s0 + $0x20] sm:$0xff]  ;;  %v13_v12 = vld [vmem:[%s494_s0 + $0x28] sm:$0xff] }
   0x3   :  { %v144_v10 = vmul.f32 %v11_v3, %v11_v3  ;;  %v145_v14 = vmul.f32 %v12_v8, %v12_v8  ;;  %v14_v16 = vld [vmem:[%s494_s0 + $0x30] sm:$0xff]  ;;  %v146_v18 = vmul.f32 %v13_v12, %v13_v12  ;;  %v15_v20 = vld [vmem:[%s494_s0 + $0x38] sm:$0xff]  ;;  %v16_v24 = vld [vmem:[%s494_s0 + $0x40] sm:$0xff] }
   0x4   :  { %v73_v9 = vadd.f32 %v72_v4, %v10_v2  ;;  %v205_v11 = vadd.f32 %v142_v6, %v141_v5  ;;  %v147_v22 = vmul.f32 %v14_v16, %v14_v16  ;;  %v148_v26 = vmul.f32 %v15_v20, %v15_v20  ;;  %v17_v28 = vld [vmem:[%s494_s0 + $0x48] sm:$0xff]  ;;  %v18_v32 = vld [vmem:[%s494_s0 + $0x50] sm:$0xff]  ;;  %v19_v36 = vld [vmem:[%s494_s0 + $0x58] sm:$0xff] }
   0x5   :  { %v149_v30 = vmul.f32 %v16_v24, %v16_v24  ;;  %v150_v34 = vmul.f32 %v17_v28, %v17_v28  ;;  %v151_v38 = vmul.f32 %v18_v32, %v18_v32  ;;  %v20_v40 = vld [vmem:[%s494_s0 + $0x60] sm:$0xff]  ;;  %v152_v42 = vmul.f32 %v19_v36, %v19_v36  ;;  %v21_v44 = vld [vmem:[%s494_s0 + $0x68] sm:$0xff]  ;;  %v22_v48 = vld [vmem:[%s494_s0 + $0x70] sm:$0xff] }
   0x6   :  { %v74_v13 = vadd.f32 %v73_v9, %v11_v3  ;;  %v206_v15 = vadd.f32 %v205_v11, %v143_v7  ;;  %v153_v46 = vmul.f32 %v20_v40, %v20_v40  ;;  %v154_v51 = vmul.f32 %v21_v44, %v21_v44  ;;  %v23_v53 = vld [vmem:[%s494_s0 + $0x78] sm:$0xff]  ;;  %v24_v57 = vld [vmem:[%s494_s0 + $0x80] sm:$0xff]  ;;  %v25_v61 = vld [vmem:[%s494_s0 + $0x88] sm:$0xff] }
   0x7   :  { %v155_v55 = vmul.f32 %v22_v48, %v22_v48  ;;  %v156_v59 = vmul.f32 %v23_v53, %v23_v53  ;;  %v157_v63 = vmul.f32 %v24_v57, %v24_v57  ;;  %v26_v1 = vld [vmem:[%s494_s0 + $0x90] sm:$0xff]  ;;  %v158_v3 = vmul.f32 %v25_v61, %v25_v61  ;;  %v27_v5 = vld [vmem:[%s494_s0 + $0x98] sm:$0xff]  ;;  %v28_v9 = vld [vmem:[%s494_s0 + $0xa0] sm:$0xff] }
   0x8   :  { %v75_v17 = vadd.f32 %v74_v13, %v12_v8  ;;  %v207_v19 = vadd.f32 %v206_v15, %v144_v10  ;;  %v159_v7 = vmul.f32 %v26_v1, %v26_v1  ;;  %v160_v11 = vmul.f32 %v27_v5, %v27_v5  ;;  %v29_v13 = vld [vmem:[%s494_s0 + $0xa8] sm:$0xff] }
   0x9   :  { %v161_v15 = vmul.f32 %v28_v9, %v28_v9 }
   0xa   :  { %v76_v21 = vadd.f32 %v75_v17, %v13_v12  ;;  %v208_v23 = vadd.f32 %v207_v19, %v145_v14  ;;  %v30_v17 = vld [vmem:[%s494_s0 + $0xb0] sm:$0xff]  ;;  %v162_v19 = vmul.f32 %v29_v13, %v29_v13 }
   0xc   :  { %v77_v25 = vadd.f32 %v76_v21, %v14_v16  ;;  %v209_v27 = vadd.f32 %v208_v23, %v146_v18  ;;  %v31_v21 = vld [vmem:[%s494_s0 + $0xb8] sm:$0xff]  ;;  %v163_v23 = vmul.f32 %v30_v17, %v30_v17 }
   0xe   :  { %v78_v29 = vadd.f32 %v77_v25, %v15_v20  ;;  %v210_v31 = vadd.f32 %v209_v27, %v147_v22  ;;  %v32_v25 = vld [vmem:[%s494_s0 + $0xc0] sm:$0xff]  ;;  %v164_v27 = vmul.f32 %v31_v21, %v31_v21 }
  0x10   :  { %v79_v33 = vadd.f32 %v78_v29, %v16_v24  ;;  %v211_v35 = vadd.f32 %v210_v31, %v148_v26  ;;  %v33_v29 = vld [vmem:[%s494_s0 + $0xc8] sm:$0xff]  ;;  %v165_v31 = vmul.f32 %v32_v25, %v32_v25 }
  0x12   :  { %v80_v37 = vadd.f32 %v79_v33, %v17_v28  ;;  %v212_v39 = vadd.f32 %v211_v35, %v149_v30  ;;  %v34_v33 = vld [vmem:[%s494_s0 + $0xd0] sm:$0xff]  ;;  %v166_v35 = vmul.f32 %v33_v29, %v33_v29 }
  0x14   :  { %v81_v41 = vadd.f32 %v80_v37, %v18_v32  ;;  %v213_v43 = vadd.f32 %v212_v39, %v150_v34  ;;  %v35_v37 = vld [vmem:[%s494_s0 + $0xd8] sm:$0xff]  ;;  %v167_v39 = vmul.f32 %v34_v33, %v34_v33 }
  0x16   :  { %v82_v45 = vadd.f32 %v81_v41, %v19_v36  ;;  %v214_v47 = vadd.f32 %v213_v43, %v151_v38  ;;  %v36_v41 = vld [vmem:[%s494_s0 + $0xe0] sm:$0xff]  ;;  %v168_v43 = vmul.f32 %v35_v37, %v35_v37 }
  0x18   :  { %v83_v49 = vadd.f32 %v82_v45, %v20_v40  ;;  %v215_v52 = vadd.f32 %v214_v47, %v152_v42  ;;  %v37_v45 = vld [vmem:[%s494_s0 + $0xe8] sm:$0xff]  ;;  %v169_v47 = vmul.f32 %v36_v41, %v36_v41 }
  0x1a   :  { %v84_v54 = vadd.f32 %v83_v49, %v21_v44  ;;  %v216_v56 = vadd.f32 %v215_v52, %v153_v46  ;;  %v38_v49 = vld [vmem:[%s494_s0 + $0xf0] sm:$0xff] }
  0x1c   :  { %v85_v58 = vadd.f32 %v84_v54, %v22_v48  ;;  %v217_v60 = vadd.f32 %v216_v56, %v154_v51  ;;  %v170_v51 = vmul.f32 %v37_v45, %v37_v45 }
  0x1e   :  { %v86_v62 = vadd.f32 %v85_v58, %v23_v53  ;;  %v218_v0 = vadd.f32 %v217_v60, %v155_v55  ;;  %v39_v53 = vld [vmem:[%s494_s0 + $0xf8] sm:$0xff]  ;;  %v171_v55 = vmul.f32 %v38_v49, %v38_v49 }
  0x20   :  { %v87_v2 = vadd.f32 %v86_v62, %v24_v57  ;;  %v219_v4 = vadd.f32 %v218_v0, %v156_v59  ;;  %v40_v57 = vld [vmem:[%s494_s0 + $0x100] sm:$0xff]  ;;  %v172_v59 = vmul.f32 %v39_v53, %v39_v53 }
  0x22   :  { %v88_v6 = vadd.f32 %v87_v2, %v25_v61  ;;  %v220_v8 = vadd.f32 %v219_v4, %v157_v63  ;;  %v41_v61 = vld [vmem:[%s494_s0 + $0x108] sm:$0xff]  ;;  %v173_v63 = vmul.f32 %v40_v57, %v40_v57 }
  0x24   :  { %v89_v10 = vadd.f32 %v88_v6, %v26_v1  ;;  %v221_v12 = vadd.f32 %v220_v8, %v158_v3  ;;  %v42_v1 = vld [vmem:[%s494_s0 + $0x110] sm:$0xff]  ;;  %v174_v3 = vmul.f32 %v41_v61, %v41_v61 }
  0x26   :  { %v90_v14 = vadd.f32 %v89_v10, %v27_v5  ;;  %v222_v16 = vadd.f32 %v221_v12, %v159_v7  ;;  %v43_v5 = vld [vmem:[%s494_s0 + $0x118] sm:$0xff]  ;;  %v175_v7 = vmul.f32 %v42_v1, %v42_v1 }
  0x28   :  { %v91_v18 = vadd.f32 %v90_v14, %v28_v9  ;;  %v223_v20 = vadd.f32 %v222_v16, %v160_v11  ;;  %v44_v9 = vld [vmem:[%s494_s0 + $0x120] sm:$0xff]  ;;  %v176_v11 = vmul.f32 %v43_v5, %v43_v5 }
  0x2a   :  { %v92_v22 = vadd.f32 %v91_v18, %v29_v13  ;;  %v224_v24 = vadd.f32 %v223_v20, %v161_v15  ;;  %v45_v13 = vld [vmem:[%s494_s0 + $0x128] sm:$0xff]  ;;  %v177_v15 = vmul.f32 %v44_v9, %v44_v9 }
  0x2c   :  { %v93_v26 = vadd.f32 %v92_v22, %v30_v17  ;;  %v225_v28 = vadd.f32 %v224_v24, %v162_v19  ;;  %v46_v17 = vld [vmem:[%s494_s0 + $0x130] sm:$0xff]  ;;  %v178_v19 = vmul.f32 %v45_v13, %v45_v13 }
  0x2e   :  { %v94_v30 = vadd.f32 %v93_v26, %v31_v21  ;;  %v226_v32 = vadd.f32 %v225_v28, %v163_v23  ;;  %v47_v21 = vld [vmem:[%s494_s0 + $0x138] sm:$0xff]  ;;  %v179_v23 = vmul.f32 %v46_v17, %v46_v17 }
  0x30   :  { %v95_v34 = vadd.f32 %v94_v30, %v32_v25  ;;  %v227_v36 = vadd.f32 %v226_v32, %v164_v27  ;;  %v48_v25 = vld [vmem:[%s494_s0 + $0x140] sm:$0xff]  ;;  %v180_v27 = vmul.f32 %v47_v21, %v47_v21 }
  0x32   :  { %v96_v38 = vadd.f32 %v95_v34, %v33_v29  ;;  %v228_v40 = vadd.f32 %v227_v36, %v165_v31  ;;  %v49_v29 = vld [vmem:[%s494_s0 + $0x148] sm:$0xff]  ;;  %v181_v31 = vmul.f32 %v48_v25, %v48_v25 }
  0x34   :  { %v97_v42 = vadd.f32 %v96_v38, %v34_v33  ;;  %v229_v44 = vadd.f32 %v228_v40, %v166_v35  ;;  %v50_v33 = vld [vmem:[%s494_s0 + $0x150] sm:$0xff]  ;;  %v182_v35 = vmul.f32 %v49_v29, %v49_v29 }
  0x36   :  { %v98_v46 = vadd.f32 %v97_v42, %v35_v37  ;;  %v230_v48 = vadd.f32 %v229_v44, %v167_v39  ;;  %v51_v37 = vld [vmem:[%s494_s0 + $0x158] sm:$0xff]  ;;  %v183_v39 = vmul.f32 %v50_v33, %v50_v33 }
  0x38   :  { %v99_v50 = vadd.f32 %v98_v46, %v36_v41  ;;  %v231_v52 = vadd.f32 %v230_v48, %v168_v43  ;;  %v52_v41 = vld [vmem:[%s494_s0 + $0x160] sm:$0xff]  ;;  %v184_v43 = vmul.f32 %v51_v37, %v51_v37 }
  0x3a   :  { %v100_v54 = vadd.f32 %v99_v50, %v37_v45  ;;  %v232_v56 = vadd.f32 %v231_v52, %v169_v47  ;;  %v53_v45 = vld [vmem:[%s494_s0 + $0x168] sm:$0xff]  ;;  %v185_v47 = vmul.f32 %v52_v41, %v52_v41 }
  0x3c   :  { %v101_v58 = vadd.f32 %v100_v54, %v38_v49  ;;  %v233_v60 = vadd.f32 %v232_v56, %v170_v51  ;;  %v54_v49 = vld [vmem:[%s494_s0 + $0x170] sm:$0xff]  ;;  %v186_v51 = vmul.f32 %v53_v45, %v53_v45 }
  0x3e   :  { %v102_v62 = vadd.f32 %v101_v58, %v39_v53  ;;  %v234_v0 = vadd.f32 %v233_v60, %v171_v55  ;;  %v55_v53 = vld [vmem:[%s494_s0 + $0x178] sm:$0xff]  ;;  %v187_v55 = vmul.f32 %v54_v49, %v54_v49 }
  0x40   :  { %v103_v2 = vadd.f32 %v102_v62, %v40_v57  ;;  %v235_v4 = vadd.f32 %v234_v0, %v172_v59  ;;  %v56_v57 = vld [vmem:[%s494_s0 + $0x180] sm:$0xff]  ;;  %v188_v59 = vmul.f32 %v55_v53, %v55_v53 }
  0x42   :  { %v104_v6 = vadd.f32 %v103_v2, %v41_v61  ;;  %v236_v8 = vadd.f32 %v235_v4, %v173_v63  ;;  %v57_v61 = vld [vmem:[%s494_s0 + $0x188] sm:$0xff]  ;;  %v189_v63 = vmul.f32 %v56_v57, %v56_v57 }
  0x44   :  { %v105_v10 = vadd.f32 %v104_v6, %v42_v1  ;;  %v237_v12 = vadd.f32 %v236_v8, %v174_v3  ;;  %v58_v1 = vld [vmem:[%s494_s0 + $0x190] sm:$0xff]  ;;  %v190_v3 = vmul.f32 %v57_v61, %v57_v61 }
  0x46   :  { %v106_v14 = vadd.f32 %v105_v10, %v43_v5  ;;  %v238_v16 = vadd.f32 %v237_v12, %v175_v7  ;;  %v59_v5 = vld [vmem:[%s494_s0 + $0x198] sm:$0xff]  ;;  %v191_v7 = vmul.f32 %v58_v1, %v58_v1 }
  0x48   :  { %v107_v18 = vadd.f32 %v106_v14, %v44_v9  ;;  %v239_v20 = vadd.f32 %v238_v16, %v176_v11  ;;  %v60_v9 = vld [vmem:[%s494_s0 + $0x1a0] sm:$0xff]  ;;  %v192_v11 = vmul.f32 %v59_v5, %v59_v5 }
  0x4a   :  { %v108_v22 = vadd.f32 %v107_v18, %v45_v13  ;;  %v240_v24 = vadd.f32 %v239_v20, %v177_v15  ;;  %v61_v13 = vld [vmem:[%s494_s0 + $0x1a8] sm:$0xff]  ;;  %v193_v15 = vmul.f32 %v60_v9, %v60_v9 }
  0x4c   :  { %v109_v26 = vadd.f32 %v108_v22, %v46_v17  ;;  %v241_v28 = vadd.f32 %v240_v24, %v178_v19  ;;  %v62_v17 = vld [vmem:[%s494_s0 + $0x1b0] sm:$0xff]  ;;  %v194_v19 = vmul.f32 %v61_v13, %v61_v13 }
  0x4e   :  { %v110_v30 = vadd.f32 %v109_v26, %v47_v21  ;;  %v242_v32 = vadd.f32 %v241_v28, %v179_v23  ;;  %v63_v21 = vld [vmem:[%s494_s0 + $0x1b8] sm:$0xff]  ;;  %v195_v23 = vmul.f32 %v62_v17, %v62_v17 }
  0x50   :  { %v111_v34 = vadd.f32 %v110_v30, %v48_v25  ;;  %v243_v36 = vadd.f32 %v242_v32, %v180_v27  ;;  %v64_v25 = vld [vmem:[%s494_s0 + $0x1c0] sm:$0xff]  ;;  %v196_v27 = vmul.f32 %v63_v21, %v63_v21 }
  0x52   :  { %v112_v38 = vadd.f32 %v111_v34, %v49_v29  ;;  %v244_v40 = vadd.f32 %v243_v36, %v181_v31  ;;  %v65_v29 = vld [vmem:[%s494_s0 + $0x1c8] sm:$0xff]  ;;  %v197_v31 = vmul.f32 %v64_v25, %v64_v25 }
  0x54   :  { %v113_v42 = vadd.f32 %v112_v38, %v50_v33  ;;  %v245_v44 = vadd.f32 %v244_v40, %v182_v35  ;;  %v66_v33 = vld [vmem:[%s494_s0 + $0x1d0] sm:$0xff]  ;;  %v198_v35 = vmul.f32 %v65_v29, %v65_v29 }
  0x56   :  { %v114_v46 = vadd.f32 %v113_v42, %v51_v37  ;;  %v246_v48 = vadd.f32 %v245_v44, %v183_v39  ;;  %v67_v37 = vld [vmem:[%s494_s0 + $0x1d8] sm:$0xff]  ;;  %v199_v39 = vmul.f32 %v66_v33, %v66_v33 }
  0x58   :  { %v115_v50 = vadd.f32 %v114_v46, %v52_v41  ;;  %v247_v52 = vadd.f32 %v246_v48, %v184_v43  ;;  %v68_v41 = vld [vmem:[%s494_s0 + $0x1e0] sm:$0xff]  ;;  %v200_v43 = vmul.f32 %v67_v37, %v67_v37 }
  0x5a   :  { %v116_v54 = vadd.f32 %v115_v50, %v53_v45  ;;  %v248_v56 = vadd.f32 %v247_v52, %v185_v47  ;;  %v69_v45 = vld [vmem:[%s494_s0 + $0x1e8] sm:$0xff]  ;;  %v201_v47 = vmul.f32 %v68_v41, %v68_v41 }
  0x5c   :  { %v117_v58 = vadd.f32 %v116_v54, %v54_v49  ;;  %v249_v60 = vadd.f32 %v248_v56, %v186_v51  ;;  %v70_v49 = vld [vmem:[%s494_s0 + $0x1f0] sm:$0xff]  ;;  %v202_v51 = vmul.f32 %v69_v45, %v69_v45 }
  0x5e   :  { %v118_v62 = vadd.f32 %v117_v58, %v55_v53  ;;  %v250_v0 = vadd.f32 %v249_v60, %v187_v55  ;;  %v71_v53 = vld [vmem:[%s494_s0 + $0x1f8] sm:$0xff]  ;;  %v203_v55 = vmul.f32 %v70_v49, %v70_v49 }
  0x5f   :  { %v204_v58 = vmul.f32 %v71_v53, %v71_v53 }
  0x60   :  { %v119_v2 = vadd.f32 %v118_v62, %v56_v57  ;;  %v251_v4 = vadd.f32 %v250_v0, %v188_v59 }
  0x62   :  { %v120_v6 = vadd.f32 %v119_v2, %v57_v61  ;;  %v252_v8 = vadd.f32 %v251_v4, %v189_v63 }
  0x64   :  { %v121_v10 = vadd.f32 %v120_v6, %v58_v1  ;;  %v253_v12 = vadd.f32 %v252_v8, %v190_v3 }
  0x66   :  { %v122_v14 = vadd.f32 %v121_v10, %v59_v5  ;;  %v254_v16 = vadd.f32 %v253_v12, %v191_v7 }
  0x68   :  { %v123_v18 = vadd.f32 %v122_v14, %v60_v9  ;;  %v255_v20 = vadd.f32 %v254_v16, %v192_v11 }
  0x6a   :  { %v124_v22 = vadd.f32 %v123_v18, %v61_v13  ;;  %v256_v24 = vadd.f32 %v255_v20, %v193_v15 }
  0x6c   :  { %v125_v26 = vadd.f32 %v124_v22, %v62_v17  ;;  %v257_v28 = vadd.f32 %v256_v24, %v194_v19 }
  0x6e   :  { %v126_v30 = vadd.f32 %v125_v26, %v63_v21  ;;  %v258_v32 = vadd.f32 %v257_v28, %v195_v23 }
  0x70   :  { %v127_v34 = vadd.f32 %v126_v30, %v64_v25  ;;  %v259_v36 = vadd.f32 %v258_v32, %v196_v27 }
  0x72   :  { %v128_v38 = vadd.f32 %v127_v34, %v65_v29  ;;  %v260_v40 = vadd.f32 %v259_v36, %v197_v31 }
  0x74   :  { %v129_v42 = vadd.f32 %v128_v38, %v66_v33  ;;  %v261_v44 = vadd.f32 %v260_v40, %v198_v35 }
  0x76   :  { %v130_v46 = vadd.f32 %v129_v42, %v67_v37  ;;  %v262_v48 = vadd.f32 %v261_v44, %v199_v39 }
  0x78   :  { %v131_v50 = vadd.f32 %v130_v46, %v68_v41  ;;  %v263_v52 = vadd.f32 %v262_v48, %v200_v43 }
  0x7a   :  { %v132_v54 = vadd.f32 %v131_v50, %v69_v45  ;;  %v264_v56 = vadd.f32 %v263_v52, %v201_v47 }
  0x7c   :  { %v133_v57 = vadd.f32 %v132_v54, %v70_v49  ;;  %v265_v59 = vadd.f32 %v264_v56, %v202_v51 }
  0x7e   :  { %v134_v60 = vadd.f32 %v133_v57, %v71_v53  ;;  %v266_v61 = vadd.f32 %v265_v59, %v203_v55 }
  0x80   :  { %v135_v62 = vrot.slane %v134_v60, 4  ;;  %v267_v63 = vadd.f32 %v266_v61, %v204_v58 }
  0x82   :  { %v136_v0 = vadd.f32 %v135_v62, %v134_v60  ;;  %v268_v1 = vrot.slane %v267_v63, 4 }
  0x84   :  { %v137_v2 = vrot.slane %v136_v0, 2  ;;  %v269_v3 = vadd.f32 %v268_v1, %v267_v63 }
  0x86   :  { %v138_v4 = vadd.f32 %v137_v2, %v136_v0  ;;  %v270_v5 = vrot.slane %v269_v3, 2 }
  0x88   :  { %v139_v6 = vrot.slane %v138_v4, 1  ;;  %v271_v7 = vadd.f32 %v270_v5, %v269_v3 }
  0x8a   :  { %v140_v8 = vadd.f32 %v139_v6, %v138_v4  ;;  %v272_v9 = vrot.slane %v271_v7, 1 }
  0x8c   :  { %275 = vst [vmem:[%s495_s1] sm:$0x1] %v140_v8  ;;  %v273_v10 = vadd.f32 %v272_v9, %v271_v7 }
  0x8e   :  { %276 = vst [vmem:[%s495_s1 + $0x1] sm:$0x1] %v273_v10 }

// kernel: network_block_forward.8
= control target key start
LH: loop header
LB: loop body
LE: loop exit
PB: predicated region body
PF: predicated region fallthrough
CT: control target
= control target key end

     0   :  { %v3053_v1 = vmov 0.0   ;;  %v3054_v24 = vmov 1966171168   ;;  %v40_v26 = vlaneseq  ;;  %vm302_vm0 = vcmask 1040384   ;;  %s3903_s4 = inlined_call_operand.vmem [shape: bf16[9,128,128], index: 4, kind: input, shape index: {}]   ;;  %s3904_s1 = inlined_call_operand.vmem [shape: f32[1,8,128], index: 1, kind: input, shape index: {}]   ;;  %s3905_s2 = inlined_call_operand.vmem [shape: f32[1,128], index: 2, kind: input, shape index: {}]   ;;  %s3906_s0 = inlined_call_operand.vmem [shape: f32[2,8,8,128], index: 0, kind: input, shape index: {}]   ;;  %s3907_s3 = inlined_call_operand.vmem [shape: f32[1,128], index: 3, kind: input, shape index: {}]   ;;  %s3908_s6 = inlined_call_operand.vmem [shape: f32[1,8,128], index: 6, kind: output, shape index: {1}]   ;;  %s3909_s5 = inlined_call_operand.vmem [shape: f32[2,64,128], index: 5, kind: output, shape index: {0}]  }
   0x1   :  { %v2978_v0 = vld [vmem:[%s3903_s4 + $0x100] sm:$0xff]   ;;  %134 = vst [vmem:[#allocation2 + $0x8] sm:$0xff] %v3053_v1  ;;  %135 = vst [vmem:[#allocation2 + $0x10] sm:$0x1] %v3053_v1  ;;  %v2980_v3 = vld [vmem:[%s3903_s4 + $0x108] sm:$0xff]   ;;  %v38_v25 = vunpack.c.l.s4 %v3054_v24  ;;  %vm722_vm1 = vcmask 1046528  }
   0x2   :  { %138 = vst [vmem:[#allocation2 + $0x28] sm:$0x1] %v3053_v1  ;;  %141 = vst [vmem:[#allocation2 + $0x40] sm:$0x1] %v3053_v1  ;;  %v2979_v2 = vld [vmem:[%s3903_s4 + $0x40] sm:$0xff]   ;;  %2672 = vmatprep.subr.bf16.mxu0 %v2978_v0  ;;  %v2981_v4 = vld [vmem:[%s3903_s4 + $0x48] sm:$0xff]  }
   0x3   :  { %144 = vst [vmem:[#allocation2 + $0x58] sm:$0x1] %v3053_v1  ;;  %147 = vst [vmem:[#allocation2 + $0x70] sm:$0x1] %v3053_v1  ;;  %2544 = vmatprep.subr.bf16.mxu1 %v2979_v2  ;;  %2673 = vmatpush3.bf16.msra.mxu0 %v2978_v0  ;;  %v2982_v5 = vld [vmem:[%s3903_s4 + $0x110] sm:$0xff]   ;;  %v2984_v7 = vld [vmem:[%s3903_s4 + $0x118] sm:$0xff]   ;;  %v39_v29 = vunpack.c.0.s8 %v38_v25 }
   0x4   :  { %150 = vst [vmem:[#allocation2 + $0x88] sm:$0x1] %v3053_v1  ;;  %153 = vst [vmem:[#allocation2 + $0xa0] sm:$0x1] %v3053_v1  ;;  %2545 = vmatpush3.bf16.msra.mxu1 %v2979_v2  ;;  %2674 = vmatprep.subr.bf16.mxu0 %v2980_v3  ;;  %v2983_v6 = vld [vmem:[%s3903_s4 + $0x50] sm:$0xff]   ;;  %v2985_v8 = vld [vmem:[%s3903_s4 + $0x58] sm:$0xff]  }
   0x5   :  { %156 = vst [vmem:[#allocation2 + $0xb8] sm:$0x1] %v3053_v1  ;;  %159 = vst [vmem:[#allocation2 + $0xd0] sm:$0x1] %v3053_v1  ;;  %2546 = vmatprep.subr.bf16.mxu1 %v2981_v4  ;;  %v2986_v9 = vld [vmem:[%s3903_s4 + $0x120] sm:$0xff]   ;;  %v2988_v11 = vld [vmem:[%s3903_s4 + $0x128] sm:$0xff]  }
   0x6   :  { %162 = vst [vmem:[#allocation2 + $0xe8] sm:$0x1] %v3053_v1  ;;  %165 = vst [vmem:[#allocation2 + $0x100] sm:$0x1] %v3053_v1  ;;  %v2987_v10 = vld [vmem:[%s3903_s4 + $0x60] sm:$0xff]   ;;  %v2989_v13 = vld [vmem:[%s3903_s4 + $0x68] sm:$0xff]  }
   0x7   :  { %168 = vst [vmem:[#allocation2 + $0x118] sm:$0x1] %v3053_v1  ;;  %171 = vst [vmem:[#allocation2 + $0x130] sm:$0x1] %v3053_v1  ;;  %2675 = vmatpush3.bf16.msra.mxu0 %v2980_v3  ;;  %v23_v12 = vld [vmem:[%s3904_s1] sm:$0xff]  ;;  %v2990_v16 = vld [vmem:[%s3903_s4 + $0x130] sm:$0xff]  }
   0x8   :  { %174 = vst [vmem:[#allocation2 + $0x148] sm:$0x1] %v3053_v1  ;;  %177 = vst [vmem:[#allocation2 + $0x160] sm:$0x1] %v3053_v1  ;;  %2547 = vmatpush3.bf16.msra.mxu1 %v2981_v4  ;;  %2676 = vmatprep.subr.bf16.mxu0 %v2982_v5  ;;  %v26_v14 = vmul.f32 0.0078125, %v23_v12  ;;  %v2991_v17 = vld [vmem:[%s3903_s4 + $0x70] sm:$0xff]  }
   0x9   :  { %180 = vst [vmem:[#allocation2 + $0x178] sm:$0x1] %v3053_v1  ;;  %183 = vst [vmem:[#allocation2 + $0x190] sm:$0x1] %v3053_v1  ;;  %2548 = vmatprep.subr.bf16.mxu1 %v2983_v6  ;;  %v2992_v20 = vld [vmem:[%s3903_s4 + $0x138] sm:$0xff]   ;;  %v3165_v27 = vld [vmem:[%s3903_s4 + $0x140] sm:$0xff]  }
   0xa   :  { %186 = vst [vmem:[#allocation2 + $0x1a8] sm:$0x1] %v3053_v1  ;;  %189 = vst [vmem:[#allocation2 + $0x1c0] sm:$0x1] %v3053_v1  ;;  %v27_v15 = vmul.f32 %v26_v14, %v26_v14  ;;  %v2993_v21 = vld [vmem:[%s3903_s4 + $0x78] sm:$0xff]   ;;  %v3170_v28 = vld [vmem:[%s3903_s4] sm:$0xff]  }
   0xb   :  { %192 = vst [vmem:[#allocation2 + $0x1d8] sm:$0x1] %v3053_v1  ;;  %2677 = vmatpush3.bf16.msra.mxu0 %v2982_v5  ;;  %v41_v30 = vshrl.u32 %v40_v26, 7  ;;  %v33_v35 = vld [vmem:[%s3905_s2] sm:$0x1]  ;;  %v58_v40 = vld [vmem:[%s3906_s0 + $0x8] sm:$0xff] }
   0xc   :  { %2549 = vmatpush3.bf16.msra.mxu1 %v2983_v6  ;;  %2678 = vmatprep.subr.bf16.mxu0 %v2984_v7  ;;  %v29_v18 = vrot.slane %v27_v15, 7  ;;  %v54_v38 = vld [vmem:[%s3907_s3] sm:$0x1]  ;;  %v59_v42 = vld [vmem:[%s3906_s0 + $0x10] sm:$0xff]  ;;  %v60_v43 = vld [vmem:[%s3906_s0 + $0x18] sm:$0xff] }
   0xd   :  { %2550 = vmatprep.subr.bf16.mxu1 %v2985_v8  ;;  %v42_v31 = vsub.s32 %v39_v29, %v41_v30  ;;  %v76_v37 = vsub.s32 0, %v41_v30  ;;  %v57_v39 = vld [vmem:[%s3906_s0] sm:$0xff]  ;;  %v62_v45 = vld [vmem:[%s3906_s0 + $0x28] sm:$0xff]  ;;  %v63_v48 = vld [vmem:[%s3906_s0 + $0x30] sm:$0xff] }
   0xe   :  { %v31_v19 = vsub.f32 %v26_v14, %v29_v18  ;;  %v61_v44 = vld [vmem:[%s3906_s0 + $0x20] sm:$0xff]  ;;  %v64_v49 = vld [vmem:[%s3906_s0 + $0x38] sm:$0xff]  ;;  %v66_v3 = vld [vmem:[%s3906_s0 + $0x48] sm:$0xff] }
   0xf   :  { %2679 = vmatpush3.bf16.msra.mxu0 %v2984_v7  ;;  %v65_v54 = vld [vmem:[%s3906_s0 + $0x40] sm:$0xff]  ;;  %v70_v15 = vld [vmem:[%s3906_s0 + $0x68] sm:$0xff] }
  0x10   :  { %2551 = vmatpush3.bf16.msra.mxu1 %v2985_v8  ;;  %2680 = vmatprep.subr.bf16.mxu0 %v2986_v9  ;;  %v32_v22 = vmax.f32 %v31_v19, 0.0  ;;  %v67_v8 = vld [vmem:[%s3906_s0 + $0x50] sm:$0xff]  ;;  %v2997_v26 = vld [vmem:[%s3903_s4 + $0x8] sm:$0xff]  }
  0x11   :  { %2552 = vmatprep.subr.bf16.mxu1 %v2987_v10 }
  0x12   :  { %v34_v23 = vadd.f32 1e-05, %v32_v22 }
  0x13   :  { %2681 = vmatpush3.bf16.msra.mxu0 %v2986_v9  ;;  %v68_v9 = vld [vmem:[%s3906_s0 + $0x58] sm:$0xff] }
  0x14   :  { %2553 = vmatpush3.bf16.msra.mxu1 %v2987_v10  ;;  %2682 = vmatprep.subr.bf16.mxu0 %v2988_v11  ;;  %3050 = vrsqrt.f32 %v34_v23 }
  0x15   :  { %2554 = vmatprep.subr.bf16.mxu1 %v2989_v13 }
  0x17   :  { %2683 = vmatpush3.bf16.msra.mxu0 %v2988_v11 }
  0x18   :  { %2555 = vmatpush3.bf16.msra.mxu1 %v2989_v13  ;;  %2684 = vmatprep.subr.bf16.mxu0 %v2990_v16 }
  0x19   :  { %2556 = vmatprep.subr.bf16.mxu1 %v2991_v17 }
  0x1b   :  { %2685 = vmatpush3.bf16.msra.mxu0 %v2990_v16 }
  0x1c   :  { %2557 = vmatpush3.bf16.msra.mxu1 %v2991_v17  ;;  %2686 = vmatprep.subr.bf16.mxu0 %v2992_v20 }
  0x1d   :  { %2558 = vmatprep.subr.bf16.mxu1 %v2993_v21 }
  0x1e   :  { %v3051_v32 = vpop.eup %3050 }
  0x1f   :  { %2687 = vmatpush3.bf16.msra.mxu0 %v2992_v20  ;;  %v43_v33 = vrot.slane %v3051_v32, %v42_v31  ;;  %v2996_v32 = vld [vmem:[%s3903_s4 + $0x148] sm:$0xff]  }
  0x20   :  { %2559 = vmatpush3.bf16.msra.mxu1 %v2993_v21  ;;  %2704 = vmatprep.subr.bf16.mxu0 %v3165_v27 }
  0x21   :  { %2576 = vmatprep.subr.bf16.mxu1 %v3170_v28  ;;  %v44_v34 = vcombine.high %v43_v33, %v43_v33 }
  0x23   :  { %v51_v36 = vrot.slane %v44_v34, %v42_v31 }
  0x25   :  { %v53_v41 = vmul.f32 %v51_v36, %v33_v35  ;;  %v71_v36 = vld [vmem:[%s3906_s0 + $0x70] sm:$0xff] }
  0x27   :  { %v55_v46 = vmul.f32 %v53_v41, %v26_v14  ;;  %v3198_v47 = vrot.slane %v53_v41, %v76_v37  ;;  %v69_v14 = vld [vmem:[%s3906_s0 + $0x60] sm:$0xff]  ;;  %v2999_v41 = vld [vmem:[%s3903_s4 + $0x10] sm:$0xff]  }
  0x29   :  { %v56_v50 = vsub.f32 %v54_v38, %v55_v46  ;;  %v79_v51 = vmul.f32 %v3198_v47, %v57_v39  ;;  %v80_v52 = vmul.f32 %v3198_v47, %v58_v40  ;;  %v81_v53 = vmul.f32 %v3198_v47, %v59_v42  ;;  %v72_v40 = vld [vmem:[%s3906_s0 + $0x78] sm:$0xff] }
  0x2a   :  { %v82_v55 = vmul.f32 %v3198_v47, %v60_v43  ;;  %v83_v56 = vmul.f32 %v3198_v47, %v61_v44  ;;  %v84_v57 = vmul.f32 %v3198_v47, %v62_v45  ;;  %v85_v58 = vmul.f32 %v3198_v47, %v63_v48  ;;  %v2998_v44 = vld [vmem:[%s3903_s4 + $0x150] sm:$0xff]  }
  0x2b   :  { %v3216_v59 = vrot.slane %v56_v50, %v76_v37  ;;  %v86_v60 = vmul.f32 %v3198_v47, %v64_v49  ;;  %v87_v61 = vmul.f32 %v3198_v47, %v65_v54  ;;  %v88_v21 = vmul.f32 %v3198_v47, %v66_v3 }
  0x2c   :  { %v89_v22 = vmul.f32 %v3198_v47, %v67_v8  ;;  %v90_v23 = vmul.f32 %v3198_v47, %v68_v9  ;;  %v91_v29 = vmul.f32 %v3198_v47, %v69_v14  ;;  %v92_v30 = vmul.f32 %v3198_v47, %v70_v15  ;;  %v224_v8 = vld [vmem:[#allocation2 + $0x70] sm:$0x1] }
  0x2d   :  { %v101_v62 = vadd.f32 %v3216_v59, %v79_v51  ;;  %v102_v63 = vadd.f32 %v3216_v59, %v80_v52  ;;  %v103_v0 = vadd.f32 %v3216_v59, %v81_v53  ;;  %v104_v2 = vadd.f32 %v3216_v59, %v82_v55  ;;  %v3001_v55 = vld [vmem:[%s3903_s4 + $0x18] sm:$0xff]  }
  0x2e   :  { %v105_v4 = vadd.f32 %v3216_v59, %v83_v56  ;;  %v106_v5 = vadd.f32 %v3216_v59, %v84_v57  ;;  %v107_v6 = vadd.f32 %v3216_v59, %v85_v58  ;;  %v108_v7 = vadd.f32 %v3216_v59, %v86_v60  ;;  %v3000_v56 = vld [vmem:[%s3903_s4 + $0x158] sm:$0xff]  }
  0x2f   :  { %v3237_v10 = vmax.f32 %v101_v62, 0.0  ;;  %v3239_v11 = vmax.f32 %v102_v63, 0.0  ;;  %v3241_v12 = vmax.f32 %v103_v0, 0.0  ;;  %v3243_v13 = vmax.f32 %v104_v2, 0.0  ;;  %v215_v0 = vld [vmem:[#allocation2 + $0x28] sm:$0x1] }
  0x30   :  { %v3251_v16 = vmax.f32 %v105_v4, 0.0  ;;  %v3253_v17 = vmax.f32 %v106_v5, 0.0  ;;  %v3255_v18 = vmax.f32 %v107_v6, 0.0  ;;  %v3257_v19 = vmax.f32 %v108_v7, 0.0  ;;  %v218_v2 = vld [vmem:[#allocation2 + $0x40] sm:$0x1] }
  0x31   :  { %v391_v20 = vpack.c.bf16 %v3237_v10, %v3053_v1  ;;  %v1171_v24 = vpack.c.bf16 %v3239_v11, %v3237_v10  ;;  %v3268_v25 = vpack.c.bf16 %v3241_v12, %v3239_v11  ;;  %v1172_v31 = vpack.c.bf16 %v3243_v13, %v3241_v12  ;;  %v3004_v5 = vld [vmem:[%s3903_s4 + $0x168] sm:$0xff]   ;;  %v221_v6 = vld [vmem:[#allocation2 + $0x58] sm:$0x1] }
  0x32   :  { %v3282_v33 = vpack.c.bf16 %v3251_v16, %v3243_v13  ;;  %v1173_v34 = vpack.c.bf16 %v3253_v17, %v3251_v16  ;;  %v3289_v35 = vpack.c.bf16 %v3255_v18, %v3253_v17  ;;  %v109_v37 = vadd.f32 %v3216_v59, %v87_v61  ;;  %v3002_v61 = vld [vmem:[%s3903_s4 + $0x160] sm:$0xff]   ;;  %v3005_v7 = vld [vmem:[%s3903_s4 + $0x28] sm:$0xff]  }
  0x33   :  { %2560 = vmatprep.mubr.bf16.mxu1 %v391_v20  ;;  %2688 = vmatprep.mubr.bf16.mxu0 %v1171_v24  ;;  %v110_v38 = vadd.f32 %v3216_v59, %v88_v21  ;;  %v111_v39 = vadd.f32 %v3216_v59, %v89_v22  ;;  %v112_v42 = vadd.f32 %v3216_v59, %v90_v23  ;;  %v3349_v63 = vrot.slane %v3053_v1, 7  ;;  %v3007_v22 = vld [vmem:[%s3903_s4 + $0x30] sm:$0xff]  }
  0x34   :  { %2561 = vmatmul.mubr.bf16.vlgmr.msra.gmra.mrb[0].mxu1 %v3268_v25  ;;  %2689 = vmatmul.mubr.bf16.vlgmr.msra.gmra.mrb[0].mxu0 %v1172_v31  ;;  %v114_v43 = vadd.f32 %v3216_v59, %v92_v30  ;;  %v3312_v45 = vmax.f32 %v109_v37, 0.0  ;;  %v93_v48 = vmul.f32 %v3198_v47, %v71_v36  ;;  %v94_v52 = vmul.f32 %v3198_v47, %v72_v40  ;;  %v227_v30 = vld [vmem:[#allocation2 + $0x88] sm:$0x1]  ;;  %v230_v31 = vld [vmem:[#allocation2 + $0xa0] sm:$0x1] }
  0x35   :  { %2577 = vmatpush3.bf16.msra.mxu1 %v3170_v28  ;;  %2705 = vmatpush3.bf16.msra.mxu0 %v3165_v27  ;;  %v113_v28 = vadd.f32 %v3216_v59, %v91_v29  ;;  %v3314_v27 = vmax.f32 %v110_v38, 0.0  ;;  %v3316_v46 = vmax.f32 %v111_v39, 0.0  ;;  %v3319_v49 = vmax.f32 %v112_v42, 0.0  ;;  %v3006_v29 = vld [vmem:[%s3903_s4 + $0x170] sm:$0xff]   ;;  %v3009_v42 = vld [vmem:[%s3903_s4 + $0x38] sm:$0xff]  }
  0x36   :  { %2578 = vmatprep.subr.bf16.mxu1 %v2997_v26  ;;  %2706 = vmatprep.subr.bf16.mxu0 %v2996_v32  ;;  %v3323_v51 = vmax.f32 %v114_v43, 0.0  ;;  %v1174_v53 = vpack.c.bf16 %v3257_v19, %v3255_v18  ;;  %v115_v54 = vadd.f32 %v3216_v59, %v93_v48  ;;  %v395_v47 = vpack.c.bf16 %v3312_v45, %v3053_v1 }
  0x37   :  { %2564 = vmatprep.mubr.bf16.mxu1 %v3282_v33  ;;  %2692 = vmatprep.mubr.bf16.mxu0 %v1173_v34  ;;  %v3321_v50 = vmax.f32 %v113_v28, 0.0  ;;  %v116_v58 = vadd.f32 %v3216_v59, %v94_v52  ;;  %v1175_v60 = vpack.c.bf16 %v3314_v27, %v3312_v45  ;;  %v3003_v59 = vld [vmem:[%s3903_s4 + $0x20] sm:$0xff]   ;;  %v3356_v3 = vpack.c.bf16 %v3316_v46, %v3314_v27 }
  0x38   :  { %v3337_v57 = vmax.f32 %v115_v54, 0.0  ;;  %v1176_v4 = vpack.c.bf16 %v3319_v49, %v3316_v46  ;;  %v727_v14 = vrot.slane %v215_v0, 1  ;;  %v730_v15 = vrot.slane %v218_v2, 1  ;;  %v3415_v54 = vld [vmem:[#allocation2 + $0xb8] sm:$0x1] }
  0x39   :  { %2579 = vmatpush3.bf16.msra.mxu1 %v2997_v26  ;;  %2707 = vmatpush3.bf16.msra.mxu0 %v2996_v32  ;;  %v3346_v62 = vmax.f32 %v116_v58, 0.0  ;;  %v3368_v9 = vpack.c.bf16 %v3321_v50, %v3319_v49  ;;  %v307_v20 = vrot.slane %v3237_v10, 7  ;;  %v1177_v21 = vpack.c.bf16 %v3323_v51, %v3321_v50  ;;  %v3430_v58 = vld [vmem:[#allocation2 + $0xd0] sm:$0x1] }
  0x3a   :  { %2580 = vmatprep.subr.bf16.mxu1 %v2999_v41  ;;  %2708 = vmatprep.subr.bf16.mxu0 %v2998_v44  ;;  %v733_v23 = vrot.slane %v221_v6, 1  ;;  %v726_v24 = vrot.slane %v3237_v10, 1  ;;  %v729_v26 = vrot.slane %v3239_v11, 1  ;;  %v310_v32 = vrot.slane %v3239_v11, 7 }
  0x3b   :  { %v313_v34 = vrot.slane %v3241_v12, 7  ;;  %v735_v36 = vrot.slane %v3243_v13, 1  ;;  %v736_v10 = vrot.slane %v224_v8, 1  ;;  %v3388_v37 = vpack.c.bf16 %v3337_v57, %v3323_v51 }
  0x3c   :  { %2565 = vmatmul.mubr.bf16.gmra.mrb[4].mxu1 %v3289_v35  ;;  %2693 = vmatmul.mubr.bf16.gmra.mrb[4].mxu0 %v1174_v53  ;;  %v3392_v38 = vsel %vm302_vm0, %v3349_v63, %v307_v20  ;;  %v732_v39 = vrot.slane %v3241_v12, 1  ;;  %v316_v11 = vrot.slane %v3243_v13, 7  ;;  %v1178_v40 = vpack.c.bf16 %v3346_v62, %v3337_v57 }
  0x3d   :  { %2581 = vmatpush3.bf16.msra.mxu1 %v2999_v41  ;;  %2709 = vmatpush3.bf16.msra.mxu0 %v2998_v44  ;;  %v3008_v41 = vld [vmem:[%s3903_s4 + $0x178] sm:$0xff]   ;;  %v3405_v28 = vsel %vm722_vm1, %v726_v24, %v727_v14  ;;  %v3408_v43 = vsel %vm722_vm1, %v729_v26, %v730_v15  ;;  %v319_v12 = vrot.slane %v3251_v16, 7  ;;  %v738_v13 = vrot.slane %v3251_v16, 1  ;;  %v248_v15 = vld [vmem:[#allocation2 + $0x130] sm:$0x1] }
  0x3e   :  { %2582 = vmatprep.subr.bf16.mxu1 %v3001_v55  ;;  %2710 = vmatprep.subr.bf16.mxu0 %v3000_v56  ;;  %v739_v44 = vrot.slane %v227_v30, 1  ;;  %v741_v48 = vrot.slane %v3253_v17, 1  ;;  %v742_v52 = vrot.slane %v230_v31, 1  ;;  %v367_v53 = vpack.c.bf16 %v3392_v38, %v3349_v63  ;;  %v245_v14 = vld [vmem:[#allocation2 + $0x118] sm:$0x1] }
  0x3f   :  { %2568 = vmatprep.mubr.bf16.mxu1 %v395_v47  ;;  %2696 = vmatprep.mubr.bf16.mxu0 %v1175_v60  ;;  %v3426_v16 = vsel %vm722_vm1, %v735_v36, %v736_v10  ;;  %v1367_v47 = vpack.c.bf16 %v3408_v43, %v3405_v28  ;;  %v3010_v60 = vld [vmem:[%s3903_s4 + $0x180] sm:$0xff]   ;;  %v3444_v0 = vsel %vm302_vm0, %v3349_v63, %v316_v11  ;;  %v745_v8 = vrot.slane %v3415_v54, 1 }
  0x40   :  { %v3448_v2 = vsel %vm302_vm0, %v3349_v63, %v319_v12  ;;  %v3455_v6 = vsel %vm722_vm1, %v741_v48, %v742_v52  ;;  %v744_v26 = vrot.slane %v3255_v18, 1  ;;  %v750_v10 = vrot.slane %v3312_v45, 1 }
  0x41   :  { %2583 = vmatpush3.bf16.msra.mxu1 %v3001_v55  ;;  %2711 = vmatpush3.bf16.msra.mxu0 %v3000_v56  ;;  %v3419_v55 = vsel %vm302_vm0, %v3349_v63, %v310_v32  ;;  %v3423_v56 = vsel %vm722_vm1, %v732_v39, %v733_v23  ;;  %v3469_v24 = vpack.c.bf16 %v3448_v2, %v3444_v0  ;;  %v1359_v32 = vrot.slane %v3257_v19, 1 }
  0x42   :  { %2584 = vmatprep.subr.bf16.mxu1 %v3003_v59  ;;  %2712 = vmatprep.subr.bf16.mxu0 %v3002_v61  ;;  %v1368_v20 = vpack.c.bf16 %v3426_v16, %v3423_v56  ;;  %v981_v11 = vrot.slane %v3346_v62, 7  ;;  %v753_v12 = vrot.slane %v3314_v27, 1  ;;  %v1362_v52 = vrot.slane %v3346_v62, 1 }
  0x44   :  { %2569 = vmatmul.mubr.bf16.gmra.mrb[8].mxu1 %v3356_v3  ;;  %2697 = vmatmul.mubr.bf16.gmra.mrb[8].mxu0 %v1176_v4  ;;  %v322_v4 = vrot.slane %v3253_v17, 7  ;;  %v1360_v17 = vrot.slane %v3430_v58, 1  ;;  %v3508_v54 = vsel %vm302_vm0, %v3349_v63, %v981_v11 }
  0x45   :  { %2585 = vmatpush3.bf16.msra.mxu1 %v3003_v59  ;;  %2713 = vmatpush3.bf16.msra.mxu0 %v3002_v61  ;;  %v3437_v61 = vsel %vm302_vm0, %v3349_v63, %v313_v34  ;;  %v3011_v59 = vld [vmem:[%s3903_s4 + $0x80] sm:$0xff]   ;;  %v331_v34 = vrot.slane %v3312_v45, 7  ;;  %v269_v45 = vld [vmem:[#allocation2 + $0x1d8] sm:$0x1] }
  0x46   :  { %2586 = vmatprep.subr.bf16.mxu1 %v3005_v7  ;;  %2714 = vmatprep.subr.bf16.mxu0 %v3004_v5  ;;  %v3465_v23 = vpack.c.bf16 %v3437_v61, %v3419_v55  ;;  %v3477_v31 = vsel %vm302_vm0, %v3349_v63, %v322_v4  ;;  %v1927_v4 = vrot.slane %v3053_v1, 1  ;;  %v3014_v1 = vld [vmem:[%s3903_s4 + $0x190] sm:$0xff]  }
  0x47   :  { %2572 = vmatprep.mubr.bf16.mxu1 %v3368_v9  ;;  %2700 = vmatprep.mubr.bf16.mxu0 %v1177_v21  ;;  %v266_v21 = vld [vmem:[#allocation2 + $0x1c0] sm:$0x1] }
  0x49   :  { %2587 = vmatpush3.bf16.msra.mxu1 %v3005_v7  ;;  %2715 = vmatpush3.bf16.msra.mxu0 %v3004_v5  ;;  %v3452_v5 = vsel %vm722_vm1, %v738_v13, %v739_v44  ;;  %v325_v7 = vrot.slane %v3255_v18, 7  ;;  %v3013_v18 = vld [vmem:[%s3903_s4 + $0x88] sm:$0xff]   ;;  %v754_v13 = vrot.slane %v248_v15, 1  ;;  %v3015_v15 = vld [vmem:[%s3903_s4 + $0x90] sm:$0xff]  }
  0x4a   :  { %2588 = vmatprep.subr.bf16.mxu1 %v3007_v22  ;;  %2716 = vmatprep.subr.bf16.mxu0 %v3006_v29  ;;  %v1369_v30 = vpack.c.bf16 %v3455_v6, %v3452_v5 }
  0x4b   :  { %v3486_v36 = vsel %vm302_vm0, %v3349_v63, %v325_v7 }
  0x4c   :  { %2573 = vmatmul.mubr.bf16.gmra.mrb[12].mxu1 %v3388_v37  ;;  %2701 = vmatmul.mubr.bf16.gmra.mrb[12].mxu0 %v1178_v40  ;;  %v239_v40 = vld [vmem:[#allocation2 + $0xe8] sm:$0x1] }
  0x4d   :  { %2589 = vmatpush3.bf16.msra.mxu1 %v3007_v22  ;;  %2717 = vmatpush3.bf16.msra.mxu0 %v3006_v29  ;;  %v978_v22 = vrot.slane %v3257_v19, 7  ;;  %v349_v29 = vrot.slane %v3337_v57, 7  ;;  %v1928_v7 = vrot.slane %v239_v40, 1  ;;  %v3017_v40 = vld [vmem:[%s3903_s4 + $0x98] sm:$0xff]  }
  0x4e   :  { %2590 = vmatprep.subr.bf16.mxu1 %v3009_v42  ;;  %2718 = vmatprep.subr.bf16.mxu0 %v3008_v41 }
  0x4f   :  { %2592 = vmatprep.mubr.bf16.mxu1 %v367_v53  ;;  %2720 = vmatprep.mubr.bf16.mxu0 %v1367_v47  ;;  %v3491_v39 = vsel %vm302_vm0, %v3349_v63, %v978_v22  ;;  %v3503_v48 = vsel %vm302_vm0, %v3349_v63, %v349_v29  ;;  %v1363_v53 = vrot.slane %v266_v21, 1  ;;  %v3511_v47 = vsel %vm722_vm1, %v744_v26, %v745_v8  ;;  %v251_v22 = vld [vmem:[#allocation2 + $0x148] sm:$0x1]  ;;  %v254_v26 = vld [vmem:[#allocation2 + $0x160] sm:$0x1] }
  0x50   :  { %v988_v44 = vpack.c.bf16 %v3491_v39, %v3486_v36  ;;  %v3528_v8 = vsel %vm302_vm0, %v3349_v63, %v331_v34  ;;  %v3538_v21 = vsel %vm722_vm1, %v753_v12, %v754_v13  ;;  %v3542_v29 = vsel %vm722_vm1, %v1927_v4, %v1928_v7 }
  0x51   :  { %2591 = vmatpush3.bf16.msra.mxu1 %v3009_v42  ;;  %2719 = vmatpush3.bf16.msra.mxu0 %v3008_v41  ;;  %v3012_v41 = vld [vmem:[%s3903_s4 + $0x188] sm:$0xff]   ;;  %v751_v42 = vrot.slane %v245_v14, 1  ;;  %v3518_v14 = vpack.c.bf16 %v3486_v36, %v3477_v31  ;;  %v3546_v34 = vsel %vm722_vm1, %v1362_v52, %v1363_v53  ;;  %v756_v12 = vrot.slane %v3316_v46, 1  ;;  %v3016_v53 = vld [vmem:[%s3903_s4 + $0x198] sm:$0xff]  }
  0x52   :  { %2608 = vmatprep.subr.bf16.mxu1 %v3011_v59  ;;  %2736 = vmatprep.subr.bf16.mxu0 %v3010_v60  ;;  %v757_v13 = vrot.slane %v251_v22, 1  ;;  %v760_v52 = vrot.slane %v254_v26, 1  ;;  %v343_v22 = vrot.slane %v3321_v50, 7  ;;  %v762_v26 = vrot.slane %v3321_v50, 1  ;;  %v3018_v50 = vld [vmem:[%s3903_s4 + $0x1a0] sm:$0xff]  }
  0x54   :  { %2593 = vmatmul.mubr.bf16.vlgmr.msra.gmra.mrb[0].mxu1 %v3465_v23  ;;  %2721 = vmatmul.mubr.bf16.vlgmr.msra.gmra.mrb[0].mxu0 %v1368_v20  ;;  %v1931_v20 = vrot.slane %v269_v45, 1  ;;  %v759_v45 = vrot.slane %v3319_v49, 1 }
  0x55   :  { %2609 = vmatpush3.bf16.msra.mxu1 %v3011_v59  ;;  %2737 = vmatpush3.bf16.msra.mxu0 %v3010_v60  ;;  %v3524_v59 = vsel %vm722_vm1, %v1359_v32, %v1360_v17  ;;  %v3535_v60 = vsel %vm722_vm1, %v750_v10, %v751_v42  ;;  %v334_v17 = vrot.slane %v3314_v27, 7  ;;  %v337_v32 = vrot.slane %v3316_v46, 7 }
  0x56   :  { %2610 = vmatprep.subr.bf16.mxu1 %v3013_v18  ;;  %2738 = vmatprep.subr.bf16.mxu0 %v3012_v41  ;;  %v3551_v11 = vsel %vm722_vm1, %v1927_v4, %v1931_v20  ;;  %v1370_v27 = vpack.c.bf16 %v3524_v59, %v3511_v47  ;;  %v371_v4 = vpack.c.bf16 %v3528_v8, %v3349_v63  ;;  %v340_v20 = vrot.slane %v3319_v49, 7 }
  0x57   :  { %2596 = vmatprep.mubr.bf16.mxu1 %v3469_v24  ;;  %2724 = vmatprep.mubr.bf16.mxu0 %v1369_v30  ;;  %v257_v30 = vld [vmem:[#allocation2 + $0x178] sm:$0x1]  ;;  %v1371_v7 = vpack.c.bf16 %v3538_v21, %v3535_v60  ;;  %v3572_v46 = vsel %vm302_vm0, %v3349_v63, %v334_v17  ;;  %v765_v42 = vrot.slane %v3323_v51, 1  ;;  %v3019_v17 = vld [vmem:[%s3903_s4 + $0xa0] sm:$0xff]   ;;  %v3589_v49 = vsel %vm722_vm1, %v759_v45, %v760_v52 }
  0x58   :  { %v763_v10 = vrot.slane %v257_v30, 1  ;;  %v3604_v30 = vsel %vm302_vm0, %v3349_v63, %v343_v22  ;;  %v346_v52 = vrot.slane %v3323_v51, 7  ;;  %v3626_v51 = vld [vmem:[#allocation2 + $0x8] sm:$0xff]  ;;  %v3023_v22 = vld [vmem:[%s3903_s4 + $0xb0] sm:$0xff]  }
  0x59   :  { %2611 = vmatpush3.bf16.msra.mxu1 %v3013_v18  ;;  %2739 = vmatpush3.bf16.msra.mxu0 %v3012_v41  ;;  %v260_v18 = vld [vmem:[#allocation2 + $0x190] sm:$0x1]  ;;  %v3576_v41 = vsel %vm302_vm0, %v3349_v63, %v337_v32  ;;  %v3586_v32 = vsel %vm722_vm1, %v756_v12, %v757_v13  ;;  %v1746_v36 = vpack.c.bf16 %v3626_v51, %v3346_v62 }
  0x5a   :  { %2612 = vmatprep.subr.bf16.mxu1 %v3015_v15  ;;  %2740 = vmatprep.subr.bf16.mxu0 %v3014_v1  ;;  %v766_v58 = vrot.slane %v260_v18, 1  ;;  %v1372_v12 = vpack.c.bf16 %v3589_v49, %v3586_v32  ;;  %v3609_v13 = vsel %vm722_vm1, %v762_v26, %v763_v10  ;;  %v212_v18 = vld [vmem:[#allocation2 + $0x10] sm:$0x1]  ;;  %v3020_v10 = vld [vmem:[%s3903_s4 + $0x1a8] sm:$0xff]   ;;  %v3911_v62 = vpack.c.bf16 %v3551_v11, %v3546_v34 }
  0x5b   :  { %2189 = vst [vmem:[%s3908_s6] sm:$0xff] %v3626_v51 }
  0x5c   :  { %2597 = vmatmul.mubr.bf16.gmra.mrb[4].mxu1 %v3518_v14  ;;  %2725 = vmatmul.mubr.bf16.gmra.mrb[4].mxu0 %v1370_v27  ;;  %v3600_v27 = vsel %vm302_vm0, %v3349_v63, %v340_v20  ;;  %v3612_v45 = vsel %vm722_vm1, %v765_v42, %v766_v58  ;;  %v723_v42 = vrot.slane %v3626_v51, 1  ;;  %v3634_v20 = vsel %vm302_vm0, %v3349_v63, %v346_v52  ;;  %v3025_v52 = vld [vmem:[%s3903_s4 + $0xb8] sm:$0xff]  }
  0x5d   :  { %2613 = vmatpush3.bf16.msra.mxu1 %v3015_v15  ;;  %2741 = vmatpush3.bf16.msra.mxu0 %v3014_v1  ;;  %v263_v15 = vld [vmem:[#allocation2 + $0x1a8] sm:$0x1]  ;;  %v3596_v1 = vpack.c.bf16 %v3576_v41, %v3572_v46  ;;  %v3624_v58 = vpack.c.bf16 %v3604_v30, %v3600_v27 }
  0x5e   :  { %2614 = vmatprep.subr.bf16.mxu1 %v3017_v40  ;;  %2742 = vmatprep.subr.bf16.mxu0 %v3016_v53 }
  0x5f   :  { %2600 = vmatprep.mubr.bf16.mxu1 %v371_v4  ;;  %2728 = vmatprep.mubr.bf16.mxu0 %v1371_v7  ;;  %v3021_v4 = vld [vmem:[%s3903_s4 + $0xa8] sm:$0xff]   ;;  %v769_v7 = vrot.slane %v263_v15, 1  ;;  %v3648_v15 = vpack.c.bf16 %v3503_v48, %v3634_v20 }
  0x61   :  { %2615 = vmatpush3.bf16.msra.mxu1 %v3017_v40  ;;  %2743 = vmatpush3.bf16.msra.mxu0 %v3016_v53  ;;  %v768_v40 = vrot.slane %v3337_v57, 1  ;;  %v1373_v53 = vpack.c.bf16 %v3612_v45, %v3609_v13  ;;  %v724_v57 = vrot.slane %v212_v18, 1  ;;  %v3024_v18 = vld [vmem:[%s3903_s4 + $0x1b8] sm:$0xff]  }
  0x62   :  { %2616 = vmatprep.subr.bf16.mxu1 %v3019_v17  ;;  %2744 = vmatprep.subr.bf16.mxu0 %v3018_v50 }
  0x63   :  { %v3640_v26 = vsel %vm722_vm1, %v768_v40, %v769_v7  ;;  %v3026_v7 = vld [vmem:[%s3903_s4 + $0x1c0] sm:$0xff]  }
  0x64   :  { %2601 = vmatmul.mubr.bf16.gmra.mrb[8].mxu1 %v3596_v1  ;;  %2729 = vmatmul.mubr.bf16.gmra.mrb[8].mxu0 %v1372_v12  ;;  %v1374_v12 = vpack.c.bf16 %v3546_v34, %v3640_v26 }
  0x65   :  { %2617 = vmatpush3.bf16.msra.mxu1 %v3019_v17  ;;  %2745 = vmatpush3.bf16.msra.mxu0 %v3018_v50  ;;  %v3022_v17 = vld [vmem:[%s3903_s4 + $0x1b0] sm:$0xff]   ;;  %v725_v50 = vsel %vm722_vm1, %v723_v42, %v724_v57  ;;  %v3028_v57 = vld [vmem:[%s3903_s4 + $0x1c8] sm:$0xff]  }
  0x66   :  { %2618 = vmatprep.subr.bf16.mxu1 %v3021_v4  ;;  %2746 = vmatprep.subr.bf16.mxu0 %v3020_v10  ;;  %v787_v40 = vpack.c.bf16 %v3405_v28, %v725_v50  ;;  %v242_v28 = vld [vmem:[#allocation2 + $0x100] sm:$0x1]  ;;  %v3037_v50 = vld [vmem:[%s3903_s4 + $0xe8] sm:$0xff]  }
  0x67   :  { %2604 = vmatprep.mubr.bf16.mxu1 %v3624_v58  ;;  %2732 = vmatprep.mubr.bf16.mxu0 %v1373_v53  ;;  %v3029_v53 = vld [vmem:[%s3903_s4 + $0xc8] sm:$0xff]  }
  0x69   :  { %2619 = vmatpush3.bf16.msra.mxu1 %v3021_v4  ;;  %2747 = vmatpush3.bf16.msra.mxu0 %v3020_v10  ;;  %v3027_v4 = vld [vmem:[%s3903_s4 + $0xc0] sm:$0xff]   ;;  %v3669_v10 = vpack.c.bf16 %v3423_v56, %v3408_v43  ;;  %v748_v43 = vrot.slane %v242_v28, 1  ;;  %v3031_v56 = vld [vmem:[%s3903_s4 + $0xd0] sm:$0xff]  }
  0x6a   :  { %2620 = vmatprep.subr.bf16.mxu1 %v3023_v22  ;;  %2748 = vmatprep.subr.bf16.mxu0 %v3022_v17 }
  0x6c   :  { %2605 = vmatmul.mubr.bf16.gmra.mrb[12].mxu1 %v3648_v15  ;;  %2733 = vmatmul.mubr.bf16.gmra.mrb[12].mxu0 %v1374_v12  ;;  %v3036_v12 = vld [vmem:[%s3903_s4 + $0x1e8] sm:$0xff]  }
  0x6d   :  { %2621 = vmatpush3.bf16.msra.mxu1 %v3023_v22  ;;  %2749 = vmatpush3.bf16.msra.mxu0 %v3022_v17  ;;  %v3680_v22 = vpack.c.bf16 %v3452_v5, %v3426_v16  ;;  %v3030_v16 = vld [vmem:[%s3903_s4 + $0x1d0] sm:$0xff]   ;;  %v3694_v5 = vpack.c.bf16 %v3511_v47, %v3455_v6  ;;  %v3033_v17 = vld [vmem:[%s3903_s4 + $0xd8] sm:$0xff]   ;;  %v3035_v47 = vld [vmem:[%s3903_s4 + $0xe0] sm:$0xff]  }
  0x6e   :  { %2622 = vmatprep.subr.bf16.mxu1 %v3025_v52  ;;  %2750 = vmatprep.subr.bf16.mxu0 %v3024_v18 }
  0x6f   :  { %2624 = vmatprep.mubr.bf16.mxu1 %v787_v40  ;;  %2752 = vmatprep.mubr.bf16.mxu0 %v3465_v23  ;;  %v749_v23 = vsel %vm722_vm1, %v723_v42, %v748_v43  ;;  %v3034_v42 = vld [vmem:[%s3903_s4 + $0x1e0] sm:$0xff]  }
  0x70   :  { %v791_v6 = vpack.c.bf16 %v3535_v60, %v749_v23  ;;  %v3716_v60 = vpack.c.bf16 %v3586_v32, %v3538_v21  ;;  %v3039_v21 = vld [vmem:[%s3903_s4 + $0xf0] sm:$0xff]  }
  0x71   :  { %2623 = vmatpush3.bf16.msra.mxu1 %v3025_v52  ;;  %2751 = vmatpush3.bf16.msra.mxu0 %v3024_v18  ;;  %v3726_v52 = vpack.c.bf16 %v3609_v13, %v3589_v49  ;;  %v3038_v32 = vld [vmem:[%s3903_s4 + $0x1f0] sm:$0xff]   ;;  %v3740_v49 = vpack.c.bf16 %v3640_v26, %v3612_v45  ;;  %v3041_v13 = vld [vmem:[%s3903_s4 + $0xf8] sm:$0xff]   ;;  %v986_v45 = vpack.c.bf16 %v3444_v0, %v3437_v61 }
  0x72   :  { %2640 = vmatprep.subr.bf16.mxu1 %v3027_v4  ;;  %2768 = vmatprep.subr.bf16.mxu0 %v3026_v7  ;;  %v1745_v61 = vpack.c.bf16 %v3626_v51, %v3257_v19  ;;  %v989_v0 = vpack.c.bf16 %v3572_v46, %v3528_v8  ;;  %v3046_v19 = vld [vmem:[%s3903_s4 + $0x220] sm:$0xff]  }
  0x74   :  { %2625 = vmatmul.mubr.bf16.vlgmr.msra.gmra.mrb[0].mxu1 %v3669_v10  ;;  %2753 = vmatmul.mubr.bf16.vlgmr.msra.gmra.mrb[0].mxu0 %v3469_v24  ;;  %v1565_v24 = vpack.c.bf16 %v3349_v63, %v3491_v39  ;;  %v3910_v39 = vpack.c.bf16 %v3508_v54, %v3503_v48 }
  0x75   :  { %2641 = vmatpush3.bf16.msra.mxu1 %v3027_v4  ;;  %2769 = vmatpush3.bf16.msra.mxu0 %v3026_v7 }
  0x76   :  { %2642 = vmatprep.subr.bf16.mxu1 %v3029_v53  ;;  %2770 = vmatprep.subr.bf16.mxu0 %v3028_v57 }
  0x77   :  { %2628 = vmatprep.mubr.bf16.mxu1 %v3680_v22  ;;  %2756 = vmatprep.mubr.bf16.mxu0 %v3518_v14  ;;  %v3032_v14 = vld [vmem:[%s3903_s4 + $0x1d8] sm:$0xff]  }
  0x79   :  { %2643 = vmatpush3.bf16.msra.mxu1 %v3029_v53  ;;  %2771 = vmatpush3.bf16.msra.mxu0 %v3028_v57 }
  0x7a   :  { %2644 = vmatprep.subr.bf16.mxu1 %v3031_v56  ;;  %2772 = vmatprep.subr.bf16.mxu0 %v3030_v16 }
  0x7c   :  { %2629 = vmatmul.mubr.bf16.gmra.mrb[4].mxu1 %v3694_v5  ;;  %2757 = vmatmul.mubr.bf16.gmra.mrb[4].mxu0 %v1565_v24 }
  0x7d   :  { %2645 = vmatpush3.bf16.msra.mxu1 %v3031_v56  ;;  %2773 = vmatpush3.bf16.msra.mxu0 %v3030_v16 }
  0x7e   :  { %2646 = vmatprep.subr.bf16.mxu1 %v3033_v17  ;;  %2774 = vmatprep.subr.bf16.mxu0 %v3032_v14 }
  0x7f   :  { %2632 = vmatprep.mubr.bf16.mxu1 %v791_v6  ;;  %2760 = vmatprep.mubr.bf16.mxu0 %v3596_v1  ;;  %v1566_v1 = vpack.c.bf16 %v3349_v63, %v3508_v54  ;;  %v3042_v63 = vld [vmem:[%s3903_s4 + $0x200] sm:$0xff]  }
  0x81   :  { %2647 = vmatpush3.bf16.msra.mxu1 %v3033_v17  ;;  %2775 = vmatpush3.bf16.msra.mxu0 %v3032_v14 }
  0x82   :  { %2648 = vmatprep.subr.bf16.mxu1 %v3035_v47  ;;  %2776 = vmatprep.subr.bf16.mxu0 %v3034_v42 }
  0x84   :  { %2633 = vmatmul.mubr.bf16.gmra.mrb[8].mxu1 %v3716_v60  ;;  %2761 = vmatmul.mubr.bf16.gmra.mrb[8].mxu0 %v3624_v58  ;;  %v3040_v58 = vld [vmem:[%s3903_s4 + $0x1f8] sm:$0xff]  }
  0x85   :  { %2649 = vmatpush3.bf16.msra.mxu1 %v3035_v47  ;;  %2777 = vmatpush3.bf16.msra.mxu0 %v3034_v42 }
  0x86   :  { %2650 = vmatprep.subr.bf16.mxu1 %v3037_v50  ;;  %2778 = vmatprep.subr.bf16.mxu0 %v3036_v12 }
  0x87   :  { %2636 = vmatprep.mubr.bf16.mxu1 %v3726_v52  ;;  %2764 = vmatprep.mubr.bf16.mxu0 %v3648_v15  ;;  %v985_v15 = vpack.c.bf16 %v3419_v55, %v3392_v38  ;;  %v3043_v38 = vld [vmem:[%s3903_s4 + $0x208] sm:$0xff]   ;;  %v987_v55 = vpack.c.bf16 %v3477_v31, %v3448_v2  ;;  %v991_v31 = vpack.c.bf16 %v3634_v20, %v3604_v30 }
  0x88   :  { %v3047_v2 = vld [vmem:[%s3903_s4 + $0x228] sm:$0xff]  }
  0x89   :  { %2651 = vmatpush3.bf16.msra.mxu1 %v3037_v50  ;;  %2779 = vmatpush3.bf16.msra.mxu0 %v3036_v12 }
  0x8a   :  { %2652 = vmatprep.subr.bf16.mxu1 %v3039_v21  ;;  %2780 = vmatprep.subr.bf16.mxu0 %v3038_v32 }
  0x8c   :  { %2637 = vmatmul.mubr.bf16.gmra.mrb[12].mxu1 %v3740_v49  ;;  %2765 = vmatmul.mubr.bf16.gmra.mrb[12].mxu0 %v1566_v1 }
  0x8d   :  { %2653 = vmatpush3.bf16.msra.mxu1 %v3039_v21  ;;  %2781 = vmatpush3.bf16.msra.mxu0 %v3038_v32 }
  0x8e   :  { %2654 = vmatprep.subr.bf16.mxu1 %v3041_v13  ;;  %2782 = vmatprep.subr.bf16.mxu0 %v3040_v58 }
  0x8f   :  { %2656 = vmatprep.mubr.bf16.mxu1 %v985_v15  ;;  %2784 = vmatprep.mubr.bf16.mxu0 %v3268_v25  ;;  %v3044_v25 = vld [vmem:[%s3903_s4 + $0x210] sm:$0xff]  }
  0x91   :  { %2655 = vmatpush3.bf16.msra.mxu1 %v3041_v13  ;;  %2783 = vmatpush3.bf16.msra.mxu0 %v3040_v58 }
  0x92   :  { %2832 = vmatprep.subr.bf16.mxu1 %v3042_v63  ;;  %2800 = vmatprep.subr.bf16.mxu0 %v3042_v63 }
  0x94   :  { %2657 = vmatmul.mubr.bf16.vlgmr.msra.gmra.mrb[0].mxu1 %v986_v45  ;;  %2785 = vmatmul.mubr.bf16.vlgmr.msra.gmra.mrb[0].mxu0 %v3282_v33  ;;  %v3045_v33 = vld [vmem:[%s3903_s4 + $0x218] sm:$0xff]  }
  0x95   :  { %2840 = vmatpush3.bf16.msra.mxu1 %v3042_v63  ;;  %2801 = vmatpush3.bf16.msra.mxu0 %v3042_v63 }
  0x96   :  { %2833 = vmatprep.subr.bf16.mxu1 %v3043_v38  ;;  %2802 = vmatprep.subr.bf16.mxu0 %v3043_v38 }
  0x97   :  { %2660 = vmatprep.mubr.bf16.mxu1 %v987_v55  ;;  %2788 = vmatprep.mubr.bf16.mxu0 %v3289_v35  ;;  %v990_v35 = vpack.c.bf16 %v3600_v27, %v3576_v41 }
  0x99   :  { %2841 = vmatpush3.bf16.msra.mxu1 %v3043_v38  ;;  %2803 = vmatpush3.bf16.msra.mxu0 %v3043_v38 }
  0x9a   :  { %2834 = vmatprep.subr.bf16.mxu1 %v3044_v25  ;;  %2804 = vmatprep.subr.bf16.mxu0 %v3044_v25 }
  0x9c   :  { %2661 = vmatmul.mubr.bf16.gmra.mrb[4].mxu1 %v988_v44  ;;  %2789 = vmatmul.mubr.bf16.gmra.mrb[4].mxu0 %v1745_v61 }
  0x9d   :  { %2842 = vmatpush3.bf16.msra.mxu1 %v3044_v25  ;;  %2805 = vmatpush3.bf16.msra.mxu0 %v3044_v25 }
  0x9e   :  { %2835 = vmatprep.subr.bf16.mxu1 %v3045_v33  ;;  %2806 = vmatprep.subr.bf16.mxu0 %v3045_v33 }
  0x9f   :  { %2664 = vmatprep.mubr.bf16.mxu1 %v989_v0  ;;  %2792 = vmatprep.mubr.bf16.mxu0 %v3356_v3  ;;  %v3048_v3 = vld [vmem:[%s3903_s4 + $0x230] sm:$0xff]  }
  0xa1   :  { %2843 = vmatpush3.bf16.msra.mxu1 %v3045_v33  ;;  %2807 = vmatpush3.bf16.msra.mxu0 %v3045_v33 }
  0xa2   :  { %2836 = vmatprep.subr.bf16.mxu1 %v3046_v19  ;;  %2808 = vmatprep.subr.bf16.mxu0 %v3046_v19 }
  0xa4   :  { %2665 = vmatmul.mubr.bf16.gmra.mrb[8].mxu1 %v990_v35  ;;  %2793 = vmatmul.mubr.bf16.gmra.mrb[8].mxu0 %v3368_v9  ;;  %v3049_v9 = vld [vmem:[%s3903_s4 + $0x238] sm:$0xff]  }
  0xa5   :  { %2844 = vmatpush3.bf16.msra.mxu1 %v3046_v19  ;;  %2809 = vmatpush3.bf16.msra.mxu0 %v3046_v19 }
  0xa6   :  { %2837 = vmatprep.subr.bf16.mxu1 %v3047_v2  ;;  %2810 = vmatprep.subr.bf16.mxu0 %v3047_v2 }
  0xa7   :  { %2668 = vmatprep.mubr.bf16.mxu1 %v991_v31  ;;  %2796 = vmatprep.mubr.bf16.mxu0 %v3388_v37  ;;  %v3912_v37 = vpack.c.bf16 %v3542_v29, %v3524_v59 }
  0xa9   :  { %2845 = vmatpush3.bf16.msra.mxu1 %v3047_v2  ;;  %2811 = vmatpush3.bf16.msra.mxu0 %v3047_v2 }
  0xaa   :  { %2838 = vmatprep.subr.bf16.mxu1 %v3048_v3  ;;  %2812 = vmatprep.subr.bf16.mxu0 %v3048_v3 }
  0xac   :  { %2669 = vmatmul.mubr.bf16.gmra.mrb[12].mxu1 %v3910_v39  ;;  %2797 = vmatmul.mubr.bf16.gmra.mrb[12].mxu0 %v1746_v36 }
  0xad   :  { %2846 = vmatpush3.bf16.msra.mxu1 %v3048_v3  ;;  %2813 = vmatpush3.bf16.msra.mxu0 %v3048_v3 }
  0xae   :  { %2839 = vmatprep.subr.bf16.mxu1 %v3049_v9  ;;  %2814 = vmatprep.subr.bf16.mxu0 %v3049_v9 }
  0xaf   :  { %2816 = vmatprep.mubr.bf16.mxu0 %v3669_v10  ;;  %2824 = vmatprep.mubr.bf16.mxu1 %v3716_v60 }
  0xb1   :  { %2847 = vmatpush3.bf16.msra.mxu1 %v3049_v9  ;;  %2815 = vmatpush3.bf16.msra.mxu0 %v3049_v9 }
  0xb4   :  { %2825 = vmatmul.mubr.bf16.vlgmr.msra.gmra.mrb[16].mxu1 %v3726_v52  ;;  %2817 = vmatmul.mubr.bf16.vlgmr.msra.gmra.mrb[0].mxu0 %v3680_v22 }
  0xb5   :  { %2828 = vmatprep.mubr.bf16.mxu1 %v3740_v49  ;;  %2820 = vmatprep.mubr.bf16.mxu0 %v3694_v5 }
  0xbc   :  { %2829 = vmatmul.mubr.bf16.gmra.mrb[20].mxu1 %v3911_v62  ;;  %2821 = vmatmul.mubr.bf16.gmra.mrb[4].mxu0 %v3912_v37 }
 0x167   :  { %v2658_v44 = vpop.f32.mrb[0].mxu1 }
 0x168   :  { %v1092_v48 = vpop.f32.mrb[1].mxu1 }
 0x169   :  { %v2659_v54 = vpop.f32.mrb[2].mxu1 }
 0x16a   :  { %v1095_v8 = vpop.f32.mrb[3].mxu1 }
 0x16f   :  { %v3819_v46 = vpop.f32.mrb[4].mxu1 }
 0x170   :  { %v3821_v41 = vpop.f32.mrb[5].mxu1 }
 0x171   :  { %v3823_v27 = vpop.f32.mrb[6].mxu1 }
 0x172   :  { %v3825_v34 = vpop.f32.mrb[7].mxu1 }
 0x177   :  { %v2666_v11 = vpop.f32.mrb[8].mxu1  ;;  %v2794_v59 = vpop.f32.mrb[8].mxu0 }
 0x178   :  { %v1124_v29 = vpop.f32.mrb[9].mxu1  ;;  %v2856_v30 = vadd.f32 %v2794_v59, %v2666_v11  ;;  %v1878_v20 = vpop.f32.mrb[9].mxu0 }
 0x179   :  { %v2667_v26 = vpop.f32.mrb[10].mxu1  ;;  %v2858_v18 = vadd.f32 %v1878_v20, %v1124_v29  ;;  %v2795_v51 = vpop.f32.mrb[10].mxu0 }
 0x17a   :  { %v1127_v40 = vpop.f32.mrb[11].mxu1  ;;  %v2860_v4 = vadd.f32 %v2795_v51, %v2667_v26  ;;  %v1881_v7 = vpop.f32.mrb[11].mxu0 }
 0x17b   :  { %v2862_v10 = vadd.f32 %v1881_v7, %v1127_v40 }
 0x17f   :  { %v2670_v28 = vpop.f32.mrb[12].mxu1  ;;  %v2798_v53 = vpop.f32.mrb[12].mxu0 }
 0x180   :  { %v1140_v57 = vpop.f32.mrb[13].mxu1  ;;  %v2864_v22 = vadd.f32 %v2798_v53, %v2670_v28  ;;  %v1894_v43 = vpop.f32.mrb[13].mxu0 }
 0x181   :  { %v2671_v56 = vpop.f32.mrb[14].mxu1  ;;  %v2866_v16 = vadd.f32 %v1894_v43, %v1140_v57  ;;  %v2799_v5 = vpop.f32.mrb[14].mxu0 }
 0x182   :  { %v1143_v23 = vpop.f32.mrb[15].mxu1  ;;  %v2868_v24 = vadd.f32 %v2799_v5, %v2671_v56  ;;  %v1897_v17 = vpop.f32.mrb[15].mxu0 }
 0x183   :  { %v2870_v14 = vadd.f32 %v1897_v17, %v1143_v23 }
 0x187   :  { %v2826_v6 = vpop.f32.mrb[16].mxu1  ;;  %v2818_v47 = vpop.f32.mrb[0].mxu0 }
 0x188   :  { %v3827_v42 = vadd.f32 %v2856_v30, %v2826_v6  ;;  %v2068_v60 = vpop.f32.mrb[17].mxu1  ;;  %v2848_v50 = vadd.f32 %v2818_v47, %v2658_v44  ;;  %v2036_v12 = vpop.f32.mrb[1].mxu0 }
 0x189   :  { %v3829_v52 = vadd.f32 %v2858_v18, %v2068_v60  ;;  %v2827_v21 = vpop.f32.mrb[18].mxu1  ;;  %v2849_v32 = vadd.f32 %v2036_v12, %v1092_v48  ;;  %v2819_v49 = vpop.f32.mrb[2].mxu0 }
 0x18a   :  { %2125 = vst [vmem:[%s3909_s5 + $0x50] sm:$0xff] %v3827_v42  ;;  %v3835_v1 = vadd.f32 %v2860_v4, %v2827_v21  ;;  %v2071_v13 = vpop.f32.mrb[19].mxu1  ;;  %2117 = vst [vmem:[%s3909_s5 + $0x10] sm:$0xff] %v2848_v50  ;;  %v2850_v58 = vadd.f32 %v2819_v49, %v2659_v54  ;;  %v2039_v15 = vpop.f32.mrb[3].mxu0  ;;  %v2154_v33 = vmul.f32 %v2848_v50, %v2848_v50 }
 0x18b   :  { %2123 = vst [vmem:[%s3909_s5 + $0x40] sm:$0xff] %v3829_v52  ;;  %v2863_v63 = vadd.f32 %v2862_v10, %v2071_v13  ;;  %2115 = vst [vmem:[%s3909_s5] sm:$0xff] %v2849_v32  ;;  %v2851_v45 = vadd.f32 %v2039_v15, %v1095_v8  ;;  %v2152_v38 = vmul.f32 %v2849_v32, %v2849_v32 }
 0x18c   :  { %2126 = vst [vmem:[%s3909_s5 + $0x58] sm:$0xff] %v3835_v1  ;;  %2118 = vst [vmem:[%s3909_s5 + $0x18] sm:$0xff] %v2850_v58  ;;  %v2155_v62 = vmul.f32 %v2850_v58, %v2850_v58  ;;  %v2160_v53 = vmul.f32 %v3829_v52, %v3829_v52  ;;  %v2162_v5 = vmul.f32 %v3827_v42, %v3827_v42 }
 0x18d   :  { %2124 = vst [vmem:[%s3909_s5 + $0x48] sm:$0xff] %v2863_v63  ;;  %2116 = vst [vmem:[%s3909_s5 + $0x8] sm:$0xff] %v2851_v45  ;;  %v2131_v55 = vadd.f32 %v2851_v45, %v2849_v32  ;;  %v2153_v25 = vmul.f32 %v2851_v45, %v2851_v45  ;;  %v2161_v43 = vmul.f32 %v2863_v63, %v2863_v63 }
 0x18e   :  { %v2163_v17 = vmul.f32 %v3835_v1, %v3835_v1 }
 0x18f   :  { %v2830_v61 = vpop.f32.mrb[20].mxu1  ;;  %v2132_v0 = vadd.f32 %v2848_v50, %v2131_v55  ;;  %v2168_v19 = vadd.f32 %v2153_v25, %v2152_v38  ;;  %v2822_v35 = vpop.f32.mrb[4].mxu0 }
 0x190   :  { %v2865_v2 = vadd.f32 %v2864_v22, %v2830_v61  ;;  %v2084_v31 = vpop.f32.mrb[21].mxu1  ;;  %v2852_v3 = vadd.f32 %v2822_v35, %v3819_v46  ;;  %v2052_v36 = vpop.f32.mrb[5].mxu0 }
 0x191   :  { %v2867_v9 = vadd.f32 %v2866_v16, %v2084_v31  ;;  %v2831_v39 = vpop.f32.mrb[22].mxu1  ;;  %v2169_v37 = vadd.f32 %v2168_v19, %v2154_v33  ;;  %v2853_v44 = vadd.f32 %v2052_v36, %v3821_v41  ;;  %v2133_v48 = vadd.f32 %v2850_v58, %v2132_v0  ;;  %v2823_v54 = vpop.f32.mrb[6].mxu0 }
 0x192   :  { %2129 = vst [vmem:[%s3909_s5 + $0x70] sm:$0xff] %v2865_v2  ;;  %v2087_v8 = vpop.f32.mrb[23].mxu1  ;;  %2121 = vst [vmem:[%s3909_s5 + $0x30] sm:$0xff] %v2852_v3  ;;  %v2854_v46 = vadd.f32 %v2823_v54, %v3823_v27  ;;  %v2869_v11 = vadd.f32 %v2868_v24, %v2831_v39  ;;  %v2055_v59 = vpop.f32.mrb[7].mxu0  ;;  %v2166_v32 = vmul.f32 %v2865_v2, %v2865_v2 }
 0x193   :  { %2127 = vst [vmem:[%s3909_s5 + $0x60] sm:$0xff] %v2867_v9  ;;  %2119 = vst [vmem:[%s3909_s5 + $0x20] sm:$0xff] %v2853_v44  ;;  %v2134_v41 = vadd.f32 %v2853_v44, %v2133_v48  ;;  %v2156_v29 = vmul.f32 %v2853_v44, %v2853_v44  ;;  %v2170_v30 = vadd.f32 %v2169_v37, %v2155_v62 }
 0x194   :  { %v2855_v20 = vadd.f32 %v2055_v59, %v3825_v34  ;;  %2122 = vst [vmem:[%s3909_s5 + $0x38] sm:$0xff] %v2854_v46  ;;  %2130 = vst [vmem:[%s3909_s5 + $0x78] sm:$0xff] %v2869_v11  ;;  %v2871_v27 = vadd.f32 %v2870_v14, %v2087_v8  ;;  %v2158_v34 = vmul.f32 %v2852_v3, %v2852_v3 }
 0x195   :  { %v2171_v26 = vadd.f32 %v2170_v30, %v2156_v29  ;;  %v2159_v7 = vmul.f32 %v2854_v46, %v2854_v46  ;;  %v2164_v47 = vmul.f32 %v2867_v9, %v2867_v9  ;;  %v2167_v58 = vmul.f32 %v2869_v11, %v2869_v11 }
 0x196   :  { %2120 = vst [vmem:[%s3909_s5 + $0x28] sm:$0xff] %v2855_v20  ;;  %v2135_v18 = vadd.f32 %v2855_v20, %v2134_v41  ;;  %v2157_v51 = vmul.f32 %v2855_v20, %v2855_v20  ;;  %2128 = vst [vmem:[%s3909_s5 + $0x68] sm:$0xff] %v2871_v27 }
 0x198   :  { %v2136_v40 = vadd.f32 %v2852_v3, %v2135_v18  ;;  %v2172_v4 = vadd.f32 %v2171_v26, %v2157_v51 }
 0x19a   :  { %v2137_v10 = vadd.f32 %v2854_v46, %v2136_v40  ;;  %v2173_v28 = vadd.f32 %v2172_v4, %v2158_v34 }
 0x19c   :  { %v2138_v57 = vadd.f32 %v3829_v52, %v2137_v10  ;;  %v2174_v22 = vadd.f32 %v2173_v28, %v2159_v7  ;;  %v2165_v52 = vmul.f32 %v2871_v27, %v2871_v27 }
 0x19e   :  { %v2175_v56 = vadd.f32 %v2174_v22, %v2160_v53  ;;  %v2139_v16 = vadd.f32 %v2863_v63, %v2138_v57 }
 0x1a0   :  { %v2140_v23 = vadd.f32 %v3827_v42, %v2139_v16  ;;  %v2176_v24 = vadd.f32 %v2175_v56, %v2161_v43 }
 0x1a2   :  { %v2141_v14 = vadd.f32 %v3835_v1, %v2140_v23  ;;  %v2177_v6 = vadd.f32 %v2176_v24, %v2162_v5 }
 0x1a4   :  { %v2142_v60 = vadd.f32 %v2867_v9, %v2141_v14  ;;  %v2178_v50 = vadd.f32 %v2177_v6, %v2163_v17 }
 0x1a6   :  { %v2143_v12 = vadd.f32 %v2871_v27, %v2142_v60  ;;  %v2179_v21 = vadd.f32 %v2178_v50, %v2164_v47 }
 0x1a8   :  { %v2144_v49 = vadd.f32 %v2865_v2, %v2143_v12  ;;  %v2180_v13 = vadd.f32 %v2179_v21, %v2165_v52 }
 0x1aa   :  { %v2145_v15 = vadd.f32 %v2869_v11, %v2144_v49  ;;  %v2181_v63 = vadd.f32 %v2180_v13, %v2166_v32 }
 0x1ac   :  { %v2146_v42 = vrot.slane %v2145_v15, 4  ;;  %v2182_v45 = vadd.f32 %v2181_v63, %v2167_v58 }
 0x1ae   :  { %v2147_v38 = vadd.f32 %v2146_v42, %v2145_v15  ;;  %v2183_v55 = vrot.slane %v2182_v45, 4 }
 0x1b0   :  { %v2148_v25 = vrot.slane %v2147_v38, 2  ;;  %v2184_v61 = vadd.f32 %v2183_v55, %v2182_v45 }
 0x1b2   :  { %v2149_v1 = vadd.f32 %v2148_v25, %v2147_v38  ;;  %v2185_v33 = vrot.slane %v2184_v61, 2 }
 0x1b4   :  { %v2150_v0 = vrot.slane %v2149_v1, 1  ;;  %v2186_v19 = vadd.f32 %v2185_v33, %v2184_v61 }
 0x1b6   :  { %v2151_v35 = vadd.f32 %v2150_v0, %v2149_v1  ;;  %v2187_v31 = vrot.slane %v2186_v19, 1 }
 0x1b8   :  { %v2188_v3 = vadd.f32 %v2187_v31, %v2186_v19  ;;  %2190 = vst [vmem:[%s3908_s6] sm:$0x1] %v2151_v35 }
 0x1ba   :  { %2191 = vst [vmem:[%s3908_s6 + $0x1] sm:$0x1] %v2188_v3 }

// kernel: network_block_forward.7
= control target key start
LH: loop header
LB: loop body
LE: loop exit
PB: predicated region body
PF: predicated region fallthrough
CT: control target
= control target key end

     0   :  { %v3088_v1 = vmov 0.0   ;;  %v3089_v24 = vmov 1966171168   ;;  %v43_v26 = vlaneseq  ;;  %vm305_vm0 = vcmask 1040384   ;;  %s4003_s4 = inlined_call_operand.vmem [shape: bf16[9,128,128], index: 4, kind: input, shape index: {}]   ;;  %s4004_s1 = inlined_call_operand.vmem [shape: f32[1,8,128], index: 1, kind: input, shape index: {}]   ;;  %s4005_s2 = inlined_call_operand.vmem [shape: f32[1,128], index: 2, kind: input, shape index: {}]   ;;  %s4006_s0 = inlined_call_operand.vmem [shape: f32[2,8,8,128], index: 0, kind: input, shape index: {}]   ;;  %s4007_s3 = inlined_call_operand.vmem [shape: f32[1,128], index: 3, kind: input, shape index: {}]   ;;  %s4008_s7 = inlined_call_operand.vmem [shape: f32[1,8,128], index: 7, kind: output, shape index: {1}]   ;;  %s4009_s5 = inlined_call_operand.vmem [shape: f32[2,64,128], index: 5, kind: input, shape index: {}]   ;;  %s4010_s6 = inlined_call_operand.vmem [shape: f32[2,64,128], index: 6, kind: output, shape index: {0}]  }
   0x1   :  { %v3013_v0 = vld [vmem:[%s4003_s4 + $0x100] sm:$0xff]   ;;  %137 = vst [vmem:[#allocation2 + $0x8] sm:$0xff] %v3088_v1  ;;  %138 = vst [vmem:[#allocation2 + $0x10] sm:$0x1] %v3088_v1  ;;  %v3015_v3 = vld [vmem:[%s4003_s4 + $0x108] sm:$0xff]   ;;  %v41_v25 = vunpack.c.l.s4 %v3089_v24  ;;  %vm725_vm1 = vcmask 1046528  }
   0x2   :  { %141 = vst [vmem:[#allocation2 + $0x28] sm:$0x1] %v3088_v1  ;;  %144 = vst [vmem:[#allocation2 + $0x40] sm:$0x1] %v3088_v1  ;;  %v3014_v2 = vld [vmem:[%s4003_s4 + $0x40] sm:$0xff]   ;;  %2707 = vmatprep.subr.bf16.mxu0 %v3013_v0  ;;  %v3016_v4 = vld [vmem:[%s4003_s4 + $0x48] sm:$0xff]  }
   0x3   :  { %147 = vst [vmem:[#allocation2 + $0x58] sm:$0x1] %v3088_v1  ;;  %150 = vst [vmem:[#allocation2 + $0x70] sm:$0x1] %v3088_v1  ;;  %2579 = vmatprep.subr.bf16.mxu1 %v3014_v2  ;;  %2708 = vmatpush3.bf16.msra.mxu0 %v3013_v0  ;;  %v3017_v5 = vld [vmem:[%s4003_s4 + $0x110] sm:$0xff]   ;;  %v3019_v7 = vld [vmem:[%s4003_s4 + $0x118] sm:$0xff]   ;;  %v42_v29 = vunpack.c.0.s8 %v41_v25 }
   0x4   :  { %153 = vst [vmem:[#allocation2 + $0x88] sm:$0x1] %v3088_v1  ;;  %156 = vst [vmem:[#allocation2 + $0xa0] sm:$0x1] %v3088_v1  ;;  %2580 = vmatpush3.bf16.msra.mxu1 %v3014_v2  ;;  %2709 = vmatprep.subr.bf16.mxu0 %v3015_v3  ;;  %v3018_v6 = vld [vmem:[%s4003_s4 + $0x50] sm:$0xff]   ;;  %v3020_v8 = vld [vmem:[%s4003_s4 + $0x58] sm:$0xff]  }
   0x5   :  { %159 = vst [vmem:[#allocation2 + $0xb8] sm:$0x1] %v3088_v1  ;;  %162 = vst [vmem:[#allocation2 + $0xd0] sm:$0x1] %v3088_v1  ;;  %2581 = vmatprep.subr.bf16.mxu1 %v3016_v4  ;;  %v3021_v9 = vld [vmem:[%s4003_s4 + $0x120] sm:$0xff]   ;;  %v3023_v11 = vld [vmem:[%s4003_s4 + $0x128] sm:$0xff]  }
   0x6   :  { %165 = vst [vmem:[#allocation2 + $0xe8] sm:$0x1] %v3088_v1  ;;  %168 = vst [vmem:[#allocation2 + $0x100] sm:$0x1] %v3088_v1  ;;  %v3022_v10 = vld [vmem:[%s4003_s4 + $0x60] sm:$0xff]   ;;  %v3024_v13 = vld [vmem:[%s4003_s4 + $0x68] sm:$0xff]  }
   0x7   :  { %171 = vst [vmem:[#allocation2 + $0x118] sm:$0x1] %v3088_v1  ;;  %174 = vst [vmem:[#allocation2 + $0x130] sm:$0x1] %v3088_v1  ;;  %2710 = vmatpush3.bf16.msra.mxu0 %v3015_v3  ;;  %v26_v12 = vld [vmem:[%s4004_s1] sm:$0xff]  ;;  %v3025_v16 = vld [vmem:[%s4003_s4 + $0x130] sm:$0xff]  }
   0x8   :  { %177 = vst [vmem:[#allocation2 + $0x148] sm:$0x1] %v3088_v1  ;;  %180 = vst [vmem:[#allocation2 + $0x160] sm:$0x1] %v3088_v1  ;;  %2582 = vmatpush3.bf16.msra.mxu1 %v3016_v4  ;;  %2711 = vmatprep.subr.bf16.mxu0 %v3017_v5  ;;  %v29_v14 = vmul.f32 0.0078125, %v26_v12  ;;  %v3026_v17 = vld [vmem:[%s4003_s4 + $0x70] sm:$0xff]  }
   0x9   :  { %183 = vst [vmem:[#allocation2 + $0x178] sm:$0x1] %v3088_v1  ;;  %186 = vst [vmem:[#allocation2 + $0x190] sm:$0x1] %v3088_v1  ;;  %2583 = vmatprep.subr.bf16.mxu1 %v3018_v6  ;;  %v3027_v20 = vld [vmem:[%s4003_s4 + $0x138] sm:$0xff]   ;;  %v3205_v27 = vld [vmem:[%s4003_s4 + $0x140] sm:$0xff]  }
   0xa   :  { %189 = vst [vmem:[#allocation2 + $0x1a8] sm:$0x1] %v3088_v1  ;;  %192 = vst [vmem:[#allocation2 + $0x1c0] sm:$0x1] %v3088_v1  ;;  %v30_v15 = vmul.f32 %v29_v14, %v29_v14  ;;  %v3028_v21 = vld [vmem:[%s4003_s4 + $0x78] sm:$0xff]   ;;  %v3210_v28 = vld [vmem:[%s4003_s4] sm:$0xff]  }
   0xb   :  { %195 = vst [vmem:[#allocation2 + $0x1d8] sm:$0x1] %v3088_v1  ;;  %2712 = vmatpush3.bf16.msra.mxu0 %v3017_v5  ;;  %v44_v30 = vshrl.u32 %v43_v26, 7  ;;  %v36_v35 = vld [vmem:[%s4005_s2] sm:$0x1]  ;;  %v61_v40 = vld [vmem:[%s4006_s0 + $0x8] sm:$0xff] }
   0xc   :  { %2584 = vmatpush3.bf16.msra.mxu1 %v3018_v6  ;;  %2713 = vmatprep.subr.bf16.mxu0 %v3019_v7  ;;  %v32_v18 = vrot.slane %v30_v15, 7  ;;  %v57_v38 = vld [vmem:[%s4007_s3] sm:$0x1]  ;;  %v62_v42 = vld [vmem:[%s4006_s0 + $0x10] sm:$0xff]  ;;  %v63_v43 = vld [vmem:[%s4006_s0 + $0x18] sm:$0xff] }
   0xd   :  { %2585 = vmatprep.subr.bf16.mxu1 %v3020_v8  ;;  %v45_v31 = vsub.s32 %v42_v29, %v44_v30  ;;  %v79_v37 = vsub.s32 0, %v44_v30  ;;  %v60_v39 = vld [vmem:[%s4006_s0] sm:$0xff]  ;;  %v65_v45 = vld [vmem:[%s4006_s0 + $0x28] sm:$0xff]  ;;  %v66_v48 = vld [vmem:[%s4006_s0 + $0x30] sm:$0xff] }
   0xe   :  { %v34_v19 = vsub.f32 %v29_v14, %v32_v18  ;;  %v64_v44 = vld [vmem:[%s4006_s0 + $0x20] sm:$0xff]  ;;  %v67_v49 = vld [vmem:[%s4006_s0 + $0x38] sm:$0xff]  ;;  %v69_v3 = vld [vmem:[%s4006_s0 + $0x48] sm:$0xff] }
   0xf   :  { %2714 = vmatpush3.bf16.msra.mxu0 %v3019_v7  ;;  %v68_v54 = vld [vmem:[%s4006_s0 + $0x40] sm:$0xff]  ;;  %v73_v15 = vld [vmem:[%s4006_s0 + $0x68] sm:$0xff] }
  0x10   :  { %2586 = vmatpush3.bf16.msra.mxu1 %v3020_v8  ;;  %2715 = vmatprep.subr.bf16.mxu0 %v3021_v9  ;;  %v35_v22 = vmax.f32 %v34_v19, 0.0  ;;  %v70_v8 = vld [vmem:[%s4006_s0 + $0x50] sm:$0xff]  ;;  %v3032_v26 = vld [vmem:[%s4003_s4 + $0x8] sm:$0xff]  }
  0x11   :  { %2587 = vmatprep.subr.bf16.mxu1 %v3022_v10 }
  0x12   :  { %v37_v23 = vadd.f32 1e-05, %v35_v22 }
  0x13   :  { %2716 = vmatpush3.bf16.msra.mxu0 %v3021_v9  ;;  %v71_v9 = vld [vmem:[%s4006_s0 + $0x58] sm:$0xff] }
  0x14   :  { %2588 = vmatpush3.bf16.msra.mxu1 %v3022_v10  ;;  %2717 = vmatprep.subr.bf16.mxu0 %v3023_v11  ;;  %3085 = vrsqrt.f32 %v37_v23 }
  0x15   :  { %2589 = vmatprep.subr.bf16.mxu1 %v3024_v13 }
  0x17   :  { %2718 = vmatpush3.bf16.msra.mxu0 %v3023_v11 }
  0x18   :  { %2590 = vmatpush3.bf16.msra.mxu1 %v3024_v13  ;;  %2719 = vmatprep.subr.bf16.mxu0 %v3025_v16 }
  0x19   :  { %2591 = vmatprep.subr.bf16.mxu1 %v3026_v17 }
  0x1b   :  { %2720 = vmatpush3.bf16.msra.mxu0 %v3025_v16 }
  0x1c   :  { %2592 = vmatpush3.bf16.msra.mxu1 %v3026_v17  ;;  %2721 = vmatprep.subr.bf16.mxu0 %v3027_v20 }
  0x1d   :  { %2593 = vmatprep.subr.bf16.mxu1 %v3028_v21 }
  0x1e   :  { %v3086_v32 = vpop.eup %3085 }
  0x1f   :  { %2722 = vmatpush3.bf16.msra.mxu0 %v3027_v20  ;;  %v46_v33 = vrot.slane %v3086_v32, %v45_v31  ;;  %v3031_v32 = vld [vmem:[%s4003_s4 + $0x148] sm:$0xff]  }
  0x20   :  { %2594 = vmatpush3.bf16.msra.mxu1 %v3028_v21  ;;  %2739 = vmatprep.subr.bf16.mxu0 %v3205_v27 }
  0x21   :  { %2611 = vmatprep.subr.bf16.mxu1 %v3210_v28  ;;  %v47_v34 = vcombine.high %v46_v33, %v46_v33 }
  0x23   :  { %v54_v36 = vrot.slane %v47_v34, %v45_v31 }
  0x25   :  { %v56_v41 = vmul.f32 %v54_v36, %v36_v35  ;;  %v74_v36 = vld [vmem:[%s4006_s0 + $0x70] sm:$0xff] }
  0x27   :  { %v58_v46 = vmul.f32 %v56_v41, %v29_v14  ;;  %v3238_v47 = vrot.slane %v56_v41, %v79_v37  ;;  %v72_v14 = vld [vmem:[%s4006_s0 + $0x60] sm:$0xff]  ;;  %v3034_v41 = vld [vmem:[%s4003_s4 + $0x10] sm:$0xff]  }
  0x29   :  { %v59_v50 = vsub.f32 %v57_v38, %v58_v46  ;;  %v82_v51 = vmul.f32 %v3238_v47, %v60_v39  ;;  %v83_v52 = vmul.f32 %v3238_v47, %v61_v40  ;;  %v84_v53 = vmul.f32 %v3238_v47, %v62_v42  ;;  %v75_v40 = vld [vmem:[%s4006_s0 + $0x78] sm:$0xff] }
  0x2a   :  { %v85_v55 = vmul.f32 %v3238_v47, %v63_v43  ;;  %v86_v56 = vmul.f32 %v3238_v47, %v64_v44  ;;  %v87_v57 = vmul.f32 %v3238_v47, %v65_v45  ;;  %v88_v58 = vmul.f32 %v3238_v47, %v66_v48  ;;  %v3033_v44 = vld [vmem:[%s4003_s4 + $0x150] sm:$0xff]  }
  0x2b   :  { %v3256_v59 = vrot.slane %v59_v50, %v79_v37  ;;  %v89_v60 = vmul.f32 %v3238_v47, %v67_v49  ;;  %v90_v61 = vmul.f32 %v3238_v47, %v68_v54  ;;  %v91_v21 = vmul.f32 %v3238_v47, %v69_v3 }
  0x2c   :  { %v92_v22 = vmul.f32 %v3238_v47, %v70_v8  ;;  %v93_v23 = vmul.f32 %v3238_v47, %v71_v9  ;;  %v94_v29 = vmul.f32 %v3238_v47, %v72_v14  ;;  %v95_v30 = vmul.f32 %v3238_v47, %v73_v15  ;;  %v227_v8 = vld [vmem:[#allocation2 + $0x70] sm:$0x1] }
  0x2d   :  { %v104_v62 = vadd.f32 %v3256_v59, %v82_v51  ;;  %v105_v63 = vadd.f32 %v3256_v59, %v83_v52  ;;  %v106_v0 = vadd.f32 %v3256_v59, %v84_v53  ;;  %v107_v2 = vadd.f32 %v3256_v59, %v85_v55  ;;  %v3036_v55 = vld [vmem:[%s4003_s4 + $0x18] sm:$0xff]  }
  0x2e   :  { %v108_v4 = vadd.f32 %v3256_v59, %v86_v56  ;;  %v109_v5 = vadd.f32 %v3256_v59, %v87_v57  ;;  %v110_v6 = vadd.f32 %v3256_v59, %v88_v58  ;;  %v111_v7 = vadd.f32 %v3256_v59, %v89_v60  ;;  %v3035_v56 = vld [vmem:[%s4003_s4 + $0x158] sm:$0xff]  }
  0x2f   :  { %v3277_v10 = vmax.f32 %v104_v62, 0.0  ;;  %v3279_v11 = vmax.f32 %v105_v63, 0.0  ;;  %v3281_v12 = vmax.f32 %v106_v0, 0.0  ;;  %v3283_v13 = vmax.f32 %v107_v2, 0.0  ;;  %v218_v0 = vld [vmem:[#allocation2 + $0x28] sm:$0x1] }
  0x30   :  { %v3291_v16 = vmax.f32 %v108_v4, 0.0  ;;  %v3293_v17 = vmax.f32 %v109_v5, 0.0  ;;  %v3295_v18 = vmax.f32 %v110_v6, 0.0  ;;  %v3297_v19 = vmax.f32 %v111_v7, 0.0  ;;  %v221_v2 = vld [vmem:[#allocation2 + $0x40] sm:$0x1] }
  0x31   :  { %v394_v20 = vpack.c.bf16 %v3277_v10, %v3088_v1  ;;  %v1174_v24 = vpack.c.bf16 %v3279_v11, %v3277_v10  ;;  %v3308_v25 = vpack.c.bf16 %v3281_v12, %v3279_v11  ;;  %v1175_v31 = vpack.c.bf16 %v3283_v13, %v3281_v12  ;;  %v3039_v5 = vld [vmem:[%s4003_s4 + $0x168] sm:$0xff]   ;;  %v224_v6 = vld [vmem:[#allocation2 + $0x58] sm:$0x1] }
  0x32   :  { %v3322_v33 = vpack.c.bf16 %v3291_v16, %v3283_v13  ;;  %v1176_v34 = vpack.c.bf16 %v3293_v17, %v3291_v16  ;;  %v3329_v35 = vpack.c.bf16 %v3295_v18, %v3293_v17  ;;  %v112_v37 = vadd.f32 %v3256_v59, %v90_v61  ;;  %v3037_v61 = vld [vmem:[%s4003_s4 + $0x160] sm:$0xff]   ;;  %v3040_v7 = vld [vmem:[%s4003_s4 + $0x28] sm:$0xff]  }
  0x33   :  { %2595 = vmatprep.mubr.bf16.mxu1 %v394_v20  ;;  %2723 = vmatprep.mubr.bf16.mxu0 %v1174_v24  ;;  %v113_v38 = vadd.f32 %v3256_v59, %v91_v21  ;;  %v114_v39 = vadd.f32 %v3256_v59, %v92_v22  ;;  %v115_v42 = vadd.f32 %v3256_v59, %v93_v23  ;;  %v3389_v63 = vrot.slane %v3088_v1, 7  ;;  %v3042_v22 = vld [vmem:[%s4003_s4 + $0x30] sm:$0xff]  }
  0x34   :  { %2596 = vmatmul.mubr.bf16.vlgmr.msra.gmra.mrb[0].mxu1 %v3308_v25  ;;  %2724 = vmatmul.mubr.bf16.vlgmr.msra.gmra.mrb[0].mxu0 %v1175_v31  ;;  %v117_v43 = vadd.f32 %v3256_v59, %v95_v30  ;;  %v3352_v45 = vmax.f32 %v112_v37, 0.0  ;;  %v96_v48 = vmul.f32 %v3238_v47, %v74_v36  ;;  %v97_v52 = vmul.f32 %v3238_v47, %v75_v40  ;;  %v230_v30 = vld [vmem:[#allocation2 + $0x88] sm:$0x1]  ;;  %v233_v31 = vld [vmem:[#allocation2 + $0xa0] sm:$0x1] }
  0x35   :  { %2612 = vmatpush3.bf16.msra.mxu1 %v3210_v28  ;;  %2740 = vmatpush3.bf16.msra.mxu0 %v3205_v27  ;;  %v116_v28 = vadd.f32 %v3256_v59, %v94_v29  ;;  %v3354_v27 = vmax.f32 %v113_v38, 0.0  ;;  %v3356_v46 = vmax.f32 %v114_v39, 0.0  ;;  %v3359_v49 = vmax.f32 %v115_v42, 0.0  ;;  %v3041_v29 = vld [vmem:[%s4003_s4 + $0x170] sm:$0xff]   ;;  %v3044_v42 = vld [vmem:[%s4003_s4 + $0x38] sm:$0xff]  }
  0x36   :  { %2613 = vmatprep.subr.bf16.mxu1 %v3032_v26  ;;  %2741 = vmatprep.subr.bf16.mxu0 %v3031_v32  ;;  %v3363_v51 = vmax.f32 %v117_v43, 0.0  ;;  %v1177_v53 = vpack.c.bf16 %v3297_v19, %v3295_v18  ;;  %v118_v54 = vadd.f32 %v3256_v59, %v96_v48  ;;  %v398_v47 = vpack.c.bf16 %v3352_v45, %v3088_v1 }
  0x37   :  { %2599 = vmatprep.mubr.bf16.mxu1 %v3322_v33  ;;  %2727 = vmatprep.mubr.bf16.mxu0 %v1176_v34  ;;  %v3361_v50 = vmax.f32 %v116_v28, 0.0  ;;  %v119_v58 = vadd.f32 %v3256_v59, %v97_v52  ;;  %v1178_v60 = vpack.c.bf16 %v3354_v27, %v3352_v45  ;;  %v3038_v59 = vld [vmem:[%s4003_s4 + $0x20] sm:$0xff]   ;;  %v3396_v3 = vpack.c.bf16 %v3356_v46, %v3354_v27 }
  0x38   :  { %v3377_v57 = vmax.f32 %v118_v54, 0.0  ;;  %v1179_v4 = vpack.c.bf16 %v3359_v49, %v3356_v46  ;;  %v730_v14 = vrot.slane %v218_v0, 1  ;;  %v733_v15 = vrot.slane %v221_v2, 1  ;;  %v3455_v54 = vld [vmem:[#allocation2 + $0xb8] sm:$0x1] }
  0x39   :  { %2614 = vmatpush3.bf16.msra.mxu1 %v3032_v26  ;;  %2742 = vmatpush3.bf16.msra.mxu0 %v3031_v32  ;;  %v3386_v62 = vmax.f32 %v119_v58, 0.0  ;;  %v3408_v9 = vpack.c.bf16 %v3361_v50, %v3359_v49  ;;  %v310_v20 = vrot.slane %v3277_v10, 7  ;;  %v1180_v21 = vpack.c.bf16 %v3363_v51, %v3361_v50  ;;  %v3470_v58 = vld [vmem:[#allocation2 + $0xd0] sm:$0x1] }
  0x3a   :  { %2615 = vmatprep.subr.bf16.mxu1 %v3034_v41  ;;  %2743 = vmatprep.subr.bf16.mxu0 %v3033_v44  ;;  %v736_v23 = vrot.slane %v224_v6, 1  ;;  %v729_v24 = vrot.slane %v3277_v10, 1  ;;  %v732_v26 = vrot.slane %v3279_v11, 1  ;;  %v313_v32 = vrot.slane %v3279_v11, 7 }
  0x3b   :  { %v316_v34 = vrot.slane %v3281_v12, 7  ;;  %v738_v36 = vrot.slane %v3283_v13, 1  ;;  %v739_v10 = vrot.slane %v227_v8, 1  ;;  %v3428_v37 = vpack.c.bf16 %v3377_v57, %v3363_v51 }
  0x3c   :  { %2600 = vmatmul.mubr.bf16.gmra.mrb[4].mxu1 %v3329_v35  ;;  %2728 = vmatmul.mubr.bf16.gmra.mrb[4].mxu0 %v1177_v53  ;;  %v3432_v38 = vsel %vm305_vm0, %v3389_v63, %v310_v20  ;;  %v735_v39 = vrot.slane %v3281_v12, 1  ;;  %v319_v11 = vrot.slane %v3283_v13, 7  ;;  %v1181_v40 = vpack.c.bf16 %v3386_v62, %v3377_v57 }
  0x3d   :  { %2616 = vmatpush3.bf16.msra.mxu1 %v3034_v41  ;;  %2744 = vmatpush3.bf16.msra.mxu0 %v3033_v44  ;;  %v3043_v41 = vld [vmem:[%s4003_s4 + $0x178] sm:$0xff]   ;;  %v3445_v28 = vsel %vm725_vm1, %v729_v24, %v730_v14  ;;  %v3448_v43 = vsel %vm725_vm1, %v732_v26, %v733_v15  ;;  %v322_v12 = vrot.slane %v3291_v16, 7  ;;  %v741_v13 = vrot.slane %v3291_v16, 1  ;;  %v251_v15 = vld [vmem:[#allocation2 + $0x130] sm:$0x1] }
  0x3e   :  { %2617 = vmatprep.subr.bf16.mxu1 %v3036_v55  ;;  %2745 = vmatprep.subr.bf16.mxu0 %v3035_v56  ;;  %v742_v44 = vrot.slane %v230_v30, 1  ;;  %v744_v48 = vrot.slane %v3293_v17, 1  ;;  %v745_v52 = vrot.slane %v233_v31, 1  ;;  %v370_v53 = vpack.c.bf16 %v3432_v38, %v3389_v63  ;;  %v248_v14 = vld [vmem:[#allocation2 + $0x118] sm:$0x1] }
  0x3f   :  { %2603 = vmatprep.mubr.bf16.mxu1 %v398_v47  ;;  %2731 = vmatprep.mubr.bf16.mxu0 %v1178_v60  ;;  %v3466_v16 = vsel %vm725_vm1, %v738_v36, %v739_v10  ;;  %v1370_v47 = vpack.c.bf16 %v3448_v43, %v3445_v28  ;;  %v3045_v60 = vld [vmem:[%s4003_s4 + $0x180] sm:$0xff]   ;;  %v3484_v0 = vsel %vm305_vm0, %v3389_v63, %v319_v11  ;;  %v748_v8 = vrot.slane %v3455_v54, 1 }
  0x40   :  { %v3488_v2 = vsel %vm305_vm0, %v3389_v63, %v322_v12  ;;  %v3495_v6 = vsel %vm725_vm1, %v744_v48, %v745_v52  ;;  %v747_v26 = vrot.slane %v3295_v18, 1  ;;  %v753_v10 = vrot.slane %v3352_v45, 1 }
  0x41   :  { %2618 = vmatpush3.bf16.msra.mxu1 %v3036_v55  ;;  %2746 = vmatpush3.bf16.msra.mxu0 %v3035_v56  ;;  %v3459_v55 = vsel %vm305_vm0, %v3389_v63, %v313_v32  ;;  %v3463_v56 = vsel %vm725_vm1, %v735_v39, %v736_v23  ;;  %v3509_v24 = vpack.c.bf16 %v3488_v2, %v3484_v0  ;;  %v1362_v32 = vrot.slane %v3297_v19, 1 }
  0x42   :  { %2619 = vmatprep.subr.bf16.mxu1 %v3038_v59  ;;  %2747 = vmatprep.subr.bf16.mxu0 %v3037_v61  ;;  %v1371_v20 = vpack.c.bf16 %v3466_v16, %v3463_v56  ;;  %v984_v11 = vrot.slane %v3386_v62, 7  ;;  %v756_v12 = vrot.slane %v3354_v27, 1  ;;  %v1365_v52 = vrot.slane %v3386_v62, 1 }
  0x44   :  { %2604 = vmatmul.mubr.bf16.gmra.mrb[8].mxu1 %v3396_v3  ;;  %2732 = vmatmul.mubr.bf16.gmra.mrb[8].mxu0 %v1179_v4  ;;  %v325_v4 = vrot.slane %v3293_v17, 7  ;;  %v1363_v17 = vrot.slane %v3470_v58, 1  ;;  %v3548_v54 = vsel %vm305_vm0, %v3389_v63, %v984_v11 }
  0x45   :  { %2620 = vmatpush3.bf16.msra.mxu1 %v3038_v59  ;;  %2748 = vmatpush3.bf16.msra.mxu0 %v3037_v61  ;;  %v3477_v61 = vsel %vm305_vm0, %v3389_v63, %v316_v34  ;;  %v3046_v59 = vld [vmem:[%s4003_s4 + $0x80] sm:$0xff]   ;;  %v334_v34 = vrot.slane %v3352_v45, 7  ;;  %v272_v45 = vld [vmem:[#allocation2 + $0x1d8] sm:$0x1] }
  0x46   :  { %2621 = vmatprep.subr.bf16.mxu1 %v3040_v7  ;;  %2749 = vmatprep.subr.bf16.mxu0 %v3039_v5  ;;  %v3505_v23 = vpack.c.bf16 %v3477_v61, %v3459_v55  ;;  %v3517_v31 = vsel %vm305_vm0, %v3389_v63, %v325_v4  ;;  %v1930_v4 = vrot.slane %v3088_v1, 1  ;;  %v3049_v1 = vld [vmem:[%s4003_s4 + $0x190] sm:$0xff]  }
  0x47   :  { %2607 = vmatprep.mubr.bf16.mxu1 %v3408_v9  ;;  %2735 = vmatprep.mubr.bf16.mxu0 %v1180_v21  ;;  %v269_v21 = vld [vmem:[#allocation2 + $0x1c0] sm:$0x1] }
  0x49   :  { %2622 = vmatpush3.bf16.msra.mxu1 %v3040_v7  ;;  %2750 = vmatpush3.bf16.msra.mxu0 %v3039_v5  ;;  %v3492_v5 = vsel %vm725_vm1, %v741_v13, %v742_v44  ;;  %v328_v7 = vrot.slane %v3295_v18, 7  ;;  %v3048_v18 = vld [vmem:[%s4003_s4 + $0x88] sm:$0xff]   ;;  %v757_v13 = vrot.slane %v251_v15, 1  ;;  %v3050_v15 = vld [vmem:[%s4003_s4 + $0x90] sm:$0xff]  }
  0x4a   :  { %2623 = vmatprep.subr.bf16.mxu1 %v3042_v22  ;;  %2751 = vmatprep.subr.bf16.mxu0 %v3041_v29  ;;  %v1372_v30 = vpack.c.bf16 %v3495_v6, %v3492_v5 }
  0x4b   :  { %v3526_v36 = vsel %vm305_vm0, %v3389_v63, %v328_v7 }
  0x4c   :  { %2608 = vmatmul.mubr.bf16.gmra.mrb[12].mxu1 %v3428_v37  ;;  %2736 = vmatmul.mubr.bf16.gmra.mrb[12].mxu0 %v1181_v40  ;;  %v242_v40 = vld [vmem:[#allocation2 + $0xe8] sm:$0x1] }
  0x4d   :  { %2624 = vmatpush3.bf16.msra.mxu1 %v3042_v22  ;;  %2752 = vmatpush3.bf16.msra.mxu0 %v3041_v29  ;;  %v981_v22 = vrot.slane %v3297_v19, 7  ;;  %v352_v29 = vrot.slane %v3377_v57, 7  ;;  %v1931_v7 = vrot.slane %v242_v40, 1  ;;  %v3052_v40 = vld [vmem:[%s4003_s4 + $0x98] sm:$0xff]  }
  0x4e   :  { %2625 = vmatprep.subr.bf16.mxu1 %v3044_v42  ;;  %2753 = vmatprep.subr.bf16.mxu0 %v3043_v41 }
  0x4f   :  { %2627 = vmatprep.mubr.bf16.mxu1 %v370_v53  ;;  %2755 = vmatprep.mubr.bf16.mxu0 %v1370_v47  ;;  %v3531_v39 = vsel %vm305_vm0, %v3389_v63, %v981_v22  ;;  %v3543_v48 = vsel %vm305_vm0, %v3389_v63, %v352_v29  ;;  %v1366_v53 = vrot.slane %v269_v21, 1  ;;  %v3551_v47 = vsel %vm725_vm1, %v747_v26, %v748_v8  ;;  %v254_v22 = vld [vmem:[#allocation2 + $0x148] sm:$0x1]  ;;  %v257_v26 = vld [vmem:[#allocation2 + $0x160] sm:$0x1] }
  0x50   :  { %v991_v44 = vpack.c.bf16 %v3531_v39, %v3526_v36  ;;  %v3568_v8 = vsel %vm305_vm0, %v3389_v63, %v334_v34  ;;  %v3578_v21 = vsel %vm725_vm1, %v756_v12, %v757_v13  ;;  %v3582_v29 = vsel %vm725_vm1, %v1930_v4, %v1931_v7 }
  0x51   :  { %2626 = vmatpush3.bf16.msra.mxu1 %v3044_v42  ;;  %2754 = vmatpush3.bf16.msra.mxu0 %v3043_v41  ;;  %v3047_v41 = vld [vmem:[%s4003_s4 + $0x188] sm:$0xff]   ;;  %v754_v42 = vrot.slane %v248_v14, 1  ;;  %v3558_v14 = vpack.c.bf16 %v3526_v36, %v3517_v31  ;;  %v3586_v34 = vsel %vm725_vm1, %v1365_v52, %v1366_v53  ;;  %v759_v12 = vrot.slane %v3356_v46, 1  ;;  %v3051_v53 = vld [vmem:[%s4003_s4 + $0x198] sm:$0xff]  }
  0x52   :  { %2643 = vmatprep.subr.bf16.mxu1 %v3046_v59  ;;  %2771 = vmatprep.subr.bf16.mxu0 %v3045_v60  ;;  %v760_v13 = vrot.slane %v254_v22, 1  ;;  %v763_v52 = vrot.slane %v257_v26, 1  ;;  %v346_v22 = vrot.slane %v3361_v50, 7  ;;  %v765_v26 = vrot.slane %v3361_v50, 1  ;;  %v3053_v50 = vld [vmem:[%s4003_s4 + $0x1a0] sm:$0xff]  }
  0x54   :  { %2628 = vmatmul.mubr.bf16.vlgmr.msra.gmra.mrb[0].mxu1 %v3505_v23  ;;  %2756 = vmatmul.mubr.bf16.vlgmr.msra.gmra.mrb[0].mxu0 %v1371_v20  ;;  %v1934_v20 = vrot.slane %v272_v45, 1  ;;  %v762_v45 = vrot.slane %v3359_v49, 1 }
  0x55   :  { %2644 = vmatpush3.bf16.msra.mxu1 %v3046_v59  ;;  %2772 = vmatpush3.bf16.msra.mxu0 %v3045_v60  ;;  %v3564_v59 = vsel %vm725_vm1, %v1362_v32, %v1363_v17  ;;  %v3575_v60 = vsel %vm725_vm1, %v753_v10, %v754_v42  ;;  %v337_v17 = vrot.slane %v3354_v27, 7  ;;  %v340_v32 = vrot.slane %v3356_v46, 7 }
  0x56   :  { %2645 = vmatprep.subr.bf16.mxu1 %v3048_v18  ;;  %2773 = vmatprep.subr.bf16.mxu0 %v3047_v41  ;;  %v3591_v11 = vsel %vm725_vm1, %v1930_v4, %v1934_v20  ;;  %v1373_v27 = vpack.c.bf16 %v3564_v59, %v3551_v47  ;;  %v374_v4 = vpack.c.bf16 %v3568_v8, %v3389_v63  ;;  %v343_v20 = vrot.slane %v3359_v49, 7 }
  0x57   :  { %2631 = vmatprep.mubr.bf16.mxu1 %v3509_v24  ;;  %2759 = vmatprep.mubr.bf16.mxu0 %v1372_v30  ;;  %v260_v30 = vld [vmem:[#allocation2 + $0x178] sm:$0x1]  ;;  %v1374_v7 = vpack.c.bf16 %v3578_v21, %v3575_v60  ;;  %v3612_v46 = vsel %vm305_vm0, %v3389_v63, %v337_v17  ;;  %v768_v42 = vrot.slane %v3363_v51, 1  ;;  %v3054_v17 = vld [vmem:[%s4003_s4 + $0xa0] sm:$0xff]   ;;  %v3629_v49 = vsel %vm725_vm1, %v762_v45, %v763_v52 }
  0x58   :  { %v766_v10 = vrot.slane %v260_v30, 1  ;;  %v3644_v30 = vsel %vm305_vm0, %v3389_v63, %v346_v22  ;;  %v349_v52 = vrot.slane %v3363_v51, 7  ;;  %v3666_v51 = vld [vmem:[#allocation2 + $0x8] sm:$0xff]  ;;  %v3058_v22 = vld [vmem:[%s4003_s4 + $0xb0] sm:$0xff]  }
  0x59   :  { %2646 = vmatpush3.bf16.msra.mxu1 %v3048_v18  ;;  %2774 = vmatpush3.bf16.msra.mxu0 %v3047_v41  ;;  %v263_v18 = vld [vmem:[#allocation2 + $0x190] sm:$0x1]  ;;  %v3616_v41 = vsel %vm305_vm0, %v3389_v63, %v340_v32  ;;  %v3626_v32 = vsel %vm725_vm1, %v759_v12, %v760_v13  ;;  %v1749_v36 = vpack.c.bf16 %v3666_v51, %v3386_v62 }
  0x5a   :  { %2647 = vmatprep.subr.bf16.mxu1 %v3050_v15  ;;  %2775 = vmatprep.subr.bf16.mxu0 %v3049_v1  ;;  %v769_v58 = vrot.slane %v263_v18, 1  ;;  %v1375_v12 = vpack.c.bf16 %v3629_v49, %v3626_v32  ;;  %v3649_v13 = vsel %vm725_vm1, %v765_v26, %v766_v10  ;;  %v215_v18 = vld [vmem:[#allocation2 + $0x10] sm:$0x1]  ;;  %v3055_v10 = vld [vmem:[%s4003_s4 + $0x1a8] sm:$0xff]   ;;  %v4012_v62 = vpack.c.bf16 %v3591_v11, %v3586_v34 }
  0x5b   :  { %2224 = vst [vmem:[%s4008_s7] sm:$0xff] %v3666_v51 }
  0x5c   :  { %2632 = vmatmul.mubr.bf16.gmra.mrb[4].mxu1 %v3558_v14  ;;  %2760 = vmatmul.mubr.bf16.gmra.mrb[4].mxu0 %v1373_v27  ;;  %v3640_v27 = vsel %vm305_vm0, %v3389_v63, %v343_v20  ;;  %v3652_v45 = vsel %vm725_vm1, %v768_v42, %v769_v58  ;;  %v726_v42 = vrot.slane %v3666_v51, 1  ;;  %v3674_v20 = vsel %vm305_vm0, %v3389_v63, %v349_v52  ;;  %v3060_v52 = vld [vmem:[%s4003_s4 + $0xb8] sm:$0xff]  }
  0x5d   :  { %2648 = vmatpush3.bf16.msra.mxu1 %v3050_v15  ;;  %2776 = vmatpush3.bf16.msra.mxu0 %v3049_v1  ;;  %v266_v15 = vld [vmem:[#allocation2 + $0x1a8] sm:$0x1]  ;;  %v3636_v1 = vpack.c.bf16 %v3616_v41, %v3612_v46  ;;  %v3664_v58 = vpack.c.bf16 %v3644_v30, %v3640_v27 }
  0x5e   :  { %2649 = vmatprep.subr.bf16.mxu1 %v3052_v40  ;;  %2777 = vmatprep.subr.bf16.mxu0 %v3051_v53 }
  0x5f   :  { %2635 = vmatprep.mubr.bf16.mxu1 %v374_v4  ;;  %2763 = vmatprep.mubr.bf16.mxu0 %v1374_v7  ;;  %v3056_v4 = vld [vmem:[%s4003_s4 + $0xa8] sm:$0xff]   ;;  %v772_v7 = vrot.slane %v266_v15, 1  ;;  %v3688_v15 = vpack.c.bf16 %v3543_v48, %v3674_v20 }
  0x61   :  { %2650 = vmatpush3.bf16.msra.mxu1 %v3052_v40  ;;  %2778 = vmatpush3.bf16.msra.mxu0 %v3051_v53  ;;  %v771_v40 = vrot.slane %v3377_v57, 1  ;;  %v1376_v53 = vpack.c.bf16 %v3652_v45, %v3649_v13  ;;  %v727_v57 = vrot.slane %v215_v18, 1  ;;  %v3059_v18 = vld [vmem:[%s4003_s4 + $0x1b8] sm:$0xff]  }
  0x62   :  { %2651 = vmatprep.subr.bf16.mxu1 %v3054_v17  ;;  %2779 = vmatprep.subr.bf16.mxu0 %v3053_v50 }
  0x63   :  { %v3680_v26 = vsel %vm725_vm1, %v771_v40, %v772_v7  ;;  %v3061_v7 = vld [vmem:[%s4003_s4 + $0x1c0] sm:$0xff]  }
  0x64   :  { %2636 = vmatmul.mubr.bf16.gmra.mrb[8].mxu1 %v3636_v1  ;;  %2764 = vmatmul.mubr.bf16.gmra.mrb[8].mxu0 %v1375_v12  ;;  %v1377_v12 = vpack.c.bf16 %v3586_v34, %v3680_v26 }
  0x65   :  { %2652 = vmatpush3.bf16.msra.mxu1 %v3054_v17  ;;  %2780 = vmatpush3.bf16.msra.mxu0 %v3053_v50  ;;  %v3057_v17 = vld [vmem:[%s4003_s4 + $0x1b0] sm:$0xff]   ;;  %v728_v50 = vsel %vm725_vm1, %v726_v42, %v727_v57  ;;  %v3063_v57 = vld [vmem:[%s4003_s4 + $0x1c8] sm:$0xff]  }
  0x66   :  { %2653 = vmatprep.subr.bf16.mxu1 %v3056_v4  ;;  %2781 = vmatprep.subr.bf16.mxu0 %v3055_v10  ;;  %v790_v40 = vpack.c.bf16 %v3445_v28, %v728_v50  ;;  %v245_v28 = vld [vmem:[#allocation2 + $0x100] sm:$0x1]  ;;  %v3072_v50 = vld [vmem:[%s4003_s4 + $0xe8] sm:$0xff]  }
  0x67   :  { %2639 = vmatprep.mubr.bf16.mxu1 %v3664_v58  ;;  %2767 = vmatprep.mubr.bf16.mxu0 %v1376_v53  ;;  %v3064_v53 = vld [vmem:[%s4003_s4 + $0xc8] sm:$0xff]  }
  0x69   :  { %2654 = vmatpush3.bf16.msra.mxu1 %v3056_v4  ;;  %2782 = vmatpush3.bf16.msra.mxu0 %v3055_v10  ;;  %v3062_v4 = vld [vmem:[%s4003_s4 + $0xc0] sm:$0xff]   ;;  %v3709_v10 = vpack.c.bf16 %v3463_v56, %v3448_v43  ;;  %v751_v43 = vrot.slane %v245_v28, 1  ;;  %v3066_v56 = vld [vmem:[%s4003_s4 + $0xd0] sm:$0xff]  }
  0x6a   :  { %2655 = vmatprep.subr.bf16.mxu1 %v3058_v22  ;;  %2783 = vmatprep.subr.bf16.mxu0 %v3057_v17 }
  0x6c   :  { %2640 = vmatmul.mubr.bf16.gmra.mrb[12].mxu1 %v3688_v15  ;;  %2768 = vmatmul.mubr.bf16.gmra.mrb[12].mxu0 %v1377_v12  ;;  %v3071_v12 = vld [vmem:[%s4003_s4 + $0x1e8] sm:$0xff]  }
  0x6d   :  { %2656 = vmatpush3.bf16.msra.mxu1 %v3058_v22  ;;  %2784 = vmatpush3.bf16.msra.mxu0 %v3057_v17  ;;  %v3720_v22 = vpack.c.bf16 %v3492_v5, %v3466_v16  ;;  %v3065_v16 = vld [vmem:[%s4003_s4 + $0x1d0] sm:$0xff]   ;;  %v3734_v5 = vpack.c.bf16 %v3551_v47, %v3495_v6  ;;  %v3068_v17 = vld [vmem:[%s4003_s4 + $0xd8] sm:$0xff]   ;;  %v3070_v47 = vld [vmem:[%s4003_s4 + $0xe0] sm:$0xff]  }
  0x6e   :  { %2657 = vmatprep.subr.bf16.mxu1 %v3060_v52  ;;  %2785 = vmatprep.subr.bf16.mxu0 %v3059_v18 }
  0x6f   :  { %2659 = vmatprep.mubr.bf16.mxu1 %v790_v40  ;;  %2787 = vmatprep.mubr.bf16.mxu0 %v3505_v23  ;;  %v752_v23 = vsel %vm725_vm1, %v726_v42, %v751_v43  ;;  %v3069_v42 = vld [vmem:[%s4003_s4 + $0x1e0] sm:$0xff]  }
  0x70   :  { %v794_v6 = vpack.c.bf16 %v3575_v60, %v752_v23  ;;  %v3756_v60 = vpack.c.bf16 %v3626_v32, %v3578_v21  ;;  %v3074_v21 = vld [vmem:[%s4003_s4 + $0xf0] sm:$0xff]  }
  0x71   :  { %2658 = vmatpush3.bf16.msra.mxu1 %v3060_v52  ;;  %2786 = vmatpush3.bf16.msra.mxu0 %v3059_v18  ;;  %v3766_v52 = vpack.c.bf16 %v3649_v13, %v3629_v49  ;;  %v3073_v32 = vld [vmem:[%s4003_s4 + $0x1f0] sm:$0xff]   ;;  %v3780_v49 = vpack.c.bf16 %v3680_v26, %v3652_v45  ;;  %v3076_v13 = vld [vmem:[%s4003_s4 + $0xf8] sm:$0xff]   ;;  %v989_v45 = vpack.c.bf16 %v3484_v0, %v3477_v61 }
  0x72   :  { %2675 = vmatprep.subr.bf16.mxu1 %v3062_v4  ;;  %2803 = vmatprep.subr.bf16.mxu0 %v3061_v7  ;;  %v1748_v61 = vpack.c.bf16 %v3666_v51, %v3297_v19  ;;  %v992_v0 = vpack.c.bf16 %v3612_v46, %v3568_v8  ;;  %v3081_v19 = vld [vmem:[%s4003_s4 + $0x220] sm:$0xff]  }
  0x74   :  { %2660 = vmatmul.mubr.bf16.vlgmr.msra.gmra.mrb[0].mxu1 %v3709_v10  ;;  %2788 = vmatmul.mubr.bf16.vlgmr.msra.gmra.mrb[0].mxu0 %v3509_v24  ;;  %v1568_v24 = vpack.c.bf16 %v3389_v63, %v3531_v39  ;;  %v4011_v39 = vpack.c.bf16 %v3548_v54, %v3543_v48 }
  0x75   :  { %2676 = vmatpush3.bf16.msra.mxu1 %v3062_v4  ;;  %2804 = vmatpush3.bf16.msra.mxu0 %v3061_v7 }
  0x76   :  { %2677 = vmatprep.subr.bf16.mxu1 %v3064_v53  ;;  %2805 = vmatprep.subr.bf16.mxu0 %v3063_v57 }
  0x77   :  { %2663 = vmatprep.mubr.bf16.mxu1 %v3720_v22  ;;  %2791 = vmatprep.mubr.bf16.mxu0 %v3558_v14  ;;  %v3067_v14 = vld [vmem:[%s4003_s4 + $0x1d8] sm:$0xff]  }
  0x79   :  { %2678 = vmatpush3.bf16.msra.mxu1 %v3064_v53  ;;  %2806 = vmatpush3.bf16.msra.mxu0 %v3063_v57 }
  0x7a   :  { %2679 = vmatprep.subr.bf16.mxu1 %v3066_v56  ;;  %2807 = vmatprep.subr.bf16.mxu0 %v3065_v16 }
  0x7c   :  { %2664 = vmatmul.mubr.bf16.gmra.mrb[4].mxu1 %v3734_v5  ;;  %2792 = vmatmul.mubr.bf16.gmra.mrb[4].mxu0 %v1568_v24 }
  0x7d   :  { %2680 = vmatpush3.bf16.msra.mxu1 %v3066_v56  ;;  %2808 = vmatpush3.bf16.msra.mxu0 %v3065_v16 }
  0x7e   :  { %2681 = vmatprep.subr.bf16.mxu1 %v3068_v17  ;;  %2809 = vmatprep.subr.bf16.mxu0 %v3067_v14 }
  0x7f   :  { %2667 = vmatprep.mubr.bf16.mxu1 %v794_v6  ;;  %2795 = vmatprep.mubr.bf16.mxu0 %v3636_v1  ;;  %v1569_v1 = vpack.c.bf16 %v3389_v63, %v3548_v54  ;;  %v3077_v63 = vld [vmem:[%s4003_s4 + $0x200] sm:$0xff]  }
  0x81   :  { %2682 = vmatpush3.bf16.msra.mxu1 %v3068_v17  ;;  %2810 = vmatpush3.bf16.msra.mxu0 %v3067_v14 }
  0x82   :  { %2683 = vmatprep.subr.bf16.mxu1 %v3070_v47  ;;  %2811 = vmatprep.subr.bf16.mxu0 %v3069_v42 }
  0x84   :  { %2668 = vmatmul.mubr.bf16.gmra.mrb[8].mxu1 %v3756_v60  ;;  %2796 = vmatmul.mubr.bf16.gmra.mrb[8].mxu0 %v3664_v58  ;;  %v3075_v58 = vld [vmem:[%s4003_s4 + $0x1f8] sm:$0xff]  }
  0x85   :  { %2684 = vmatpush3.bf16.msra.mxu1 %v3070_v47  ;;  %2812 = vmatpush3.bf16.msra.mxu0 %v3069_v42  ;;  %v2128_v47 = vld [vmem:[%s4009_s5 + $0x50] sm:$0xff] }
  0x86   :  { %2685 = vmatprep.subr.bf16.mxu1 %v3072_v50  ;;  %2813 = vmatprep.subr.bf16.mxu0 %v3071_v12 }
  0x87   :  { %2671 = vmatprep.mubr.bf16.mxu1 %v3766_v52  ;;  %2799 = vmatprep.mubr.bf16.mxu0 %v3688_v15  ;;  %v988_v15 = vpack.c.bf16 %v3459_v55, %v3432_v38  ;;  %v3078_v38 = vld [vmem:[%s4003_s4 + $0x208] sm:$0xff]   ;;  %v990_v55 = vpack.c.bf16 %v3517_v31, %v3488_v2  ;;  %v994_v31 = vpack.c.bf16 %v3674_v20, %v3644_v30 }
  0x88   :  { %v3082_v2 = vld [vmem:[%s4003_s4 + $0x228] sm:$0xff]  }
  0x89   :  { %2686 = vmatpush3.bf16.msra.mxu1 %v3072_v50  ;;  %2814 = vmatpush3.bf16.msra.mxu0 %v3071_v12 }
  0x8a   :  { %2687 = vmatprep.subr.bf16.mxu1 %v3074_v21  ;;  %2815 = vmatprep.subr.bf16.mxu0 %v3073_v32 }
  0x8c   :  { %2672 = vmatmul.mubr.bf16.gmra.mrb[12].mxu1 %v3780_v49  ;;  %2800 = vmatmul.mubr.bf16.gmra.mrb[12].mxu0 %v1569_v1 }
  0x8d   :  { %2688 = vmatpush3.bf16.msra.mxu1 %v3074_v21  ;;  %2816 = vmatpush3.bf16.msra.mxu0 %v3073_v32 }
  0x8e   :  { %2689 = vmatprep.subr.bf16.mxu1 %v3076_v13  ;;  %2817 = vmatprep.subr.bf16.mxu0 %v3075_v58 }
  0x8f   :  { %2691 = vmatprep.mubr.bf16.mxu1 %v988_v15  ;;  %2819 = vmatprep.mubr.bf16.mxu0 %v3308_v25  ;;  %v3079_v25 = vld [vmem:[%s4003_s4 + $0x210] sm:$0xff]  }
  0x91   :  { %2690 = vmatpush3.bf16.msra.mxu1 %v3076_v13  ;;  %2818 = vmatpush3.bf16.msra.mxu0 %v3075_v58  ;;  %v2129_v58 = vld [vmem:[%s4009_s5 + $0x58] sm:$0xff] }
  0x92   :  { %2867 = vmatprep.subr.bf16.mxu1 %v3077_v63  ;;  %2835 = vmatprep.subr.bf16.mxu0 %v3077_v63 }
  0x94   :  { %2692 = vmatmul.mubr.bf16.vlgmr.msra.gmra.mrb[0].mxu1 %v989_v45  ;;  %2820 = vmatmul.mubr.bf16.vlgmr.msra.gmra.mrb[0].mxu0 %v3322_v33  ;;  %v3080_v33 = vld [vmem:[%s4003_s4 + $0x218] sm:$0xff]  }
  0x95   :  { %2875 = vmatpush3.bf16.msra.mxu1 %v3077_v63  ;;  %2836 = vmatpush3.bf16.msra.mxu0 %v3077_v63 }
  0x96   :  { %2868 = vmatprep.subr.bf16.mxu1 %v3078_v38  ;;  %2837 = vmatprep.subr.bf16.mxu0 %v3078_v38 }
  0x97   :  { %2695 = vmatprep.mubr.bf16.mxu1 %v990_v55  ;;  %2823 = vmatprep.mubr.bf16.mxu0 %v3329_v35  ;;  %v993_v35 = vpack.c.bf16 %v3640_v27, %v3616_v41 }
  0x99   :  { %2876 = vmatpush3.bf16.msra.mxu1 %v3078_v38  ;;  %2838 = vmatpush3.bf16.msra.mxu0 %v3078_v38  ;;  %v2121_v38 = vld [vmem:[%s4009_s5 + $0x18] sm:$0xff] }
  0x9a   :  { %2869 = vmatprep.subr.bf16.mxu1 %v3079_v25  ;;  %2839 = vmatprep.subr.bf16.mxu0 %v3079_v25 }
  0x9c   :  { %2696 = vmatmul.mubr.bf16.gmra.mrb[4].mxu1 %v991_v44  ;;  %2824 = vmatmul.mubr.bf16.gmra.mrb[4].mxu0 %v1748_v61  ;;  %v2127_v61 = vld [vmem:[%s4009_s5 + $0x48] sm:$0xff] }
  0x9d   :  { %2877 = vmatpush3.bf16.msra.mxu1 %v3079_v25  ;;  %2840 = vmatpush3.bf16.msra.mxu0 %v3079_v25 }
  0x9e   :  { %2870 = vmatprep.subr.bf16.mxu1 %v3080_v33  ;;  %2841 = vmatprep.subr.bf16.mxu0 %v3080_v33 }
  0x9f   :  { %2699 = vmatprep.mubr.bf16.mxu1 %v992_v0  ;;  %2827 = vmatprep.mubr.bf16.mxu0 %v3396_v3  ;;  %v3083_v3 = vld [vmem:[%s4003_s4 + $0x230] sm:$0xff]  }
  0xa1   :  { %2878 = vmatpush3.bf16.msra.mxu1 %v3080_v33  ;;  %2842 = vmatpush3.bf16.msra.mxu0 %v3080_v33 }
  0xa2   :  { %2871 = vmatprep.subr.bf16.mxu1 %v3081_v19  ;;  %2843 = vmatprep.subr.bf16.mxu0 %v3081_v19 }
  0xa4   :  { %2700 = vmatmul.mubr.bf16.gmra.mrb[8].mxu1 %v993_v35  ;;  %2828 = vmatmul.mubr.bf16.gmra.mrb[8].mxu0 %v3408_v9  ;;  %v3084_v9 = vld [vmem:[%s4003_s4 + $0x238] sm:$0xff]  }
  0xa5   :  { %2879 = vmatpush3.bf16.msra.mxu1 %v3081_v19  ;;  %2844 = vmatpush3.bf16.msra.mxu0 %v3081_v19 }
  0xa6   :  { %2872 = vmatprep.subr.bf16.mxu1 %v3082_v2  ;;  %2845 = vmatprep.subr.bf16.mxu0 %v3082_v2 }
  0xa7   :  { %2703 = vmatprep.mubr.bf16.mxu1 %v994_v31  ;;  %2831 = vmatprep.mubr.bf16.mxu0 %v3428_v37  ;;  %v4013_v37 = vpack.c.bf16 %v3582_v29, %v3564_v59 }
  0xa9   :  { %2880 = vmatpush3.bf16.msra.mxu1 %v3082_v2  ;;  %2846 = vmatpush3.bf16.msra.mxu0 %v3082_v2  ;;  %v2119_v2 = vld [vmem:[%s4009_s5 + $0x8] sm:$0xff] }
  0xaa   :  { %2873 = vmatprep.subr.bf16.mxu1 %v3083_v3  ;;  %2847 = vmatprep.subr.bf16.mxu0 %v3083_v3 }
  0xac   :  { %2704 = vmatmul.mubr.bf16.gmra.mrb[12].mxu1 %v4011_v39  ;;  %2832 = vmatmul.mubr.bf16.gmra.mrb[12].mxu0 %v1749_v36 }
  0xad   :  { %2881 = vmatpush3.bf16.msra.mxu1 %v3083_v3  ;;  %2848 = vmatpush3.bf16.msra.mxu0 %v3083_v3 }
  0xae   :  { %2874 = vmatprep.subr.bf16.mxu1 %v3084_v9  ;;  %2849 = vmatprep.subr.bf16.mxu0 %v3084_v9 }
  0xaf   :  { %2851 = vmatprep.mubr.bf16.mxu0 %v3709_v10  ;;  %2859 = vmatprep.mubr.bf16.mxu1 %v3756_v60  ;;  %v2120_v60 = vld [vmem:[%s4009_s5 + $0x10] sm:$0xff] }
  0xb1   :  { %2882 = vmatpush3.bf16.msra.mxu1 %v3084_v9  ;;  %2850 = vmatpush3.bf16.msra.mxu0 %v3084_v9 }
  0xb4   :  { %2860 = vmatmul.mubr.bf16.vlgmr.msra.gmra.mrb[16].mxu1 %v3766_v52  ;;  %2852 = vmatmul.mubr.bf16.vlgmr.msra.gmra.mrb[0].mxu0 %v3720_v22  ;;  %v2126_v52 = vld [vmem:[%s4009_s5 + $0x40] sm:$0xff] }
  0xb5   :  { %2863 = vmatprep.mubr.bf16.mxu1 %v3780_v49  ;;  %2855 = vmatprep.mubr.bf16.mxu0 %v3734_v5  ;;  %v2118_v49 = vld [vmem:[%s4009_s5] sm:$0xff] }
  0xbc   :  { %2864 = vmatmul.mubr.bf16.gmra.mrb[20].mxu1 %v4012_v62  ;;  %2856 = vmatmul.mubr.bf16.gmra.mrb[4].mxu0 %v4013_v37 }
 0x167   :  { %v2693_v44 = vpop.f32.mrb[0].mxu1 }
 0x168   :  { %v1095_v48 = vpop.f32.mrb[1].mxu1 }
 0x169   :  { %v2694_v54 = vpop.f32.mrb[2].mxu1 }
 0x16a   :  { %v1098_v8 = vpop.f32.mrb[3].mxu1 }
 0x16f   :  { %v3859_v46 = vpop.f32.mrb[4].mxu1 }
 0x170   :  { %v3861_v41 = vpop.f32.mrb[5].mxu1 }
 0x171   :  { %v3863_v27 = vpop.f32.mrb[6].mxu1 }
 0x172   :  { %v3865_v34 = vpop.f32.mrb[7].mxu1 }
 0x177   :  { %v2701_v11 = vpop.f32.mrb[8].mxu1  ;;  %v2829_v59 = vpop.f32.mrb[8].mxu0 }
 0x178   :  { %v1127_v29 = vpop.f32.mrb[9].mxu1  ;;  %v2891_v30 = vadd.f32 %v2829_v59, %v2701_v11  ;;  %v1881_v20 = vpop.f32.mrb[9].mxu0 }
 0x179   :  { %v2702_v26 = vpop.f32.mrb[10].mxu1  ;;  %v2893_v18 = vadd.f32 %v1881_v20, %v1127_v29  ;;  %v2830_v51 = vpop.f32.mrb[10].mxu0  ;;  %v2124_v29 = vld [vmem:[%s4009_s5 + $0x30] sm:$0xff] }
 0x17a   :  { %v1130_v40 = vpop.f32.mrb[11].mxu1  ;;  %v2895_v4 = vadd.f32 %v2830_v51, %v2702_v26  ;;  %v1884_v7 = vpop.f32.mrb[11].mxu0  ;;  %v2130_v26 = vld [vmem:[%s4009_s5 + $0x60] sm:$0xff] }
 0x17b   :  { %v2897_v10 = vadd.f32 %v1884_v7, %v1130_v40 }
 0x17f   :  { %v2705_v28 = vpop.f32.mrb[12].mxu1  ;;  %v2833_v53 = vpop.f32.mrb[12].mxu0 }
 0x180   :  { %v1143_v57 = vpop.f32.mrb[13].mxu1  ;;  %v2899_v22 = vadd.f32 %v2833_v53, %v2705_v28  ;;  %v1897_v43 = vpop.f32.mrb[13].mxu0 }
 0x181   :  { %v2706_v56 = vpop.f32.mrb[14].mxu1  ;;  %v2901_v16 = vadd.f32 %v1897_v43, %v1143_v57  ;;  %v2834_v5 = vpop.f32.mrb[14].mxu0 }
 0x182   :  { %v1146_v23 = vpop.f32.mrb[15].mxu1  ;;  %v3867_v24 = vadd.f32 %v2834_v5, %v2706_v56  ;;  %v1900_v17 = vpop.f32.mrb[15].mxu0  ;;  %v2125_v56 = vld [vmem:[%s4009_s5 + $0x38] sm:$0xff] }
 0x183   :  { %v3869_v14 = vadd.f32 %v1900_v17, %v1146_v23 }
 0x187   :  { %v2861_v6 = vpop.f32.mrb[16].mxu1  ;;  %v2853_v42 = vpop.f32.mrb[0].mxu0 }
 0x188   :  { %v2892_v50 = vadd.f32 %v2891_v30, %v2861_v6  ;;  %v2071_v12 = vpop.f32.mrb[17].mxu1  ;;  %v2883_v21 = vadd.f32 %v2853_v42, %v2693_v44  ;;  %v2039_v32 = vpop.f32.mrb[1].mxu0 }
 0x189   :  { %v2894_v1 = vadd.f32 %v2893_v18, %v2071_v12  ;;  %v2862_v13 = vpop.f32.mrb[18].mxu1  ;;  %v2884_v63 = vadd.f32 %v2039_v32, %v1095_v48  ;;  %v2854_v45 = vpop.f32.mrb[2].mxu0  ;;  %v2132_v48 = vld [vmem:[%s4009_s5 + $0x70] sm:$0xff] }
 0x18a   :  { %v3886_v15 = vadd.f32 %v2892_v50, %v2128_v47  ;;  %v2896_v55 = vadd.f32 %v2895_v4, %v2862_v13  ;;  %v2074_v25 = vpop.f32.mrb[19].mxu1  ;;  %v2136_v33 = vadd.f32 %v2883_v21, %v2120_v60  ;;  %v2885_v19 = vadd.f32 %v2854_v45, %v2694_v54  ;;  %v2042_v35 = vpop.f32.mrb[3].mxu0  ;;  %v2122_v4 = vld [vmem:[%s4009_s5 + $0x20] sm:$0xff] }
 0x18b   :  { %v3894_v0 = vadd.f32 %v2894_v1, %v2126_v52  ;;  %v2898_v31 = vadd.f32 %v2897_v10, %v2074_v25  ;;  %v2134_v3 = vadd.f32 %v2884_v63, %v2118_v49  ;;  %v2886_v9 = vadd.f32 %v2042_v35, %v1098_v8  ;;  %v2131_v1 = vld [vmem:[%s4009_s5 + $0x68] sm:$0xff] }
 0x18c   :  { %2160 = vst [vmem:[%s4010_s6 + $0x50] sm:$0xff] %v3886_v15  ;;  %v3903_v36 = vadd.f32 %v2896_v55, %v2129_v58  ;;  %2152 = vst [vmem:[%s4010_s6 + $0x10] sm:$0xff] %v2136_v33  ;;  %v2137_v39 = vadd.f32 %v2885_v19, %v2121_v38  ;;  %v2189_v18 = vmul.f32 %v2136_v33, %v2136_v33 }
 0x18d   :  { %2158 = vst [vmem:[%s4010_s6 + $0x40] sm:$0xff] %v3894_v0  ;;  %v3912_v62 = vadd.f32 %v2898_v31, %v2127_v61  ;;  %2150 = vst [vmem:[%s4010_s6] sm:$0xff] %v2134_v3  ;;  %v2135_v37 = vadd.f32 %v2886_v9, %v2119_v2  ;;  %v2187_v54 = vmul.f32 %v2134_v3, %v2134_v3 }
 0x18e   :  { %2161 = vst [vmem:[%s4010_s6 + $0x58] sm:$0xff] %v3903_v36  ;;  %2153 = vst [vmem:[%s4010_s6 + $0x18] sm:$0xff] %v2137_v39  ;;  %v2190_v42 = vmul.f32 %v2137_v39, %v2137_v39 }
 0x18f   :  { %2159 = vst [vmem:[%s4010_s6 + $0x48] sm:$0xff] %v3912_v62  ;;  %v2865_v44 = vpop.f32.mrb[20].mxu1  ;;  %2151 = vst [vmem:[%s4010_s6 + $0x8] sm:$0xff] %v2135_v37  ;;  %v2166_v8 = vadd.f32 %v2135_v37, %v2134_v3  ;;  %v2188_v11 = vmul.f32 %v2135_v37, %v2135_v37  ;;  %v2857_v59 = vpop.f32.mrb[4].mxu0  ;;  %v2196_v3 = vmul.f32 %v3912_v62, %v3912_v62 }
 0x190   :  { %v2900_v30 = vadd.f32 %v2899_v22, %v2865_v44  ;;  %v2087_v20 = vpop.f32.mrb[21].mxu1  ;;  %v2887_v51 = vadd.f32 %v2857_v59, %v3859_v46  ;;  %v2055_v40 = vpop.f32.mrb[5].mxu0  ;;  %v2133_v46 = vld [vmem:[%s4009_s5 + $0x78] sm:$0xff]  ;;  %v2197_v37 = vmul.f32 %v3886_v15, %v3886_v15 }
 0x191   :  { %v2902_v7 = vadd.f32 %v2901_v16, %v2087_v20  ;;  %v2866_v10 = vpop.f32.mrb[22].mxu1  ;;  %v2167_v28 = vadd.f32 %v2166_v8, %v2136_v33  ;;  %v2203_v53 = vadd.f32 %v2188_v11, %v2187_v54  ;;  %v2888_v22 = vadd.f32 %v2055_v40, %v3861_v41  ;;  %v2858_v43 = vpop.f32.mrb[6].mxu0 }
 0x192   :  { %v2148_v57 = vadd.f32 %v2900_v30, %v2132_v48  ;;  %v2090_v5 = vpop.f32.mrb[23].mxu1  ;;  %v2140_v23 = vadd.f32 %v2887_v51, %v2124_v29  ;;  %v2889_v16 = vadd.f32 %v2858_v43, %v3863_v27  ;;  %v2904_v6 = vadd.f32 %v3867_v24, %v2866_v10  ;;  %v2058_v47 = vpop.f32.mrb[7].mxu0  ;;  %v2123_v24 = vld [vmem:[%s4009_s5 + $0x28] sm:$0xff] }
 0x193   :  { %v2146_v17 = vadd.f32 %v2902_v7, %v2130_v26  ;;  %v2204_v60 = vadd.f32 %v2203_v53, %v2189_v18  ;;  %v2138_v41 = vadd.f32 %v2888_v22, %v2122_v4  ;;  %v2168_v50 = vadd.f32 %v2167_v28, %v2137_v39 }
 0x194   :  { %2164 = vst [vmem:[%s4010_s6 + $0x70] sm:$0xff] %v2148_v57  ;;  %2156 = vst [vmem:[%s4010_s6 + $0x30] sm:$0xff] %v2140_v23  ;;  %v2141_v27 = vadd.f32 %v2889_v16, %v2125_v56  ;;  %v2149_v12 = vadd.f32 %v2904_v6, %v2133_v46  ;;  %v2890_v49 = vadd.f32 %v2058_v47, %v3865_v34 }
 0x195   :  { %2162 = vst [vmem:[%s4010_s6 + $0x60] sm:$0xff] %v2146_v17  ;;  %2154 = vst [vmem:[%s4010_s6 + $0x20] sm:$0xff] %v2138_v41  ;;  %v2169_v52 = vadd.f32 %v2168_v50, %v2138_v41  ;;  %v2191_v21 = vmul.f32 %v2138_v41, %v2138_v41  ;;  %v2205_v32 = vadd.f32 %v2204_v60, %v2190_v42 }
 0x196   :  { %2157 = vst [vmem:[%s4010_s6 + $0x38] sm:$0xff] %v2141_v27  ;;  %2165 = vst [vmem:[%s4010_s6 + $0x78] sm:$0xff] %v2149_v12  ;;  %v2906_v13 = vadd.f32 %v3869_v14, %v2090_v5  ;;  %v2139_v63 = vadd.f32 %v2890_v49, %v2123_v24  ;;  %v2193_v55 = vmul.f32 %v2140_v23, %v2140_v23 }
 0x197   :  { %v2206_v58 = vadd.f32 %v2205_v32, %v2191_v21  ;;  %v2194_v33 = vmul.f32 %v2141_v27, %v2141_v27  ;;  %v2195_v14 = vmul.f32 %v3894_v0, %v3894_v0  ;;  %v2198_v54 = vmul.f32 %v3903_v36, %v3903_v36 }
 0x198   :  { %v2147_v45 = vadd.f32 %v2906_v13, %v2131_v1  ;;  %2155 = vst [vmem:[%s4010_s6 + $0x28] sm:$0xff] %v2139_v63  ;;  %v2170_v34 = vadd.f32 %v2169_v52, %v2139_v63  ;;  %v2192_v38 = vmul.f32 %v2139_v63, %v2139_v63  ;;  %v2201_v18 = vmul.f32 %v2148_v57, %v2148_v57 }
 0x199   :  { %v2202_v40 = vmul.f32 %v2149_v12, %v2149_v12 }
 0x19a   :  { %2163 = vst [vmem:[%s4010_s6 + $0x68] sm:$0xff] %v2147_v45  ;;  %v2171_v25 = vadd.f32 %v2170_v34, %v2140_v23  ;;  %v2207_v61 = vadd.f32 %v2206_v58, %v2192_v38  ;;  %v2200_v20 = vmul.f32 %v2147_v45, %v2147_v45 }
 0x19c   :  { %v2172_v19 = vadd.f32 %v2171_v25, %v2141_v27  ;;  %v2208_v35 = vadd.f32 %v2207_v61, %v2193_v55 }
 0x19e   :  { %v2173_v2 = vadd.f32 %v2172_v19, %v3894_v0  ;;  %v2209_v31 = vadd.f32 %v2208_v35, %v2194_v33  ;;  %v2199_v0 = vmul.f32 %v2146_v17, %v2146_v17 }
 0x1a0   :  { %v2210_v9 = vadd.f32 %v2209_v31, %v2195_v14  ;;  %v2174_v39 = vadd.f32 %v2173_v2, %v3912_v62 }
 0x1a2   :  { %v2175_v44 = vadd.f32 %v2174_v39, %v3886_v15  ;;  %v2211_v48 = vadd.f32 %v2210_v9, %v2196_v3 }
 0x1a4   :  { %v2176_v8 = vadd.f32 %v2175_v44, %v3903_v36  ;;  %v2212_v11 = vadd.f32 %v2211_v48, %v2197_v37 }
 0x1a6   :  { %v2177_v59 = vadd.f32 %v2176_v8, %v2146_v17  ;;  %v2213_v29 = vadd.f32 %v2212_v11, %v2198_v54 }
 0x1a8   :  { %v2178_v30 = vadd.f32 %v2177_v59, %v2147_v45  ;;  %v2214_v26 = vadd.f32 %v2213_v29, %v2199_v0 }
 0x1aa   :  { %v2179_v62 = vadd.f32 %v2178_v30, %v2148_v57  ;;  %v2215_v51 = vadd.f32 %v2214_v26, %v2200_v20 }
 0x1ac   :  { %v2180_v4 = vadd.f32 %v2179_v62, %v2149_v12  ;;  %v2216_v7 = vadd.f32 %v2215_v51, %v2201_v18 }
 0x1ae   :  { %v2181_v15 = vrot.slane %v2180_v4, 4  ;;  %v2217_v10 = vadd.f32 %v2216_v7, %v2202_v40 }
 0x1b0   :  { %v2182_v28 = vadd.f32 %v2181_v15, %v2180_v4  ;;  %v2218_v53 = vrot.slane %v2217_v10, 4 }
 0x1b2   :  { %v2183_v22 = vrot.slane %v2182_v28, 2  ;;  %v2219_v43 = vadd.f32 %v2218_v53, %v2217_v10 }
 0x1b4   :  { %v2184_v36 = vadd.f32 %v2183_v22, %v2182_v28  ;;  %v2220_v56 = vrot.slane %v2219_v43, 2 }
 0x1b6   :  { %v2185_v46 = vrot.slane %v2184_v36, 1  ;;  %v2221_v5 = vadd.f32 %v2220_v56, %v2219_v43 }
 0x1b8   :  { %v2186_v23 = vadd.f32 %v2185_v46, %v2184_v36  ;;  %v2222_v17 = vrot.slane %v2221_v5, 1 }
 0x1ba   :  { %v2223_v16 = vadd.f32 %v2222_v17, %v2221_v5  ;;  %2225 = vst [vmem:[%s4008_s7] sm:$0x1] %v2186_v23 }
 0x1bc   :  { %2226 = vst [vmem:[%s4008_s7 + $0x1] sm:$0x1] %v2223_v16 }

// kernel: network_block_forward.6
= control target key start
LH: loop header
LB: loop body
LE: loop exit
PB: predicated region body
PF: predicated region fallthrough
CT: control target
= control target key end

     0   :  { %v3907_v0 = vmov 0   ;;  %v3908_v62 = vmov 1966171168   ;;  %vm1263_vm0 = vcmask 1046528   ;;  %s5944_s1 = inlined_call_operand.vmem [shape: f32[36,9,1], index: 1, kind: input, shape index: {}]   ;;  %s5945_s5 = inlined_call_operand.vmem [shape: bf16[9,128,128], index: 5, kind: input, shape index: {}]   ;;  %s5946_s2 = inlined_call_operand.vmem [shape: f32[1,8,128], index: 2, kind: input, shape index: {}]   ;;  %s5947_s3 = inlined_call_operand.vmem [shape: f32[1,128], index: 3, kind: input, shape index: {}]   ;;  %s5948_s4 = inlined_call_operand.vmem [shape: f32[1,128], index: 4, kind: input, shape index: {}]   ;;  %s5949_s0 = inlined_call_operand.vmem [shape: f32[2,36,9,128], index: 0, kind: input, shape index: {}]   ;;  %s5950_s6 = inlined_call_operand.vmem [shape: bf16[128,128], index: 6, kind: input, shape index: {}]   ;;  %s5951_s9 = inlined_call_operand.vmem [shape: f32[1,8,128], index: 9, kind: output, shape index: {2}]   ;;  %s5952_s7 = inlined_call_operand.vmem [shape: f32[2,64,128], index: 7, kind: output, shape index: {0}]   ;;  %s5953_s8 = inlined_call_operand.vmem [shape: f32[2,64,128], index: 8, kind: output, shape index: {1}]  }
   0x1   :  { %3824 = vset.pattern.permute.xlu1 %v3907_v0  ;;  %3823 = vset.pattern.permute.xlu0 %v3907_v0  ;;  %v529_v1 = vld [vmem:[%s5944_s1 + $0x1d0] sm:$0xff]  ;;  %v530_v3 = vld [vmem:[%s5944_s1 + $0x1e0] sm:$0xff]  ;;  %v3826_v14 = vld [vmem:[%s5945_s5 + $0x108] sm:$0xff]   ;;  %v45_v63 = vunpack.c.l.s4 %v3908_v62  ;;  %v47_v0 = vlaneseq }
   0x2   :  { %v527_v2 = vld [vmem:[%s5944_s1 + $0x1b0] sm:$0xff]  ;;  %762 = vperm.xlu1 %3824, %v529_v1   ;;  %v528_v4 = vld [vmem:[%s5944_s1 + $0x1c0] sm:$0xff]  ;;  %v512_v15 = vld [vmem:[%s5944_s1 + $0x128] sm:$0x1] }
   0x3   :  { %752 = vperm.xlu0 %3823, %v527_v2   ;;  %v532_v5 = vld [vmem:[%s5944_s1 + $0x200] sm:$0xff]  ;;  %v531_v6 = vld [vmem:[%s5944_s1 + $0x1f0] sm:$0xff]  ;;  %v3831_v19 = vld [vmem:[%s5945_s5 + $0x48] sm:$0xff]  }
   0x4   :  { %v534_v7 = vld [vmem:[%s5944_s1 + $0x220] sm:$0xff]  ;;  %v533_v8 = vld [vmem:[%s5944_s1 + $0x210] sm:$0xff]  ;;  %v514_v20 = vld [vmem:[%s5944_s1 + $0x138] sm:$0x1] }
   0x5   :  { %v503_v9 = vld [vmem:[%s5944_s1 + $0xa0] sm:$0xff]  ;;  %v502_v10 = vld [vmem:[%s5944_s1 + $0x90] sm:$0xff]  ;;  %v3828_v22 = vld [vmem:[%s5945_s5 + $0x118] sm:$0xff]  }
   0x6   :  { %767 = vperm.xlu1 %3824, %v530_v3   ;;  %v505_v11 = vld [vmem:[%s5944_s1 + $0xc0] sm:$0xff]  ;;  %v504_v12 = vld [vmem:[%s5944_s1 + $0xb0] sm:$0xff]  ;;  %v3835_v27 = vld [vmem:[%s5945_s5 + $0x58] sm:$0xff]   ;;  %v46_v3 = vunpack.c.0.s8 %v45_v63 }
   0x7   :  { %757 = vperm.xlu0 %3823, %v528_v4   ;;  %v3825_v13 = vld [vmem:[%s5945_s5 + $0x100] sm:$0xff]   ;;  %v3827_v18 = vld [vmem:[%s5945_s5 + $0x110] sm:$0xff]   ;;  %v516_v28 = vld [vmem:[%s5944_s1 + $0x148] sm:$0x1]  ;;  %v48_v4 = vshrl.u32 %v47_v0, 7 }
   0x8   :  { %3500 = vmatprep.subr.bf16.mxu0 %v3825_v13  ;;  %v511_v16 = vld [vmem:[%s5944_s1 + $0x120] sm:$0xff]  ;;  %v513_v21 = vld [vmem:[%s5944_s1 + $0x130] sm:$0xff]  ;;  %v3832_v30 = vld [vmem:[%s5945_s5 + $0x128] sm:$0xff]  }
   0x9   :  { %3501 = vmatpush3.bf16.msra.mxu0 %v3825_v13  ;;  %v3829_v17 = vld [vmem:[%s5945_s5 + $0x40] sm:$0xff]   ;;  %v3833_v23 = vld [vmem:[%s5945_s5 + $0x50] sm:$0xff]   ;;  %v518_v32 = vld [vmem:[%s5944_s1 + $0x158] sm:$0x1] }
   0xa   :  { %777 = vperm.xlu1 %3824, %v532_v5   ;;  %3502 = vmatprep.subr.bf16.mxu0 %v3826_v14  ;;  %v507_v24 = vld [vmem:[%s5944_s1 + $0xe0] sm:$0xff]  ;;  %v506_v25 = vld [vmem:[%s5944_s1 + $0xd0] sm:$0xff]  ;;  %v3838_v36 = vld [vmem:[%s5945_s5 + $0x68] sm:$0xff]  }
   0xb   :  { %772 = vperm.xlu0 %3823, %v531_v6   ;;  %3372 = vmatprep.subr.bf16.mxu1 %v3829_v17  ;;  %v3830_v26 = vld [vmem:[%s5945_s5 + $0x120] sm:$0xff]   ;;  %v517_v33 = vld [vmem:[%s5944_s1 + $0x150] sm:$0xff]  ;;  %v3836_v40 = vld [vmem:[%s5945_s5 + $0x138] sm:$0xff]  }
   0xc   :  { %3373 = vmatpush3.bf16.msra.mxu1 %v3829_v17  ;;  %v515_v29 = vld [vmem:[%s5944_s1 + $0x140] sm:$0xff]  ;;  %v3834_v35 = vld [vmem:[%s5945_s5 + $0x130] sm:$0xff]   ;;  %v520_v42 = vld [vmem:[%s5944_s1 + $0x168] sm:$0x1] }
   0xd   :  { %3503 = vmatpush3.bf16.msra.mxu0 %v3826_v14  ;;  %3374 = vmatprep.subr.bf16.mxu1 %v3831_v19  ;;  %v3837_v31 = vld [vmem:[%s5945_s5 + $0x60] sm:$0xff]   ;;  %v508_v38 = vld [vmem:[%s5944_s1 + $0xf0] sm:$0xff]  ;;  %v3842_v46 = vld [vmem:[%s5945_s5 + $0x78] sm:$0xff]  }
   0xe   :  { %787 = vperm.xlu1 %3824, %v534_v7   ;;  %3504 = vmatprep.subr.bf16.mxu0 %v3827_v18  ;;  %v30_v34 = vld [vmem:[%s5946_s2] sm:$0xff]  ;;  %v3840_v41 = vld [vmem:[%s5945_s5 + $0x70] sm:$0xff]   ;;  %v522_v47 = vld [vmem:[%s5944_s1 + $0x178] sm:$0x1]  ;;  %v49_v7 = vsub.s32 %v46_v3, %v48_v4 }
   0xf   :  { %782 = vperm.xlu0 %3823, %v533_v8   ;;  %v509_v37 = vld [vmem:[%s5944_s1 + $0x100] sm:$0xff]  ;;  %v4074_v39 = vmul.f32 0.001953125, %v30_v34  ;;  %v521_v49 = vld [vmem:[%s5944_s1 + $0x170] sm:$0xff]  ;;  %v524_v51 = vld [vmem:[%s5944_s1 + $0x188] sm:$0x1] }
  0x10   :  { %3375 = vmatpush3.bf16.msra.mxu1 %v3831_v19  ;;  %v519_v44 = vld [vmem:[%s5944_s1 + $0x160] sm:$0xff]  ;;  %v526_v54 = vld [vmem:[%s5944_s1 + $0x198] sm:$0x1]  ;;  %v525_v56 = vld [vmem:[%s5944_s1 + $0x190] sm:$0xff] }
  0x11   :  { %3505 = vmatpush3.bf16.msra.mxu0 %v3827_v18  ;;  %3376 = vmatprep.subr.bf16.mxu1 %v3833_v23  ;;  %v34_v43 = vmul.f32 %v4074_v39, %v4074_v39  ;;  %v4093_v45 = vld [vmem:[%s5945_s5 + $0x140] sm:$0xff]   ;;  %v486_v58 = vld [vmem:[%s5944_s1 + $0x10] sm:$0xff]  ;;  %v487_v13 = vld [vmem:[%s5944_s1 + $0x18] sm:$0x1] }
  0x12   :  { %632 = vperm.xlu1 %3824, %v503_v9   ;;  %3506 = vmatprep.subr.bf16.mxu0 %v3828_v22  ;;  %v523_v52 = vld [vmem:[%s5944_s1 + $0x180] sm:$0xff]  ;;  %v490_v60 = vld [vmem:[%s5944_s1 + $0x30] sm:$0xff]  ;;  %v485_v9 = vld [vmem:[%s5944_s1 + $0x8] sm:$0x1] }
  0x13   :  { %627 = vperm.xlu0 %3823, %v502_v10   ;;  %v36_v48 = vrot.slane %v34_v43, 7  ;;  %v4115_v53 = vld [vmem:[%s5945_s5] sm:$0xff]   ;;  %v494_v1 = vld [vmem:[%s5944_s1 + $0x50] sm:$0xff]  ;;  %v497_v19 = vld [vmem:[%s5944_s1 + $0x68] sm:$0x1] }
  0x14   :  { %3377 = vmatpush3.bf16.msra.mxu1 %v3833_v23  ;;  %v484_v59 = vld [vmem:[%s5944_s1] sm:$0xff]  ;;  %v498_v5 = vld [vmem:[%s5944_s1 + $0x70] sm:$0xff]  ;;  %v169_v23 = vsub.s32 0, %v48_v4 }
  0x15   :  { %3507 = vmatpush3.bf16.msra.mxu0 %v3828_v22  ;;  %3378 = vmatprep.subr.bf16.mxu1 %v3835_v27  ;;  %v38_v50 = vsub.f32 %v4074_v39, %v36_v48  ;;  %v488_v61 = vld [vmem:[%s5944_s1 + $0x20] sm:$0xff]  ;;  %v510_v22 = vld [vmem:[%s5944_s1 + $0x110] sm:$0xff] }
  0x16   :  { %642 = vperm.xlu1 %3824, %v505_v11   ;;  %3508 = vmatprep.subr.bf16.mxu0 %v3830_v26  ;;  %v492_v2 = vld [vmem:[%s5944_s1 + $0x40] sm:$0xff]  ;;  %v111_v48 = vld [vmem:[%s5949_s0 + $0x1f0] sm:$0xff] }
  0x17   :  { %637 = vperm.xlu0 %3823, %v504_v12   ;;  %v39_v55 = vmax.f32 %v38_v50, 0.0  ;;  %v496_v6 = vld [vmem:[%s5944_s1 + $0x60] sm:$0xff]  ;;  %v489_v12 = vld [vmem:[%s5944_s1 + $0x28] sm:$0x1] }
  0x18   :  { %3379 = vmatpush3.bf16.msra.mxu1 %v3835_v27  ;;  %v500_v10 = vld [vmem:[%s5944_s1 + $0x80] sm:$0xff]  ;;  %v501_v27 = vld [vmem:[%s5944_s1 + $0x88] sm:$0x1] }
  0x19   :  { %3509 = vmatpush3.bf16.msra.mxu0 %v3830_v26  ;;  %3380 = vmatprep.subr.bf16.mxu1 %v3837_v31  ;;  %v41_v57 = vadd.f32 1e-05, %v39_v55  ;;  %v40_v18 = vld [vmem:[%s5947_s3] sm:$0x1] }
  0x1a   :  { %677 = vperm.xlu1 %3824, %v512_v15   ;;  %3510 = vmatprep.subr.bf16.mxu0 %v3832_v30  ;;  %v493_v15 = vld [vmem:[%s5944_s1 + $0x48] sm:$0x1]  ;;  %v61_v26 = vld [vmem:[%s5948_s4] sm:$0x1] }
  0x1b   :  { %672 = vperm.xlu0 %3823, %v511_v16   ;;  %3905 = vrsqrt.f32 %v41_v57  ;;  %v491_v16 = vld [vmem:[%s5944_s1 + $0x38] sm:$0x1]  ;;  %v110_v34 = vld [vmem:[%s5949_s0 + $0x1e0] sm:$0xff] }
  0x1c   :  { %3381 = vmatpush3.bf16.msra.mxu1 %v3837_v31  ;;  %v160_v31 = vld [vmem:[%s5949_s0 + $0x410] sm:$0xff] }
  0x1d   :  { %3511 = vmatpush3.bf16.msra.mxu0 %v3832_v30  ;;  %3382 = vmatprep.subr.bf16.mxu1 %v3838_v36  ;;  %v109_v30 = vld [vmem:[%s5949_s0 + $0x1d0] sm:$0xff] }
  0x1e   :  { %687 = vperm.xlu1 %3824, %v514_v20   ;;  %3512 = vmatprep.subr.bf16.mxu0 %v3834_v35  ;;  %v495_v20 = vld [vmem:[%s5944_s1 + $0x58] sm:$0x1] }
  0x1f   :  { %682 = vperm.xlu0 %3823, %v513_v21  }
  0x20   :  { %3383 = vmatpush3.bf16.msra.mxu1 %v3838_v36  ;;  %v108_v36 = vld [vmem:[%s5949_s0 + $0x1c0] sm:$0xff] }
  0x21   :  { %3513 = vmatpush3.bf16.msra.mxu0 %v3834_v35  ;;  %3384 = vmatprep.subr.bf16.mxu1 %v3840_v41  ;;  %v161_v35 = vld [vmem:[%s5949_s0 + $0x420] sm:$0xff] }
  0x22   :  { %652 = vperm.xlu1 %3824, %v507_v24   ;;  %3514 = vmatprep.subr.bf16.mxu0 %v3836_v40  ;;  %v499_v24 = vld [vmem:[%s5944_s1 + $0x78] sm:$0x1] }
  0x23   :  { %647 = vperm.xlu0 %3823, %v506_v25  }
  0x24   :  { %3385 = vmatpush3.bf16.msra.mxu1 %v3840_v41 }
  0x25   :  { %3515 = vmatpush3.bf16.msra.mxu0 %v3836_v40  ;;  %3386 = vmatprep.subr.bf16.mxu1 %v3842_v46  ;;  %v3906_v8 = vpop.eup %3905 }
  0x26   :  { %697 = vperm.xlu1 %3824, %v516_v28   ;;  %3532 = vmatprep.subr.bf16.mxu0 %v4093_v45  ;;  %v50_v11 = vrot.slane %v3906_v8, %v49_v7 }
  0x27   :  { %692 = vperm.xlu0 %3823, %v515_v29  }
  0x28   :  { %3387 = vmatpush3.bf16.msra.mxu1 %v3842_v46  ;;  %v51_v14 = vcombine.high %v50_v11, %v50_v11  ;;  %v82_v11 = vld [vmem:[%s5949_s0 + $0x90] sm:$0xff] }
  0x29   :  { %3404 = vmatprep.subr.bf16.mxu1 %v4115_v53 }
  0x2a   :  { %707 = vperm.xlu1 %3824, %v518_v32   ;;  %v58_v17 = vrot.slane %v51_v14, %v49_v7  ;;  %v107_v32 = vld [vmem:[%s5949_s0 + $0x1b0] sm:$0xff] }
  0x2b   :  { %702 = vperm.xlu0 %3823, %v517_v33   ;;  %v158_v33 = vld [vmem:[%s5949_s0 + $0x3f0] sm:$0xff] }
  0x2c   :  { %v60_v21 = vmul.f32 %v58_v17, %v40_v18  ;;  %v85_v17 = vld [vmem:[%s5949_s0 + $0xc0] sm:$0xff] }
  0x2d   :  { %v136_v18 = vld [vmem:[%s5949_s0 + $0x300] sm:$0xff] }
  0x2e   :  { %662 = vperm.xlu1 %3824, %v509_v37   ;;  %v62_v25 = vmul.f32 %v60_v21, %v4074_v39  ;;  %v4188_v29 = vrot.slane %v60_v21, %v169_v23  ;;  %v159_v39 = vld [vmem:[%s5949_s0 + $0x400] sm:$0xff] }
  0x2f   :  { %657 = vperm.xlu0 %3823, %v508_v38  }
  0x30   :  { %v63_v28 = vsub.f32 %v61_v26, %v62_v25  ;;  %v217_v38 = vmul.f32 %v4188_v29, %v109_v30  ;;  %v268_v40 = vmul.f32 %v4188_v29, %v160_v31  ;;  %v215_v41 = vmul.f32 %v4188_v29, %v107_v32 }
  0x31   :  { %v266_v43 = vmul.f32 %v4188_v29, %v158_v33  ;;  %v269_v46 = vmul.f32 %v4188_v29, %v161_v35  ;;  %v267_v50 = vmul.f32 %v4188_v29, %v159_v39  ;;  %v143_v35 = vld [vmem:[%s5949_s0 + $0x368] sm:$0x1] }
  0x32   :  { %717 = vperm.xlu1 %3824, %v520_v42   ;;  %v4211_v37 = vrot.slane %v63_v28, %v169_v23  ;;  %v112_v42 = vld [vmem:[%s5949_s0 + $0x200] sm:$0xff]  ;;  %v84_v23 = vld [vmem:[%s5949_s0 + $0xb0] sm:$0xff]  ;;  %v92_v28 = vld [vmem:[%s5949_s0 + $0x128] sm:$0x1] }
  0x33   :  { %712 = vperm.xlu0 %3823, %v519_v44   ;;  %v218_v44 = vmul.f32 %v4188_v29, %v110_v34  ;;  %v135_v34 = vld [vmem:[%s5949_s0 + $0x2f0] sm:$0xff] }
  0x34   :  { %v4241_v55 = vadd.f32 %v4211_v37, %v268_v40  ;;  %v4261_v63 = vadd.f32 %v4211_v37, %v269_v46  ;;  %v4274_v4 = vadd.f32 %v4211_v37, %v267_v50  ;;  %v190_v40 = vmul.f32 %v4188_v29, %v82_v11  ;;  %v91_v46 = vld [vmem:[%s5949_s0 + $0x120] sm:$0xff] }
  0x35   :  { %v4258_v62 = vadd.f32 %v4211_v37, %v218_v44  ;;  %v244_v44 = vmul.f32 %v4188_v29, %v136_v18  ;;  %v243_v50 = vmul.f32 %v4188_v29, %v135_v34 }
  0x36   :  { %727 = vperm.xlu1 %3824, %v522_v47   ;;  %v163_v47 = vld [vmem:[%s5949_s0 + $0x440] sm:$0xff]  ;;  %v477_v25 = vmax.f32 %v4274_v4, 0.0  ;;  %v3844_v4 = vld [vmem:[%s5945_s5 + $0x158] sm:$0xff]  }
  0x37   :  { %722 = vperm.xlu0 %3823, %v521_v49   ;;  %v216_v49 = vmul.f32 %v4188_v29, %v108_v36  ;;  %v271_v57 = vmul.f32 %v4188_v29, %v163_v47  ;;  %v4387_v11 = vadd.f32 %v4211_v37, %v244_v44 }
  0x39   :  { %v4271_v3 = vadd.f32 %v4211_v37, %v216_v49  ;;  %v4294_v14 = vadd.f32 %v4211_v37, %v271_v57  ;;  %v192_v49 = vmul.f32 %v4188_v29, %v84_v23 }
  0x3a   :  { %737 = vperm.xlu1 %3824, %v524_v51   ;;  %v162_v51 = vld [vmem:[%s5949_s0 + $0x430] sm:$0xff] }
  0x3b   :  { %732 = vperm.xlu0 %3823, %v523_v52   ;;  %v4237_v52 = vadd.f32 %v4211_v37, %v217_v38  ;;  %v270_v0 = vmul.f32 %v4188_v29, %v162_v51  ;;  %v142_v51 = vld [vmem:[%s5949_s0 + $0x360] sm:$0xff]  ;;  %v4393_v23 = vadd.f32 %v4211_v37, %v192_v49 }
  0x3c   :  { %v138_v49 = vld [vmem:[%s5949_s0 + $0x320] sm:$0xff] }
  0x3e   :  { %747 = vperm.xlu1 %3824, %v526_v54   ;;  %v220_v54 = vmul.f32 %v4188_v29, %v112_v42 }
  0x3f   :  { %742 = vperm.xlu0 %3823, %v525_v56   ;;  %v4244_v56 = vadd.f32 %v4211_v37, %v215_v41  ;;  %v246_v41 = vmul.f32 %v4188_v29, %v138_v49  ;;  %v146_v49 = vld [vmem:[%s5949_s0 + $0x380] sm:$0xff] }
  0x40   :  { %v4281_v7 = vadd.f32 %v4211_v37, %v220_v54 }
  0x42   :  { %547 = vperm.xlu1 %3824, %v486_v58   ;;  %v219_v58 = vmul.f32 %v4188_v29, %v111_v48  ;;  %v430_v30 = vmax.f32 %v4281_v7, 0.0  ;;  %v3843_v7 = vld [vmem:[%s5945_s5 + $0x150] sm:$0xff]  }
  0x43   :  { %537 = vperm.xlu0 %3823, %v484_v59   ;;  %v114_v59 = vld [vmem:[%s5949_s0 + $0x220] sm:$0xff] }
  0x44   :  { %v222_v8 = vmul.f32 %v4188_v29, %v114_v59  ;;  %v200_v59 = vmul.f32 %v4188_v29, %v92_v28 }
  0x46   :  { %567 = vperm.xlu1 %3824, %v490_v60   ;;  %v165_v60 = vld [vmem:[%s5949_s0 + $0x460] sm:$0xff]  ;;  %v4326_v31 = vadd.f32 %v4211_v37, %v222_v8  ;;  %v145_v8 = vld [vmem:[%s5949_s0 + $0x378] sm:$0x1] }
  0x47   :  { %557 = vperm.xlu0 %3823, %v488_v61   ;;  %v4255_v61 = vadd.f32 %v4211_v37, %v266_v43  ;;  %v193_v43 = vmul.f32 %v4188_v29, %v85_v17 }
  0x4a   :  { %587 = vperm.xlu1 %3824, %v494_v1   ;;  %v113_v1 = vld [vmem:[%s5949_s0 + $0x210] sm:$0xff] }
  0x4b   :  { %577 = vperm.xlu0 %3823, %v492_v2   ;;  %v164_v2 = vld [vmem:[%s5949_s0 + $0x450] sm:$0xff]  ;;  %v221_v26 = vmul.f32 %v4188_v29, %v113_v1  ;;  %v4373_v1 = vadd.f32 %v4211_v37, %v190_v40  ;;  %v87_v40 = vld [vmem:[%s5949_s0 + $0xe0] sm:$0xff] }
  0x4c   :  { %v195_v57 = vmul.f32 %v4188_v29, %v87_v40 }
  0x4d   :  { %v4350_v47 = vadd.f32 %v4211_v37, %v221_v26  ;;  %v4396_v26 = vadd.f32 %v4211_v37, %v243_v50  ;;  %v86_v50 = vld [vmem:[%s5949_s0 + $0xd0] sm:$0xff] }
  0x4e   :  { %607 = vperm.xlu1 %3824, %v498_v5   ;;  %v83_v5 = vld [vmem:[%s5949_s0 + $0xa0] sm:$0xff] }
  0x4f   :  { %597 = vperm.xlu0 %3823, %v496_v6   ;;  %v427_v6 = vmax.f32 %v4237_v52, 0.0  ;;  %v191_v33 = vmul.f32 %v4188_v29, %v83_v5  ;;  %v199_v5 = vmul.f32 %v4188_v29, %v91_v46  ;;  %v149_v52 = vld [vmem:[%s5949_s0 + $0x398] sm:$0x1] }
  0x51   :  { %v4419_v46 = vadd.f32 %v4211_v37, %v199_v5  ;;  %v137_v5 = vld [vmem:[%s5949_s0 + $0x310] sm:$0xff] }
  0x52   :  { %542 = vperm.xlu1 %3824, %v485_v9   ;;  %v273_v9 = vmul.f32 %v4188_v29, %v165_v60  ;;  %v94_v60 = vld [vmem:[%s5949_s0 + $0x138] sm:$0x1] }
  0x53   :  { %617 = vperm.xlu0 %3823, %v500_v10   ;;  %v134_v10 = vld [vmem:[%s5949_s0 + $0x2e0] sm:$0xff]  ;;  %v202_v34 = vmul.f32 %v4188_v29, %v94_v60 }
  0x54   :  { %v4329_v32 = vadd.f32 %v4211_v37, %v273_v9  ;;  %v242_v39 = vmul.f32 %v4188_v29, %v134_v10  ;;  %v4384_v10 = vadd.f32 %v4211_v37, %v193_v43  ;;  %v95_v43 = vld [vmem:[%s5949_s0 + $0x140] sm:$0xff] }
  0x56   :  { %562 = vperm.xlu1 %3824, %v489_v12   ;;  %v4440_v12 = vadd.f32 %v4211_v37, %v202_v34  ;;  %v147_v34 = vld [vmem:[%s5949_s0 + $0x388] sm:$0x1] }
  0x57   :  { %552 = vperm.xlu0 %3823, %v487_v13   ;;  %v425_v13 = vmax.f32 %v4244_v56, 0.0  ;;  %v255_v28 = vmul.f32 %v4188_v29, %v147_v34 }
  0x5a   :  { %582 = vperm.xlu1 %3824, %v493_v15   ;;  %v4297_v15 = vadd.f32 %v4211_v37, %v219_v58  ;;  %v4363_v58 = vadd.f32 %v4211_v37, %v191_v33  ;;  %v4403_v33 = vadd.f32 %v4211_v37, %v200_v59  ;;  %v194_v59 = vmul.f32 %v4188_v29, %v86_v50 }
  0x5b   :  { %572 = vperm.xlu0 %3823, %v491_v16   ;;  %v133_v16 = vld [vmem:[%s5949_s0 + $0x2d0] sm:$0xff] }
  0x5c   :  { %v429_v38 = vmax.f32 %v4297_v15, 0.0  ;;  %v241_v42 = vmul.f32 %v4188_v29, %v133_v16  ;;  %v250_v16 = vmul.f32 %v4188_v29, %v142_v51 }
  0x5e   :  { %602 = vperm.xlu1 %3824, %v497_v19   ;;  %v4381_v9 = vadd.f32 %v4211_v37, %v241_v42  ;;  %v97_v19 = vld [vmem:[%s5949_s0 + $0x150] sm:$0xff] }
  0x5f   :  { %592 = vperm.xlu0 %3823, %v495_v20   ;;  %v428_v20 = vmax.f32 %v4258_v62, 0.0  ;;  %v203_v62 = vmul.f32 %v4188_v29, %v95_v43  ;;  %v3841_v43 = vld [vmem:[%s5945_s5 + $0x148] sm:$0xff]  }
  0x62   :  { %667 = vperm.xlu1 %3824, %v510_v22   ;;  %v4312_v22 = vadd.f32 %v4211_v37, %v270_v0  ;;  %v4370_v0 = vadd.f32 %v4211_v37, %v242_v39  ;;  %v144_v39 = vld [vmem:[%s5949_s0 + $0x370] sm:$0xff] }
  0x63   :  { %612 = vperm.xlu0 %3823, %v499_v24   ;;  %v426_v24 = vmax.f32 %v4271_v3, 0.0  ;;  %v252_v18 = vmul.f32 %v4188_v29, %v144_v39  ;;  %v4485_v39 = vadd.f32 %v4211_v37, %v246_v41 }
  0x65   :  { %v4477_v50 = vadd.f32 %v4211_v37, %v252_v18 }
  0x67   :  { %622 = vperm.xlu0 %3823, %v501_v27   ;;  %v272_v27 = vmul.f32 %v4188_v29, %v164_v2  ;;  %v251_v2 = vmul.f32 %v4188_v29, %v143_v35  ;;  %v253_v35 = vmul.f32 %v4188_v29, %v145_v8  ;;  %v245_v8 = vmul.f32 %v4188_v29, %v137_v5 }
  0x68   :  { %v4480_v5 = vadd.f32 %v4211_v37, %v195_v57 }
  0x69   :  { %v4353_v48 = vadd.f32 %v4211_v37, %v272_v27  ;;  %v93_v27 = vld [vmem:[%s5949_s0 + $0x130] sm:$0xff]  ;;  %v4416_v44 = vadd.f32 %v4211_v37, %v251_v2  ;;  %v4431_v2 = vadd.f32 %v4211_v37, %v250_v16  ;;  %v4443_v51 = vadd.f32 %v4211_v37, %v253_v35  ;;  %v96_v16 = vld [vmem:[%s5949_s0 + $0x148] sm:$0x1] }
  0x6a   :  { %v201_v60 = vmul.f32 %v4188_v29, %v93_v27  ;;  %v204_v21 = vmul.f32 %v4188_v29, %v96_v16  ;;  %v4488_v16 = vadd.f32 %v4211_v37, %v194_v59  ;;  %v4491_v27 = vadd.f32 %v4211_v37, %v245_v8  ;;  %v98_v8 = vld [vmem:[%s5949_s0 + $0x158] sm:$0x1] }
  0x6b   :  { %5985 = vst [vmem:[#allocation2_spill] sm:$0xff] %v4416_v44  ;;  %5986 = vst [vmem:[#allocation3_spill] sm:$0xff] %v4443_v51 }
  0x6c   :  { %v4467_v36 = vadd.f32 %v4211_v37, %v201_v60  ;;  %v4513_v56 = vadd.f32 %v4211_v37, %v204_v21 }
  0x81   :  { %v4456_v35 = vpop.permute.xlu1 %762 }
  0x82   :  { %v4458_v42 = vpop.permute.xlu0 %752  ;;  %v835_v18 = vmul.f32 %v4456_v35, %v427_v6 }
  0x83   :  { %v833_v57 = vmul.f32 %v4458_v42, %v425_v13  ;;  %v254_v13 = vmul.f32 %v4188_v29, %v146_v49  ;;  %v205_v49 = vmul.f32 %v4188_v29, %v97_v19  ;;  %v5992_v19 = vmax.f32 %v4350_v47, 0.0 }
  0x85   :  { %v4482_v40 = vpop.permute.xlu1 %767  ;;  %v4612_v47 = vadd.f32 %v4211_v37, %v205_v49  ;;  %v102_v49 = vld [vmem:[%s5949_s0 + $0x178] sm:$0x1] }
  0x86   :  { %v758_v60 = vpop.permute.xlu0 %757  ;;  %v836_v41 = vmul.f32 %v4482_v40, %v428_v20 }
  0x87   :  { %v834_v59 = vmul.f32 %v758_v60, %v426_v24 }
  0x88   :  { %v4517_v20 = vpack.c.bf16 %v836_v41, %v835_v18  ;;  %v4535_v18 = vadd.f32 %v4211_v37, %v255_v28  ;;  %v257_v41 = vmul.f32 %v4188_v29, %v149_v52  ;;  %v89_v52 = vld [vmem:[%s5949_s0 + $0x100] sm:$0xff] }
  0x89   :  { %v4519_v3 = vpack.c.bf16 %v834_v59, %v833_v57  ;;  %v4526_v6 = vpop.permute.xlu1 %777  ;;  %v206_v57 = vmul.f32 %v4188_v29, %v98_v8  ;;  %v148_v59 = vld [vmem:[%s5949_s0 + $0x390] sm:$0xff]  ;;  %v140_v8 = vld [vmem:[%s5949_s0 + $0x340] sm:$0xff] }
  0x8a   :  { %5987 = vst [vmem:[#allocation4_spill] sm:$0xff] %v4517_v20  ;;  %v4528_v21 = vpop.permute.xlu0 %772  ;;  %5989 = vst [vmem:[#allocation6_spill] sm:$0xff] %v4535_v18  ;;  %v838_v34 = vmul.f32 %v4526_v6, %v430_v30  ;;  %v4560_v30 = vadd.f32 %v4211_v37, %v203_v62  ;;  %v256_v17 = vmul.f32 %v4188_v29, %v148_v59  ;;  %v88_v62 = vld [vmem:[%s5949_s0 + $0xf0] sm:$0xff] }
  0x8b   :  { %5988 = vst [vmem:[#allocation5_spill] sm:$0xff] %v4519_v3  ;;  %v837_v24 = vmul.f32 %v4528_v21, %v429_v38  ;;  %3516 = vmatprep.mubr.bf16.mxu0 %v4519_v3  ;;  %v4563_v38 = vadd.f32 %v4211_v37, %v254_v13  ;;  %v4582_v54 = vadd.f32 %v4211_v37, %v206_v57 }
  0x8c   :  { %3517 = vmatmul.mubr.bf16.vlgmr.msra.gmra.mrb[0].mxu0 %v4517_v20  ;;  %v885_v59 = vmul.f32 %v758_v60, %v477_v25  ;;  %v5991_v20 = vmax.f32 %v4326_v31, 0.0  ;;  %v248_v60 = vmul.f32 %v4188_v29, %v140_v8  ;;  %v4621_v18 = vadd.f32 %v4211_v37, %v256_v17  ;;  %v150_v17 = vld [vmem:[%s5949_s0 + $0x3a0] sm:$0xff] }
  0x8d   :  { %v4569_v28 = vpack.c.bf16 %v838_v34, %v837_v24  ;;  %3533 = vmatpush3.bf16.msra.mxu0 %v4093_v45  ;;  %v4576_v15 = vpop.permute.xlu1 %787  ;;  %v4585_v24 = vadd.f32 %v4211_v37, %v257_v41  ;;  %v197_v45 = vmul.f32 %v4188_v29, %v89_v52  ;;  %v139_v34 = vld [vmem:[%s5949_s0 + $0x330] sm:$0xff]  ;;  %v100_v41 = vld [vmem:[%s5949_s0 + $0x168] sm:$0x1]  ;;  %v5999_v31 = vmax.f32 %v4261_v63, 0.0 }
  0x8e   :  { %v4578_v13 = vpop.permute.xlu0 %782  ;;  %3534 = vmatprep.subr.bf16.mxu0 %v3841_v43  ;;  %v840_v3 = vmul.f32 %v4576_v15, %v5991_v20  ;;  %v151_v52 = vld [vmem:[%s5949_s0 + $0x3a8] sm:$0x1]  ;;  %v5993_v20 = vmax.f32 %v4255_v61, 0.0  ;;  %v196_v61 = vmul.f32 %v4188_v29, %v88_v62  ;;  %v247_v62 = vmul.f32 %v4188_v29, %v139_v34 }
  0x8f   :  { %5990 = vst [vmem:[#allocation7_spill] sm:$0xff] %v4569_v28  ;;  %v839_v57 = vmul.f32 %v4578_v13, %v5992_v19  ;;  %3520 = vmatprep.mubr.bf16.mxu0 %v4569_v28  ;;  %v4628_v8 = vadd.f32 %v4211_v37, %v197_v45  ;;  %v210_v63 = vmul.f32 %v4188_v29, %v102_v49 }
  0x90   :  { %v884_v19 = vmul.f32 %v4458_v42, %v5993_v20  ;;  %v99_v42 = vld [vmem:[%s5949_s0 + $0x160] sm:$0xff]  ;;  %v5998_v20 = vmax.f32 %v4373_v1, 0.0 }
  0x91   :  { %v4618_v28 = vpack.c.bf16 %v840_v3, %v839_v57  ;;  %3535 = vmatpush3.bf16.msra.mxu0 %v3841_v43  ;;  %v633_v44 = vpop.permute.xlu1 %632  ;;  %v5996_v43 = vmax.f32 %v4363_v58, 0.0  ;;  %v208_v58 = vmul.f32 %v4188_v29, %v100_v41  ;;  %v887_v41 = vmul.f32 %v4482_v40, %v5999_v31 }
  0x92   :  { %v4623_v51 = vpop.permute.xlu0 %627  ;;  %3536 = vmatprep.subr.bf16.mxu0 %v3843_v7  ;;  %v4637_v3 = vpack.c.bf16 %v885_v59, %v884_v19  ;;  %v4653_v59 = vadd.f32 %v4211_v37, %v248_v60  ;;  %v259_v19 = vmul.f32 %v4188_v29, %v151_v52  ;;  %v153_v60 = vld [vmem:[%s5949_s0 + $0x3b8] sm:$0x1]  ;;  %v6000_v52 = vmax.f32 %v4294_v14, 0.0  ;;  %v101_v14 = vld [vmem:[%s5949_s0 + $0x170] sm:$0xff] }
  0x93   :  { %5994 = vst [vmem:[#allocation8_spill] sm:$0xff] %v4618_v28  ;;  %v4641_v57 = vmul.f32 %v633_v44, %v5996_v43  ;;  %v808_v45 = vmul.f32 %v4623_v51, %v5998_v20  ;;  %v207_v43 = vmul.f32 %v4188_v29, %v99_v42  ;;  %v258_v20 = vmul.f32 %v4188_v29, %v150_v17  ;;  %v3845_v17 = vld [vmem:[%s5945_s5 + $0x160] sm:$0xff]  }
  0x94   :  { %5995 = vst [vmem:[#allocation9_spill] sm:$0xff] %v4637_v3  ;;  %3521 = vmatmul.mubr.bf16.gmra.mrb[4].mxu0 %v4618_v28  ;;  %v889_v25 = vmul.f32 %v4526_v6, %v6000_v52  ;;  %v6002_v40 = vmax.f32 %v4370_v0, 0.0  ;;  %v6006_v31 = vmax.f32 %v4393_v23, 0.0 }
  0x95   :  { %5997 = vst [vmem:[#allocation10_spill] sm:$0xff] %v4641_v57  ;;  %3524 = vmatprep.mubr.bf16.mxu0 %v4637_v3  ;;  %v916_v1 = vpack.c.bf16 %v4641_v57, %v808_v45  ;;  %3537 = vmatpush3.bf16.msra.mxu0 %v3843_v7  ;;  %v6001_v7 = vmax.f32 %v4312_v22, 0.0  ;;  %v4674_v34 = vpop.permute.xlu1 %642  ;;  %v6004_v22 = vmax.f32 %v4384_v10, 0.0  ;;  %v6008_v3 = vmax.f32 %v4241_v55, 0.0  ;;  %v152_v55 = vld [vmem:[%s5949_s0 + $0x3b0] sm:$0xff] }
  0x96   :  { %v638_v42 = vpop.permute.xlu0 %637  ;;  %3538 = vmatprep.subr.bf16.mxu0 %v3844_v4  ;;  %v4685_v6 = vmul.f32 %v633_v44, %v6002_v40  ;;  %v4705_v10 = vadd.f32 %v4211_v37, %v196_v61  ;;  %v261_v40 = vmul.f32 %v4188_v29, %v153_v60 }
  0x97   :  { %v888_v45 = vmul.f32 %v4528_v21, %v6001_v7  ;;  %v4690_v21 = vmul.f32 %v4674_v34, %v6004_v22  ;;  %v4694_v52 = vmul.f32 %v638_v42, %v6006_v31  ;;  %v6007_v7 = vmax.f32 %v4396_v26, 0.0  ;;  %3388 = vmatprep.mubr.bf16.mxu1 %v916_v1  ;;  %v104_v31 = vld [vmem:[%s5949_s0 + $0x188] sm:$0x1] }
  0x98   :  { %6003 = vst [vmem:[#allocation11_spill] sm:$0xff] %v4685_v6  ;;  %v886_v0 = vmul.f32 %v4456_v35, %v6008_v3  ;;  %v209_v35 = vmul.f32 %v4188_v29, %v101_v14  ;;  %v4726_v22 = vadd.f32 %v4211_v37, %v247_v62  ;;  %v4732_v14 = vadd.f32 %v4211_v37, %v208_v58  ;;  %v155_v58 = vld [vmem:[%s5949_s0 + $0x3c8] sm:$0x1] }
  0x99   :  { %6005 = vst [vmem:[#allocation12_spill] sm:$0xff] %v4690_v21  ;;  %v4698_v49 = vmul.f32 %v638_v42, %v6007_v7  ;;  %v917_v23 = vpack.c.bf16 %v4690_v21, %v4694_v52  ;;  %3539 = vmatpush3.bf16.msra.mxu0 %v3844_v4  ;;  %v4720_v3 = vpop.permute.xlu1 %677  ;;  %v3846_v42 = vld [vmem:[%s5945_s5 + $0x168] sm:$0xff]   ;;  %v4740_v7 = vpack.c.bf16 %v889_v25, %v888_v45  ;;  %v6012_v45 = vmax.f32 %v4419_v46, 0.0  ;;  %v103_v46 = vld [vmem:[%s5949_s0 + $0x180] sm:$0xff] }
  0x9a   :  { %v4718_v61 = vpack.c.bf16 %v887_v41, %v886_v0  ;;  %v673_v60 = vpop.permute.xlu0 %672  ;;  %3540 = vmatprep.subr.bf16.mxu0 %v3845_v17  ;;  %v3850_v4 = vld [vmem:[%s5945_s5 + $0x8] sm:$0xff]   ;;  %v4735_v41 = vadd.f32 %v4211_v37, %v259_v19  ;;  %v4743_v62 = vadd.f32 %v4211_v37, %v207_v43  ;;  %v4746_v0 = vadd.f32 %v4211_v37, %v258_v20 }
  0x9b   :  { %6010 = vst [vmem:[#allocation14_spill] sm:$0xff] %v4740_v7  ;;  %3389 = vmatmul.mubr.bf16.vlgmr.msra.gmra.mrb[0].mxu1 %v917_v23  ;;  %v4749_v1 = vadd.f32 %v4211_v37, %v210_v63  ;;  %v6011_v19 = vmax.f32 %v4403_v33, 0.0  ;;  %v4763_v43 = vadd.f32 %v4211_v37, %v261_v40  ;;  %v260_v20 = vmul.f32 %v4188_v29, %v152_v55  ;;  %v154_v55 = vld [vmem:[%s5949_s0 + $0x3c0] sm:$0xff] }
  0x9c   :  { %6009 = vst [vmem:[#allocation13_spill] sm:$0xff] %v4718_v61  ;;  %3525 = vmatmul.mubr.bf16.gmra.mrb[8].mxu0 %v4718_v61  ;;  %3405 = vmatpush3.bf16.msra.mxu1 %v4115_v53  ;;  %v4768_v63 = vmul.f32 %v673_v60, %v6012_v45  ;;  %v3851_v53 = vld [vmem:[%s5945_s5 + $0x10] sm:$0xff]   ;;  %v4776_v23 = vadd.f32 %v4211_v37, %v209_v35  ;;  %v6015_v45 = vmax.f32 %v4353_v48, 0.0  ;;  %v6017_v48 = vmax.f32 %v4440_v12, 0.0 }
  0x9d   :  { %v4757_v26 = vmul.f32 %v4720_v3, %v6011_v19  ;;  %3528 = vmatprep.mubr.bf16.mxu0 %v4740_v7  ;;  %3541 = vmatpush3.bf16.msra.mxu0 %v3845_v17  ;;  %v212_v40 = vmul.f32 %v4188_v29, %v104_v31  ;;  %v6014_v17 = vmax.f32 %v4329_v32, 0.0  ;;  %v4791_v35 = vpop.permute.xlu1 %687  ;;  %v3847_v31 = vld [vmem:[%s5945_s5 + $0x170] sm:$0xff]   ;;  %v263_v7 = vmul.f32 %v4188_v29, %v155_v58 }
  0x9e   :  { %6013 = vst [vmem:[#allocation15_spill] sm:$0xff] %v4768_v63  ;;  %v890_v25 = vmul.f32 %v4578_v13, %v6015_v45  ;;  %v683_v33 = vpop.permute.xlu0 %682  ;;  %3542 = vmatprep.subr.bf16.mxu0 %v3846_v42  ;;  %3406 = vmatprep.subr.bf16.mxu1 %v3850_v4  ;;  %v6016_v32 = vmax.f32 %v4431_v2, 0.0  ;;  %v820_v13 = vmul.f32 %v4791_v35, %v6017_v48  ;;  %v6020_v61 = vmax.f32 %v4477_v50, 0.0 }
  0x9f   :  { %v891_v19 = vmul.f32 %v4576_v15, %v6014_v17  ;;  %v6018_v17 = vmax.f32 %v4467_v36, 0.0  ;;  %v1919_v44 = vrot.slane %v4757_v26, 1  ;;  %v4815_v58 = vadd.f32 %v4211_v37, %v260_v20  ;;  %v106_v26 = vld [vmem:[%s5949_s0 + $0x198] sm:$0x1] }
  0xa0   :  { %v4800_v15 = vmul.f32 %v673_v60, %v6016_v32  ;;  %v4811_v28 = vmul.f32 %v683_v33, %v6020_v61  ;;  %3407 = vmatpush3.bf16.msra.mxu1 %v3850_v4  ;;  %v211_v2 = vmul.f32 %v4188_v29, %v103_v46  ;;  %v262_v12 = vmul.f32 %v4188_v29, %v154_v55  ;;  %v3849_v46 = vld [vmem:[%s5945_s5 + $0x178] sm:$0xff]  }
  0xa1   :  { %v4807_v45 = vmul.f32 %v683_v33, %v6018_v17  ;;  %v1918_v60 = vrot.slane %v4768_v63, 1  ;;  %v1922_v32 = vrot.slane %v820_v13, 1  ;;  %3543 = vmatpush3.bf16.msra.mxu0 %v3846_v42  ;;  %3408 = vmatprep.subr.bf16.mxu1 %v3851_v53  ;;  %v4827_v61 = vpack.c.bf16 %v891_v19, %v890_v25  ;;  %v4830_v20 = vpop.permute.xlu1 %652  ;;  %v3852_v42 = vld [vmem:[%s5945_s5 + $0x18] sm:$0xff]  }
  0xa2   :  { %6021 = vst [vmem:[#allocation17_spill] sm:$0xff] %v4811_v28  ;;  %v648_v33 = vpop.permute.xlu0 %647  ;;  %3544 = vmatprep.subr.bf16.mxu0 %v3847_v31  ;;  %v4839_v55 = vadd.f32 %v4211_v37, %v212_v40  ;;  %v4842_v25 = vadd.f32 %v4211_v37, %v263_v7  ;;  %v6023_v19 = vmax.f32 %v4387_v11, 0.0  ;;  %v6025_v13 = vmax.f32 %v4480_v5, 0.0  ;;  %v157_v11 = vld [vmem:[%s5949_s0 + $0x3d8] sm:$0x1] }
  0xa3   :  { %6019 = vst [vmem:[#allocation16_spill] sm:$0xff] %v4807_v45  ;;  %6022 = vst [vmem:[#allocation18_spill] sm:$0xff] %v4827_v61  ;;  %v1921_v4 = vrot.slane %v4807_v45, 1  ;;  %v6027_v50 = vmax.f32 %v4488_v16, 0.0  ;;  %v6029_v40 = vmax.f32 %v4491_v27, 0.0  ;;  %v4872_v7 = vadd.f32 %v4211_v37, %v211_v2  ;;  %v156_v2 = vld [vmem:[%s5949_s0 + $0x3d0] sm:$0xff] }
  0xa4   :  { %v4847_v48 = vmul.f32 %v4674_v34, %v6023_v19  ;;  %v4852_v17 = vmul.f32 %v4830_v20, %v6025_v13  ;;  %v105_v34 = vld [vmem:[%s5949_s0 + $0x190] sm:$0xff]  ;;  %3529 = vmatmul.mubr.bf16.gmra.mrb[12].mxu0 %v4827_v61  ;;  %3409 = vmatpush3.bf16.msra.mxu1 %v3851_v53  ;;  %v214_v27 = vmul.f32 %v4188_v29, %v106_v26  ;;  %v3853_v53 = vld [vmem:[%s5945_s5 + $0x20] sm:$0xff]   ;;  %v6031_v19 = vmax.f32 %v4513_v56, 0.0 }
  0xa5   :  { %v4856_v36 = vmul.f32 %v648_v33, %v6027_v50  ;;  %v4860_v63 = vmul.f32 %v648_v33, %v6029_v40  ;;  %v1923_v5 = vsel %vm1263_vm0, %v1921_v4, %v1922_v32  ;;  %v1920_v13 = vsel %vm1263_vm0, %v1918_v60, %v1919_v44  ;;  %3545 = vmatpush3.bf16.msra.mxu0 %v3847_v31  ;;  %v4888_v32 = vpop.permute.xlu1 %697  ;;  %v4894_v44 = vld [vmem:[%s5945_s5 + $0x180] sm:$0xff]  }
  0xa6   :  { %6024 = vst [vmem:[#allocation19_spill] sm:$0xff] %v4847_v48  ;;  %6026 = vst [vmem:[#allocation20_spill] sm:$0xff] %v4852_v17  ;;  %v693_v26 = vpop.permute.xlu0 %692  ;;  %v1982_v4 = vpack.c.bf16 %v1923_v5, %v1920_v13  ;;  %3546 = vmatprep.subr.bf16.mxu0 %v3849_v46  ;;  %3410 = vmatprep.subr.bf16.mxu1 %v3852_v42  ;;  %v265_v31 = vmul.f32 %v4188_v29, %v157_v11  ;;  %v6032_v16 = vmax.f32 %v4560_v30, 0.0  ;;  %v117_v30 = vld [vmem:[%s5949_s0 + $0x250] sm:$0xff] }
  0xa7   :  { %6028 = vst [vmem:[#allocation21_spill] sm:$0xff] %v4856_v36  ;;  %6030 = vst [vmem:[#allocation22_spill] sm:$0xff] %v4860_v63  ;;  %v918_v50 = vpack.c.bf16 %v4852_v17, %v4856_v36  ;;  %v213_v60 = vmul.f32 %v4188_v29, %v105_v34  ;;  %v822_v33 = vmul.f32 %v4888_v32, %v6031_v19  ;;  %v6034_v11 = vmax.f32 %v4582_v54, 0.0 }
  0xa8   :  { %v4903_v5 = vmul.f32 %v693_v26, %v6032_v16  ;;  %3548 = vmatprep.mubr.bf16.mxu0 %v1982_v4  ;;  %3411 = vmatpush3.bf16.msra.mxu1 %v3852_v42  ;;  %v264_v56 = vmul.f32 %v4188_v29, %v156_v2  ;;  %v4915_v19 = vadd.f32 %v4211_v37, %v262_v12  ;;  %v3855_v4 = vld [vmem:[%s5945_s5 + $0x28] sm:$0xff]   ;;  %v66_v42 = vld [vmem:[%s5949_s0 + $0x10] sm:$0xff]  ;;  %v6038_v54 = vmax.f32 %v4621_v18, 0.0 }
  0xa9   :  { %3392 = vmatprep.mubr.bf16.mxu1 %v918_v50  ;;  %3547 = vmatpush3.bf16.msra.mxu0 %v3849_v46  ;;  %v4923_v2 = vpop.permute.xlu1 %707  ;;  %v4928_v50 = vadd.f32 %v4211_v37, %v214_v27  ;;  %v4931_v12 = vadd.f32 %v4211_v37, %v265_v31  ;;  %v4934_v16 = vadd.f32 %v4211_v37, %v213_v60  ;;  %v1925_v34 = vrot.slane %v822_v33, 1  ;;  %v64_v31 = vld [vmem:[%s5949_s0] sm:$0xff]  ;;  %v3857_v18 = vld [vmem:[%s5945_s5 + $0x30] sm:$0xff]  }
  0xaa   :  { %6033 = vst [vmem:[#allocation23_spill] sm:$0xff] %v4903_v5  ;;  %3412 = vmatprep.subr.bf16.mxu1 %v3853_v53  ;;  %v703_v46 = vpop.permute.xlu0 %702  ;;  %3564 = vmatprep.subr.bf16.mxu0 %v4894_v44  ;;  %v1924_v61 = vrot.slane %v4903_v5, 1  ;;  %v824_v40 = vmul.f32 %v4923_v2, %v6034_v11  ;;  %v6035_v27 = vmax.f32 %v4612_v47, 0.0  ;;  %v115_v60 = vld [vmem:[%s5949_s0 + $0x240] sm:$0xff]  ;;  %v6037_v33 = vmax.f32 %v4563_v38, 0.0 }
  0xab   :  { %v4959_v21 = vmul.f32 %v703_v46, %v6038_v54  ;;  %v4962_v47 = vadd.f32 %v4211_v37, %v264_v56  ;;  %v174_v11 = vmul.f32 %v4188_v29, %v66_v42  ;;  %v225_v38 = vmul.f32 %v4188_v29, %v117_v30  ;;  %v70_v30 = vld [vmem:[%s5949_s0 + $0x30] sm:$0xff] }
  0xac   :  { %v4945_v13 = vmul.f32 %v703_v46, %v6035_v27  ;;  %v4955_v45 = vmul.f32 %v693_v26, %v6037_v33  ;;  %3413 = vmatpush3.bf16.msra.mxu1 %v3853_v53  ;;  %v1928_v27 = vrot.slane %v824_v40, 1  ;;  %v6039_v53 = vmax.f32 %v4381_v9, 0.0 }
  0xad   :  { %3414 = vmatprep.subr.bf16.mxu1 %v3855_v4  ;;  %v4977_v40 = vpop.permute.xlu1 %662  ;;  %v172_v46 = vmul.f32 %v4188_v29, %v64_v31  ;;  %v223_v33 = vmul.f32 %v4188_v29, %v115_v60  ;;  %v1926_v54 = vsel %vm1263_vm0, %v1924_v61, %v1925_v34  ;;  %v6042_v56 = vmax.f32 %v4705_v10, 0.0  ;;  %v68_v34 = vld [vmem:[%s5949_s0 + $0x20] sm:$0xff] }
  0xae   :  { %6036 = vst [vmem:[#allocation24_spill] sm:$0xff] %v4945_v13  ;;  %v1927_v57 = vrot.slane %v4945_v13, 1  ;;  %v859_v26 = vmul.f32 %v4623_v51, %v6039_v53  ;;  %v658_v42 = vpop.permute.xlu0 %657  ;;  %v6040_v51 = vmax.f32 %v4628_v8, 0.0  ;;  %v6043_v31 = vmax.f32 %v4485_v39, 0.0  ;;  %v3856_v39 = vld [vmem:[%s5945_s5 + $0x188] sm:$0xff]  }
  0xaf   :  { %v4993_v36 = vmul.f32 %v658_v42, %v6042_v56  ;;  %v6045_v13 = vmax.f32 %v4726_v22, 0.0  ;;  %v5005_v8 = vadd.f32 %v4211_v37, %v174_v11  ;;  %v121_v22 = vld [vmem:[%s5949_s0 + $0x270] sm:$0xff]  ;;  %v5030_v56 = vadd.f32 %v4211_v37, %v172_v46 }
  0xb0   :  { %v1929_v9 = vsel %vm1263_vm0, %v1927_v57, %v1928_v27  ;;  %v4989_v53 = vmul.f32 %v4977_v40, %v6040_v51  ;;  %v4998_v60 = vmul.f32 %v4830_v20, %v6043_v31  ;;  %3415 = vmatpush3.bf16.msra.mxu1 %v3855_v4  ;;  %v5015_v20 = vadd.f32 %v4211_v37, %v225_v38  ;;  %v74_v46 = vld [vmem:[%s5949_s0 + $0x50] sm:$0xff] }
  0xb1   :  { %v1983_v5 = vpack.c.bf16 %v1929_v9, %v1926_v54  ;;  %v5002_v61 = vmul.f32 %v658_v42, %v6045_v13  ;;  %3416 = vmatprep.subr.bf16.mxu1 %v3857_v18  ;;  %v178_v13 = vmul.f32 %v4188_v29, %v70_v30  ;;  %v920_v4 = vpack.c.bf16 %v4685_v6, %v859_v26  ;;  %v5027_v27 = vpop.permute.xlu1 %717  ;;  %v3859_v30 = vld [vmem:[%s5945_s5 + $0x38] sm:$0xff]  }
  0xb2   :  { %6041 = vst [vmem:[#allocation25_spill] sm:$0xff] %v4989_v53  ;;  %6044 = vst [vmem:[#allocation26_spill] sm:$0xff] %v4998_v60  ;;  %v919_v57 = vpack.c.bf16 %v4989_v53, %v4993_v36  ;;  %v713_v38 = vpop.permute.xlu0 %712  ;;  %v5033_v42 = vadd.f32 %v4211_v37, %v223_v33  ;;  %v6046_v33 = vmax.f32 %v4732_v14, 0.0  ;;  %v5056_v11 = vmul.f32 %v4188_v29, %v121_v22  ;;  %v72_v22 = vld [vmem:[%s5949_s0 + $0x40] sm:$0xff] }
  0xb3   :  { %3549 = vmatmul.mubr.bf16.vlgmr.msra.gmra.mrb[0].mxu0 %v1983_v5  ;;  %v119_v5 = vld [vmem:[%s5949_s0 + $0x260] sm:$0xff]  ;;  %v176_v10 = vmul.f32 %v4188_v29, %v68_v34  ;;  %v6047_v9 = vmax.f32 %v4743_v62, 0.0  ;;  %v6051_v26 = vmax.f32 %v4749_v1, 0.0  ;;  %v6052_v14 = vmax.f32 %v4776_v23, 0.0  ;;  %v125_v1 = vld [vmem:[%s5949_s0 + $0x290] sm:$0xff] }
  0xb4   :  { %3393 = vmatmul.mubr.bf16.gmra.mrb[4].mxu1 %v919_v57  ;;  %v5051_v31 = vmul.f32 %v5027_v27, %v6046_v33  ;;  %3565 = vmatpush3.bf16.msra.mxu0 %v4894_v44  ;;  %v5069_v44 = vadd.f32 %v4211_v37, %v178_v13  ;;  %v182_v33 = vmul.f32 %v4188_v29, %v74_v46  ;;  %v5085_v13 = vld [vmem:[%s5945_s5 + $0x80] sm:$0xff]   ;;  %v6049_v57 = vmax.f32 %v4746_v0, 0.0 }
  0xb5   :  { %3396 = vmatprep.mubr.bf16.mxu1 %v920_v4  ;;  %v5061_v51 = vmul.f32 %v713_v38, %v6047_v9  ;;  %3566 = vmatprep.subr.bf16.mxu0 %v3856_v39  ;;  %v3858_v4 = vld [vmem:[%s5945_s5 + $0x190] sm:$0xff]   ;;  %v5074_v62 = vpop.permute.xlu1 %727  ;;  %v6054_v6 = vmax.f32 %v4815_v58, 0.0  ;;  %v921_v53 = vpack.c.bf16 %v4847_v48, %v4698_v49  ;;  %v5106_v0 = vadd.f32 %v4211_v37, %v176_v10  ;;  %v123_v23 = vld [vmem:[%s5949_s0 + $0x280] sm:$0xff] }
  0xb6   :  { %3417 = vmatpush3.bf16.msra.mxu1 %v3857_v18  ;;  %v723_v34 = vpop.permute.xlu0 %722  ;;  %v5079_v18 = vmul.f32 %v4188_v29, %v119_v5  ;;  %v5089_v54 = vmul.f32 %v713_v38, %v6049_v57  ;;  %v828_v9 = vmul.f32 %v5074_v62, %v6051_v26  ;;  %v1931_v17 = vrot.slane %v5051_v31, 1  ;;  %v6056_v31 = vld [vmem:[#allocation3_spill] sm:$0xff]  ;;  %v6058_v48 = vld [vmem:[#allocation2_spill] sm:$0xff] }
  0xb7   :  { %6048 = vst [vmem:[#allocation27_spill] sm:$0xff] %v5061_v51  ;;  %3418 = vmatprep.subr.bf16.mxu1 %v3859_v30  ;;  %v5096_v5 = vmul.f32 %v723_v34, %v6052_v14  ;;  %v5100_v46 = vmul.f32 %v723_v34, %v6054_v6  ;;  %v180_v6 = vmul.f32 %v4188_v29, %v72_v22  ;;  %v1930_v58 = vrot.slane %v5061_v51, 1  ;;  %v76_v10 = vld [vmem:[%s5949_s0 + $0x60] sm:$0xff] }
  0xb8   :  { %6050 = vst [vmem:[#allocation28_spill] sm:$0xff] %v5089_v54  ;;  %3567 = vmatpush3.bf16.msra.mxu0 %v3856_v39  ;;  %v1934_v38 = vrot.slane %v828_v9, 1  ;;  %v3860_v39 = vld [vmem:[%s5945_s5 + $0x198] sm:$0xff]   ;;  %v6057_v57 = vmax.f32 %v6056_v31, 0.0  ;;  %v922_v22 = vpack.c.bf16 %v4998_v60, %v4860_v63  ;;  %v6059_v31 = vmax.f32 %v6058_v48, 0.0 }
  0xb9   :  { %6053 = vst [vmem:[#allocation29_spill] sm:$0xff] %v5096_v5  ;;  %6055 = vst [vmem:[#allocation30_spill] sm:$0xff] %v5100_v46  ;;  %3568 = vmatprep.subr.bf16.mxu0 %v3858_v4  ;;  %v1933_v34 = vrot.slane %v5096_v5, 1  ;;  %v5129_v9 = vpop.permute.xlu1 %737  ;;  %v5143_v60 = vadd.f32 %v4211_v37, %v182_v33  ;;  %v5146_v63 = vmul.f32 %v4188_v29, %v123_v23  ;;  %v6060_v51 = vmax.f32 %v4653_v59, 0.0 }
  0xba   :  { %3419 = vmatpush3.bf16.msra.mxu1 %v3859_v30  ;;  %v871_v14 = vmul.f32 %v4791_v35, %v6057_v57  ;;  %v733_v26 = vpop.permute.xlu0 %732  ;;  %v78_v30 = vld [vmem:[%s5949_s0 + $0x70] sm:$0xff]  ;;  %v869_v35 = vmul.f32 %v4720_v3, %v6059_v31  ;;  %v5140_v57 = vmul.f32 %v4188_v29, %v125_v1  ;;  %v6061_v3 = vmax.f32 %v4839_v55, 0.0  ;;  %v3862_v55 = vld [vmem:[%s5945_s5 + $0x1a0] sm:$0xff]  }
  0xbb   :  { %3436 = vmatprep.subr.bf16.mxu1 %v5085_v13  ;;  %v5154_v48 = vmul.f32 %v4977_v40, %v6060_v51  ;;  %v1935_v33 = vsel %vm1263_vm0, %v1933_v34, %v1934_v38  ;;  %v386_v1 = vmax.f32 %v5106_v0, 0.0  ;;  %v6062_v23 = vmax.f32 %v4872_v7, 0.0 }
  0xbc   :  { %3397 = vmatmul.mubr.bf16.gmra.mrb[8].mxu1 %v921_v53  ;;  %v830_v53 = vmul.f32 %v5129_v9, %v6061_v3  ;;  %3569 = vmatpush3.bf16.msra.mxu0 %v3858_v4  ;;  %v1932_v5 = vsel %vm1263_vm0, %v1930_v58, %v1931_v17  ;;  %v5167_v59 = vadd.f32 %v4211_v37, %v180_v6  ;;  %v1946_v51 = vrot.slane %v871_v14, 1 }
  0xbd   :  { %3400 = vmatprep.mubr.bf16.mxu1 %v922_v22  ;;  %v5163_v31 = vmul.f32 %v733_v26, %v6062_v23  ;;  %3570 = vmatprep.subr.bf16.mxu0 %v3860_v39  ;;  %v186_v40 = vmul.f32 %v4188_v29, %v78_v30  ;;  %v1945_v0 = vrot.slane %v4811_v28, 1  ;;  %v5174_v4 = vpop.permute.xlu1 %747  ;;  %v1984_v38 = vpack.c.bf16 %v1935_v33, %v1932_v5 }
  0xbe   :  { %v743_v7 = vpop.permute.xlu0 %742  ;;  %v184_v22 = vmul.f32 %v4188_v29, %v76_v10  ;;  %v6063_v17 = vmax.f32 %v4915_v19, 0.0  ;;  %v6065_v6 = vmax.f32 %v4928_v50, 0.0  ;;  %v6066_v3 = vmax.f32 %v4934_v16, 0.0 }
  0xbf   :  { %v6067_v14 = vmax.f32 %v4962_v47, 0.0  ;;  %v1943_v28 = vrot.slane %v869_v35, 1  ;;  %v1942_v5 = vrot.slane %v4800_v15, 1  ;;  %v923_v19 = vpack.c.bf16 %v5154_v48, %v5002_v61  ;;  %3552 = vmatprep.mubr.bf16.mxu0 %v1984_v38  ;;  %v3864_v35 = vld [vmem:[%s5945_s5 + $0x1a8] sm:$0xff]   ;;  %v6073_v47 = vld [vmem:[#allocation6_spill] sm:$0xff] }
  0xc0   :  { %v5179_v58 = vmul.f32 %v733_v26, %v6063_v17  ;;  %v832_v34 = vmul.f32 %v5174_v4, %v6065_v6  ;;  %v5186_v30 = vmul.f32 %v743_v7, %v6066_v3  ;;  %v1937_v26 = vrot.slane %v830_v53, 1  ;;  %3571 = vmatpush3.bf16.msra.mxu0 %v3860_v39 }
  0xc1   :  { %v5190_v23 = vmul.f32 %v743_v7, %v6067_v14  ;;  %v1936_v50 = vrot.slane %v5163_v31, 1  ;;  %3572 = vmatprep.subr.bf16.mxu0 %v3862_v55  ;;  %v6069_v33 = vmax.f32 %v4585_v24, 0.0  ;;  %v5207_v7 = vpop.permute.xlu1 %547  ;;  %v392_v17 = vmax.f32 %v5143_v60, 0.0 }
  0xc2   :  { %6064 = vst [vmem:[#allocation3_spill] sm:$0xff] %v5179_v58  ;;  %v1940_v10 = vrot.slane %v832_v34, 1  ;;  %v1939_v39 = vrot.slane %v5186_v30, 1  ;;  %v5209_v38 = vpop.permute.xlu0 %537  ;;  %v5213_v6 = vadd.f32 %v4211_v37, %v186_v40  ;;  %v6070_v34 = vmax.f32 %v4763_v43, 0.0 }
  0xc3   :  { %6068 = vst [vmem:[#allocation2_spill] sm:$0xff] %v5190_v23  ;;  %v875_v53 = vmul.f32 %v4923_v2, %v6069_v33  ;;  %v6071_v14 = vmax.f32 %v5005_v8, 0.0  ;;  %v6072_v2 = vmax.f32 %v5030_v56, 0.0  ;;  %v1947_v60 = vsel %vm1263_vm0, %v1945_v0, %v1946_v51 }
  0xc4   :  { %v879_v3 = vmul.f32 %v5074_v62, %v6070_v34  ;;  %3401 = vmatmul.mubr.bf16.gmra.mrb[12].mxu1 %v923_v19  ;;  %v6074_v40 = vmax.f32 %v6073_v47, 0.0  ;;  %v1941_v43 = vsel %vm1263_vm0, %v1939_v39, %v1940_v10  ;;  %v390_v62 = vmax.f32 %v5167_v59, 0.0  ;;  %3573 = vmatpush3.bf16.msra.mxu0 %v3862_v55 }
  0xc5   :  { %v5221_v24 = vmul.f32 %v5207_v7, %v6071_v14  ;;  %v5226_v33 = vmul.f32 %v5209_v38, %v6072_v2  ;;  %v5235_v8 = vadd.f32 %v4211_v37, %v184_v22  ;;  %v6075_v56 = vmax.f32 %v4735_v41, 0.0  ;;  %3574 = vmatprep.subr.bf16.mxu0 %v3864_v35  ;;  %v5245_v59 = vpop.permute.xlu1 %567  ;;  %v3866_v41 = vld [vmem:[%s5945_s5 + $0x1b0] sm:$0xff]  }
  0xc6   :  { %v873_v16 = vmul.f32 %v4888_v32, %v6074_v40  ;;  %v1938_v51 = vsel %vm1263_vm0, %v1936_v50, %v1937_v26  ;;  %v1944_v0 = vsel %vm1263_vm0, %v1942_v5, %v1943_v28  ;;  %v1952_v32 = vrot.slane %v875_v53, 1  ;;  %v5247_v22 = vpop.permute.xlu0 %557  ;;  %v67_v40 = vld [vmem:[%s5949_s0 + $0x18] sm:$0x1] }
  0xc7   :  { %v877_v34 = vmul.f32 %v5027_v27, %v6075_v56  ;;  %v892_v19 = vpack.c.bf16 %v5221_v24, %v5226_v33  ;;  %v1951_v10 = vrot.slane %v4959_v21, 1  ;;  %v1985_v55 = vpack.c.bf16 %v1941_v43, %v1938_v51 }
  0xc8   :  { %v1986_v47 = vpack.c.bf16 %v1947_v60, %v1944_v0  ;;  %v1958_v27 = vrot.slane %v879_v3, 1  ;;  %v1957_v39 = vrot.slane %v5100_v46, 1  ;;  %v6076_v26 = vmax.f32 %v5069_v44, 0.0  ;;  %v129_v44 = vld [vmem:[%s5949_s0 + $0x2b0] sm:$0xff]  ;;  %v65_v60 = vld [vmem:[%s5949_s0 + $0x8] sm:$0x1]  ;;  %3575 = vmatpush3.bf16.msra.mxu0 %v3864_v35 }
  0xc9   :  { %v5259_v5 = vmul.f32 %v5247_v22, %v386_v1  ;;  %3420 = vmatprep.mubr.bf16.mxu1 %v892_v19  ;;  %v1949_v50 = vrot.slane %v873_v16, 1  ;;  %v1948_v53 = vrot.slane %v4955_v45, 1  ;;  %v5264_v14 = vadd.f32 %v4211_v37, %v5056_v11  ;;  %3553 = vmatmul.mubr.bf16.gmra.mrb[4].mxu0 %v1985_v55  ;;  %v3863_v1 = vld [vmem:[%s5945_s5 + $0x88] sm:$0xff]  }
  0xca   :  { %v5256_v28 = vmul.f32 %v5245_v59, %v6076_v26  ;;  %v5268_v3 = vadd.f32 %v4211_v37, %v5079_v18  ;;  %v1955_v16 = vrot.slane %v877_v34, 1  ;;  %v1954_v2 = vrot.slane %v5089_v54, 1  ;;  %3556 = vmatprep.mubr.bf16.mxu0 %v1986_v47  ;;  %v5294_v34 = vpop.permute.xlu1 %587  ;;  %v5296_v19 = vpop.permute.xlu0 %577  ;;  %3576 = vmatprep.subr.bf16.mxu0 %v3866_v41 }
  0xcb   :  { %v5281_v18 = vadd.f32 %v4211_v37, %v5140_v57  ;;  %v6077_v43 = vmax.f32 %v4931_v12, 0.0  ;;  %v5300_v57 = vadd.f32 %v4211_v37, %v5146_v63  ;;  %v396_v51 = vmax.f32 %v5213_v6, 0.0  ;;  %v3868_v12 = vld [vmem:[%s5945_s5 + $0x1b8] sm:$0xff]  }
  0xcc   :  { %v893_v11 = vpack.c.bf16 %v5256_v28, %v5259_v5  ;;  %v1953_v35 = vsel %vm1263_vm0, %v1951_v10, %v1952_v32  ;;  %v5311_v0 = vmul.f32 %v5296_v19, %v390_v62  ;;  %v394_v55 = vmax.f32 %v5235_v8, 0.0  ;;  %v127_v8 = vld [vmem:[%s5949_s0 + $0x2a0] sm:$0xff]  ;;  %3577 = vmatpush3.bf16.msra.mxu0 %v3866_v41 }
  0xcd   :  { %v5292_v56 = vmul.f32 %v5174_v4, %v6077_v43  ;;  %v5308_v4 = vmul.f32 %v5294_v34, %v392_v17  ;;  %v1959_v63 = vsel %vm1263_vm0, %v1957_v39, %v1958_v27  ;;  %v237_v6 = vmul.f32 %v4188_v29, %v129_v44  ;;  %v3865_v44 = vld [vmem:[%s5945_s5 + $0x90] sm:$0xff]   ;;  %3578 = vmatprep.subr.bf16.mxu0 %v3868_v12  ;;  %v5357_v43 = vld [vmem:[%s5945_s5 + $0x1c0] sm:$0xff]  }
  0xce   :  { %3421 = vmatmul.mubr.bf16.vlgmr.msra.gmra.mrb[0].mxu1 %v893_v11  ;;  %v1950_v32 = vsel %vm1263_vm0, %v1948_v53, %v1949_v50  ;;  %v173_v10 = vmul.f32 %v4188_v29, %v65_v60  ;;  %v175_v47 = vmul.f32 %v4188_v29, %v67_v40  ;;  %v6078_v17 = vmax.f32 %v4842_v25, 0.0  ;;  %v5329_v50 = vpop.permute.xlu1 %607  ;;  %v5331_v53 = vpop.permute.xlu0 %597 }
  0xcf   :  { %3437 = vmatpush3.bf16.msra.mxu1 %v5085_v13  ;;  %v1987_v26 = vpack.c.bf16 %v1953_v35, %v1950_v32  ;;  %v1956_v13 = vsel %vm1263_vm0, %v1954_v2, %v1955_v16  ;;  %v1964_v27 = vrot.slane %v5292_v56, 1  ;;  %v1963_v39 = vrot.slane %v5190_v23, 1  ;;  %v80_v35 = vld [vmem:[%s5949_s0 + $0x80] sm:$0xff] }
  0xd0   :  { %v881_v62 = vmul.f32 %v5129_v9, %v6078_v17  ;;  %3438 = vmatprep.subr.bf16.mxu1 %v3863_v1  ;;  %v894_v25 = vpack.c.bf16 %v5308_v4, %v5311_v0  ;;  %v1988_v9 = vpack.c.bf16 %v1959_v63, %v1956_v13  ;;  %v6079_v16 = vmax.f32 %v5015_v20, 0.0  ;;  %3579 = vmatpush3.bf16.msra.mxu0 %v3868_v12 }
  0xd1   :  { %v6080_v2 = vmax.f32 %v5033_v42, 0.0  ;;  %v5349_v60 = vmul.f32 %v5329_v50, %v396_v51  ;;  %v5352_v40 = vmul.f32 %v5331_v53, %v394_v55  ;;  %v235_v20 = vmul.f32 %v4188_v29, %v127_v8  ;;  %3557 = vmatmul.mubr.bf16.gmra.mrb[8].mxu0 %v1987_v26  ;;  %v69_v42 = vld [vmem:[%s5949_s0 + $0x28] sm:$0x1]  ;;  %v71_v55 = vld [vmem:[%s5949_s0 + $0x38] sm:$0x1]  ;;  %3596 = vmatprep.subr.bf16.mxu0 %v5357_v43 }
  0xd2   :  { %v5341_v41 = vmul.f32 %v5207_v7, %v6079_v16  ;;  %3424 = vmatprep.mubr.bf16.mxu1 %v894_v25  ;;  %v283_v7 = vadd.f32 %v4211_v37, %v175_v47  ;;  %v1960_v56 = vrot.slane %v5179_v58, 1  ;;  %v439_v51 = vmax.f32 %v5264_v14, 0.0  ;;  %3560 = vmatprep.mubr.bf16.mxu0 %v1988_v9  ;;  %v5375_v17 = vpop.permute.xlu0 %617  ;;  %v5392_v13 = vpop.permute.xlu1 %542  ;;  %v73_v9 = vld [vmem:[%s5949_s0 + $0x48] sm:$0x1] }
  0xd3   :  { %v5346_v11 = vmul.f32 %v5209_v38, %v6080_v2  ;;  %v1961_v38 = vrot.slane %v881_v62, 1  ;;  %3439 = vmatpush3.bf16.msra.mxu1 %v3863_v1  ;;  %v437_v63 = vmax.f32 %v5268_v3, 0.0  ;;  %v443_v32 = vmax.f32 %v5281_v18, 0.0  ;;  %v3867_v1 = vld [vmem:[%s5945_s5 + $0x98] sm:$0xff]  }
  0xd4   :  { %v281_v47 = vadd.f32 %v4211_v37, %v173_v10  ;;  %v895_v14 = vpack.c.bf16 %v5349_v60, %v5352_v40  ;;  %3440 = vmatprep.subr.bf16.mxu1 %v3865_v44  ;;  %v75_v62 = vld [vmem:[%s5949_s0 + $0x58] sm:$0x1]  ;;  %v441_v18 = vmax.f32 %v5300_v57, 0.0  ;;  %v345_v10 = vadd.f32 %v4211_v37, %v237_v6 }
  0xd5   :  { %v896_v3 = vpack.c.bf16 %v5341_v41, %v5346_v11  ;;  %v1965_v8 = vsel %vm1263_vm0, %v1963_v39, %v1964_v27  ;;  %v343_v26 = vadd.f32 %v4211_v37, %v235_v20  ;;  %v188_v12 = vmul.f32 %v4188_v29, %v80_v35 }
  0xd6   :  { %3425 = vmatmul.mubr.bf16.gmra.mrb[4].mxu1 %v895_v14  ;;  %v385_v25 = vmax.f32 %v283_v7, 0.0  ;;  %v179_v57 = vmul.f32 %v4188_v29, %v71_v55  ;;  %v177_v6 = vmul.f32 %v4188_v29, %v69_v42  ;;  %v1962_v27 = vsel %vm1263_vm0, %v1960_v56, %v1961_v38  ;;  %v5408_v7 = vpop.permute.xlu0 %552 }
  0xd7   :  { %3428 = vmatprep.mubr.bf16.mxu1 %v896_v3  ;;  %3441 = vmatpush3.bf16.msra.mxu1 %v3865_v44  ;;  %v183_v39 = vmul.f32 %v4188_v29, %v75_v62  ;;  %v5403_v16 = vmul.f32 %v5245_v59, %v439_v51  ;;  %v5406_v2 = vmul.f32 %v5247_v22, %v437_v63  ;;  %v383_v20 = vmax.f32 %v281_v47, 0.0  ;;  %v3869_v44 = vld [vmem:[%s5945_s5 + $0xa0] sm:$0xff]   ;;  %v116_v59 = vld [vmem:[%s5949_s0 + $0x248] sm:$0x1]  ;;  %v79_v62 = vld [vmem:[%s5949_s0 + $0x78] sm:$0x1] }
  0xd8   :  { %v1989_v35 = vpack.c.bf16 %v1965_v8, %v1962_v27  ;;  %3442 = vmatprep.subr.bf16.mxu1 %v3867_v1  ;;  %v5414_v42 = vmul.f32 %v5294_v34, %v443_v32  ;;  %v5417_v38 = vmul.f32 %v5296_v19, %v441_v18  ;;  %v2168_v22 = vpack.c.bf16 %v5259_v5, %v5221_v24  ;;  %v131_v51 = vld [vmem:[%s5949_s0 + $0x2c0] sm:$0xff]  ;;  %v118_v34 = vld [vmem:[%s5949_s0 + $0x258] sm:$0x1]  ;;  %v5440_v8 = vpop.permute.xlu1 %562 }
  0xd9   :  { %v181_v56 = vmul.f32 %v4188_v29, %v73_v9  ;;  %v296_v55 = vadd.f32 %v4211_v37, %v188_v12  ;;  %v793_v19 = vmul.f32 %v5408_v7, %v385_v25  ;;  %v287_v63 = vadd.f32 %v4211_v37, %v179_v57 }
  0xda   :  { %3561 = vmatmul.mubr.bf16.gmra.mrb[12].mxu0 %v1989_v35  ;;  %v447_v32 = vmax.f32 %v345_v10, 0.0  ;;  %v445_v47 = vmax.f32 %v343_v26, 0.0  ;;  %v291_v14 = vadd.f32 %v4211_v37, %v183_v39  ;;  %v224_v3 = vmul.f32 %v4188_v29, %v116_v59  ;;  %v5443_v25 = vpop.permute.xlu0 %572  ;;  %v3871_v26 = vld [vmem:[%s5945_s5 + $0xa8] sm:$0xff]  }
  0xdb   :  { %3580 = vmatprep.mubr.bf16.mxu0 %v2168_v22  ;;  %3443 = vmatpush3.bf16.msra.mxu1 %v3867_v1  ;;  %v791_v18 = vmul.f32 %v5392_v13, %v383_v20  ;;  %v285_v12 = vadd.f32 %v4211_v37, %v177_v6  ;;  %v897_v10 = vpack.c.bf16 %v5403_v16, %v5406_v2  ;;  %v77_v1 = vld [vmem:[%s5949_s0 + $0x68] sm:$0x1]  ;;  %v398_v39 = vmax.f32 %v296_v55, 0.0 }
  0xdc   :  { %3444 = vmatprep.subr.bf16.mxu1 %v3869_v44  ;;  %v239_v9 = vmul.f32 %v4188_v29, %v131_v51  ;;  %v226_v57 = vmul.f32 %v4188_v29, %v118_v34  ;;  %v289_v6 = vadd.f32 %v4211_v37, %v181_v56  ;;  %v898_v27 = vpack.c.bf16 %v5414_v42, %v5417_v38 }
  0xdd   :  { %v1268_v20 = vrot.slane %v793_v19, 1  ;;  %v389_v35 = vmax.f32 %v287_v63, 0.0  ;;  %v187_v59 = vmul.f32 %v4188_v29, %v79_v62  ;;  %v5460_v22 = vmul.f32 %v5329_v50, %v447_v32  ;;  %v3872_v50 = vld [vmem:[%s5945_s5 + $0x1c8] sm:$0xff]   ;;  %v5486_v62 = vpop.permute.xlu1 %582 }
  0xde   :  { %3429 = vmatmul.mubr.bf16.gmra.mrb[8].mxu1 %v897_v10  ;;  %v5463_v58 = vmul.f32 %v5331_v53, %v445_v47  ;;  %v185_v51 = vmul.f32 %v4188_v29, %v77_v1  ;;  %v393_v56 = vmax.f32 %v291_v14, 0.0  ;;  %v1267_v34 = vrot.slane %v5221_v24, 1  ;;  %v5469_v10 = vpop.permute.xlu0 %592  ;;  %v3873_v47 = vld [vmem:[%s5945_s5 + $0xb0] sm:$0xff]   ;;  %v120_v1 = vld [vmem:[%s5949_s0 + $0x268] sm:$0x1] }
  0xdf   :  { %3432 = vmatprep.mubr.bf16.mxu1 %v898_v27  ;;  %3445 = vmatpush3.bf16.msra.mxu1 %v3869_v44  ;;  %v2169_v55 = vpack.c.bf16 %v5311_v0, %v5256_v28  ;;  %v1265_v19 = vrot.slane %v791_v18, 1  ;;  %v387_v63 = vmax.f32 %v285_v12, 0.0  ;;  %v5475_v53 = vadd.f32 %v4211_v37, %v224_v3 }
  0xe0   :  { %3446 = vmatprep.subr.bf16.mxu1 %v3871_v26  ;;  %v5478_v44 = vadd.f32 %v4211_v37, %v226_v57  ;;  %v391_v32 = vmax.f32 %v289_v6, 0.0  ;;  %v2170_v24 = vpack.c.bf16 %v5352_v40, %v5308_v4  ;;  %v1264_v14 = vrot.slane %v5226_v33, 1  ;;  %v122_v57 = vld [vmem:[%s5949_s0 + $0x278] sm:$0x1] }
  0xe1   :  { %v797_v18 = vmul.f32 %v5443_v25, %v389_v35  ;;  %v295_v3 = vadd.f32 %v4211_v37, %v187_v59  ;;  %v5491_v12 = vsel %vm1263_vm0, %v1267_v34, %v1268_v20  ;;  %v293_v33 = vadd.f32 %v4211_v37, %v185_v51  ;;  %v126_v59 = vld [vmem:[%s5949_s0 + $0x298] sm:$0x1] }
  0xe2   :  { %3581 = vmatmul.mubr.bf16.vlgmr.msra.gmra.mrb[0].mxu0 %v2169_v55  ;;  %v801_v6 = vmul.f32 %v5469_v10, %v393_v56  ;;  %v899_v27 = vpack.c.bf16 %v5460_v22, %v5463_v58  ;;  %v5505_v20 = vmul.f32 %v5375_v17, %v398_v39  ;;  %v795_v35 = vmul.f32 %v5440_v8, %v387_v63  ;;  %v3875_v55 = vld [vmem:[%s5945_s5 + $0xb8] sm:$0xff]   ;;  %v5531_v54 = vpop.permute.xlu0 %612 }
  0xe3   :  { %3597 = vmatpush3.bf16.msra.mxu0 %v5357_v43  ;;  %3584 = vmatprep.mubr.bf16.mxu0 %v2170_v24  ;;  %v1266_v51 = vsel %vm1263_vm0, %v1264_v14, %v1265_v19  ;;  %v3874_v43 = vld [vmem:[%s5945_s5 + $0x1d0] sm:$0xff]   ;;  %v5516_v56 = vadd.f32 %v4211_v37, %v239_v9  ;;  %v799_v39 = vmul.f32 %v5486_v62, %v391_v32  ;;  %v124_v19 = vld [vmem:[%s5949_s0 + $0x288] sm:$0x1]  ;;  %v1274_v24 = vrot.slane %v797_v18, 1 }
  0xe4   :  { %3447 = vmatpush3.bf16.msra.mxu1 %v3871_v26  ;;  %3598 = vmatprep.subr.bf16.mxu0 %v3872_v50  ;;  %v1328_v34 = vpack.c.bf16 %v5491_v12, %v1266_v51  ;;  %v228_v26 = vmul.f32 %v4188_v29, %v120_v1  ;;  %v230_v63 = vmul.f32 %v4188_v29, %v122_v57  ;;  %v397_v9 = vmax.f32 %v295_v3, 0.0 }
  0xe5   :  { %3448 = vmatprep.subr.bf16.mxu1 %v3873_v47  ;;  %v434_v32 = vmax.f32 %v5475_v53, 0.0  ;;  %v436_v14 = vmax.f32 %v5478_v44, 0.0  ;;  %v234_v51 = vmul.f32 %v4188_v29, %v126_v59  ;;  %v1280_v23 = vrot.slane %v801_v6, 1  ;;  %v3876_v53 = vld [vmem:[%s5945_s5 + $0x1d8] sm:$0xff]  }
  0xe6   :  { %3433 = vmatmul.mubr.bf16.gmra.mrb[12].mxu1 %v899_v27  ;;  %v1273_v1 = vrot.slane %v5256_v28, 1  ;;  %v2171_v46 = vpack.c.bf16 %v5505_v20, %v5349_v60  ;;  %v1271_v57 = vrot.slane %v795_v35, 1  ;;  %v395_v18 = vmax.f32 %v293_v33, 0.0 }
  0xe7   :  { %3599 = vmatpush3.bf16.msra.mxu0 %v3872_v50  ;;  %3452 = vmatprep.mubr.bf16.mxu1 %v1328_v34  ;;  %v1279_v44 = vrot.slane %v5308_v4, 1  ;;  %v232_v3 = vmul.f32 %v4188_v29, %v124_v19  ;;  %v1277_v6 = vrot.slane %v799_v39, 1  ;;  %v5541_v50 = vpop.permute.xlu1 %602  ;;  %v2172_v28 = vpack.c.bf16 %v5406_v2, %v5341_v41  ;;  %v130_v19 = vld [vmem:[%s5949_s0 + $0x2b8] sm:$0x1] }
  0xe8   :  { %3449 = vmatpush3.bf16.msra.mxu1 %v3873_v47  ;;  %3600 = vmatprep.subr.bf16.mxu0 %v3874_v43  ;;  %v3877_v47 = vld [vmem:[%s5945_s5 + $0xc0] sm:$0xff]   ;;  %v1270_v33 = vrot.slane %v5259_v5, 1  ;;  %v338_v27 = vadd.f32 %v4211_v37, %v230_v63  ;;  %v5551_v35 = vsel %vm1263_vm0, %v1273_v1, %v1274_v24  ;;  %v805_v4 = vmul.f32 %v5531_v54, %v397_v9 }
  0xe9   :  { %3450 = vmatprep.subr.bf16.mxu1 %v3875_v55  ;;  %v1276_v59 = vrot.slane %v5311_v0, 1  ;;  %v844_v39 = vmul.f32 %v5408_v7, %v436_v14  ;;  %v342_v34 = vadd.f32 %v4211_v37, %v234_v51  ;;  %v5561_v5 = vsel %vm1263_vm0, %v1279_v44, %v1280_v23  ;;  %v3878_v9 = vld [vmem:[%s5945_s5 + $0x1e0] sm:$0xff]  }
  0xea   :  { %3585 = vmatmul.mubr.bf16.gmra.mrb[4].mxu0 %v2171_v46  ;;  %v336_v63 = vadd.f32 %v4211_v37, %v228_v26  ;;  %v5565_v24 = vsel %vm1263_vm0, %v1270_v33, %v1271_v57  ;;  %v128_v46 = vld [vmem:[%s5949_s0 + $0x2a8] sm:$0x1]  ;;  %v803_v0 = vmul.f32 %v5541_v50, %v395_v18  ;;  %v842_v7 = vmul.f32 %v5392_v13, %v434_v32 }
  0xeb   :  { %3601 = vmatpush3.bf16.msra.mxu0 %v3874_v43  ;;  %3588 = vmatprep.mubr.bf16.mxu0 %v2172_v28  ;;  %v340_v43 = vadd.f32 %v4211_v37, %v232_v3  ;;  %v1329_v23 = vpack.c.bf16 %v5551_v35, %v5565_v24  ;;  %v5576_v26 = vsel %vm1263_vm0, %v1276_v59, %v1277_v6  ;;  %v440_v14 = vmax.f32 %v338_v27, 0.0  ;;  %v3880_v27 = vld [vmem:[%s5945_s5 + $0x1e8] sm:$0xff]  }
  0xec   :  { %3451 = vmatpush3.bf16.msra.mxu1 %v3875_v55  ;;  %3602 = vmatprep.subr.bf16.mxu0 %v3876_v53  ;;  %v3879_v55 = vld [vmem:[%s5945_s5 + $0xc8] sm:$0xff]   ;;  %v238_v13 = vmul.f32 %v4188_v29, %v130_v19  ;;  %v1286_v32 = vrot.slane %v805_v4, 1  ;;  %v1330_v51 = vpack.c.bf16 %v5561_v5, %v5576_v26  ;;  %v449_v1 = vmax.f32 %v5516_v56, 0.0 }
  0xed   :  { %3468 = vmatprep.subr.bf16.mxu1 %v3877_v47  ;;  %v1292_v57 = vrot.slane %v844_v39, 1  ;;  %v236_v18 = vmul.f32 %v4188_v29, %v128_v46  ;;  %v444_v44 = vmax.f32 %v342_v34, 0.0  ;;  %v1285_v3 = vrot.slane %v5349_v60, 1 }
  0xee   :  { %v438_v6 = vmax.f32 %v336_v63, 0.0  ;;  %v1283_v28 = vrot.slane %v803_v0, 1  ;;  %v2173_v33 = vpack.c.bf16 %v5417_v38, %v5403_v16  ;;  %v1291_v56 = vrot.slane %v5341_v41, 1 }
  0xef   :  { %3603 = vmatpush3.bf16.msra.mxu0 %v3876_v53  ;;  %3453 = vmatmul.mubr.bf16.vlgmr.msra.gmra.mrb[0].mxu1 %v1329_v23  ;;  %v1289_v4 = vrot.slane %v842_v7, 1  ;;  %v442_v59 = vmax.f32 %v340_v43, 0.0  ;;  %v2174_v60 = vpack.c.bf16 %v5463_v58, %v5414_v42  ;;  %v3881_v53 = vld [vmem:[%s5945_s5 + $0xd0] sm:$0xff]   ;;  %v848_v39 = vmul.f32 %v5443_v25, %v440_v14  ;;  %v3883_v23 = vld [vmem:[%s5945_s5 + $0xd8] sm:$0xff]  }
  0xf0   :  { %3456 = vmatprep.mubr.bf16.mxu1 %v1330_v51  ;;  %3469 = vmatpush3.bf16.msra.mxu1 %v3877_v47  ;;  %v1282_v47 = vrot.slane %v5352_v40, 1  ;;  %v346_v34 = vadd.f32 %v4211_v37, %v238_v13  ;;  %v5605_v41 = vsel %vm1263_vm0, %v1285_v3, %v1286_v32  ;;  %v1288_v19 = vrot.slane %v5346_v11, 1  ;;  %v90_v7 = vld [vmem:[%s5949_s0 + $0x110] sm:$0xff] }
  0xf1   :  { %3604 = vmatprep.subr.bf16.mxu0 %v3878_v9  ;;  %3470 = vmatprep.subr.bf16.mxu1 %v3879_v55  ;;  %v344_v63 = vadd.f32 %v4211_v37, %v236_v18  ;;  %v852_v46 = vmul.f32 %v5469_v10, %v444_v44  ;;  %v5611_v0 = vsel %vm1263_vm0, %v1291_v56, %v1292_v57  ;;  %v1297_v32 = vrot.slane %v5403_v16, 1  ;;  %v3884_v18 = vld [vmem:[%s5945_s5 + $0x1f8] sm:$0xff]   ;;  %v3885_v16 = vld [vmem:[%s5945_s5 + $0xe0] sm:$0xff]  }
  0xf2   :  { %3589 = vmatmul.mubr.bf16.gmra.mrb[8].mxu0 %v2173_v33  ;;  %v5614_v40 = vmul.f32 %v5375_v17, %v449_v1  ;;  %v846_v25 = vmul.f32 %v5440_v8, %v438_v6  ;;  %v5621_v11 = vsel %vm1263_vm0, %v1282_v47, %v1283_v28  ;;  %v850_v10 = vmul.f32 %v5486_v62, %v442_v59  ;;  %v3882_v8 = vld [vmem:[%s5945_s5 + $0x1f0] sm:$0xff]  }
  0xf3   :  { %3605 = vmatpush3.bf16.msra.mxu0 %v3878_v9  ;;  %3592 = vmatprep.mubr.bf16.mxu0 %v2174_v60  ;;  %v1331_v43 = vpack.c.bf16 %v5605_v41, %v5621_v11  ;;  %v1290_v17 = vsel %vm1263_vm0, %v1288_v19, %v1289_v4  ;;  %v1298_v9 = vrot.slane %v848_v39, 1  ;;  %v1304_v13 = vrot.slane %v852_v46, 1  ;;  %v668_v46 = vpop.permute.xlu1 %667 }
  0xf4   :  { %3471 = vmatpush3.bf16.msra.mxu1 %v3879_v55  ;;  %3606 = vmatprep.subr.bf16.mxu0 %v3880_v27  ;;  %v448_v55 = vmax.f32 %v346_v34, 0.0  ;;  %v1332_v14 = vpack.c.bf16 %v5611_v0, %v1290_v17  ;;  %v198_v62 = vmul.f32 %v4188_v29, %v90_v7  ;;  %v2175_v51 = vpack.c.bf16 %v5614_v40, %v5460_v22 }
  0xf5   :  { %3472 = vmatprep.subr.bf16.mxu1 %v3881_v53  ;;  %v1295_v1 = vrot.slane %v846_v25, 1  ;;  %v446_v57 = vmax.f32 %v344_v63, 0.0  ;;  %v1303_v44 = vrot.slane %v5414_v42, 1  ;;  %v1301_v3 = vrot.slane %v850_v10, 1  ;;  %v6081_v42 = vld [vmem:[#allocation10_spill] sm:$0xff]  ;;  %v3888_v63 = vld [vmem:[%s5945_s5 + $0x208] sm:$0xff]  }
  0xf6   :  { %v1294_v6 = vrot.slane %v5406_v2, 1  ;;  %v856_v28 = vmul.f32 %v5531_v54, %v448_v55  ;;  %v5648_v33 = vsel %vm1263_vm0, %v1297_v32, %v1298_v9  ;;  %v6082_v56 = vpack.c.bf16 %v4694_v52, %v6081_v42  ;;  %v3886_v52 = vld [vmem:[%s5945_s5 + $0x200] sm:$0xff]   ;;  %v3889_v25 = vld [vmem:[%s5945_s5 + $0xf0] sm:$0xff]   ;;  %v6083_v10 = vld [vmem:[#allocation21_spill] sm:$0xff] }
  0xf7   :  { %3607 = vmatpush3.bf16.msra.mxu0 %v3880_v27  ;;  %3457 = vmatmul.mubr.bf16.gmra.mrb[4].mxu1 %v1331_v43  ;;  %v1300_v27 = vrot.slane %v5417_v38, 1  ;;  %v5655_v4 = vsel %vm1263_vm0, %v1303_v44, %v1304_v13  ;;  %v854_v59 = vmul.f32 %v5541_v50, %v446_v57  ;;  %v306_v2 = vadd.f32 %v4211_v37, %v198_v62  ;;  %v3887_v50 = vld [vmem:[%s5945_s5 + $0xe8] sm:$0xff]   ;;  %v6084_v43 = vld [vmem:[#allocation12_spill] sm:$0xff]  ;;  %v6088_v32 = vld [vmem:[#allocation25_spill] sm:$0xff] }
  0xf8   :  { %3460 = vmatprep.mubr.bf16.mxu1 %v1332_v14  ;;  %3473 = vmatpush3.bf16.msra.mxu1 %v3881_v53  ;;  %v5660_v54 = vsel %vm1263_vm0, %v1294_v6, %v1295_v1  ;;  %v1310_v53 = vrot.slane %v856_v28, 1  ;;  %v1309_v39 = vrot.slane %v5460_v22, 1  ;;  %v1306_v7 = vrot.slane %v5463_v58, 1  ;;  %v141_v58 = vld [vmem:[%s5949_s0 + $0x350] sm:$0xff]  ;;  %v6090_v57 = vld [vmem:[#allocation15_spill] sm:$0xff]  ;;  %v3892_v44 = vld [vmem:[%s5945_s5 + $0x218] sm:$0xff]  }
  0xf9   :  { %3608 = vmatprep.subr.bf16.mxu0 %v3882_v8  ;;  %3474 = vmatprep.subr.bf16.mxu1 %v3883_v23  ;;  %v1333_v38 = vpack.c.bf16 %v5648_v33, %v5660_v54  ;;  %v5665_v60 = vsel %vm1263_vm0, %v1300_v27, %v1301_v3  ;;  %v1307_v34 = vrot.slane %v854_v59, 1  ;;  %v408_v19 = vmax.f32 %v306_v2, 0.0  ;;  %v3890_v13 = vld [vmem:[%s5945_s5 + $0x210] sm:$0xff]   ;;  %v3893_v3 = vld [vmem:[%s5950_s6] sm:$0xff]   ;;  %v3895_v42 = vld [vmem:[%s5950_s6 + $0x8] sm:$0xff]  }
  0xfa   :  { %3593 = vmatmul.mubr.bf16.gmra.mrb[12].mxu0 %v2175_v51  ;;  %v1334_v47 = vpack.c.bf16 %v5655_v4, %v5665_v60  ;;  %v6085_v22 = vpack.c.bf16 %v6083_v10, %v6084_v43  ;;  %v5687_v17 = vsel %vm1263_vm0, %v1309_v39, %v1310_v53  ;;  %v249_v62 = vmul.f32 %v4188_v29, %v141_v58  ;;  %v6089_v1 = vld [vmem:[#allocation16_spill] sm:$0xff]  ;;  %v3894_v27 = vld [vmem:[%s5945_s5 + $0x220] sm:$0xff]   ;;  %v6095_v59 = vld [vmem:[#allocation23_spill] sm:$0xff] }
  0xfb   :  { %3609 = vmatpush3.bf16.msra.mxu0 %v3882_v8  ;;  %3612 = vmatprep.mubr.bf16.mxu0 %v6082_v56  ;;  %v6086_v8 = vld [vmem:[#allocation20_spill] sm:$0xff]  ;;  %v816_v9 = vmul.f32 %v668_v46, %v408_v19  ;;  %v5693_v55 = vsel %vm1263_vm0, %v1306_v7, %v1307_v34  ;;  %v81_v56 = vld [vmem:[%s5949_s0 + $0x88] sm:$0x1]  ;;  %v6100_v19 = vld [vmem:[#allocation22_spill] sm:$0xff] }
  0xfc   :  { %3475 = vmatpush3.bf16.msra.mxu1 %v3883_v23  ;;  %3610 = vmatprep.subr.bf16.mxu0 %v3884_v18  ;;  %v6087_v23 = vpack.c.bf16 %v4993_v36, %v6086_v8  ;;  %v1335_v14 = vpack.c.bf16 %v5687_v17, %v5693_v55  ;;  %v3891_v36 = vld [vmem:[%s5945_s5 + $0xf8] sm:$0xff]   ;;  %v357_v28 = vadd.f32 %v4211_v37, %v249_v62  ;;  %v3897_v34 = vld [vmem:[%s5950_s6 + $0x10] sm:$0xff]   ;;  %v6103_v7 = vld [vmem:[#allocation26_spill] sm:$0xff] }
  0xfd   :  { %3476 = vmatprep.subr.bf16.mxu1 %v3885_v16  ;;  %v2357_v51 = vpack.c.bf16 %v816_v9, %v6088_v32  ;;  %v189_v39 = vmul.f32 %v4188_v29, %v81_v56  ;;  %v6104_v10 = vpack.c.bf16 %v5002_v61, %v6103_v7  ;;  %v3898_v8 = vld [vmem:[%s5945_s5 + $0x230] sm:$0xff]   ;;  %v6105_v9 = vpack.c.bf16 %v5186_v30, %v5163_v31  ;;  %v3901_v31 = vld [vmem:[%s5950_s6 + $0x20] sm:$0xff]   ;;  %v3902_v30 = vld [vmem:[%s5950_s6 + $0x28] sm:$0xff]  }
  0xfe   :  { %v2553_v62 = vpack.c.bf16 %v5576_v26, %v5551_v35  ;;  %v6109_v32 = vld [vmem:[#allocation30_spill] sm:$0xff]  ;;  %v2557_v56 = vpack.c.bf16 %v5665_v60, %v5648_v33 }
  0xff   :  { %3611 = vmatpush3.bf16.msra.mxu0 %v3884_v18  ;;  %3461 = vmatmul.mubr.bf16.gmra.mrb[8].mxu1 %v1333_v38  ;;  %v6091_v18 = vpack.c.bf16 %v6089_v1, %v6090_v57  ;;  %v459_v38 = vmax.f32 %v357_v28, 0.0  ;;  %v6121_v33 = vld [vmem:[#allocation14_spill] sm:$0xff] }
 0x100   :  { %3464 = vmatprep.mubr.bf16.mxu1 %v1334_v47  ;;  %3477 = vmatpush3.bf16.msra.mxu1 %v3885_v16  ;;  %v6092_v16 = vld [vmem:[#allocation11_spill] sm:$0xff]  ;;  %v6122_v60 = vld [vmem:[#allocation18_spill] sm:$0xff] }
 0x101   :  { %3628 = vmatprep.subr.bf16.mxu0 %v3886_v52  ;;  %3478 = vmatprep.subr.bf16.mxu1 %v3887_v50  ;;  %v6093_v6 = vpack.c.bf16 %v4698_v49, %v6092_v16  ;;  %v6094_v49 = vld [vmem:[#allocation24_spill] sm:$0xff]  ;;  %v3896_v47 = vld [vmem:[%s5945_s5 + $0x228] sm:$0xff]   ;;  %v867_v43 = vmul.f32 %v668_v46, %v459_v38  ;;  %v6106_v46 = vld [vmem:[#allocation17_spill] sm:$0xff] }
 0x102   :  { %3613 = vmatmul.mubr.bf16.vlgmr.msra.gmra.mrb[0].mxu0 %v6085_v22  ;;  %v6096_v2 = vpack.c.bf16 %v6094_v49, %v6095_v59  ;;  %v297_v22 = vadd.f32 %v4211_v37, %v189_v39  ;;  %v6107_v58 = vpack.c.bf16 %v6106_v46, %v4800_v15  ;;  %v6115_v16 = vld [vmem:[#allocation5_spill] sm:$0xff]  ;;  %v2547_v59 = vrot.slane %v5614_v40, 1 }
 0x103   :  { %3629 = vmatpush3.bf16.msra.mxu0 %v3886_v52  ;;  %3616 = vmatprep.mubr.bf16.mxu0 %v6087_v23  ;;  %v6097_v52 = vld [vmem:[#allocation29_spill] sm:$0xff]  ;;  %v2361_v61 = vpack.c.bf16 %v867_v43, %v5154_v48  ;;  %v623_v48 = vpop.permute.xlu0 %622 }
 0x104   :  { %3479 = vmatpush3.bf16.msra.mxu1 %v3887_v50  ;;  %3630 = vmatprep.subr.bf16.mxu0 %v3888_v63  ;;  %v6098_v50 = vld [vmem:[#allocation27_spill] sm:$0xff]  ;;  %v3899_v23 = vld [vmem:[%s5950_s6 + $0x18] sm:$0xff]  }
 0x105   :  { %3480 = vmatprep.subr.bf16.mxu1 %v3889_v25  ;;  %v6099_v53 = vpack.c.bf16 %v6097_v52, %v6098_v50  ;;  %v6120_v52 = vld [vmem:[#allocation13_spill] sm:$0xff] }
 0x107   :  { %3631 = vmatpush3.bf16.msra.mxu0 %v3888_v63  ;;  %3465 = vmatmul.mubr.bf16.gmra.mrb[12].mxu1 %v1335_v14  ;;  %v6101_v63 = vld [vmem:[#allocation19_spill] sm:$0xff]  ;;  %v3900_v14 = vld [vmem:[%s5945_s5 + $0x238] sm:$0xff]  }
 0x108   :  { %3481 = vmatpush3.bf16.msra.mxu1 %v3889_v25  ;;  %3484 = vmatprep.mubr.bf16.mxu1 %v6091_v18  ;;  %v6102_v25 = vpack.c.bf16 %v6100_v19, %v6101_v63 }
 0x109   :  { %3632 = vmatprep.subr.bf16.mxu0 %v3890_v13  ;;  %3482 = vmatprep.subr.bf16.mxu1 %v3891_v36 }
 0x10a   :  { %3617 = vmatmul.mubr.bf16.gmra.mrb[4].mxu0 %v2357_v51  ;;  %v6110_v51 = vld [vmem:[#allocation28_spill] sm:$0xff] }
 0x10b   :  { %3633 = vmatpush3.bf16.msra.mxu0 %v3890_v13  ;;  %3620 = vmatprep.mubr.bf16.mxu0 %v6093_v6  ;;  %v399_v13 = vmax.f32 %v297_v22, 0.0  ;;  %v6111_v1 = vpack.c.bf16 %v6109_v32, %v6110_v51 }
 0x10c   :  { %3483 = vmatpush3.bf16.msra.mxu1 %v3891_v36  ;;  %3634 = vmatprep.subr.bf16.mxu0 %v3892_v44  ;;  %v2552_v36 = vpack.c.bf16 %v5565_v24, %v5491_v12  ;;  %v132_v12 = vld [vmem:[%s5949_s0 + $0x2c8] sm:$0x1]  ;;  %v6108_v24 = vpack.c.bf16 %v4959_v21, %v4955_v45  ;;  %v3903_v21 = vld [vmem:[%s5950_s6 + $0x30] sm:$0xff]   ;;  %v2544_v45 = vrot.slane %v5505_v20, 1 }
 0x10d   :  { %3660 = vmatprep.subr.bf16.mxu1 %v3893_v3  ;;  %v807_v15 = vmul.f32 %v623_v48, %v399_v13  ;;  %v240_v57 = vmul.f32 %v4188_v29, %v132_v12  ;;  %v3904_v29 = vld [vmem:[%s5950_s6 + $0x38] sm:$0xff]  }
 0x10f   :  { %3635 = vmatpush3.bf16.msra.mxu0 %v3892_v44  ;;  %3485 = vmatmul.mubr.bf16.vlgmr.msra.gmra.mrb[0].mxu1 %v6096_v2  ;;  %v2545_v18 = vrot.slane %v807_v15, 1  ;;  %v2554_v44 = vpack.c.bf16 %v5621_v11, %v5561_v5  ;;  %v348_v35 = vadd.f32 %v4211_v37, %v240_v57  ;;  %v6112_v5 = vld [vmem:[#allocation2_spill] sm:$0xff]  ;;  %v6113_v11 = vld [vmem:[#allocation3_spill] sm:$0xff]  ;;  %v2556_v37 = vpack.c.bf16 %v5660_v54, %v5611_v0  ;;  %v6118_v54 = vld [vmem:[#allocation8_spill] sm:$0xff] }
 0x110   :  { %3488 = vmatprep.mubr.bf16.mxu1 %v6099_v53  ;;  %3661 = vmatpush3.bf16.msra.mxu1 %v3893_v3  ;;  %v6114_v3 = vpack.c.bf16 %v6112_v5, %v6113_v11  ;;  %v6119_v2 = vld [vmem:[#allocation9_spill] sm:$0xff] }
 0x111   :  { %3636 = vmatprep.subr.bf16.mxu0 %v3894_v27  ;;  %3662 = vmatprep.subr.bf16.mxu1 %v3895_v42  ;;  %v2546_v26 = vsel %vm1263_vm0, %v2544_v45, %v2545_v18  ;;  %v450_v6 = vmax.f32 %v348_v35, 0.0 }
 0x112   :  { %3621 = vmatmul.mubr.bf16.gmra.mrb[8].mxu0 %v6102_v25  ;;  %v2555_v20 = vpack.c.bf16 %v2546_v26, %v5605_v41  ;;  %v2558_v41 = vpack.c.bf16 %v5693_v55, %v5655_v4  ;;  %v3909_v4 = vmov 0.0  }
 0x113   :  { %3637 = vmatpush3.bf16.msra.mxu0 %v3894_v27  ;;  %3624 = vmatprep.mubr.bf16.mxu0 %v6104_v10  ;;  %v858_v28 = vmul.f32 %v623_v48, %v450_v6  ;;  %v6116_v27 = vld [vmem:[#allocation4_spill] sm:$0xff]  ;;  %2989 = vst [vmem:[%s5951_s9] sm:$0xff] %v3909_v4 }
 0x114   :  { %3663 = vmatpush3.bf16.msra.mxu1 %v3895_v42  ;;  %3638 = vmatprep.subr.bf16.mxu0 %v3896_v47  ;;  %v6117_v42 = vld [vmem:[#allocation7_spill] sm:$0xff] }
 0x115   :  { %3664 = vmatprep.subr.bf16.mxu1 %v3897_v34  ;;  %v2548_v49 = vrot.slane %v858_v28, 1 }
 0x117   :  { %3639 = vmatpush3.bf16.msra.mxu0 %v3896_v47  ;;  %3489 = vmatmul.mubr.bf16.gmra.mrb[4].mxu1 %v6105_v9  ;;  %v2549_v0 = vsel %vm1263_vm0, %v2547_v59, %v2548_v49 }
 0x118   :  { %3492 = vmatprep.mubr.bf16.mxu1 %v6107_v58  ;;  %3665 = vmatpush3.bf16.msra.mxu1 %v3897_v34  ;;  %v2559_v38 = vpack.c.bf16 %v2549_v0, %v5687_v17 }
 0x119   :  { %3640 = vmatprep.subr.bf16.mxu0 %v3898_v8  ;;  %3666 = vmatprep.subr.bf16.mxu1 %v3899_v23 }
 0x11a   :  { %3625 = vmatmul.mubr.bf16.gmra.mrb[12].mxu0 %v2361_v61 }
 0x11b   :  { %3641 = vmatpush3.bf16.msra.mxu0 %v3898_v8  ;;  %3644 = vmatprep.mubr.bf16.mxu0 %v2552_v36 }
 0x11c   :  { %3667 = vmatpush3.bf16.msra.mxu1 %v3899_v23  ;;  %3642 = vmatprep.subr.bf16.mxu0 %v3900_v14 }
 0x11d   :  { %3668 = vmatprep.subr.bf16.mxu1 %v3901_v31 }
 0x11f   :  { %3643 = vmatpush3.bf16.msra.mxu0 %v3900_v14  ;;  %3493 = vmatmul.mubr.bf16.gmra.mrb[8].mxu1 %v6108_v24 }
 0x120   :  { %3496 = vmatprep.mubr.bf16.mxu1 %v6111_v1  ;;  %3669 = vmatpush3.bf16.msra.mxu1 %v3901_v31 }
 0x121   :  { %3670 = vmatprep.subr.bf16.mxu1 %v3902_v30 }
 0x122   :  { %3645 = vmatmul.mubr.bf16.vlgmr.msra.gmra.mrb[0].mxu0 %v2553_v62 }
 0x123   :  { %3648 = vmatprep.mubr.bf16.mxu0 %v2554_v44 }
 0x124   :  { %3671 = vmatpush3.bf16.msra.mxu1 %v3902_v30 }
 0x125   :  { %3672 = vmatprep.subr.bf16.mxu1 %v3903_v21 }
 0x127   :  { %3497 = vmatmul.mubr.bf16.gmra.mrb[12].mxu1 %v6114_v3 }
 0x128   :  { %3673 = vmatpush3.bf16.msra.mxu1 %v3903_v21  ;;  %3676 = vmatprep.mubr.bf16.mxu1 %v6115_v16 }
 0x129   :  { %3674 = vmatprep.subr.bf16.mxu1 %v3904_v29 }
 0x12a   :  { %3649 = vmatmul.mubr.bf16.gmra.mrb[4].mxu0 %v2555_v20 }
 0x12b   :  { %3652 = vmatprep.mubr.bf16.mxu0 %v2556_v37 }
 0x12c   :  { %3675 = vmatpush3.bf16.msra.mxu1 %v3904_v29 }
 0x12f   :  { %3677 = vmatmul.mubr.bf16.vlgmr.msra.gmra.mrb[16].mxu1 %v6116_v27 }
 0x130   :  { %3680 = vmatprep.mubr.bf16.mxu1 %v6117_v42 }
 0x132   :  { %3653 = vmatmul.mubr.bf16.gmra.mrb[8].mxu0 %v2557_v56 }
 0x133   :  { %3656 = vmatprep.mubr.bf16.mxu0 %v2558_v41 }
 0x137   :  { %3681 = vmatmul.mubr.bf16.gmra.mrb[20].mxu1 %v6118_v54 }
 0x138   :  { %3684 = vmatprep.mubr.bf16.mxu1 %v6119_v2 }
 0x13a   :  { %3657 = vmatmul.mubr.bf16.gmra.mrb[12].mxu0 %v2559_v38 }
 0x13f   :  { %3685 = vmatmul.mubr.bf16.gmra.mrb[24].mxu1 %v6120_v52 }
 0x140   :  { %3688 = vmatprep.mubr.bf16.mxu1 %v6121_v33 }
 0x147   :  { %3689 = vmatmul.mubr.bf16.gmra.mrb[28].mxu1 %v6122_v60 }
 0x1e2   :  { %v3486_v40 = vpop.f32.mrb[0].mxu1 }
 0x1e3   :  { %v1621_v55 = vpop.f32.mrb[1].mxu1 }
 0x1e4   :  { %v3487_v50 = vpop.f32.mrb[2].mxu1 }
 0x1e5   :  { %v1624_v53 = vpop.f32.mrb[3].mxu1 }
 0x1ea   :  { %v3490_v47 = vpop.f32.mrb[4].mxu1 }
 0x1eb   :  { %v1637_v39 = vpop.f32.mrb[5].mxu1 }
 0x1ec   :  { %v3491_v34 = vpop.f32.mrb[6].mxu1 }
 0x1ed   :  { %v1640_v17 = vpop.f32.mrb[7].mxu1 }
 0x1f2   :  { %v3494_v19 = vpop.f32.mrb[8].mxu1 }
 0x1f3   :  { %v5821_v63 = vpop.f32.mrb[9].mxu1 }
 0x1f4   :  { %v5823_v25 = vpop.f32.mrb[10].mxu1 }
 0x1f5   :  { %v5825_v7 = vpop.f32.mrb[11].mxu1  ;;  %v3646_v10 = vpop.f32.mrb[0].mxu0 }
 0x1f6   :  { %v3692_v43 = vadd.f32 %v3646_v10, %v3486_v40  ;;  %v2659_v22 = vpop.f32.mrb[1].mxu0 }
 0x1f7   :  { %v3693_v8 = vadd.f32 %v2659_v22, %v1621_v55  ;;  %v3647_v23 = vpop.f32.mrb[2].mxu0 }
 0x1f8   :  { %2740 = vst [vmem:[%s5952_s7 + $0x10] sm:$0xff] %v3692_v43  ;;  %v3694_v9 = vadd.f32 %v3647_v23, %v3487_v50  ;;  %v2662_v61 = vpop.f32.mrb[3].mxu0  ;;  %v2954_v15 = vmul.f32 %v3692_v43, %v3692_v43 }
 0x1f9   :  { %2738 = vst [vmem:[%s5952_s7] sm:$0xff] %v3693_v8  ;;  %v3695_v46 = vadd.f32 %v2662_v61, %v1624_v53  ;;  %v2952_v14 = vmul.f32 %v3693_v8, %v3693_v8 }
 0x1fa   :  { %2741 = vst [vmem:[%s5952_s7 + $0x18] sm:$0xff] %v3694_v9  ;;  %v5836_v58 = vpop.f32.mrb[12].mxu1  ;;  %v2955_v1 = vmul.f32 %v3694_v9, %v3694_v9 }
 0x1fb   :  { %2739 = vst [vmem:[%s5952_s7 + $0x8] sm:$0xff] %v3695_v46  ;;  %v2931_v13 = vadd.f32 %v3695_v46, %v3693_v8  ;;  %v2953_v36 = vmul.f32 %v3695_v46, %v3695_v46  ;;  %v5841_v31 = vpop.f32.mrb[13].mxu1 }
 0x1fc   :  { %v5843_v48 = vpop.f32.mrb[14].mxu1 }
 0x1fd   :  { %v2932_v30 = vadd.f32 %v3692_v43, %v2931_v13  ;;  %v2968_v12 = vadd.f32 %v2953_v36, %v2952_v14  ;;  %v5845_v24 = vpop.f32.mrb[15].mxu1  ;;  %v3650_v62 = vpop.f32.mrb[4].mxu0 }
 0x1fe   :  { %v3696_v32 = vadd.f32 %v3650_v62, %v3490_v47  ;;  %v2675_v51 = vpop.f32.mrb[5].mxu0 }
 0x1ff   :  { %v2969_v57 = vadd.f32 %v2968_v12, %v2954_v15  ;;  %v3697_v18 = vadd.f32 %v2675_v51, %v1637_v39  ;;  %v2933_v44 = vadd.f32 %v3694_v9, %v2932_v30  ;;  %v3651_v21 = vpop.f32.mrb[6].mxu0 }
 0x200   :  { %2744 = vst [vmem:[%s5952_s7 + $0x30] sm:$0xff] %v3696_v32  ;;  %v3698_v45 = vadd.f32 %v3651_v21, %v3491_v34  ;;  %v2678_v35 = vpop.f32.mrb[7].mxu0  ;;  %v2958_v27 = vmul.f32 %v3696_v32, %v3696_v32 }
 0x201   :  { %2742 = vst [vmem:[%s5952_s7 + $0x20] sm:$0xff] %v3697_v18  ;;  %v2934_v26 = vadd.f32 %v3697_v18, %v2933_v44  ;;  %v2956_v29 = vmul.f32 %v3697_v18, %v3697_v18  ;;  %v2970_v5 = vadd.f32 %v2969_v57, %v2955_v1  ;;  %v3699_v11 = vadd.f32 %v2678_v35, %v1640_v17 }
 0x202   :  { %2745 = vst [vmem:[%s5952_s7 + $0x38] sm:$0xff] %v3698_v45  ;;  %v3678_v3 = vpop.f32.mrb[16].mxu1  ;;  %v2959_v54 = vmul.f32 %v3698_v45, %v3698_v45 }
 0x203   :  { %v2971_v16 = vadd.f32 %v2970_v5, %v2956_v29  ;;  %2743 = vst [vmem:[%s5952_s7 + $0x28] sm:$0xff] %v3699_v11  ;;  %v2935_v20 = vadd.f32 %v3699_v11, %v2934_v26  ;;  %v2957_v6 = vmul.f32 %v3699_v11, %v3699_v11  ;;  %2917 = vst [vmem:[%s5953_s8 + $0x10] sm:$0xff] %v3678_v3  ;;  %v2852_v37 = vpop.f32.mrb[17].mxu1 }
 0x204   :  { %2915 = vst [vmem:[%s5953_s8] sm:$0xff] %v2852_v37  ;;  %v3679_v28 = vpop.f32.mrb[18].mxu1 }
 0x205   :  { %v2936_v42 = vadd.f32 %v3696_v32, %v2935_v20  ;;  %v2972_v56 = vadd.f32 %v2971_v16, %v2957_v6  ;;  %2918 = vst [vmem:[%s5953_s8 + $0x18] sm:$0xff] %v3679_v28  ;;  %v3654_v49 = vpop.f32.mrb[8].mxu0  ;;  %v2855_v41 = vpop.f32.mrb[19].mxu1 }
 0x206   :  { %v3700_v59 = vadd.f32 %v3654_v49, %v3494_v19  ;;  %2916 = vst [vmem:[%s5953_s8 + $0x8] sm:$0xff] %v2855_v41  ;;  %v2691_v0 = vpop.f32.mrb[9].mxu0 }
 0x207   :  { %v2973_v2 = vadd.f32 %v2972_v56, %v2958_v27  ;;  %v3701_v38 = vadd.f32 %v2691_v0, %v5821_v63  ;;  %v2937_v52 = vadd.f32 %v3698_v45, %v2936_v42  ;;  %v3655_v33 = vpop.f32.mrb[10].mxu0 }
 0x208   :  { %2748 = vst [vmem:[%s5952_s7 + $0x50] sm:$0xff] %v3700_v59  ;;  %v3702_v60 = vadd.f32 %v3655_v33, %v5823_v25  ;;  %v2694_v4 = vpop.f32.mrb[11].mxu0  ;;  %v2962_v25 = vmul.f32 %v3700_v59, %v3700_v59 }
 0x209   :  { %2746 = vst [vmem:[%s5952_s7 + $0x40] sm:$0xff] %v3701_v38  ;;  %v2938_v40 = vadd.f32 %v3701_v38, %v2937_v52  ;;  %v2960_v55 = vmul.f32 %v3701_v38, %v3701_v38  ;;  %v2974_v50 = vadd.f32 %v2973_v2, %v2959_v54  ;;  %v3703_v53 = vadd.f32 %v2694_v4, %v5825_v7 }
 0x20a   :  { %2749 = vst [vmem:[%s5952_s7 + $0x58] sm:$0xff] %v3702_v60  ;;  %v3682_v47 = vpop.f32.mrb[20].mxu1  ;;  %v2963_v9 = vmul.f32 %v3702_v60, %v3702_v60 }
 0x20b   :  { %v2975_v39 = vadd.f32 %v2974_v50, %v2960_v55  ;;  %2747 = vst [vmem:[%s5952_s7 + $0x48] sm:$0xff] %v3703_v53  ;;  %v2939_v34 = vadd.f32 %v3703_v53, %v2938_v40  ;;  %v2961_v17 = vmul.f32 %v3703_v53, %v3703_v53  ;;  %2921 = vst [vmem:[%s5953_s8 + $0x30] sm:$0xff] %v3682_v47  ;;  %v2868_v19 = vpop.f32.mrb[21].mxu1 }
 0x20c   :  { %2919 = vst [vmem:[%s5953_s8 + $0x20] sm:$0xff] %v2868_v19  ;;  %v3683_v63 = vpop.f32.mrb[22].mxu1 }
 0x20d   :  { %v2940_v7 = vadd.f32 %v3700_v59, %v2939_v34  ;;  %v2976_v10 = vadd.f32 %v2975_v39, %v2961_v17  ;;  %2922 = vst [vmem:[%s5953_s8 + $0x38] sm:$0xff] %v3683_v63  ;;  %v3658_v43 = vpop.f32.mrb[12].mxu0  ;;  %v2871_v22 = vpop.f32.mrb[23].mxu1 }
 0x20e   :  { %v3704_v8 = vadd.f32 %v3658_v43, %v5836_v58  ;;  %2920 = vst [vmem:[%s5953_s8 + $0x28] sm:$0xff] %v2871_v22  ;;  %v2707_v23 = vpop.f32.mrb[13].mxu0 }
 0x20f   :  { %v2977_v61 = vadd.f32 %v2976_v10, %v2962_v25  ;;  %v3705_v46 = vadd.f32 %v2707_v23, %v5841_v31  ;;  %v2941_v14 = vadd.f32 %v3702_v60, %v2940_v7  ;;  %v3659_v13 = vpop.f32.mrb[14].mxu0 }
 0x210   :  { %2752 = vst [vmem:[%s5952_s7 + $0x70] sm:$0xff] %v3704_v8  ;;  %v3706_v36 = vadd.f32 %v3659_v13, %v5843_v48  ;;  %v2710_v15 = vpop.f32.mrb[15].mxu0  ;;  %v2966_v57 = vmul.f32 %v3704_v8, %v3704_v8 }
 0x211   :  { %2750 = vst [vmem:[%s5952_s7 + $0x60] sm:$0xff] %v3705_v46  ;;  %v2942_v58 = vadd.f32 %v3705_v46, %v2941_v14  ;;  %v2964_v30 = vmul.f32 %v3705_v46, %v3705_v46  ;;  %v2978_v12 = vadd.f32 %v2977_v61, %v2963_v9  ;;  %v3707_v62 = vadd.f32 %v2710_v15, %v5845_v24 }
 0x212   :  { %2753 = vst [vmem:[%s5952_s7 + $0x78] sm:$0xff] %v3706_v36  ;;  %v3686_v31 = vpop.f32.mrb[24].mxu1  ;;  %v2967_v45 = vmul.f32 %v3706_v36, %v3706_v36 }
 0x213   :  { %v2979_v32 = vadd.f32 %v2978_v12, %v2964_v30  ;;  %2751 = vst [vmem:[%s5952_s7 + $0x68] sm:$0xff] %v3707_v62  ;;  %v2943_v48 = vadd.f32 %v3707_v62, %v2942_v58  ;;  %v2965_v51 = vmul.f32 %v3707_v62, %v3707_v62  ;;  %2925 = vst [vmem:[%s5953_s8 + $0x50] sm:$0xff] %v3686_v31  ;;  %v2884_v1 = vpop.f32.mrb[25].mxu1 }
 0x214   :  { %2923 = vst [vmem:[%s5953_s8 + $0x40] sm:$0xff] %v2884_v1  ;;  %v3687_v24 = vpop.f32.mrb[26].mxu1 }
 0x215   :  { %v2944_v18 = vadd.f32 %v3704_v8, %v2943_v48  ;;  %v2980_v44 = vadd.f32 %v2979_v32, %v2965_v51  ;;  %2926 = vst [vmem:[%s5953_s8 + $0x58] sm:$0xff] %v3687_v24  ;;  %v2887_v21 = vpop.f32.mrb[27].mxu1 }
 0x216   :  { %2924 = vst [vmem:[%s5953_s8 + $0x48] sm:$0xff] %v2887_v21 }
 0x217   :  { %v2945_v35 = vadd.f32 %v3706_v36, %v2944_v18  ;;  %v2981_v26 = vadd.f32 %v2980_v44, %v2966_v57 }
 0x219   :  { %v2946_v29 = vrot.slane %v2945_v35, 4  ;;  %v2982_v5 = vadd.f32 %v2981_v26, %v2967_v45 }
 0x21a   :  { %v3690_v11 = vpop.f32.mrb[28].mxu1 }
 0x21b   :  { %v2947_v3 = vadd.f32 %v2946_v29, %v2945_v35  ;;  %v2983_v16 = vrot.slane %v2982_v5, 4  ;;  %2929 = vst [vmem:[%s5953_s8 + $0x70] sm:$0xff] %v3690_v11  ;;  %v2900_v20 = vpop.f32.mrb[29].mxu1 }
 0x21c   :  { %2927 = vst [vmem:[%s5953_s8 + $0x60] sm:$0xff] %v2900_v20  ;;  %v3691_v6 = vpop.f32.mrb[30].mxu1 }
 0x21d   :  { %v2948_v37 = vrot.slane %v2947_v3, 2  ;;  %v2984_v28 = vadd.f32 %v2983_v16, %v2982_v5  ;;  %2930 = vst [vmem:[%s5953_s8 + $0x78] sm:$0xff] %v3691_v6  ;;  %v2903_v27 = vpop.f32.mrb[31].mxu1 }
 0x21e   :  { %2928 = vst [vmem:[%s5953_s8 + $0x68] sm:$0xff] %v2903_v27 }
 0x21f   :  { %v2949_v42 = vadd.f32 %v2948_v37, %v2947_v3  ;;  %v2985_v56 = vrot.slane %v2984_v28, 2 }
 0x221   :  { %v2950_v49 = vrot.slane %v2949_v42, 1  ;;  %v2986_v41 = vadd.f32 %v2985_v56, %v2984_v28 }
 0x223   :  { %v2951_v59 = vadd.f32 %v2950_v49, %v2949_v42  ;;  %v2987_v0 = vrot.slane %v2986_v41, 1 }
 0x225   :  { %v2988_v54 = vadd.f32 %v2987_v0, %v2986_v41  ;;  %2990 = vst [vmem:[%s5951_s9] sm:$0x1] %v2951_v59 }
 0x227   :  { %2991 = vst [vmem:[%s5951_s9 + $0x1] sm:$0x1] %v2988_v54 }

// kernel: network_block_forward.9
= control target key start
LH: loop header
LB: loop body
LE: loop exit
PB: predicated region body
PF: predicated region fallthrough
CT: control target
= control target key end

     0   :  { %v3124_v2 = vmov 0.0   ;;  %v3125_v24 = vmov 1966171168   ;;  %v44_v26 = vlaneseq  ;;  %vm306_vm0 = vcmask 1040384   ;;  %s4045_s0 = inlined_call_operand.vmem [shape: f32[2,8,8,128], index: 0, kind: input, shape index: {}]   ;;  %s4046_s1 = inlined_call_operand.vmem [shape: f32[1,8,128], index: 1, kind: input, shape index: {}]   ;;  %s4047_s2 = inlined_call_operand.vmem [shape: f32[1,128], index: 2, kind: input, shape index: {}]   ;;  %s4048_s3 = inlined_call_operand.vmem [shape: f32[1,128], index: 3, kind: input, shape index: {}]   ;;  %s4049_s4 = inlined_call_operand.vmem [shape: bf16[9,128,128], index: 4, kind: input, shape index: {}]   ;;  %s4050_s5 = inlined_call_operand.vmem [shape: f32[2,64,128], index: 5, kind: input, shape index: {}]   ;;  %s4051_s6 = inlined_call_operand.vmem [shape: f32[2,64,128], index: 6, kind: output, shape index: {0}]   ;;  %s4052_s7 = inlined_call_operand.hbm [shape: f32[1,8,128], index: 7, kind: output, shape index: {1}]  }
   0x1   :  { %v3025_v0 = vld [vmem:[%s4049_s4 + $0x100] sm:$0xff]   ;;  %138 = vst [vmem:[#allocation2 + $0x8] sm:$0xff] %v3124_v2  ;;  %139 = vst [vmem:[#allocation2 + $0x10] sm:$0x1] %v3124_v2  ;;  %v3027_v3 = vld [vmem:[%s4049_s4 + $0x108] sm:$0xff]   ;;  %v42_v25 = vunpack.c.l.s4 %v3125_v24  ;;  %vm726_vm1 = vcmask 1046528  }
   0x2   :  { %v3026_v1 = vld [vmem:[%s4049_s4 + $0x40] sm:$0xff]   ;;  %142 = vst [vmem:[#allocation2 + $0x28] sm:$0x1] %v3124_v2  ;;  %145 = vst [vmem:[#allocation2 + $0x40] sm:$0x1] %v3124_v2  ;;  %2718 = vmatprep.subr.bf16.mxu0 %v3025_v0  ;;  %v3028_v4 = vld [vmem:[%s4049_s4 + $0x48] sm:$0xff]  }
   0x3   :  { %148 = vst [vmem:[#allocation2 + $0x58] sm:$0x1] %v3124_v2  ;;  %151 = vst [vmem:[#allocation2 + $0x70] sm:$0x1] %v3124_v2  ;;  %2590 = vmatprep.subr.bf16.mxu1 %v3026_v1  ;;  %2719 = vmatpush3.bf16.msra.mxu0 %v3025_v0  ;;  %v3029_v5 = vld [vmem:[%s4049_s4 + $0x110] sm:$0xff]   ;;  %v3031_v7 = vld [vmem:[%s4049_s4 + $0x118] sm:$0xff]   ;;  %v43_v29 = vunpack.c.0.s8 %v42_v25 }
   0x4   :  { %154 = vst [vmem:[#allocation2 + $0x88] sm:$0x1] %v3124_v2  ;;  %157 = vst [vmem:[#allocation2 + $0xa0] sm:$0x1] %v3124_v2  ;;  %2591 = vmatpush3.bf16.msra.mxu1 %v3026_v1  ;;  %2720 = vmatprep.subr.bf16.mxu0 %v3027_v3  ;;  %v3030_v6 = vld [vmem:[%s4049_s4 + $0x50] sm:$0xff]   ;;  %v3032_v8 = vld [vmem:[%s4049_s4 + $0x58] sm:$0xff]  }
   0x5   :  { %160 = vst [vmem:[#allocation2 + $0xb8] sm:$0x1] %v3124_v2  ;;  %163 = vst [vmem:[#allocation2 + $0xd0] sm:$0x1] %v3124_v2  ;;  %2592 = vmatprep.subr.bf16.mxu1 %v3028_v4  ;;  %v3033_v9 = vld [vmem:[%s4049_s4 + $0x120] sm:$0xff]   ;;  %v3035_v11 = vld [vmem:[%s4049_s4 + $0x128] sm:$0xff]  }
   0x6   :  { %166 = vst [vmem:[#allocation2 + $0xe8] sm:$0x1] %v3124_v2  ;;  %169 = vst [vmem:[#allocation2 + $0x100] sm:$0x1] %v3124_v2  ;;  %v3034_v10 = vld [vmem:[%s4049_s4 + $0x60] sm:$0xff]   ;;  %v3036_v13 = vld [vmem:[%s4049_s4 + $0x68] sm:$0xff]  }
   0x7   :  { %172 = vst [vmem:[#allocation2 + $0x118] sm:$0x1] %v3124_v2  ;;  %175 = vst [vmem:[#allocation2 + $0x130] sm:$0x1] %v3124_v2  ;;  %2721 = vmatpush3.bf16.msra.mxu0 %v3027_v3  ;;  %v27_v12 = vld [vmem:[%s4046_s1] sm:$0xff]  ;;  %v3037_v16 = vld [vmem:[%s4049_s4 + $0x130] sm:$0xff]  }
   0x8   :  { %178 = vst [vmem:[#allocation2 + $0x148] sm:$0x1] %v3124_v2  ;;  %181 = vst [vmem:[#allocation2 + $0x160] sm:$0x1] %v3124_v2  ;;  %2593 = vmatpush3.bf16.msra.mxu1 %v3028_v4  ;;  %2722 = vmatprep.subr.bf16.mxu0 %v3029_v5  ;;  %v30_v14 = vmul.f32 0.0078125, %v27_v12  ;;  %v3038_v17 = vld [vmem:[%s4049_s4 + $0x70] sm:$0xff]  }
   0x9   :  { %184 = vst [vmem:[#allocation2 + $0x178] sm:$0x1] %v3124_v2  ;;  %187 = vst [vmem:[#allocation2 + $0x190] sm:$0x1] %v3124_v2  ;;  %2594 = vmatprep.subr.bf16.mxu1 %v3030_v6  ;;  %v3039_v20 = vld [vmem:[%s4049_s4 + $0x138] sm:$0xff]   ;;  %v3243_v27 = vld [vmem:[%s4049_s4 + $0x140] sm:$0xff]  }
   0xa   :  { %190 = vst [vmem:[#allocation2 + $0x1a8] sm:$0x1] %v3124_v2  ;;  %193 = vst [vmem:[#allocation2 + $0x1c0] sm:$0x1] %v3124_v2  ;;  %v31_v15 = vmul.f32 %v30_v14, %v30_v14  ;;  %v3040_v21 = vld [vmem:[%s4049_s4 + $0x78] sm:$0xff]   ;;  %v3248_v28 = vld [vmem:[%s4049_s4] sm:$0xff]  }
   0xb   :  { %196 = vst [vmem:[#allocation2 + $0x1d8] sm:$0x1] %v3124_v2  ;;  %2225 = vst [vmem:[#allocation3] sm:$0xff] %v3124_v2  ;;  %2723 = vmatpush3.bf16.msra.mxu0 %v3029_v5  ;;  %v45_v30 = vshrl.u32 %v44_v26, 7  ;;  %v37_v35 = vld [vmem:[%s4047_s2] sm:$0x1] }
   0xc   :  { %2595 = vmatpush3.bf16.msra.mxu1 %v3030_v6  ;;  %2724 = vmatprep.subr.bf16.mxu0 %v3031_v7  ;;  %v33_v18 = vrot.slane %v31_v15, 7  ;;  %v58_v38 = vld [vmem:[%s4048_s3] sm:$0x1]  ;;  %v62_v40 = vld [vmem:[%s4045_s0 + $0x8] sm:$0xff]  ;;  %v63_v42 = vld [vmem:[%s4045_s0 + $0x10] sm:$0xff] }
   0xd   :  { %2596 = vmatprep.subr.bf16.mxu1 %v3032_v8  ;;  %v46_v31 = vsub.s32 %v43_v29, %v45_v30  ;;  %v80_v37 = vsub.s32 0, %v45_v30  ;;  %v61_v39 = vld [vmem:[%s4045_s0] sm:$0xff]  ;;  %v64_v43 = vld [vmem:[%s4045_s0 + $0x18] sm:$0xff]  ;;  %v66_v45 = vld [vmem:[%s4045_s0 + $0x28] sm:$0xff] }
   0xe   :  { %v35_v19 = vsub.f32 %v30_v14, %v33_v18  ;;  %v65_v44 = vld [vmem:[%s4045_s0 + $0x20] sm:$0xff]  ;;  %v67_v48 = vld [vmem:[%s4045_s0 + $0x30] sm:$0xff]  ;;  %v68_v49 = vld [vmem:[%s4045_s0 + $0x38] sm:$0xff] }
   0xf   :  { %2725 = vmatpush3.bf16.msra.mxu0 %v3031_v7  ;;  %v69_v54 = vld [vmem:[%s4045_s0 + $0x40] sm:$0xff]  ;;  %v70_v3 = vld [vmem:[%s4045_s0 + $0x48] sm:$0xff] }
  0x10   :  { %2597 = vmatpush3.bf16.msra.mxu1 %v3032_v8  ;;  %2726 = vmatprep.subr.bf16.mxu0 %v3033_v9  ;;  %v36_v22 = vmax.f32 %v35_v19, 0.0  ;;  %v71_v8 = vld [vmem:[%s4045_s0 + $0x50] sm:$0xff]  ;;  %v74_v15 = vld [vmem:[%s4045_s0 + $0x68] sm:$0xff] }
  0x11   :  { %2598 = vmatprep.subr.bf16.mxu1 %v3034_v10  ;;  %v3044_v26 = vld [vmem:[%s4049_s4 + $0x8] sm:$0xff]  }
  0x12   :  { %v38_v23 = vadd.f32 1e-05, %v36_v22 }
  0x13   :  { %2727 = vmatpush3.bf16.msra.mxu0 %v3033_v9  ;;  %v72_v9 = vld [vmem:[%s4045_s0 + $0x58] sm:$0xff] }
  0x14   :  { %2599 = vmatpush3.bf16.msra.mxu1 %v3034_v10  ;;  %2728 = vmatprep.subr.bf16.mxu0 %v3035_v11  ;;  %3097 = vrsqrt.f32 %v38_v23 }
  0x15   :  { %2600 = vmatprep.subr.bf16.mxu1 %v3036_v13 }
  0x17   :  { %2729 = vmatpush3.bf16.msra.mxu0 %v3035_v11 }
  0x18   :  { %2601 = vmatpush3.bf16.msra.mxu1 %v3036_v13  ;;  %2730 = vmatprep.subr.bf16.mxu0 %v3037_v16 }
  0x19   :  { %2602 = vmatprep.subr.bf16.mxu1 %v3038_v17 }
  0x1b   :  { %2731 = vmatpush3.bf16.msra.mxu0 %v3037_v16 }
  0x1c   :  { %2603 = vmatpush3.bf16.msra.mxu1 %v3038_v17  ;;  %2732 = vmatprep.subr.bf16.mxu0 %v3039_v20 }
  0x1d   :  { %2604 = vmatprep.subr.bf16.mxu1 %v3040_v21 }
  0x1e   :  { %v3098_v32 = vpop.eup %3097 }
  0x1f   :  { %2733 = vmatpush3.bf16.msra.mxu0 %v3039_v20  ;;  %v47_v33 = vrot.slane %v3098_v32, %v46_v31  ;;  %v3043_v32 = vld [vmem:[%s4049_s4 + $0x148] sm:$0xff]  }
  0x20   :  { %2605 = vmatpush3.bf16.msra.mxu1 %v3040_v21  ;;  %2750 = vmatprep.subr.bf16.mxu0 %v3243_v27 }
  0x21   :  { %2622 = vmatprep.subr.bf16.mxu1 %v3248_v28  ;;  %v48_v34 = vcombine.high %v47_v33, %v47_v33 }
  0x23   :  { %v55_v36 = vrot.slane %v48_v34, %v46_v31 }
  0x25   :  { %v57_v41 = vmul.f32 %v55_v36, %v37_v35  ;;  %v75_v36 = vld [vmem:[%s4045_s0 + $0x70] sm:$0xff] }
  0x27   :  { %v59_v46 = vmul.f32 %v57_v41, %v30_v14  ;;  %v3276_v47 = vrot.slane %v57_v41, %v80_v37  ;;  %v73_v14 = vld [vmem:[%s4045_s0 + $0x60] sm:$0xff]  ;;  %v3046_v41 = vld [vmem:[%s4049_s4 + $0x10] sm:$0xff]  }
  0x29   :  { %v60_v50 = vsub.f32 %v58_v38, %v59_v46  ;;  %v83_v51 = vmul.f32 %v3276_v47, %v61_v39  ;;  %v84_v52 = vmul.f32 %v3276_v47, %v62_v40  ;;  %v85_v53 = vmul.f32 %v3276_v47, %v63_v42  ;;  %v76_v40 = vld [vmem:[%s4045_s0 + $0x78] sm:$0xff] }
  0x2a   :  { %v86_v55 = vmul.f32 %v3276_v47, %v64_v43  ;;  %v87_v56 = vmul.f32 %v3276_v47, %v65_v44  ;;  %v88_v57 = vmul.f32 %v3276_v47, %v66_v45  ;;  %v89_v58 = vmul.f32 %v3276_v47, %v67_v48  ;;  %v3045_v44 = vld [vmem:[%s4049_s4 + $0x150] sm:$0xff]  }
  0x2b   :  { %v3294_v59 = vrot.slane %v60_v50, %v80_v37  ;;  %v90_v60 = vmul.f32 %v3276_v47, %v68_v49  ;;  %v91_v61 = vmul.f32 %v3276_v47, %v69_v54  ;;  %v92_v21 = vmul.f32 %v3276_v47, %v70_v3 }
  0x2c   :  { %v93_v22 = vmul.f32 %v3276_v47, %v71_v8  ;;  %v94_v23 = vmul.f32 %v3276_v47, %v72_v9  ;;  %v95_v29 = vmul.f32 %v3276_v47, %v73_v14  ;;  %v96_v30 = vmul.f32 %v3276_v47, %v74_v15  ;;  %v228_v8 = vld [vmem:[#allocation2 + $0x70] sm:$0x1] }
  0x2d   :  { %v105_v62 = vadd.f32 %v3294_v59, %v83_v51  ;;  %v106_v63 = vadd.f32 %v3294_v59, %v84_v52  ;;  %v107_v0 = vadd.f32 %v3294_v59, %v85_v53  ;;  %v108_v1 = vadd.f32 %v3294_v59, %v86_v55  ;;  %v3048_v55 = vld [vmem:[%s4049_s4 + $0x18] sm:$0xff]  }
  0x2e   :  { %v109_v4 = vadd.f32 %v3294_v59, %v87_v56  ;;  %v110_v5 = vadd.f32 %v3294_v59, %v88_v57  ;;  %v111_v6 = vadd.f32 %v3294_v59, %v89_v58  ;;  %v112_v7 = vadd.f32 %v3294_v59, %v90_v60  ;;  %v3047_v56 = vld [vmem:[%s4049_s4 + $0x158] sm:$0xff]  }
  0x2f   :  { %v3315_v10 = vmax.f32 %v105_v62, 0.0  ;;  %v3317_v11 = vmax.f32 %v106_v63, 0.0  ;;  %v3319_v12 = vmax.f32 %v107_v0, 0.0  ;;  %v3321_v13 = vmax.f32 %v108_v1, 0.0  ;;  %v3049_v62 = vld [vmem:[%s4049_s4 + $0x160] sm:$0xff]  }
  0x30   :  { %v3329_v16 = vmax.f32 %v109_v4, 0.0  ;;  %v3331_v17 = vmax.f32 %v110_v5, 0.0  ;;  %v3333_v18 = vmax.f32 %v111_v6, 0.0  ;;  %v3335_v19 = vmax.f32 %v112_v7, 0.0  ;;  %v219_v0 = vld [vmem:[#allocation2 + $0x28] sm:$0x1] }
  0x31   :  { %v395_v20 = vpack.c.bf16 %v3315_v10, %v3124_v2  ;;  %v1175_v24 = vpack.c.bf16 %v3317_v11, %v3315_v10  ;;  %v3346_v25 = vpack.c.bf16 %v3319_v12, %v3317_v11  ;;  %v1176_v31 = vpack.c.bf16 %v3321_v13, %v3319_v12  ;;  %v222_v1 = vld [vmem:[#allocation2 + $0x40] sm:$0x1]  ;;  %v3051_v5 = vld [vmem:[%s4049_s4 + $0x168] sm:$0xff]   ;;  %v225_v6 = vld [vmem:[#allocation2 + $0x58] sm:$0x1] }
  0x32   :  { %v3360_v33 = vpack.c.bf16 %v3329_v16, %v3321_v13  ;;  %v1177_v34 = vpack.c.bf16 %v3331_v17, %v3329_v16  ;;  %v3367_v35 = vpack.c.bf16 %v3333_v18, %v3331_v17  ;;  %v113_v37 = vadd.f32 %v3294_v59, %v91_v61  ;;  %v3052_v7 = vld [vmem:[%s4049_s4 + $0x28] sm:$0xff]  }
  0x33   :  { %2606 = vmatprep.mubr.bf16.mxu1 %v395_v20  ;;  %2734 = vmatprep.mubr.bf16.mxu0 %v1175_v24  ;;  %v114_v38 = vadd.f32 %v3294_v59, %v92_v21  ;;  %v115_v39 = vadd.f32 %v3294_v59, %v93_v22  ;;  %v116_v42 = vadd.f32 %v3294_v59, %v94_v23  ;;  %v3419_v60 = vrot.slane %v3124_v2, 7  ;;  %v3054_v22 = vld [vmem:[%s4049_s4 + $0x30] sm:$0xff]  }
  0x34   :  { %2607 = vmatmul.mubr.bf16.vlgmr.msra.gmra.mrb[0].mxu1 %v3346_v25  ;;  %2735 = vmatmul.mubr.bf16.vlgmr.msra.gmra.mrb[0].mxu0 %v1176_v31  ;;  %v118_v43 = vadd.f32 %v3294_v59, %v96_v30  ;;  %v3390_v45 = vmax.f32 %v113_v37, 0.0  ;;  %v97_v48 = vmul.f32 %v3276_v47, %v75_v36  ;;  %v98_v52 = vmul.f32 %v3276_v47, %v76_v40  ;;  %v231_v30 = vld [vmem:[#allocation2 + $0x88] sm:$0x1]  ;;  %v234_v31 = vld [vmem:[#allocation2 + $0xa0] sm:$0x1] }
  0x35   :  { %2623 = vmatpush3.bf16.msra.mxu1 %v3248_v28  ;;  %2751 = vmatpush3.bf16.msra.mxu0 %v3243_v27  ;;  %v117_v28 = vadd.f32 %v3294_v59, %v95_v29  ;;  %v3392_v27 = vmax.f32 %v114_v38, 0.0  ;;  %v3394_v46 = vmax.f32 %v115_v39, 0.0  ;;  %v3397_v49 = vmax.f32 %v116_v42, 0.0  ;;  %v3053_v29 = vld [vmem:[%s4049_s4 + $0x170] sm:$0xff]  }
  0x36   :  { %2624 = vmatprep.subr.bf16.mxu1 %v3044_v26  ;;  %2752 = vmatprep.subr.bf16.mxu0 %v3043_v32  ;;  %v3401_v51 = vmax.f32 %v118_v43, 0.0  ;;  %v1178_v53 = vpack.c.bf16 %v3335_v19, %v3333_v18  ;;  %v119_v54 = vadd.f32 %v3294_v59, %v97_v48  ;;  %v399_v47 = vpack.c.bf16 %v3390_v45, %v3124_v2  ;;  %v3056_v43 = vld [vmem:[%s4049_s4 + $0x38] sm:$0xff]  }
  0x37   :  { %2610 = vmatprep.mubr.bf16.mxu1 %v3360_v33  ;;  %2738 = vmatprep.mubr.bf16.mxu0 %v1177_v34  ;;  %v3399_v50 = vmax.f32 %v117_v28, 0.0  ;;  %v120_v58 = vadd.f32 %v3294_v59, %v98_v52  ;;  %v1179_v61 = vpack.c.bf16 %v3392_v27, %v3390_v45  ;;  %v3050_v59 = vld [vmem:[%s4049_s4 + $0x20] sm:$0xff]   ;;  %v3434_v3 = vpack.c.bf16 %v3394_v46, %v3392_v27  ;;  %v3462_v34 = vld [vmem:[#allocation2 + $0xd0] sm:$0x1]  ;;  %v3055_v28 = vld [vmem:[%s4049_s4 + $0x178] sm:$0xff]  }
  0x38   :  { %v3415_v57 = vmax.f32 %v119_v54, 0.0  ;;  %v1180_v4 = vpack.c.bf16 %v3397_v49, %v3394_v46  ;;  %v731_v14 = vrot.slane %v219_v0, 1  ;;  %v734_v15 = vrot.slane %v222_v1, 1  ;;  %v3057_v0 = vld [vmem:[%s4049_s4 + $0x180] sm:$0xff]  }
  0x39   :  { %2625 = vmatpush3.bf16.msra.mxu1 %v3044_v26  ;;  %2753 = vmatpush3.bf16.msra.mxu0 %v3043_v32  ;;  %v3427_v63 = vmax.f32 %v120_v58, 0.0  ;;  %v3446_v9 = vpack.c.bf16 %v3399_v50, %v3397_v49  ;;  %v311_v20 = vrot.slane %v3315_v10, 7  ;;  %v1181_v21 = vpack.c.bf16 %v3401_v51, %v3399_v50  ;;  %v3460_v32 = vld [vmem:[#allocation2 + $0xb8] sm:$0x1] }
  0x3a   :  { %2626 = vmatprep.subr.bf16.mxu1 %v3046_v41  ;;  %2754 = vmatprep.subr.bf16.mxu0 %v3045_v44  ;;  %v737_v23 = vrot.slane %v225_v6, 1  ;;  %v730_v24 = vrot.slane %v3315_v10, 1  ;;  %v733_v26 = vrot.slane %v3317_v11, 1  ;;  %v314_v36 = vrot.slane %v3317_v11, 7  ;;  %v249_v6 = vld [vmem:[#allocation2 + $0x118] sm:$0x1] }
  0x3b   :  { %v317_v10 = vrot.slane %v3319_v12, 7  ;;  %v739_v37 = vrot.slane %v3321_v13, 1  ;;  %v740_v38 = vrot.slane %v228_v8, 1  ;;  %v3470_v39 = vpack.c.bf16 %v3415_v57, %v3401_v51 }
  0x3c   :  { %2611 = vmatmul.mubr.bf16.gmra.mrb[4].mxu1 %v3367_v35  ;;  %2739 = vmatmul.mubr.bf16.gmra.mrb[4].mxu0 %v1178_v53  ;;  %v3474_v40 = vsel %vm306_vm0, %v3419_v60, %v311_v20  ;;  %v320_v11 = vrot.slane %v3321_v13, 7  ;;  %v1182_v42 = vpack.c.bf16 %v3427_v63, %v3415_v57  ;;  %v3490_v48 = vsel %vm726_vm1, %v733_v26, %v734_v15  ;;  %v252_v20 = vld [vmem:[#allocation2 + $0x130] sm:$0x1] }
  0x3d   :  { %2627 = vmatpush3.bf16.msra.mxu1 %v3046_v41  ;;  %2755 = vmatpush3.bf16.msra.mxu0 %v3045_v44  ;;  %v736_v41 = vrot.slane %v3319_v12, 1  ;;  %v3487_v44 = vsel %vm726_vm1, %v730_v24, %v731_v14  ;;  %v323_v12 = vrot.slane %v3329_v16, 7  ;;  %v742_v13 = vrot.slane %v3329_v16, 1 }
  0x3e   :  { %2628 = vmatprep.subr.bf16.mxu1 %v3048_v55  ;;  %2756 = vmatprep.subr.bf16.mxu0 %v3047_v56  ;;  %v743_v52 = vrot.slane %v231_v30, 1  ;;  %v745_v53 = vrot.slane %v3331_v17, 1  ;;  %v746_v54 = vrot.slane %v234_v31, 1  ;;  %v3501_v58 = vsel %vm306_vm0, %v3419_v60, %v314_v36  ;;  %v3059_v36 = vld [vmem:[%s4049_s4 + $0x188] sm:$0xff]  }
  0x3f   :  { %2614 = vmatprep.mubr.bf16.mxu1 %v399_v47  ;;  %2742 = vmatprep.mubr.bf16.mxu0 %v1179_v61  ;;  %v1364_v47 = vrot.slane %v3462_v34, 1  ;;  %v3505_v16 = vsel %vm726_vm1, %v736_v41, %v737_v23  ;;  %v3508_v61 = vsel %vm726_vm1, %v739_v37, %v740_v38  ;;  %v3520_v1 = vsel %vm306_vm0, %v3419_v60, %v317_v10  ;;  %v3060_v10 = vld [vmem:[%s4049_s4 + $0x88] sm:$0xff]  }
  0x40   :  { %v3534_v8 = vsel %vm726_vm1, %v745_v53, %v746_v54  ;;  %v326_v14 = vrot.slane %v3331_v17, 7  ;;  %v329_v15 = vrot.slane %v3333_v18, 7  ;;  %v982_v23 = vrot.slane %v3335_v19, 7 }
  0x41   :  { %2629 = vmatpush3.bf16.msra.mxu1 %v3048_v55  ;;  %2757 = vmatpush3.bf16.msra.mxu0 %v3047_v56  ;;  %v371_v55 = vpack.c.bf16 %v3474_v40, %v3419_v60  ;;  %v749_v56 = vrot.slane %v3460_v32, 1  ;;  %v1372_v24 = vpack.c.bf16 %v3508_v61, %v3505_v16  ;;  %v3544_v26 = vpack.c.bf16 %v3520_v1, %v3501_v58 }
  0x42   :  { %2630 = vmatprep.subr.bf16.mxu1 %v3050_v59  ;;  %2758 = vmatprep.subr.bf16.mxu0 %v3049_v62  ;;  %v1363_v17 = vrot.slane %v3335_v19, 1  ;;  %v335_v31 = vrot.slane %v3390_v45, 7  ;;  %v754_v32 = vrot.slane %v3390_v45, 1  ;;  %v3564_v37 = vsel %vm306_vm0, %v3419_v60, %v329_v15 }
  0x43   :  { %v755_v38 = vrot.slane %v249_v6, 1  ;;  %v3568_v41 = vsel %vm306_vm0, %v3419_v60, %v982_v23  ;;  %v985_v45 = vrot.slane %v3427_v63, 7 }
  0x44   :  { %2615 = vmatmul.mubr.bf16.gmra.mrb[8].mxu1 %v3434_v3  ;;  %2743 = vmatmul.mubr.bf16.gmra.mrb[8].mxu0 %v1180_v4  ;;  %v3524_v4 = vsel %vm306_vm0, %v3419_v60, %v320_v11  ;;  %v243_v11 = vld [vmem:[#allocation2 + $0xe8] sm:$0x1] }
  0x45   :  { %2631 = vmatpush3.bf16.msra.mxu1 %v3050_v59  ;;  %2759 = vmatpush3.bf16.msra.mxu0 %v3049_v62  ;;  %v1371_v62 = vpack.c.bf16 %v3490_v48, %v3487_v44  ;;  %v3058_v59 = vld [vmem:[%s4049_s4 + $0x80] sm:$0xff]  }
  0x46   :  { %2632 = vmatprep.subr.bf16.mxu1 %v3052_v7  ;;  %2760 = vmatprep.subr.bf16.mxu0 %v3051_v5 }
  0x47   :  { %2618 = vmatprep.mubr.bf16.mxu1 %v3446_v9  ;;  %2746 = vmatprep.mubr.bf16.mxu0 %v1181_v21  ;;  %v748_v21 = vrot.slane %v3333_v18, 1 }
  0x49   :  { %2633 = vmatpush3.bf16.msra.mxu1 %v3052_v7  ;;  %2761 = vmatpush3.bf16.msra.mxu0 %v3051_v5  ;;  %v3528_v5 = vsel %vm306_vm0, %v3419_v60, %v323_v12  ;;  %v3531_v7 = vsel %vm726_vm1, %v742_v13, %v743_v52  ;;  %v992_v12 = vpack.c.bf16 %v3568_v41, %v3564_v37  ;;  %v273_v13 = vld [vmem:[#allocation2 + $0x1d8] sm:$0x1] }
  0x4a   :  { %2634 = vmatprep.subr.bf16.mxu1 %v3054_v22  ;;  %2762 = vmatprep.subr.bf16.mxu0 %v3053_v29  ;;  %v3550_v30 = vpack.c.bf16 %v3528_v5, %v3524_v4  ;;  %v1373_v18 = vpack.c.bf16 %v3534_v8, %v3531_v7 }
  0x4c   :  { %2619 = vmatmul.mubr.bf16.gmra.mrb[12].mxu1 %v3470_v39  ;;  %2747 = vmatmul.mubr.bf16.gmra.mrb[12].mxu0 %v1182_v42  ;;  %v3573_v42 = vsel %vm306_vm0, %v3419_v60, %v326_v14 }
  0x4d   :  { %2635 = vmatpush3.bf16.msra.mxu1 %v3054_v22  ;;  %2763 = vmatpush3.bf16.msra.mxu0 %v3053_v29  ;;  %v270_v22 = vld [vmem:[#allocation2 + $0x1c0] sm:$0x1]  ;;  %v353_v29 = vrot.slane %v3415_v57, 7 }
  0x4e   :  { %2636 = vmatprep.subr.bf16.mxu1 %v3056_v43  ;;  %2764 = vmatprep.subr.bf16.mxu0 %v3055_v28 }
  0x4f   :  { %2638 = vmatprep.mubr.bf16.mxu1 %v371_v55  ;;  %2766 = vmatprep.mubr.bf16.mxu0 %v1371_v62 }
  0x51   :  { %2637 = vmatpush3.bf16.msra.mxu1 %v3056_v43  ;;  %2765 = vmatpush3.bf16.msra.mxu0 %v3055_v28  ;;  %v757_v28 = vrot.slane %v3392_v27, 1  ;;  %v758_v43 = vrot.slane %v252_v20, 1 }
  0x52   :  { %2654 = vmatprep.subr.bf16.mxu1 %v3058_v59  ;;  %2782 = vmatprep.subr.bf16.mxu0 %v3057_v0 }
  0x53   :  { %13 = vsyncpa [#allocation4], 0  ;;  %v3581_v52 = vsel %vm306_vm0, %v3419_v60, %v353_v29  ;;  %v1366_v53 = vrot.slane %v3427_v63, 1  ;;  %v1367_v54 = vrot.slane %v270_v22, 1  ;;  %v3586_v55 = vsel %vm306_vm0, %v3419_v60, %v985_v45  ;;  %v3062_v22 = vld [vmem:[%s4049_s4 + $0x90] sm:$0xff]   ;;  %v3064_v45 = vld [vmem:[%s4049_s4 + $0x98] sm:$0xff]  }
  0x54   :  { %2639 = vmatmul.mubr.bf16.vlgmr.msra.gmra.mrb[0].mxu1 %v3544_v26  ;;  %2767 = vmatmul.mubr.bf16.vlgmr.msra.gmra.mrb[0].mxu0 %v1372_v24  ;;  %v3589_v62 = vsel %vm726_vm1, %v748_v21, %v749_v56  ;;  %v1931_v14 = vrot.slane %v3124_v2, 1  ;;  %v1932_v15 = vrot.slane %v243_v11, 1  ;;  %v3596_v20 = vpack.c.bf16 %v3564_v37, %v3573_v42  ;;  %v255_v23 = vld [vmem:[#allocation2 + $0x148] sm:$0x1]  ;;  %v258_v24 = vld [vmem:[#allocation2 + $0x160] sm:$0x1] }
  0x55   :  { %2655 = vmatpush3.bf16.msra.mxu1 %v3058_v59  ;;  %2783 = vmatpush3.bf16.msra.mxu0 %v3057_v0  ;;  %v3604_v56 = vsel %vm726_vm1, %v1363_v17, %v1364_v47  ;;  %v3608_v59 = vsel %vm306_vm0, %v3419_v60, %v335_v31  ;;  %v1935_v2 = vrot.slane %v273_v13, 1  ;;  %v3061_v0 = vld [vmem:[%s4049_s4 + $0x190] sm:$0xff]   ;;  %v3615_v21 = vsel %vm726_vm1, %v754_v32, %v755_v38 }
  0x56   :  { %2656 = vmatprep.subr.bf16.mxu1 %v3060_v10  ;;  %2784 = vmatprep.subr.bf16.mxu0 %v3059_v36  ;;  %v3618_v34 = vsel %vm726_vm1, %v757_v28, %v758_v43  ;;  %v338_v47 = vrot.slane %v3392_v27, 7  ;;  %v3622_v17 = vsel %vm726_vm1, %v1931_v14, %v1932_v15  ;;  %v341_v29 = vrot.slane %v3394_v46, 7 }
  0x57   :  { %2642 = vmatprep.mubr.bf16.mxu1 %v3550_v30  ;;  %2770 = vmatprep.mubr.bf16.mxu0 %v1373_v18  ;;  %v3626_v31 = vsel %vm726_vm1, %v1366_v53, %v1367_v54  ;;  %v3631_v38 = vsel %vm726_vm1, %v1931_v14, %v1935_v2  ;;  %v1374_v27 = vpack.c.bf16 %v3604_v56, %v3589_v62  ;;  %v261_v18 = vld [vmem:[#allocation2 + $0x178] sm:$0x1]  ;;  %v760_v28 = vrot.slane %v3394_v46, 1 }
  0x58   :  { %v761_v43 = vrot.slane %v255_v23, 1  ;;  %v763_v13 = vrot.slane %v3397_v49, 1  ;;  %v764_v53 = vrot.slane %v258_v24, 1  ;;  %v3063_v54 = vld [vmem:[%s4049_s4 + $0x198] sm:$0xff]   ;;  %v375_v14 = vpack.c.bf16 %v3608_v59, %v3419_v60 }
  0x59   :  { %2657 = vmatpush3.bf16.msra.mxu1 %v3060_v10  ;;  %2785 = vmatpush3.bf16.msra.mxu0 %v3059_v36  ;;  %v264_v10 = vld [vmem:[#allocation2 + $0x190] sm:$0x1]  ;;  %v1375_v15 = vpack.c.bf16 %v3618_v34, %v3615_v21  ;;  %v3652_v46 = vsel %vm306_vm0, %v3419_v60, %v338_v47  ;;  %v3656_v36 = vsel %vm306_vm0, %v3419_v60, %v341_v29  ;;  %v344_v2 = vrot.slane %v3397_v49, 7  ;;  %v3066_v47 = vld [vmem:[%s4049_s4 + $0xa0] sm:$0xff]  }
  0x5a   :  { %2658 = vmatprep.subr.bf16.mxu1 %v3062_v22  ;;  %2786 = vmatprep.subr.bf16.mxu0 %v3061_v0  ;;  %v347_v23 = vrot.slane %v3399_v50, 7  ;;  %v766_v24 = vrot.slane %v3399_v50, 1  ;;  %v767_v32 = vrot.slane %v261_v18, 1  ;;  %v769_v11 = vrot.slane %v3401_v51, 1  ;;  %v3065_v50 = vld [vmem:[%s4049_s4 + $0x1a0] sm:$0xff]  }
  0x5b   :  { %v770_v6 = vrot.slane %v264_v10, 1  ;;  %v3666_v29 = vsel %vm726_vm1, %v760_v28, %v761_v43  ;;  %v3669_v49 = vsel %vm726_vm1, %v763_v13, %v764_v53  ;;  %v350_v53 = vrot.slane %v3401_v51, 7  ;;  %v216_v10 = vld [vmem:[#allocation2 + $0x10] sm:$0x1]  ;;  %v3706_v51 = vld [vmem:[#allocation2 + $0x8] sm:$0xff] }
  0x5c   :  { %2643 = vmatmul.mubr.bf16.gmra.mrb[4].mxu1 %v3596_v20  ;;  %2771 = vmatmul.mubr.bf16.gmra.mrb[4].mxu0 %v1374_v27  ;;  %v3680_v27 = vsel %vm306_vm0, %v3419_v60, %v344_v2  ;;  %v3684_v18 = vsel %vm306_vm0, %v3419_v60, %v347_v23  ;;  %v1376_v28 = vpack.c.bf16 %v3669_v49, %v3666_v29  ;;  %v3070_v23 = vld [vmem:[%s4049_s4 + $0xb0] sm:$0xff]  }
  0x5d   :  { %2659 = vmatpush3.bf16.msra.mxu1 %v3062_v22  ;;  %2787 = vmatpush3.bf16.msra.mxu0 %v3061_v0  ;;  %v267_v22 = vld [vmem:[#allocation2 + $0x1a8] sm:$0x1]  ;;  %v3676_v0 = vpack.c.bf16 %v3656_v36, %v3652_v46  ;;  %v3689_v43 = vsel %vm726_vm1, %v766_v24, %v767_v32  ;;  %v3692_v13 = vsel %vm726_vm1, %v769_v11, %v770_v6  ;;  %v727_v11 = vrot.slane %v3706_v51, 1 }
  0x5e   :  { %2660 = vmatprep.subr.bf16.mxu1 %v3064_v45  ;;  %2788 = vmatprep.subr.bf16.mxu0 %v3063_v54  ;;  %v3067_v32 = vld [vmem:[%s4049_s4 + $0x1a8] sm:$0xff]   ;;  %v3704_v6 = vpack.c.bf16 %v3684_v18, %v3680_v27  ;;  %v3714_v2 = vsel %vm306_vm0, %v3419_v60, %v350_v53  ;;  %v3072_v53 = vld [vmem:[%s4049_s4 + $0xb8] sm:$0xff]  }
  0x5f   :  { %2646 = vmatprep.mubr.bf16.mxu1 %v375_v14  ;;  %2774 = vmatprep.mubr.bf16.mxu0 %v1375_v15  ;;  %v3068_v14 = vld [vmem:[%s4049_s4 + $0xa8] sm:$0xff]   ;;  %v773_v15 = vrot.slane %v267_v22, 1  ;;  %v3728_v22 = vpack.c.bf16 %v3581_v52, %v3714_v2  ;;  %v995_v37 = vpack.c.bf16 %v3714_v2, %v3684_v18 }
  0x61   :  { %2661 = vmatpush3.bf16.msra.mxu1 %v3064_v45  ;;  %2789 = vmatpush3.bf16.msra.mxu0 %v3063_v54  ;;  %v772_v45 = vrot.slane %v3415_v57, 1  ;;  %v1377_v54 = vpack.c.bf16 %v3692_v13, %v3689_v43  ;;  %v728_v57 = vrot.slane %v216_v10, 1  ;;  %v3071_v10 = vld [vmem:[%s4049_s4 + $0x1b8] sm:$0xff]  }
  0x62   :  { %2662 = vmatprep.subr.bf16.mxu1 %v3066_v47  ;;  %2790 = vmatprep.subr.bf16.mxu0 %v3065_v50 }
  0x63   :  { %v3720_v24 = vsel %vm726_vm1, %v772_v45, %v773_v15  ;;  %v3073_v15 = vld [vmem:[%s4049_s4 + $0x1c0] sm:$0xff]  }
  0x64   :  { %2647 = vmatmul.mubr.bf16.gmra.mrb[8].mxu1 %v3676_v0  ;;  %2775 = vmatmul.mubr.bf16.gmra.mrb[8].mxu0 %v1376_v28  ;;  %v1378_v28 = vpack.c.bf16 %v3626_v31, %v3720_v24 }
  0x65   :  { %2663 = vmatpush3.bf16.msra.mxu1 %v3066_v47  ;;  %2791 = vmatpush3.bf16.msra.mxu0 %v3065_v50  ;;  %v3069_v47 = vld [vmem:[%s4049_s4 + $0x1b0] sm:$0xff]   ;;  %v729_v50 = vsel %vm726_vm1, %v727_v11, %v728_v57  ;;  %v3075_v57 = vld [vmem:[%s4049_s4 + $0x1c8] sm:$0xff]  }
  0x66   :  { %2664 = vmatprep.subr.bf16.mxu1 %v3068_v14  ;;  %2792 = vmatprep.subr.bf16.mxu0 %v3067_v32  ;;  %v791_v45 = vpack.c.bf16 %v3487_v44, %v729_v50  ;;  %v246_v44 = vld [vmem:[#allocation2 + $0x100] sm:$0x1]  ;;  %v3084_v50 = vld [vmem:[%s4049_s4 + $0xe8] sm:$0xff]  }
  0x67   :  { %2650 = vmatprep.mubr.bf16.mxu1 %v3704_v6  ;;  %2778 = vmatprep.mubr.bf16.mxu0 %v1377_v54  ;;  %v3076_v54 = vld [vmem:[%s4049_s4 + $0xc8] sm:$0xff]  }
  0x69   :  { %2665 = vmatpush3.bf16.msra.mxu1 %v3068_v14  ;;  %2793 = vmatpush3.bf16.msra.mxu0 %v3067_v32  ;;  %v3074_v14 = vld [vmem:[%s4049_s4 + $0xc0] sm:$0xff]   ;;  %v3749_v32 = vpack.c.bf16 %v3505_v16, %v3490_v48  ;;  %v752_v48 = vrot.slane %v246_v44, 1  ;;  %v3078_v16 = vld [vmem:[%s4049_s4 + $0xd0] sm:$0xff]  }
  0x6a   :  { %2666 = vmatprep.subr.bf16.mxu1 %v3070_v23  ;;  %2794 = vmatprep.subr.bf16.mxu0 %v3069_v47 }
  0x6c   :  { %2651 = vmatmul.mubr.bf16.gmra.mrb[12].mxu1 %v3728_v22  ;;  %2779 = vmatmul.mubr.bf16.gmra.mrb[12].mxu0 %v1378_v28  ;;  %v3083_v28 = vld [vmem:[%s4049_s4 + $0x1e8] sm:$0xff]  }
  0x6d   :  { %2667 = vmatpush3.bf16.msra.mxu1 %v3070_v23  ;;  %2795 = vmatpush3.bf16.msra.mxu0 %v3069_v47  ;;  %v3760_v23 = vpack.c.bf16 %v3531_v7, %v3508_v61  ;;  %v3077_v61 = vld [vmem:[%s4049_s4 + $0x1d0] sm:$0xff]   ;;  %v3774_v7 = vpack.c.bf16 %v3589_v62, %v3534_v8  ;;  %v3080_v47 = vld [vmem:[%s4049_s4 + $0xd8] sm:$0xff]   ;;  %v3082_v62 = vld [vmem:[%s4049_s4 + $0xe0] sm:$0xff]  }
  0x6e   :  { %2668 = vmatprep.subr.bf16.mxu1 %v3072_v53  ;;  %2796 = vmatprep.subr.bf16.mxu0 %v3071_v10 }
  0x6f   :  { %2670 = vmatprep.mubr.bf16.mxu1 %v791_v45  ;;  %2798 = vmatprep.mubr.bf16.mxu0 %v3544_v26  ;;  %v753_v26 = vsel %vm726_vm1, %v727_v11, %v752_v48  ;;  %v3081_v11 = vld [vmem:[%s4049_s4 + $0x1e0] sm:$0xff]  }
  0x70   :  { %v795_v8 = vpack.c.bf16 %v3615_v21, %v753_v26  ;;  %v3796_v21 = vpack.c.bf16 %v3666_v29, %v3618_v34  ;;  %v3086_v34 = vld [vmem:[%s4049_s4 + $0xf0] sm:$0xff]  }
  0x71   :  { %2669 = vmatpush3.bf16.msra.mxu1 %v3072_v53  ;;  %2797 = vmatpush3.bf16.msra.mxu0 %v3071_v10  ;;  %v3806_v53 = vpack.c.bf16 %v3689_v43, %v3669_v49  ;;  %v3085_v29 = vld [vmem:[%s4049_s4 + $0x1f0] sm:$0xff]   ;;  %v3820_v49 = vpack.c.bf16 %v3720_v24, %v3692_v13  ;;  %v3088_v43 = vld [vmem:[%s4049_s4 + $0xf8] sm:$0xff]   ;;  %v990_v13 = vpack.c.bf16 %v3524_v4, %v3520_v1 }
  0x72   :  { %2686 = vmatprep.subr.bf16.mxu1 %v3074_v14  ;;  %2814 = vmatprep.subr.bf16.mxu0 %v3073_v15  ;;  %v1749_v1 = vpack.c.bf16 %v3706_v51, %v3335_v19  ;;  %v993_v4 = vpack.c.bf16 %v3652_v46, %v3608_v59  ;;  %v3093_v19 = vld [vmem:[%s4049_s4 + $0x220] sm:$0xff]  }
  0x74   :  { %2671 = vmatmul.mubr.bf16.vlgmr.msra.gmra.mrb[0].mxu1 %v3749_v32  ;;  %2799 = vmatmul.mubr.bf16.vlgmr.msra.gmra.mrb[0].mxu0 %v3550_v30  ;;  %v1569_v30 = vpack.c.bf16 %v3419_v60, %v3568_v41  ;;  %v1750_v41 = vpack.c.bf16 %v3706_v51, %v3427_v63  ;;  %v4054_v63 = vpack.c.bf16 %v3631_v38, %v3626_v31 }
  0x75   :  { %2687 = vmatpush3.bf16.msra.mxu1 %v3074_v14  ;;  %2815 = vmatpush3.bf16.msra.mxu0 %v3073_v15 }
  0x76   :  { %2688 = vmatprep.subr.bf16.mxu1 %v3076_v54  ;;  %2816 = vmatprep.subr.bf16.mxu0 %v3075_v57 }
  0x77   :  { %2674 = vmatprep.mubr.bf16.mxu1 %v3760_v23  ;;  %2802 = vmatprep.mubr.bf16.mxu0 %v3596_v20  ;;  %v3079_v20 = vld [vmem:[%s4049_s4 + $0x1d8] sm:$0xff]  }
  0x79   :  { %2689 = vmatpush3.bf16.msra.mxu1 %v3076_v54  ;;  %2817 = vmatpush3.bf16.msra.mxu0 %v3075_v57 }
  0x7a   :  { %2690 = vmatprep.subr.bf16.mxu1 %v3078_v16  ;;  %2818 = vmatprep.subr.bf16.mxu0 %v3077_v61 }
  0x7c   :  { %2675 = vmatmul.mubr.bf16.gmra.mrb[4].mxu1 %v3774_v7  ;;  %2803 = vmatmul.mubr.bf16.gmra.mrb[4].mxu0 %v1569_v30 }
  0x7d   :  { %2691 = vmatpush3.bf16.msra.mxu1 %v3078_v16  ;;  %2819 = vmatpush3.bf16.msra.mxu0 %v3077_v61 }
  0x7e   :  { %2692 = vmatprep.subr.bf16.mxu1 %v3080_v47  ;;  %2820 = vmatprep.subr.bf16.mxu0 %v3079_v20 }
  0x7f   :  { %2678 = vmatprep.mubr.bf16.mxu1 %v795_v8  ;;  %2806 = vmatprep.mubr.bf16.mxu0 %v3676_v0  ;;  %v1570_v0 = vpack.c.bf16 %v3419_v60, %v3586_v55  ;;  %v3089_v60 = vld [vmem:[%s4049_s4 + $0x200] sm:$0xff]  }
  0x81   :  { %2693 = vmatpush3.bf16.msra.mxu1 %v3080_v47  ;;  %2821 = vmatpush3.bf16.msra.mxu0 %v3079_v20 }
  0x82   :  { %2694 = vmatprep.subr.bf16.mxu1 %v3082_v62  ;;  %2822 = vmatprep.subr.bf16.mxu0 %v3081_v11 }
  0x84   :  { %2679 = vmatmul.mubr.bf16.gmra.mrb[8].mxu1 %v3796_v21  ;;  %2807 = vmatmul.mubr.bf16.gmra.mrb[8].mxu0 %v3704_v6  ;;  %v3087_v6 = vld [vmem:[%s4049_s4 + $0x1f8] sm:$0xff]  }
  0x85   :  { %2695 = vmatpush3.bf16.msra.mxu1 %v3082_v62  ;;  %2823 = vmatpush3.bf16.msra.mxu0 %v3081_v11  ;;  %v2129_v62 = vld [vmem:[%s4050_s5 + $0x50] sm:$0xff] }
  0x86   :  { %2696 = vmatprep.subr.bf16.mxu1 %v3084_v50  ;;  %2824 = vmatprep.subr.bf16.mxu0 %v3083_v28 }
  0x87   :  { %2682 = vmatprep.mubr.bf16.mxu1 %v3806_v53  ;;  %2810 = vmatprep.mubr.bf16.mxu0 %v3728_v22  ;;  %v989_v22 = vpack.c.bf16 %v3501_v58, %v3474_v40  ;;  %v3090_v40 = vld [vmem:[%s4049_s4 + $0x208] sm:$0xff]   ;;  %v991_v58 = vpack.c.bf16 %v3573_v42, %v3528_v5  ;;  %v4053_v42 = vpack.c.bf16 %v3586_v55, %v3581_v52 }
  0x88   :  { %v3094_v5 = vld [vmem:[%s4049_s4 + $0x228] sm:$0xff]  }
  0x89   :  { %2697 = vmatpush3.bf16.msra.mxu1 %v3084_v50  ;;  %2825 = vmatpush3.bf16.msra.mxu0 %v3083_v28 }
  0x8a   :  { %2698 = vmatprep.subr.bf16.mxu1 %v3086_v34  ;;  %2826 = vmatprep.subr.bf16.mxu0 %v3085_v29 }
  0x8c   :  { %2683 = vmatmul.mubr.bf16.gmra.mrb[12].mxu1 %v3820_v49  ;;  %2811 = vmatmul.mubr.bf16.gmra.mrb[12].mxu0 %v1570_v0 }
  0x8d   :  { %2699 = vmatpush3.bf16.msra.mxu1 %v3086_v34  ;;  %2827 = vmatpush3.bf16.msra.mxu0 %v3085_v29 }
  0x8e   :  { %2700 = vmatprep.subr.bf16.mxu1 %v3088_v43  ;;  %2828 = vmatprep.subr.bf16.mxu0 %v3087_v6 }
  0x8f   :  { %2702 = vmatprep.mubr.bf16.mxu1 %v989_v22  ;;  %2830 = vmatprep.mubr.bf16.mxu0 %v3346_v25  ;;  %v3091_v25 = vld [vmem:[%s4049_s4 + $0x210] sm:$0xff]  }
  0x91   :  { %2701 = vmatpush3.bf16.msra.mxu1 %v3088_v43  ;;  %2829 = vmatpush3.bf16.msra.mxu0 %v3087_v6  ;;  %v2130_v6 = vld [vmem:[%s4050_s5 + $0x58] sm:$0xff] }
  0x92   :  { %2878 = vmatprep.subr.bf16.mxu1 %v3089_v60  ;;  %2846 = vmatprep.subr.bf16.mxu0 %v3089_v60 }
  0x94   :  { %2703 = vmatmul.mubr.bf16.vlgmr.msra.gmra.mrb[0].mxu1 %v990_v13  ;;  %2831 = vmatmul.mubr.bf16.vlgmr.msra.gmra.mrb[0].mxu0 %v3360_v33  ;;  %v3092_v33 = vld [vmem:[%s4049_s4 + $0x218] sm:$0xff]  }
  0x95   :  { %2886 = vmatpush3.bf16.msra.mxu1 %v3089_v60  ;;  %2847 = vmatpush3.bf16.msra.mxu0 %v3089_v60 }
  0x96   :  { %2879 = vmatprep.subr.bf16.mxu1 %v3090_v40  ;;  %2848 = vmatprep.subr.bf16.mxu0 %v3090_v40 }
  0x97   :  { %2706 = vmatprep.mubr.bf16.mxu1 %v991_v58  ;;  %2834 = vmatprep.mubr.bf16.mxu0 %v3367_v35  ;;  %v994_v35 = vpack.c.bf16 %v3680_v27, %v3656_v36 }
  0x99   :  { %2887 = vmatpush3.bf16.msra.mxu1 %v3090_v40  ;;  %2849 = vmatpush3.bf16.msra.mxu0 %v3090_v40  ;;  %v2122_v40 = vld [vmem:[%s4050_s5 + $0x18] sm:$0xff] }
  0x9a   :  { %2880 = vmatprep.subr.bf16.mxu1 %v3091_v25  ;;  %2850 = vmatprep.subr.bf16.mxu0 %v3091_v25 }
  0x9c   :  { %2707 = vmatmul.mubr.bf16.gmra.mrb[4].mxu1 %v992_v12  ;;  %2835 = vmatmul.mubr.bf16.gmra.mrb[4].mxu0 %v1749_v1  ;;  %v2128_v1 = vld [vmem:[%s4050_s5 + $0x48] sm:$0xff] }
  0x9d   :  { %2888 = vmatpush3.bf16.msra.mxu1 %v3091_v25  ;;  %2851 = vmatpush3.bf16.msra.mxu0 %v3091_v25 }
  0x9e   :  { %2881 = vmatprep.subr.bf16.mxu1 %v3092_v33  ;;  %2852 = vmatprep.subr.bf16.mxu0 %v3092_v33 }
  0x9f   :  { %2710 = vmatprep.mubr.bf16.mxu1 %v993_v4  ;;  %2838 = vmatprep.mubr.bf16.mxu0 %v3434_v3  ;;  %v3095_v3 = vld [vmem:[%s4049_s4 + $0x230] sm:$0xff]  }
  0xa1   :  { %2889 = vmatpush3.bf16.msra.mxu1 %v3092_v33  ;;  %2853 = vmatpush3.bf16.msra.mxu0 %v3092_v33 }
  0xa2   :  { %2882 = vmatprep.subr.bf16.mxu1 %v3093_v19  ;;  %2854 = vmatprep.subr.bf16.mxu0 %v3093_v19 }
  0xa4   :  { %2711 = vmatmul.mubr.bf16.gmra.mrb[8].mxu1 %v994_v35  ;;  %2839 = vmatmul.mubr.bf16.gmra.mrb[8].mxu0 %v3446_v9  ;;  %v3096_v9 = vld [vmem:[%s4049_s4 + $0x238] sm:$0xff]  }
  0xa5   :  { %2890 = vmatpush3.bf16.msra.mxu1 %v3093_v19  ;;  %2855 = vmatpush3.bf16.msra.mxu0 %v3093_v19 }
  0xa6   :  { %2883 = vmatprep.subr.bf16.mxu1 %v3094_v5  ;;  %2856 = vmatprep.subr.bf16.mxu0 %v3094_v5 }
  0xa7   :  { %2714 = vmatprep.mubr.bf16.mxu1 %v995_v37  ;;  %2842 = vmatprep.mubr.bf16.mxu0 %v3470_v39  ;;  %v4055_v39 = vpack.c.bf16 %v3622_v17, %v3604_v56 }
  0xa9   :  { %2891 = vmatpush3.bf16.msra.mxu1 %v3094_v5  ;;  %2857 = vmatpush3.bf16.msra.mxu0 %v3094_v5  ;;  %v2120_v5 = vld [vmem:[%s4050_s5 + $0x8] sm:$0xff] }
  0xaa   :  { %2884 = vmatprep.subr.bf16.mxu1 %v3095_v3  ;;  %2858 = vmatprep.subr.bf16.mxu0 %v3095_v3 }
  0xac   :  { %2715 = vmatmul.mubr.bf16.gmra.mrb[12].mxu1 %v4053_v42  ;;  %2843 = vmatmul.mubr.bf16.gmra.mrb[12].mxu0 %v1750_v41 }
  0xad   :  { %2892 = vmatpush3.bf16.msra.mxu1 %v3095_v3  ;;  %2859 = vmatpush3.bf16.msra.mxu0 %v3095_v3 }
  0xae   :  { %2885 = vmatprep.subr.bf16.mxu1 %v3096_v9  ;;  %2860 = vmatprep.subr.bf16.mxu0 %v3096_v9 }
  0xaf   :  { %2862 = vmatprep.mubr.bf16.mxu0 %v3749_v32  ;;  %2870 = vmatprep.mubr.bf16.mxu1 %v3796_v21  ;;  %v2121_v21 = vld [vmem:[%s4050_s5 + $0x10] sm:$0xff] }
  0xb1   :  { %2893 = vmatpush3.bf16.msra.mxu1 %v3096_v9  ;;  %2861 = vmatpush3.bf16.msra.mxu0 %v3096_v9 }
  0xb4   :  { %2871 = vmatmul.mubr.bf16.vlgmr.msra.gmra.mrb[16].mxu1 %v3806_v53  ;;  %2863 = vmatmul.mubr.bf16.vlgmr.msra.gmra.mrb[0].mxu0 %v3760_v23  ;;  %v2127_v53 = vld [vmem:[%s4050_s5 + $0x40] sm:$0xff] }
  0xb5   :  { %2874 = vmatprep.mubr.bf16.mxu1 %v3820_v49  ;;  %2866 = vmatprep.mubr.bf16.mxu0 %v3774_v7  ;;  %v2119_v49 = vld [vmem:[%s4050_s5] sm:$0xff] }
  0xbc   :  { %2875 = vmatmul.mubr.bf16.gmra.mrb[20].mxu1 %v4054_v63  ;;  %2867 = vmatmul.mubr.bf16.gmra.mrb[4].mxu0 %v4055_v39 }
 0x167   :  { %v2704_v12 = vpop.f32.mrb[0].mxu1 }
 0x168   :  { %v1096_v52 = vpop.f32.mrb[1].mxu1 }
 0x169   :  { %v2705_v55 = vpop.f32.mrb[2].mxu1 }
 0x16a   :  { %v1099_v59 = vpop.f32.mrb[3].mxu1 }
 0x16f   :  { %v3895_v46 = vpop.f32.mrb[4].mxu1 }
 0x170   :  { %v3897_v36 = vpop.f32.mrb[5].mxu1 }
 0x171   :  { %v3899_v27 = vpop.f32.mrb[6].mxu1 }
 0x172   :  { %v3901_v18 = vpop.f32.mrb[7].mxu1 }
 0x177   :  { %v2712_v51 = vpop.f32.mrb[8].mxu1  ;;  %v2840_v2 = vpop.f32.mrb[8].mxu0 }
 0x178   :  { %v1128_v31 = vpop.f32.mrb[9].mxu1  ;;  %v2902_v38 = vadd.f32 %v2840_v2, %v2712_v51  ;;  %v1882_v24 = vpop.f32.mrb[9].mxu0 }
 0x179   :  { %v2713_v10 = vpop.f32.mrb[10].mxu1  ;;  %v2904_v56 = vadd.f32 %v1882_v24, %v1128_v31  ;;  %v2841_v17 = vpop.f32.mrb[10].mxu0  ;;  %v2125_v31 = vld [vmem:[%s4050_s5 + $0x30] sm:$0xff] }
 0x17a   :  { %v1131_v45 = vpop.f32.mrb[11].mxu1  ;;  %v2906_v14 = vadd.f32 %v2841_v17, %v2713_v10  ;;  %v1885_v15 = vpop.f32.mrb[11].mxu0  ;;  %v2131_v10 = vld [vmem:[%s4050_s5 + $0x60] sm:$0xff] }
 0x17b   :  { %v2908_v32 = vadd.f32 %v1885_v15, %v1131_v45 }
 0x17f   :  { %v2716_v44 = vpop.f32.mrb[12].mxu1  ;;  %v2844_v54 = vpop.f32.mrb[12].mxu0 }
 0x180   :  { %v1144_v57 = vpop.f32.mrb[13].mxu1  ;;  %v2910_v23 = vadd.f32 %v2844_v54, %v2716_v44  ;;  %v1898_v48 = vpop.f32.mrb[13].mxu0 }
 0x181   :  { %v2717_v16 = vpop.f32.mrb[14].mxu1  ;;  %v2912_v61 = vadd.f32 %v1898_v48, %v1144_v57  ;;  %v2845_v7 = vpop.f32.mrb[14].mxu0 }
 0x182   :  { %v1147_v26 = vpop.f32.mrb[15].mxu1  ;;  %v3903_v30 = vadd.f32 %v2845_v7, %v2717_v16  ;;  %v1901_v47 = vpop.f32.mrb[15].mxu0  ;;  %v2126_v16 = vld [vmem:[%s4050_s5 + $0x38] sm:$0xff] }
 0x183   :  { %v3905_v20 = vadd.f32 %v1901_v47, %v1147_v26 }
 0x187   :  { %v2872_v8 = vpop.f32.mrb[16].mxu1  ;;  %v2864_v11 = vpop.f32.mrb[0].mxu0 }
 0x188   :  { %v2903_v50 = vadd.f32 %v2902_v38, %v2872_v8  ;;  %v2072_v28 = vpop.f32.mrb[17].mxu1  ;;  %v2894_v34 = vadd.f32 %v2864_v11, %v2704_v12  ;;  %v2040_v29 = vpop.f32.mrb[1].mxu0 }
 0x189   :  { %v2905_v0 = vadd.f32 %v2904_v56, %v2072_v28  ;;  %v2873_v43 = vpop.f32.mrb[18].mxu1  ;;  %v2895_v60 = vadd.f32 %v2040_v29, %v1096_v52  ;;  %v2865_v13 = vpop.f32.mrb[2].mxu0  ;;  %v2133_v52 = vld [vmem:[%s4050_s5 + $0x70] sm:$0xff] }
 0x18a   :  { %v3922_v22 = vadd.f32 %v2903_v50, %v2129_v62  ;;  %v2907_v58 = vadd.f32 %v2906_v14, %v2873_v43  ;;  %v2075_v25 = vpop.f32.mrb[19].mxu1  ;;  %v2137_v33 = vadd.f32 %v2894_v34, %v2121_v21  ;;  %v2896_v19 = vadd.f32 %v2865_v13, %v2705_v55  ;;  %v2043_v35 = vpop.f32.mrb[3].mxu0  ;;  %v2123_v14 = vld [vmem:[%s4050_s5 + $0x20] sm:$0xff] }
 0x18b   :  { %v3930_v4 = vadd.f32 %v2905_v0, %v2127_v53  ;;  %v2909_v37 = vadd.f32 %v2908_v32, %v2075_v25  ;;  %v2135_v3 = vadd.f32 %v2895_v60, %v2119_v49  ;;  %v2897_v9 = vadd.f32 %v2043_v35, %v1099_v59  ;;  %v2132_v0 = vld [vmem:[%s4050_s5 + $0x68] sm:$0xff] }
 0x18c   :  { %2161 = vst [vmem:[%s4051_s6 + $0x50] sm:$0xff] %v3922_v22  ;;  %v3939_v41 = vadd.f32 %v2907_v58, %v2130_v6  ;;  %2153 = vst [vmem:[%s4051_s6 + $0x10] sm:$0xff] %v2137_v33  ;;  %v2138_v42 = vadd.f32 %v2896_v19, %v2122_v40  ;;  %v2190_v56 = vmul.f32 %v2137_v33, %v2137_v33 }
 0x18d   :  { %2159 = vst [vmem:[%s4051_s6 + $0x40] sm:$0xff] %v3930_v4  ;;  %v3948_v63 = vadd.f32 %v2909_v37, %v2128_v1  ;;  %2151 = vst [vmem:[%s4051_s6] sm:$0xff] %v2135_v3  ;;  %v2136_v39 = vadd.f32 %v2897_v9, %v2120_v5  ;;  %v2188_v55 = vmul.f32 %v2135_v3, %v2135_v3 }
 0x18e   :  { %2162 = vst [vmem:[%s4051_s6 + $0x58] sm:$0xff] %v3939_v41  ;;  %2154 = vst [vmem:[%s4051_s6 + $0x18] sm:$0xff] %v2138_v42  ;;  %v2191_v11 = vmul.f32 %v2138_v42, %v2138_v42 }
 0x18f   :  { %2160 = vst [vmem:[%s4051_s6 + $0x48] sm:$0xff] %v3948_v63  ;;  %v2876_v12 = vpop.f32.mrb[20].mxu1  ;;  %2152 = vst [vmem:[%s4051_s6 + $0x8] sm:$0xff] %v2136_v39  ;;  %v2167_v59 = vadd.f32 %v2136_v39, %v2135_v3  ;;  %v2189_v51 = vmul.f32 %v2136_v39, %v2136_v39  ;;  %v2868_v2 = vpop.f32.mrb[4].mxu0  ;;  %v2197_v3 = vmul.f32 %v3948_v63, %v3948_v63 }
 0x190   :  { %v2911_v38 = vadd.f32 %v2910_v23, %v2876_v12  ;;  %v2088_v24 = vpop.f32.mrb[21].mxu1  ;;  %v2898_v17 = vadd.f32 %v2868_v2, %v3895_v46  ;;  %v2056_v45 = vpop.f32.mrb[5].mxu0  ;;  %v2134_v46 = vld [vmem:[%s4050_s5 + $0x78] sm:$0xff]  ;;  %v2198_v39 = vmul.f32 %v3922_v22, %v3922_v22 }
 0x191   :  { %v2913_v15 = vadd.f32 %v2912_v61, %v2088_v24  ;;  %v2877_v32 = vpop.f32.mrb[22].mxu1  ;;  %v2168_v44 = vadd.f32 %v2167_v59, %v2137_v33  ;;  %v2204_v54 = vadd.f32 %v2189_v51, %v2188_v55  ;;  %v2899_v23 = vadd.f32 %v2056_v45, %v3897_v36  ;;  %v2869_v48 = vpop.f32.mrb[6].mxu0 }
 0x192   :  { %v2149_v57 = vadd.f32 %v2911_v38, %v2133_v52  ;;  %v2091_v7 = vpop.f32.mrb[23].mxu1  ;;  %v2141_v26 = vadd.f32 %v2898_v17, %v2125_v31  ;;  %v2900_v61 = vadd.f32 %v2869_v48, %v3899_v27  ;;  %v2915_v8 = vadd.f32 %v3903_v30, %v2877_v32  ;;  %v2059_v62 = vpop.f32.mrb[7].mxu0  ;;  %v2124_v30 = vld [vmem:[%s4050_s5 + $0x28] sm:$0xff] }
 0x193   :  { %v2147_v47 = vadd.f32 %v2913_v15, %v2131_v10  ;;  %v2205_v21 = vadd.f32 %v2204_v54, %v2190_v56  ;;  %v2139_v36 = vadd.f32 %v2899_v23, %v2123_v14  ;;  %v2169_v50 = vadd.f32 %v2168_v44, %v2138_v42 }
 0x194   :  { %2165 = vst [vmem:[%s4051_s6 + $0x70] sm:$0xff] %v2149_v57  ;;  %2157 = vst [vmem:[%s4051_s6 + $0x30] sm:$0xff] %v2141_v26  ;;  %v2142_v27 = vadd.f32 %v2900_v61, %v2126_v16  ;;  %v2150_v28 = vadd.f32 %v2915_v8, %v2134_v46  ;;  %v2901_v49 = vadd.f32 %v2059_v62, %v3901_v18 }
 0x195   :  { %2163 = vst [vmem:[%s4051_s6 + $0x60] sm:$0xff] %v2147_v47  ;;  %2155 = vst [vmem:[%s4051_s6 + $0x20] sm:$0xff] %v2139_v36  ;;  %v2170_v53 = vadd.f32 %v2169_v50, %v2139_v36  ;;  %v2192_v34 = vmul.f32 %v2139_v36, %v2139_v36  ;;  %v2206_v29 = vadd.f32 %v2205_v21, %v2191_v11 }
 0x196   :  { %2158 = vst [vmem:[%s4051_s6 + $0x38] sm:$0xff] %v2142_v27  ;;  %2166 = vst [vmem:[%s4051_s6 + $0x78] sm:$0xff] %v2150_v28  ;;  %v2917_v43 = vadd.f32 %v3905_v20, %v2091_v7  ;;  %v2140_v60 = vadd.f32 %v2901_v49, %v2124_v30  ;;  %v2194_v58 = vmul.f32 %v2141_v26, %v2141_v26 }
 0x197   :  { %v2207_v6 = vadd.f32 %v2206_v29, %v2192_v34  ;;  %v2195_v33 = vmul.f32 %v2142_v27, %v2142_v27  ;;  %v2196_v20 = vmul.f32 %v3930_v4, %v3930_v4  ;;  %v2199_v55 = vmul.f32 %v3939_v41, %v3939_v41 }
 0x198   :  { %v2148_v13 = vadd.f32 %v2917_v43, %v2132_v0  ;;  %2156 = vst [vmem:[%s4051_s6 + $0x28] sm:$0xff] %v2140_v60  ;;  %v2171_v18 = vadd.f32 %v2170_v53, %v2140_v60  ;;  %v2193_v40 = vmul.f32 %v2140_v60, %v2140_v60  ;;  %v2202_v56 = vmul.f32 %v2149_v57, %v2149_v57 }
 0x199   :  { %v2203_v45 = vmul.f32 %v2150_v28, %v2150_v28 }
 0x19a   :  { %2164 = vst [vmem:[%s4051_s6 + $0x68] sm:$0xff] %v2148_v13  ;;  %v2172_v25 = vadd.f32 %v2171_v18, %v2141_v26  ;;  %v2208_v1 = vadd.f32 %v2207_v6, %v2193_v40  ;;  %v2201_v24 = vmul.f32 %v2148_v13, %v2148_v13  ;;  %s3126_s6 = smov [#allocation3]  }
 0x19b   :  { %s2236_s29 = sshll.u32 %s3126_s6, 4  ;;  %s2237_s29 = int_to_ptr.vmem [resolvable:$true] %s2236_s29 }
 0x19c   :  { %v2173_v19 = vadd.f32 %v2172_v25, %v2142_v27  ;;  %v2209_v35 = vadd.f32 %v2208_v1, %v2194_v58  ;;  %s3100_s30 = scalar_lea.vmem %s2237_s29, 128  ;;  %p3105_p1 = scmp.lt.s32.totalorder %s2237_s29, %s2237_s29 }
 0x19d   :  { %p3101_p0 = scmp.ne.s32.totalorder %s2237_s29, %s3100_s30  ;;  %p3106_p2 = scmp.lt.s32.totalorder %s3100_s30, %s3100_s30 }
 0x19e   :  { %v2174_v5 = vadd.f32 %v2173_v19, %v3930_v4  ;;  %v2210_v37 = vadd.f32 %v2209_v35, %v2195_v33  ;;  %v2200_v4 = vmul.f32 %v2147_v47, %v2147_v47 }
 0x19f   :  { %p3107_p3 = por %p3106_p2, %p3105_p1 }
 0x1a0   :  { %v2211_v9 = vadd.f32 %v2210_v37, %v2196_v20  ;;  %v2175_v42 = vadd.f32 %v2174_v5, %v3948_v63 }
 0x1a1   :  { %p3108_p4 = pnand %p3107_p3, %p3101_p0 }
 0x1a2   :  { %v2176_v12 = vadd.f32 %v2175_v42, %v3922_v22  ;;  %v2212_v52 = vadd.f32 %v2211_v9, %v2197_v3 }
 0x1a4   :  { %v2177_v59 = vadd.f32 %v2176_v12, %v3939_v41  ;;  %v2213_v51 = vadd.f32 %v2212_v52, %v2198_v39 }
 0x1a6   :  { %v2178_v2 = vadd.f32 %v2177_v59, %v2147_v47  ;;  %v2214_v31 = vadd.f32 %v2213_v51, %v2199_v55 }
 0x1a8   :  { %v2179_v38 = vadd.f32 %v2178_v2, %v2148_v13  ;;  %v2215_v10 = vadd.f32 %v2214_v31, %v2200_v4 }
 0x1aa   :  { %v2180_v63 = vadd.f32 %v2179_v38, %v2149_v57  ;;  %v2216_v17 = vadd.f32 %v2215_v10, %v2201_v24 }
 0x1ac   :  { %v2181_v14 = vadd.f32 %v2180_v63, %v2150_v28  ;;  %v2217_v15 = vadd.f32 %v2216_v17, %v2202_v56 }
 0x1ae   :  { %v2182_v22 = vrot.slane %v2181_v14, 4  ;;  %v2218_v32 = vadd.f32 %v2217_v15, %v2203_v45 }
 0x1b0   :  { %v2183_v44 = vadd.f32 %v2182_v22, %v2181_v14  ;;  %v2219_v54 = vrot.slane %v2218_v32, 4 }
 0x1b2   :  { %v2184_v23 = vrot.slane %v2183_v44, 2  ;;  %v2220_v48 = vadd.f32 %v2219_v54, %v2218_v32 }
 0x1b4   :  { %v2185_v41 = vadd.f32 %v2184_v23, %v2183_v44  ;;  %v2221_v16 = vrot.slane %v2220_v48, 2 }
 0x1b6   :  { %v2186_v46 = vrot.slane %v2185_v41, 1  ;;  %v2222_v7 = vadd.f32 %v2221_v16, %v2220_v48 }
 0x1b8   :  { %v2187_v26 = vadd.f32 %v2186_v46, %v2185_v41  ;;  %v2223_v47 = vrot.slane %v2222_v7, 1 }
 0x1ba   :  { %v2224_v61 = vadd.f32 %v2223_v47, %v2222_v7  ;;  %2226 = vst [vmem:[#allocation3] sm:$0x1] %v2187_v26 }
 0x1bc   :  { %2227 = vst [vmem:[#allocation3 + $0x1] sm:$0x1] %v2224_v61 }
 0x1bd   :  { %3111 = shalt.err (!%p3108_p4)
}
 0x1be   :  { %s3112_s8 = scalar_lea.hbm %s4052_s7, 128 }
 0x1bf   :  { %p3113_p5 = scmp.ne.s32.totalorder %s4052_s7, %s3112_s8  ;;  %p3116_p6 = scmp.lt.u32.totalorder %s3112_s8, %s4052_s7 }
 0x1c1   :  { %p3118_p7 = pnand %p3116_p6, %p3113_p5 }
 0x1c3   :  { %3121 = shalt.err (!%p3118_p7)
}
 0x1c4   :  { %2239 = dma.vmem_to_hbm [thread:$0]  %s2237_s29, 128, %s4052_s7, [#allocation4]  }
 0x1c5   :  { %3122 = dma.done.wait [#allocation4], 128  }
 0x1c6   :  { %3123 = vsyncadd [#allocation4], 4294967168 }
 0x1c7   :  { %2245 = vsyncpa [#allocation4], 1 }

</bundles_post_ra>
